<compile_context>
chip_gen: v5e
topology: v5e:2x2
jax: 0.10.0
libtpu: 0.0.40
codegen_flags: <defaults>
</compile_context>

<pallas_src>
import jax
import jax.numpy as jnp
from jax import lax
from jax.experimental import pallas as pl
from jax.experimental.pallas import tpu as pltpu


def example_code_kernel(x_ref, mm_ref, w_ref, b_ref, o_ref):
    # x_ref:  (TB, D)  input tile
    # mm_ref: (D, D)   mm_param                    (resident)
    # w_ref:  (D, D)   lin weight, PyTorch (out,in) layout (resident)
    # b_ref:  (1, D)   lin bias                    (resident)
    # o_ref:  (TB, D)  output tile
    x = x_ref[...] + 1.0                                   # x + torch.ones(B, D), f32 on VPU

    # relu(x @ mm_param): bf16 MXU inputs, f32 accumulation.
    h = jnp.dot(
        x.astype(jnp.bfloat16),
        mm_ref[...].astype(jnp.bfloat16),
        preferred_element_type=jnp.float32,
    )
    h = jnp.maximum(h, 0.0)

    # relu(h @ W.T + b): contract h's dim 1 against W's "in" dim (dim 1) directly,
    # so no wrapper-side transpose / extra HBM pass over the weight is needed.
    y = lax.dot_general(
        h.astype(jnp.bfloat16),
        w_ref[...].astype(jnp.bfloat16),
        dimension_numbers=(((1,), (1,)), ((), ())),
        preferred_element_type=jnp.float32,
    )
    y = y + b_ref[...]                                     # broadcast bias, f32
    o_ref[...] = jnp.maximum(y, 0.0).astype(o_ref.dtype)   # relu


def _num_tensorcores() -> int:
    """TensorCores per chip: v7x (and v4/v5p megacore) expose 2; v5e/v6e expose 1."""
    try:
        kind = jax.devices()[0].device_kind.lower()
    except Exception:
        return 1
    if any(tag in kind for tag in ("v7", "7x", "v4", "v5p")):
        return 2
    return 1


def _pick_batch_tile(B: int) -> int:
    """Largest batch tile that (a) divides B, (b) caps VMEM growth, and
    (c) leaves >= num_tensorcores parallel grid steps for multi-core chips."""
    tb = min(B, 512)
    n_tc = _num_tensorcores()
    if n_tc > 1:
        tb = min(tb, max(B // n_tc, 8))
    while tb > 8 and B % tb != 0:
        tb //= 2
    # NOTE: arbitrary batch sizes would need pl.cdiv + a masked tail (or padding).
    assert B % tb == 0, "batch must be divisible by the chosen tile"
    return tb


@jax.jit
def example_code_forward(x, mm_param, lin_w, lin_b):
    B, D = x.shape
    assert mm_param.shape == (D, D)
    assert lin_w.shape == (D, D) and lin_b.shape == (D,)

    tb = _pick_batch_tile(B)
    b2 = lin_b.reshape(1, D)  # 2-D for clean VMEM tiling; fuses under jit

    flops = 4 * B * D * D                                  # two (B,D)x(D,D) matmuls
    bytes_accessed = 4 * (2 * B * D + 2 * D * D + D)       # f32 in/out + weights + bias

    grid = (B // tb,)
    return pl.pallas_call(
        example_code_kernel,
        out_shape=jax.ShapeDtypeStruct((B, D), x.dtype),
        grid_spec=pltpu.PrefetchScalarGridSpec(
            num_scalar_prefetch=0,
            grid=grid,
            in_specs=[
                pl.BlockSpec((tb, D), lambda i: (i, 0)),   # x tile (pipelined)
                pl.BlockSpec((D, D), lambda i: (0, 0)),    # mm_param (resident)
                pl.BlockSpec((D, D), lambda i: (0, 0)),    # lin weight, (out,in) (resident)
                pl.BlockSpec((1, D), lambda i: (0, 0)),    # bias (resident)
            ],
            out_specs=pl.BlockSpec((tb, D), lambda i: (i, 0)),
        ),
        compiler_params=pltpu.CompilerParams(
            dimension_semantics=("parallel",),
        ),
        cost_estimate=pl.CostEstimate(
            flops=flops, transcendentals=0, bytes_accessed=bytes_accessed
        ),
    )(x, mm_param, lin_w, b2)


def reference_forward(x, mm_param, lin_w, lin_b):
    # Pure-f32 reference matching the PyTorch forward exactly.
    h = jnp.maximum((x + jnp.ones_like(x)) @ mm_param, 0.0)
    return jnp.maximum(h @ lin_w.T + lin_b, 0.0)


if __name__ == "__main__":
    # Shapes from the module spec: batch_size=256, d_hid=512 (small for TPU).
    batch_size = 256
    d_hid = 512

    key = jax.random.PRNGKey(0)
    k_x, k_mm, k_w, k_b = jax.random.split(key, 4)

    x = jax.random.normal(k_x, (batch_size, d_hid), dtype=jnp.float32)
    # torch.randn analogue for mm_param; nn.Linear default init analogue for lin.
    mm_param = jax.random.normal(k_mm, (d_hid, d_hid), dtype=jnp.float32)
    bound = d_hid ** -0.5
    lin_w = jax.random.uniform(k_w, (d_hid, d_hid), jnp.float32, -bound, bound)
    lin_b = jax.random.uniform(k_b, (d_hid,), jnp.float32, -bound, bound)

    out = jax.block_until_ready(example_code_forward(x, mm_param, lin_w, lin_b))
    ref = reference_forward(x, mm_param, lin_w, lin_b)

    assert out.shape == (batch_size, d_hid)
    # bf16 MXU inputs (f32 accumulation) => compare with a bf16-appropriate tolerance.
    err = float(jnp.max(jnp.abs(out - ref)))
    scale = float(jnp.max(jnp.abs(ref)))
    assert err <= 3e-2 * scale + 1e-2, f"mismatch vs reference: max_err={err}, scale={scale}"

    # TODO(synk): pipe_split() is a pipeline-parallelism stage marker with no
    # single-kernel equivalent; the whole forward is fused into one kernel.
    print("KERNEL_OK")
</pallas_src>

<mosaic_0001>
module attributes {stable_mosaic.version = 11 : i64} {
  func.func @example_code_kernel(%arg0: i32, %arg1: memref<256x512xf32, #tpu.memory_space<vmem>>, %arg2: memref<512x512xf32, #tpu.memory_space<vmem>>, %arg3: memref<512x512xf32, #tpu.memory_space<vmem>>, %arg4: memref<1x512xf32, #tpu.memory_space<vmem>>, %arg5: memref<256x512xf32, #tpu.memory_space<vmem>>) attributes {dimension_semantics = [#tpu.dimension_semantics<parallel>], iteration_bounds = array<i64: 1>, scalar_prefetch = 0 : i64, scratch_operands = 0 : i64, tpu.core_type = #tpu.core_type<tc>, window_params = [{transform_indices = @transform_0, window_bounds = array<i64: 256, 512>}, {pipeline_mode = #tpu.pipeline_mode<synchronous>, transform_indices = @transform_1, window_bounds = array<i64: 512, 512>}, {pipeline_mode = #tpu.pipeline_mode<synchronous>, transform_indices = @transform_2, window_bounds = array<i64: 512, 512>}, {pipeline_mode = #tpu.pipeline_mode<synchronous>, transform_indices = @transform_3, window_bounds = array<i64: 1, 512>}, {transform_indices = @transform_4, window_bounds = array<i64: 256, 512>}]} {
    %c0 = arith.constant 0 : index
    %c0_0 = arith.constant 0 : index
    %0 = vector.load %arg1[%c0, %c0_0] : memref<256x512xf32, #tpu.memory_space<vmem>>, vector<256x512xf32>
    %cst = arith.constant 1.000000e+00 : f32
    %1 = vector.broadcast %cst : f32 to vector<256x512xf32>
    %2 = arith.addf %0, %1 : vector<256x512xf32>
    %3 = arith.truncf %2 : vector<256x512xf32> to vector<256x512xbf16>
    %c0_1 = arith.constant 0 : index
    %c0_2 = arith.constant 0 : index
    %4 = vector.load %arg2[%c0_1, %c0_2] : memref<512x512xf32, #tpu.memory_space<vmem>>, vector<512x512xf32>
    %5 = arith.truncf %4 : vector<512x512xf32> to vector<512x512xbf16>
    %cst_3 = arith.constant dense<0.000000e+00> : vector<256x512xf32>
    %6 = tpu.matmul %3, %5, %cst_3 {dimension_numbers = #tpu.dot_dimension_numbers<[1], [0], [0], [1], [0, 0, 1, 1], [], []>} : vector<256x512xbf16>, vector<512x512xbf16>, vector<256x512xf32> -> vector<256x512xf32>
    %cst_4 = arith.constant 0.000000e+00 : f32
    %7 = vector.broadcast %cst_4 : f32 to vector<256x512xf32>
    %8 = arith.maximumf %6, %7 : vector<256x512xf32>
    %9 = arith.truncf %8 : vector<256x512xf32> to vector<256x512xbf16>
    %c0_5 = arith.constant 0 : index
    %c0_6 = arith.constant 0 : index
    %10 = vector.load %arg3[%c0_5, %c0_6] : memref<512x512xf32, #tpu.memory_space<vmem>>, vector<512x512xf32>
    %11 = arith.truncf %10 : vector<512x512xf32> to vector<512x512xbf16>
    %cst_7 = arith.constant dense<0.000000e+00> : vector<256x512xf32>
    %12 = tpu.matmul %9, %11, %cst_7 {dimension_numbers = #tpu.dot_dimension_numbers<[1], [1], [0], [0], [0, 0, 1, 0], [], []>} : vector<256x512xbf16>, vector<512x512xbf16>, vector<256x512xf32> -> vector<256x512xf32>
    %c0_8 = arith.constant 0 : index
    %c0_9 = arith.constant 0 : index
    %13 = vector.load %arg4[%c0_8, %c0_9] : memref<1x512xf32, #tpu.memory_space<vmem>>, vector<1x512xf32>
    %14 = vector.broadcast %13 : vector<1x512xf32> to vector<256x512xf32>
    %15 = arith.addf %12, %14 : vector<256x512xf32>
    %cst_10 = arith.constant 0.000000e+00 : f32
    %16 = vector.broadcast %cst_10 : f32 to vector<256x512xf32>
    %17 = arith.maximumf %15, %16 : vector<256x512xf32>
    %c0_11 = arith.constant 0 : index
    %c0_12 = arith.constant 0 : index
    %18 = vector.load %arg5[%c0_11, %c0_12] : memref<256x512xf32, #tpu.memory_space<vmem>>, vector<256x512xf32>
    tpu.vector_store %arg5[%c0_11, %c0_12], %17 {strides = array<i32>} : memref<256x512xf32, #tpu.memory_space<vmem>>, vector<256x512xf32>,
    return
  }
  func.func @transform_0(%arg0: i32) -> (i32, i32) {
    %c0_i32 = arith.constant 0 : i32
    %c0_i32_0 = arith.constant 0 : i32
    return %arg0, %c0_i32 : i32, i32
  }
  func.func @transform_1(%arg0: i32) -> (i32, i32) {
    %c0_i32 = arith.constant 0 : i32
    %c0_i32_0 = arith.constant 0 : i32
    %c0_i32_1 = arith.constant 0 : i32
    return %c0_i32, %c0_i32_0 : i32, i32
  }
  func.func @transform_2(%arg0: i32) -> (i32, i32) {
    %c0_i32 = arith.constant 0 : i32
    %c0_i32_0 = arith.constant 0 : i32
    %c0_i32_1 = arith.constant 0 : i32
    return %c0_i32, %c0_i32_0 : i32, i32
  }
  func.func @transform_3(%arg0: i32) -> (i32, i32) {
    %c0_i32 = arith.constant 0 : i32
    %c0_i32_0 = arith.constant 0 : i32
    %c0_i32_1 = arith.constant 0 : i32
    return %c0_i32, %c0_i32_0 : i32, i32
  }
  func.func @transform_4(%arg0: i32) -> (i32, i32) {
    %c0_i32 = arith.constant 0 : i32
    %c0_i32_0 = arith.constant 0 : i32
    return %arg0, %c0_i32 : i32, i32
  }
}

</mosaic_0001>

<bundles_post_ra>
// kernel: example_code_forward.1
= control target key start
LH: loop header
LB: loop body
LE: loop exit
PB: predicated region body
PF: predicated region fallthrough
CT: control target
= control target key end

     0   :  { %9 = vsyncpa [#allocation3], 0  ;;  %s5598_s0 = inlined_call_operand.hbm [shape: f32[256,512], index: 0, kind: input, shape index: {}]   ;;  %s5599_s1 = inlined_call_operand.hbm [shape: f32[512,512], index: 1, kind: input, shape index: {}]   ;;  %s5600_s2 = inlined_call_operand.hbm [shape: f32[512,512], index: 2, kind: input, shape index: {}]   ;;  %s5601_s3 = inlined_call_operand.hbm [shape: f32[1,512], index: 3, kind: input, shape index: {}]   ;;  %s5602_s4 = inlined_call_operand.hbm [shape: f32[256,512], index: 4, kind: output, shape index: {}]  }
   0x1   :  { %10 = vsyncpa [#allocation6], 0 }
   0x2   :  { %11 = vsyncpa [#allocation9], 0 }
   0x3   :  { %12 = vsyncpa [#allocation4], 0  ;;  %s30_s17 = sshll.u32 %s5599_s1, 4  ;;  %s4631_s18 = smov [#allocation5]   ;;  %s31_s17 = int_to_ptr.hbm [resolvable:$true] %s30_s17 }
   0x4   :  { %s32_s19 = sshll.u32 %s4631_s18, 4  ;;  %s17_s22 = sshll.u32 %s5598_s0, 4  ;;  %s33_s19 = int_to_ptr.vmem [resolvable:$true] %s32_s19  ;;  %s18_s22 = int_to_ptr.hbm [resolvable:$true] %s17_s22 }
   0x5   :  { %s4632_s23 = smov 512   ;;  %s4633_s24 = smov 32  }
   0x6   :  { %38 = dma.hbm_to_vmem [thread:$0]  %s31_s17, 32768, %s33_s19, [#allocation6], %s4632_s23, %s4632_s23, %s4633_s24  }
   0x7   :  { %s4634_s25 = smov [#allocation2]   ;;  %s43_s1 = sshll.u32 %s5600_s2, 4  ;;  %s44_s1 = int_to_ptr.hbm [resolvable:$true] %s43_s1 }
   0x8   :  { %s19_s26 = sshll.u32 %s4634_s25, 4  ;;  %s57_s30 = sshll.u32 %s5601_s3, 4  ;;  %s20_s26 = int_to_ptr.vmem [resolvable:$true] %s19_s26  ;;  %s58_s30 = int_to_ptr.hbm [resolvable:$true] %s57_s30 }
   0x9   :  { %25 = dma.hbm_to_vmem [thread:$0]  %s18_s22, 16384, %s20_s26, [#allocation3], %s4632_s23, %s4632_s23, %s4633_s24  }
   0xa   :  { %s4635_s5 = smov [#allocation7]   ;;  %s4636_s7 = smov [#allocation8]  }
   0xb   :  { %s45_s6 = sshll.u32 %s4635_s5, 4  ;;  %s59_s2 = sshll.u32 %s4636_s7, 4  ;;  %s46_s6 = int_to_ptr.vmem [resolvable:$true] %s45_s6  ;;  %s60_s2 = int_to_ptr.vmem [resolvable:$true] %s59_s2 }
   0xc   :  { %51 = dma.hbm_to_vmem [thread:$0]  %s44_s1, 32768, %s46_s6, [#allocation6], %s4632_s23, %s4632_s23, %s4633_s24  }
   0xd   :  { %62 = dma.hbm_to_vmem [thread:$0]  %s58_s30, 64, %s60_s2, [#allocation9]  }
   0xe   :  { %4623 = dma.done.wait [#allocation3], 16384  }
   0xf   :  { %4624 = vsyncadd [#allocation3], 4294950912 }
  0x10   :  { %4625 = dma.done.wait [#allocation6], 65536  }
  0x11   :  { %4626 = vsyncadd [#allocation6], 4294901760 }
  0x12   :  { %4627 = dma.done.wait [#allocation9], 64  }
  0x13   :  { %4628 = vsyncadd [#allocation9], 4294967232  ;;  %v455_v0 = vld [vmem:[#allocation5 + $0x1c0] sm:$0xff]  ;;  %s4637_s3 = smov [#allocation10]   ;;  %s4479_s11 = sshll.u32 %s5602_s4, 4  ;;  %s4480_s11 = int_to_ptr.hbm [resolvable:$true] %s4479_s11 }
  0x14   :  { %v459_v1 = vld [vmem:[#allocation5 + $0x1e0] sm:$0xff]  ;;  %s4477_s8 = sshll.u32 %s4637_s3, 4  ;;  %s4478_s8 = int_to_ptr.vmem [resolvable:$true] %s4477_s8 }
  0x15   :  { %v519_v2 = vld [vmem:[#allocation5 + $0x3c0] sm:$0xff]  ;;  %v683_v3 = vpack.c.bf16 %v459_v1, %v455_v0 }
  0x16   :  { %v523_v4 = vld [vmem:[#allocation5 + $0x3e0] sm:$0xff] }
  0x17   :  { %v583_v5 = vld [vmem:[#allocation5 + $0x5c0] sm:$0xff]  ;;  %v715_v7 = vpack.c.bf16 %v523_v4, %v519_v2  ;;  %783 = vmatpush.bf16.msra.mxu0 %v683_v3 }
  0x18   :  { %v587_v6 = vld [vmem:[#allocation5 + $0x5e0] sm:$0xff] }
  0x19   :  { %v747_v8 = vpack.c.bf16 %v587_v6, %v583_v5  ;;  %v647_v9 = vld [vmem:[#allocation5 + $0x7c0] sm:$0xff]  ;;  %872 = vmatpush.bf16.msra.mxu1 %v715_v7 }
  0x1a   :  { %v651_v10 = vld [vmem:[#allocation5 + $0x7e0] sm:$0xff] }
  0x1b   :  { %v447_v11 = vld [vmem:[#allocation5 + $0x180] sm:$0xff]  ;;  %v779_v12 = vpack.c.bf16 %v651_v10, %v647_v9  ;;  %961 = vmatpush.bf16.msra.mxu2 %v747_v8 }
  0x1c   :  { %v451_v13 = vld [vmem:[#allocation5 + $0x1a0] sm:$0xff] }
  0x1d   :  { %v511_v14 = vld [vmem:[#allocation5 + $0x380] sm:$0xff]  ;;  %v679_v16 = vpack.c.bf16 %v451_v13, %v447_v11  ;;  %1050 = vmatpush.bf16.msra.mxu3 %v779_v12 }
  0x1e   :  { %v515_v15 = vld [vmem:[#allocation5 + $0x3a0] sm:$0xff] }
  0x1f   :  { %v711_v17 = vpack.c.bf16 %v515_v15, %v511_v14  ;;  %v575_v18 = vld [vmem:[#allocation5 + $0x580] sm:$0xff]  ;;  %784 = vmatpush.bf16.msra.mxu0 %v679_v16 }
  0x20   :  { %v579_v19 = vld [vmem:[#allocation5 + $0x5a0] sm:$0xff] }
  0x21   :  { %v639_v20 = vld [vmem:[#allocation5 + $0x780] sm:$0xff]  ;;  %v743_v21 = vpack.c.bf16 %v579_v19, %v575_v18  ;;  %873 = vmatpush.bf16.msra.mxu1 %v711_v17 }
  0x22   :  { %v643_v22 = vld [vmem:[#allocation5 + $0x7a0] sm:$0xff] }
  0x23   :  { %v439_v23 = vld [vmem:[#allocation5 + $0x140] sm:$0xff]  ;;  %v775_v25 = vpack.c.bf16 %v643_v22, %v639_v20  ;;  %962 = vmatpush.bf16.msra.mxu2 %v743_v21 }
  0x24   :  { %v443_v24 = vld [vmem:[#allocation5 + $0x160] sm:$0xff] }
  0x25   :  { %v503_v26 = vld [vmem:[#allocation5 + $0x340] sm:$0xff]  ;;  %v675_v29 = vpack.c.bf16 %v443_v24, %v439_v23  ;;  %1051 = vmatpush.bf16.msra.mxu3 %v775_v25  ;;  %v80_v25 = vld [vmem:[#allocation2 + $0x8] sm:$0xff] }
  0x26   :  { %v507_v27 = vld [vmem:[#allocation5 + $0x360] sm:$0xff] }
  0x27   :  { %v567_v28 = vld [vmem:[#allocation5 + $0x540] sm:$0xff]  ;;  %v707_v33 = vpack.c.bf16 %v507_v27, %v503_v26  ;;  %785 = vmatpush.bf16.msra.mxu0 %v675_v29  ;;  %v81_v29 = vld [vmem:[#allocation2 + $0x10] sm:$0xff] }
  0x28   :  { %v571_v30 = vld [vmem:[#allocation5 + $0x560] sm:$0xff] }
  0x29   :  { %v631_v31 = vld [vmem:[#allocation5 + $0x740] sm:$0xff]  ;;  %v739_v34 = vpack.c.bf16 %v571_v30, %v567_v28  ;;  %874 = vmatpush.bf16.msra.mxu1 %v707_v33  ;;  %v84_v28 = vld [vmem:[#allocation2 + $0x28] sm:$0xff]  ;;  %v85_v30 = vld [vmem:[#allocation2 + $0x30] sm:$0xff] }
  0x2a   :  { %v635_v32 = vld [vmem:[#allocation5 + $0x760] sm:$0xff]  ;;  %v82_v33 = vld [vmem:[#allocation2 + $0x18] sm:$0xff] }
  0x2b   :  { %v431_v35 = vld [vmem:[#allocation5 + $0x100] sm:$0xff]  ;;  %v771_v38 = vpack.c.bf16 %v635_v32, %v631_v31  ;;  %963 = vmatpush.bf16.msra.mxu2 %v739_v34  ;;  %v86_v34 = vld [vmem:[#allocation2 + $0x38] sm:$0xff] }
  0x2c   :  { %v435_v36 = vld [vmem:[#allocation5 + $0x120] sm:$0xff] }
  0x2d   :  { %v495_v37 = vld [vmem:[#allocation5 + $0x300] sm:$0xff]  ;;  %v671_v44 = vpack.c.bf16 %v435_v36, %v431_v35  ;;  %1052 = vmatpush.bf16.msra.mxu3 %v771_v38 }
  0x2e   :  { %v499_v39 = vld [vmem:[#allocation5 + $0x320] sm:$0xff] }
  0x2f   :  { %v559_v40 = vld [vmem:[#allocation5 + $0x500] sm:$0xff]  ;;  %v703_v45 = vpack.c.bf16 %v499_v39, %v495_v37  ;;  %786 = vmatpush.bf16.msra.mxu0 %v671_v44  ;;  %v584_v39 = vld [vmem:[#allocation5 + $0x5c8] sm:$0xff]  ;;  %v213_v44 = vadd.f32 1.0, %v85_v30 }
  0x30   :  { %v563_v41 = vld [vmem:[#allocation5 + $0x520] sm:$0xff] }
  0x31   :  { %v623_v42 = vld [vmem:[#allocation5 + $0x700] sm:$0xff]  ;;  %v735_v46 = vpack.c.bf16 %v563_v41, %v559_v40  ;;  %875 = vmatpush.bf16.msra.mxu1 %v703_v45  ;;  %v588_v40 = vld [vmem:[#allocation5 + $0x5e8] sm:$0xff]  ;;  %v208_v41 = vadd.f32 1.0, %v80_v25 }
  0x32   :  { %v627_v43 = vld [vmem:[#allocation5 + $0x720] sm:$0xff]  ;;  %v648_v45 = vld [vmem:[#allocation5 + $0x7c8] sm:$0xff] }
  0x33   :  { %v423_v47 = vld [vmem:[#allocation5 + $0xc0] sm:$0xff]  ;;  %v767_v50 = vpack.c.bf16 %v627_v43, %v623_v42  ;;  %964 = vmatpush.bf16.msra.mxu2 %v735_v46  ;;  %v212_v42 = vadd.f32 1.0, %v84_v28  ;;  %v209_v43 = vadd.f32 1.0, %v81_v29  ;;  %v652_v46 = vld [vmem:[#allocation5 + $0x7e8] sm:$0xff] }
  0x34   :  { %v427_v48 = vld [vmem:[#allocation5 + $0xe0] sm:$0xff] }
  0x35   :  { %v487_v49 = vld [vmem:[#allocation5 + $0x2c0] sm:$0xff]  ;;  %v667_v56 = vpack.c.bf16 %v427_v48, %v423_v47  ;;  %1053 = vmatpush.bf16.msra.mxu3 %v767_v50  ;;  %v214_v50 = vadd.f32 1.0, %v86_v34  ;;  %v96_v34 = vld [vmem:[#allocation2 + $0x88] sm:$0xff] }
  0x36   :  { %v491_v51 = vld [vmem:[#allocation5 + $0x2e0] sm:$0xff] }
  0x37   :  { %v551_v52 = vld [vmem:[#allocation5 + $0x4c0] sm:$0xff]  ;;  %v699_v57 = vpack.c.bf16 %v491_v51, %v487_v49  ;;  %787 = vmatpush.bf16.msra.mxu0 %v667_v56  ;;  %v210_v49 = vadd.f32 1.0, %v82_v33  ;;  %v780_v56 = vpack.c.bf16 %v652_v46, %v648_v45 }
  0x38   :  { %v555_v53 = vld [vmem:[#allocation5 + $0x4e0] sm:$0xff] }
  0x39   :  { %v615_v54 = vld [vmem:[#allocation5 + $0x6c0] sm:$0xff]  ;;  %v731_v58 = vpack.c.bf16 %v555_v53, %v551_v52  ;;  %876 = vmatpush.bf16.msra.mxu1 %v699_v57  ;;  %v748_v52 = vpack.c.bf16 %v588_v40, %v584_v39  ;;  %v456_v53 = vld [vmem:[#allocation5 + $0x1c8] sm:$0xff]  ;;  %v102_v39 = vld [vmem:[#allocation2 + $0xb8] sm:$0xff] }
  0x3a   :  { %v619_v55 = vld [vmem:[#allocation5 + $0x6e0] sm:$0xff]  ;;  %v520_v57 = vld [vmem:[#allocation5 + $0x3c8] sm:$0xff] }
  0x3b   :  { %v415_v59 = vld [vmem:[#allocation5 + $0x80] sm:$0xff]  ;;  %v763_v62 = vpack.c.bf16 %v619_v55, %v615_v54  ;;  %965 = vmatpush.bf16.msra.mxu2 %v731_v58  ;;  %v460_v54 = vld [vmem:[#allocation5 + $0x1e8] sm:$0xff] }
  0x3c   :  { %v419_v60 = vld [vmem:[#allocation5 + $0xa0] sm:$0xff]  ;;  %v524_v58 = vld [vmem:[#allocation5 + $0x3e8] sm:$0xff] }
  0x3d   :  { %v479_v61 = vld [vmem:[#allocation5 + $0x280] sm:$0xff]  ;;  %v663_v4 = vpack.c.bf16 %v419_v60, %v415_v59  ;;  %1054 = vmatpush.bf16.msra.mxu3 %v763_v62  ;;  %v4686_v59 = vpack.c.bf16 %v212_v42, %v208_v41  ;;  %v4688_v60 = vpack.c.bf16 %v213_v44, %v209_v43  ;;  %v684_v62 = vpack.c.bf16 %v460_v54, %v456_v53  ;;  %v572_v53 = vld [vmem:[#allocation5 + $0x568] sm:$0xff] }
  0x3e   :  { %v483_v63 = vld [vmem:[#allocation5 + $0x2a0] sm:$0xff]  ;;  %v224_v42 = vadd.f32 1.0, %v96_v34  ;;  %v440_v54 = vld [vmem:[#allocation5 + $0x148] sm:$0xff]  ;;  %v114_v34 = vld [vmem:[#allocation2 + $0x118] sm:$0xff] }
  0x3f   :  { %v543_v0 = vld [vmem:[#allocation5 + $0x480] sm:$0xff]  ;;  %v695_v6 = vpack.c.bf16 %v483_v63, %v479_v61  ;;  %788 = vmatpush.bf16.msra.mxu0 %v663_v4  ;;  %v4690_v61 = vpack.c.bf16 %v214_v50, %v210_v49  ;;  %v716_v63 = vpack.c.bf16 %v524_v58, %v520_v57  ;;  %v452_v4 = vld [vmem:[#allocation5 + $0x1a8] sm:$0xff] }
  0x40   :  { %v547_v1 = vld [vmem:[#allocation5 + $0x4a0] sm:$0xff]  ;;  %v444_v57 = vld [vmem:[#allocation5 + $0x168] sm:$0xff] }
  0x41   :  { %v607_v2 = vld [vmem:[#allocation5 + $0x680] sm:$0xff]  ;;  %v727_v7 = vpack.c.bf16 %v547_v1, %v543_v0  ;;  %877 = vmatpush.bf16.msra.mxu1 %v695_v6  ;;  %v576_v0 = vld [vmem:[#allocation5 + $0x588] sm:$0xff] }
  0x42   :  { %v611_v3 = vld [vmem:[#allocation5 + $0x6a0] sm:$0xff]  ;;  %v580_v1 = vld [vmem:[#allocation5 + $0x5a8] sm:$0xff] }
  0x43   :  { %v407_v5 = vld [vmem:[#allocation5 + $0x40] sm:$0xff]  ;;  %v759_v11 = vpack.c.bf16 %v611_v3, %v607_v2  ;;  %966 = vmatpush.bf16.msra.mxu2 %v727_v7  ;;  %v448_v2 = vld [vmem:[#allocation5 + $0x188] sm:$0xff]  ;;  %v744_v3 = vpack.c.bf16 %v580_v1, %v576_v0 }
  0x44   :  { %v411_v8 = vld [vmem:[#allocation5 + $0x60] sm:$0xff]  ;;  %v644_v6 = vld [vmem:[#allocation5 + $0x7a8] sm:$0xff]  ;;  %v680_v7 = vpack.c.bf16 %v452_v4, %v448_v2 }
  0x45   :  { %v471_v9 = vld [vmem:[#allocation5 + $0x240] sm:$0xff]  ;;  %v659_v18 = vpack.c.bf16 %v411_v8, %v407_v5  ;;  %1055 = vmatpush.bf16.msra.mxu3 %v759_v11  ;;  %v640_v5 = vld [vmem:[#allocation5 + $0x788] sm:$0xff] }
  0x46   :  { %v475_v10 = vld [vmem:[#allocation5 + $0x260] sm:$0xff]  ;;  %v776_v8 = vpack.c.bf16 %v644_v6, %v640_v5  ;;  %v632_v58 = vld [vmem:[#allocation5 + $0x748] sm:$0xff] }
  0x47   :  { %v535_v12 = vld [vmem:[#allocation5 + $0x440] sm:$0xff]  ;;  %v691_v26 = vpack.c.bf16 %v475_v10, %v471_v9  ;;  %789 = vmatpush.bf16.msra.mxu0 %v659_v18  ;;  %v512_v9 = vld [vmem:[#allocation5 + $0x388] sm:$0xff]  ;;  %v90_v18 = vld [vmem:[#allocation2 + $0x58] sm:$0xff] }
  0x48   :  { %v539_v13 = vld [vmem:[#allocation5 + $0x460] sm:$0xff]  ;;  %v516_v10 = vld [vmem:[#allocation5 + $0x3a8] sm:$0xff] }
  0x49   :  { %v599_v14 = vld [vmem:[#allocation5 + $0x640] sm:$0xff]  ;;  %v723_v27 = vpack.c.bf16 %v539_v13, %v535_v12  ;;  %878 = vmatpush.bf16.msra.mxu1 %v691_v26  ;;  %v88_v13 = vld [vmem:[#allocation2 + $0x48] sm:$0xff]  ;;  %v218_v26 = vadd.f32 1.0, %v90_v18 }
  0x4a   :  { %v603_v15 = vld [vmem:[#allocation5 + $0x660] sm:$0xff]  ;;  %v504_v1 = vld [vmem:[#allocation5 + $0x348] sm:$0xff] }
  0x4b   :  { %v399_v16 = vld [vmem:[#allocation5] sm:$0xff]  ;;  %v755_v31 = vpack.c.bf16 %v603_v15, %v599_v14  ;;  %967 = vmatpush.bf16.msra.mxu2 %v723_v27  ;;  %v712_v14 = vpack.c.bf16 %v516_v10, %v512_v9  ;;  %v92_v15 = vld [vmem:[#allocation2 + $0x68] sm:$0xff]  ;;  %v109_v9 = vld [vmem:[#allocation2 + $0xf0] sm:$0xff] }
  0x4c   :  { %v403_v17 = vld [vmem:[#allocation5 + $0x20] sm:$0xff]  ;;  %v508_v2 = vld [vmem:[#allocation5 + $0x368] sm:$0xff]  ;;  %v106_v10 = vld [vmem:[#allocation2 + $0xd8] sm:$0xff] }
  0x4d   :  { %v463_v19 = vld [vmem:[#allocation5 + $0x200] sm:$0xff]  ;;  %v655_v35 = vpack.c.bf16 %v403_v17, %v399_v16  ;;  %1056 = vmatpush.bf16.msra.mxu3 %v755_v31  ;;  %v89_v16 = vld [vmem:[#allocation2 + $0x50] sm:$0xff]  ;;  %v104_v5 = vld [vmem:[#allocation2 + $0xc8] sm:$0xff]  ;;  %v708_v6 = vpack.c.bf16 %v508_v2, %v504_v1  ;;  %v234_v18 = vadd.f32 1.0, %v106_v10 }
  0x4e   :  { %v467_v20 = vld [vmem:[#allocation5 + $0x220] sm:$0xff]  ;;  %v93_v17 = vld [vmem:[#allocation2 + $0x70] sm:$0xff]  ;;  %v496_v1 = vld [vmem:[#allocation5 + $0x308] sm:$0xff] }
  0x4f   :  { %v527_v21 = vld [vmem:[#allocation5 + $0x400] sm:$0xff]  ;;  %v687_v47 = vpack.c.bf16 %v467_v20, %v463_v19  ;;  %790 = vmatpush.bf16.msra.mxu0 %v655_v35  ;;  %v94_v19 = vld [vmem:[#allocation2 + $0x78] sm:$0xff]  ;;  %v221_v25 = vadd.f32 1.0, %v93_v17  ;;  %v100_v35 = vld [vmem:[#allocation2 + $0xa8] sm:$0xff]  ;;  %v237_v17 = vadd.f32 1.0, %v109_v9 }
  0x50   :  { %v531_v22 = vld [vmem:[#allocation5 + $0x420] sm:$0xff]  ;;  %v222_v27 = vadd.f32 1.0, %v94_v19  ;;  %v228_v43 = vadd.f32 1.0, %v100_v35  ;;  %v118_v35 = vld [vmem:[#allocation2 + $0x138] sm:$0xff]  ;;  %v500_v2 = vld [vmem:[#allocation5 + $0x328] sm:$0xff] }
  0x51   :  { %v79_v23 = vld [vmem:[#allocation2] sm:$0xff]  ;;  %v719_v48 = vpack.c.bf16 %v531_v22, %v527_v21  ;;  %879 = vmatpush.bf16.msra.mxu1 %v687_v47  ;;  %v216_v22 = vadd.f32 1.0, %v88_v13  ;;  %v230_v47 = vadd.f32 1.0, %v102_v39  ;;  %v125_v9 = vld [vmem:[#allocation2 + $0x170] sm:$0xff]  ;;  %v122_v10 = vld [vmem:[#allocation2 + $0x158] sm:$0xff] }
  0x52   :  { %v83_v24 = vld [vmem:[#allocation2 + $0x20] sm:$0xff]  ;;  %v207_v37 = vadd.f32 1.0, %v79_v23  ;;  %v220_v23 = vadd.f32 1.0, %v92_v15  ;;  %v4702_v31 = vpack.c.bf16 %v222_v27, %v218_v26  ;;  %v4710_v49 = vpack.c.bf16 %v228_v43, %v224_v42  ;;  %v112_v26 = vld [vmem:[#allocation2 + $0x108] sm:$0xff] }
  0x53   :  { %v591_v32 = vld [vmem:[#allocation5 + $0x600] sm:$0xff]  ;;  %v211_v38 = vadd.f32 1.0, %v83_v24  ;;  %968 = vmatpush.bf16.msra.mxu2 %v719_v48  ;;  %1139 = vmatpush.bf16.msrb.mxu0 %v684_v62  ;;  %v217_v24 = vadd.f32 1.0, %v89_v16  ;;  %v636_v62 = vld [vmem:[#allocation5 + $0x768] sm:$0xff]  ;;  %v242_v42 = vadd.f32 1.0, %v114_v34  ;;  %v246_v43 = vadd.f32 1.0, %v118_v35 }
  0x54   :  { %v595_v36 = vld [vmem:[#allocation5 + $0x620] sm:$0xff]  ;;  %880 = vmatmul.bf16.vlgmr.msra.gmra.mxu1 %v4686_v59  ;;  %v4698_v29 = vpack.c.bf16 %v220_v23, %v216_v22  ;;  %v772_v0 = vpack.c.bf16 %v636_v62, %v632_v58  ;;  %v116_v27 = vld [vmem:[#allocation2 + $0x128] sm:$0xff] }
  0x55   :  { %v751_v51 = vpack.c.bf16 %v595_v36, %v591_v32  ;;  %v4684_v55 = vpack.c.bf16 %v211_v38, %v207_v37  ;;  %1228 = vmatpush.bf16.msrb.mxu1 %v716_v63  ;;  %v87_v11 = vld [vmem:[#allocation2 + $0x40] sm:$0xff]  ;;  %v4700_v30 = vpack.c.bf16 %v221_v25, %v217_v24  ;;  %v97_v36 = vld [vmem:[#allocation2 + $0x90] sm:$0xff]  ;;  %v98_v38 = vld [vmem:[#allocation2 + $0x98] sm:$0xff]  ;;  %v676_v63 = vpack.c.bf16 %v444_v57, %v440_v54 }
  0x56   :  { %969 = vmatmul.bf16.vlgmr.msra.gmra.mxu2 %v4688_v60  ;;  %v91_v12 = vld [vmem:[#allocation2 + $0x60] sm:$0xff]  ;;  %v215_v20 = vadd.f32 1.0, %v87_v11  ;;  %v101_v37 = vld [vmem:[#allocation2 + $0xb0] sm:$0xff]  ;;  %v225_v44 = vadd.f32 1.0, %v97_v36  ;;  %v226_v46 = vadd.f32 1.0, %v98_v38  ;;  %v110_v11 = vld [vmem:[#allocation2 + $0xf8] sm:$0xff] }
  0x57   :  { %1057 = vmatpush.bf16.msra.mxu3 %v751_v51  ;;  %1317 = vmatpush.bf16.msrb.mxu2 %v748_v52  ;;  %v219_v21 = vadd.f32 1.0, %v91_v12  ;;  %v95_v32 = vld [vmem:[#allocation2 + $0x80] sm:$0xff]  ;;  %v229_v45 = vadd.f32 1.0, %v101_v37  ;;  %v568_v52 = vld [vmem:[#allocation5 + $0x548] sm:$0xff]  ;;  %v238_v19 = vadd.f32 1.0, %v110_v11  ;;  %v240_v38 = vadd.f32 1.0, %v112_v26 }
  0x58   :  { %791 = vmatmul.bf16.vlgmr.msra.gmra.mxu0 %v4684_v55  ;;  %v99_v33 = vld [vmem:[#allocation2 + $0xa0] sm:$0xff]  ;;  %v223_v40 = vadd.f32 1.0, %v95_v32  ;;  %v4714_v51 = vpack.c.bf16 %v230_v47, %v226_v46  ;;  %v113_v32 = vld [vmem:[#allocation2 + $0x110] sm:$0xff]  ;;  %v244_v39 = vadd.f32 1.0, %v116_v27  ;;  %v4738_v47 = vpack.c.bf16 %v246_v43, %v242_v42  ;;  %v432_v54 = vld [vmem:[#allocation5 + $0x108] sm:$0xff] }
  0x59   :  { %1140 = vmatpush.bf16.msrb.mxu0 %v680_v7  ;;  %1229 = vmatpush.bf16.msrb.mxu1 %v712_v14  ;;  %v4696_v28 = vpack.c.bf16 %v219_v21, %v215_v20  ;;  %v227_v41 = vadd.f32 1.0, %v99_v33  ;;  %v4712_v50 = vpack.c.bf16 %v229_v45, %v225_v44  ;;  %v107_v4 = vld [vmem:[#allocation2 + $0xe0] sm:$0xff]  ;;  %v108_v7 = vld [vmem:[#allocation2 + $0xe8] sm:$0xff]  ;;  %v232_v14 = vadd.f32 1.0, %v104_v5  ;;  %v117_v33 = vld [vmem:[#allocation2 + $0x130] sm:$0xff] }
  0x5a   :  { %1058 = vmatmul.bf16.vlgmr.msra.gmra.mxu3 %v4690_v61  ;;  %v235_v13 = vadd.f32 1.0, %v107_v4  ;;  %v236_v15 = vadd.f32 1.0, %v108_v7  ;;  %v4726_v23 = vpack.c.bf16 %v238_v19, %v234_v18  ;;  %v111_v24 = vld [vmem:[#allocation2 + $0x100] sm:$0xff]  ;;  %v4734_v45 = vpack.c.bf16 %v244_v39, %v240_v38  ;;  %v436_v57 = vld [vmem:[#allocation5 + $0x128] sm:$0xff]  ;;  %v126_v11 = vld [vmem:[#allocation2 + $0x178] sm:$0xff] }
  0x5b   :  { %1406 = vmatpush.bf16.msrb.mxu3 %v780_v56  ;;  %1318 = vmatpush.bf16.msrb.mxu2 %v744_v3  ;;  %v4708_v48 = vpack.c.bf16 %v227_v41, %v223_v40  ;;  %v740_v56 = vpack.c.bf16 %v572_v53, %v568_v52  ;;  %v103_v3 = vld [vmem:[#allocation2 + $0xc0] sm:$0xff]  ;;  %v239_v36 = vadd.f32 1.0, %v111_v24  ;;  %v241_v40 = vadd.f32 1.0, %v113_v32  ;;  %v560_v52 = vld [vmem:[#allocation5 + $0x508] sm:$0xff]  ;;  %v130_v38 = vld [vmem:[#allocation2 + $0x198] sm:$0xff] }
  0x5c   :  { %v231_v12 = vadd.f32 1.0, %v103_v3  ;;  %v4722_v21 = vpack.c.bf16 %v236_v15, %v232_v14  ;;  %v115_v25 = vld [vmem:[#allocation2 + $0x120] sm:$0xff]  ;;  %v245_v41 = vadd.f32 1.0, %v117_v33  ;;  %v564_v53 = vld [vmem:[#allocation5 + $0x528] sm:$0xff]  ;;  %v250_v18 = vadd.f32 1.0, %v122_v10  ;;  %v134_v39 = vld [vmem:[#allocation2 + $0x1b8] sm:$0xff] }
  0x5d   :  { %1141 = vmatpush.bf16.msrb.mxu0 %v676_v63  ;;  %1230 = vmatpush.bf16.msrb.mxu1 %v708_v6  ;;  %v243_v37 = vadd.f32 1.0, %v115_v25  ;;  %v624_v58 = vld [vmem:[#allocation5 + $0x708] sm:$0xff]  ;;  %v672_v63 = vpack.c.bf16 %v436_v57, %v432_v54  ;;  %v119_v3 = vld [vmem:[#allocation2 + $0x140] sm:$0xff]  ;;  %v704_v6 = vpack.c.bf16 %v500_v2, %v496_v1  ;;  %v254_v19 = vadd.f32 1.0, %v126_v11 }
  0x5e   :  { %v4720_v20 = vpack.c.bf16 %v235_v13, %v231_v12  ;;  %v4736_v46 = vpack.c.bf16 %v245_v41, %v241_v40  ;;  %v628_v62 = vld [vmem:[#allocation5 + $0x728] sm:$0xff]  ;;  %v123_v4 = vld [vmem:[#allocation2 + $0x160] sm:$0xff]  ;;  %v247_v12 = vadd.f32 1.0, %v119_v3  ;;  %v258_v54 = vadd.f32 1.0, %v130_v38 }
  0x5f   :  { %1407 = vmatpush.bf16.msrb.mxu3 %v776_v8  ;;  %1319 = vmatpush.bf16.msrb.mxu2 %v740_v56  ;;  %v105_v8 = vld [vmem:[#allocation2 + $0xd0] sm:$0xff]  ;;  %v4732_v44 = vpack.c.bf16 %v243_v37, %v239_v36  ;;  %v736_v56 = vpack.c.bf16 %v564_v53, %v560_v52  ;;  %v120_v5 = vld [vmem:[#allocation2 + $0x148] sm:$0xff]  ;;  %v251_v13 = vadd.f32 1.0, %v123_v4  ;;  %v4750_v27 = vpack.c.bf16 %v254_v19, %v250_v18  ;;  %v127_v32 = vld [vmem:[#allocation2 + $0x180] sm:$0xff] }
  0x60   :  { %v233_v16 = vadd.f32 1.0, %v105_v8  ;;  %v124_v7 = vld [vmem:[#allocation2 + $0x168] sm:$0xff]  ;;  %v121_v8 = vld [vmem:[#allocation2 + $0x150] sm:$0xff]  ;;  %v248_v14 = vadd.f32 1.0, %v120_v5  ;;  %v131_v33 = vld [vmem:[#allocation2 + $0x1a0] sm:$0xff]  ;;  %v255_v40 = vadd.f32 1.0, %v127_v32 }
  0x61   :  { %1142 = vmatpush.bf16.msrb.mxu0 %v672_v63  ;;  %1231 = vmatpush.bf16.msrb.mxu1 %v704_v6  ;;  %v252_v15 = vadd.f32 1.0, %v124_v7  ;;  %v4744_v24 = vpack.c.bf16 %v251_v13, %v247_v12  ;;  %v128_v34 = vld [vmem:[#allocation2 + $0x188] sm:$0xff]  ;;  %v129_v36 = vld [vmem:[#allocation2 + $0x190] sm:$0xff]  ;;  %v259_v41 = vadd.f32 1.0, %v131_v33  ;;  %v139_v10 = vld [vmem:[#allocation2 + $0x1e0] sm:$0xff] }
  0x62   :  { %v4724_v22 = vpack.c.bf16 %v237_v17, %v233_v16  ;;  %v249_v16 = vadd.f32 1.0, %v121_v8  ;;  %v253_v17 = vadd.f32 1.0, %v125_v9  ;;  %v132_v35 = vld [vmem:[#allocation2 + $0x1a8] sm:$0xff]  ;;  %v133_v37 = vld [vmem:[#allocation2 + $0x1b0] sm:$0xff]  ;;  %v256_v42 = vadd.f32 1.0, %v128_v34  ;;  %v135_v9 = vld [vmem:[#allocation2 + $0x1c0] sm:$0xff] }
  0x63   :  { %1408 = vmatpush.bf16.msrb.mxu3 %v772_v0  ;;  %v768_v0 = vpack.c.bf16 %v628_v62, %v624_v58  ;;  %1320 = vmatpush.bf16.msrb.mxu2 %v736_v56  ;;  %v4746_v25 = vpack.c.bf16 %v252_v15, %v248_v14  ;;  %v260_v43 = vadd.f32 1.0, %v132_v35  ;;  %v257_v52 = vadd.f32 1.0, %v129_v36  ;;  %v556_v1 = vld [vmem:[#allocation5 + $0x4e8] sm:$0xff]  ;;  %v137_v13 = vld [vmem:[#allocation2 + $0x1d0] sm:$0xff]  ;;  %v138_v15 = vld [vmem:[#allocation2 + $0x1d8] sm:$0xff] }
  0x64   :  { %885 = vmatmul.bf16.gmra.mxu1 %v4698_v29  ;;  %v4748_v26 = vpack.c.bf16 %v253_v17, %v249_v16  ;;  %v261_v53 = vadd.f32 1.0, %v133_v37  ;;  %v262_v56 = vadd.f32 1.0, %v134_v39  ;;  %v4756_v57 = vpack.c.bf16 %v259_v41, %v255_v40  ;;  %v424_v2 = vld [vmem:[#allocation5 + $0xc8] sm:$0xff]  ;;  %v141_v14 = vld [vmem:[#allocation2 + $0x1f0] sm:$0xff]  ;;  %v142_v16 = vld [vmem:[#allocation2 + $0x1f8] sm:$0xff] }
  0x65   :  { %v4758_v58 = vpack.c.bf16 %v260_v43, %v256_v42  ;;  %v428_v4 = vld [vmem:[#allocation5 + $0xe8] sm:$0xff]  ;;  %v263_v17 = vadd.f32 1.0, %v135_v9  ;;  %v267_v18 = vadd.f32 1.0, %v139_v10  ;;  %v265_v33 = vadd.f32 1.0, %v137_v13 }
  0x66   :  { %974 = vmatmul.bf16.gmra.mxu2 %v4700_v30  ;;  %v4760_v62 = vpack.c.bf16 %v261_v53, %v257_v52  ;;  %v4762_v63 = vpack.c.bf16 %v262_v56, %v258_v54  ;;  %v616_v5 = vld [vmem:[#allocation5 + $0x6c8] sm:$0xff]  ;;  %v668_v7 = vpack.c.bf16 %v428_v4, %v424_v2  ;;  %v269_v34 = vadd.f32 1.0, %v141_v14  ;;  %v143_v52 = vld [vmem:[#allocation2 + $0x200] sm:$0xff]  ;;  %v146_v2 = vld [vmem:[#allocation2 + $0x218] sm:$0xff] }
  0x67   :  { %1409 = vmatpush.bf16.msrb.mxu3 %v768_v0  ;;  %v552_v0 = vld [vmem:[#allocation5 + $0x4c8] sm:$0xff]  ;;  %v266_v37 = vadd.f32 1.0, %v138_v15  ;;  %v270_v38 = vadd.f32 1.0, %v142_v16  ;;  %v4768_v40 = vpack.c.bf16 %v267_v18, %v263_v17  ;;  %v147_v53 = vld [vmem:[#allocation2 + $0x220] sm:$0xff]  ;;  %v271_v4 = vadd.f32 1.0, %v143_v52 }
  0x68   :  { %796 = vmatmul.bf16.gmra.mxu0 %v4696_v28  ;;  %v732_v3 = vpack.c.bf16 %v556_v1, %v552_v0  ;;  %v620_v6 = vld [vmem:[#allocation5 + $0x6e8] sm:$0xff]  ;;  %v4772_v42 = vpack.c.bf16 %v269_v34, %v265_v33  ;;  %v145_v0 = vld [vmem:[#allocation2 + $0x210] sm:$0xff]  ;;  %v274_v10 = vadd.f32 1.0, %v146_v2 }
  0x69   :  { %v764_v8 = vpack.c.bf16 %v620_v6, %v616_v5  ;;  %v136_v11 = vld [vmem:[#allocation2 + $0x1c8] sm:$0xff]  ;;  %1143 = vmatpush.bf16.msrb.mxu0 %v668_v7  ;;  %v4774_v43 = vpack.c.bf16 %v270_v38, %v266_v37  ;;  %v149_v1 = vld [vmem:[#allocation2 + $0x230] sm:$0xff]  ;;  %v275_v5 = vadd.f32 1.0, %v147_v53 }
  0x6a   :  { %1063 = vmatmul.bf16.gmra.mxu3 %v4702_v31  ;;  %1321 = vmatpush.bf16.msrb.mxu2 %v732_v3  ;;  %v140_v12 = vld [vmem:[#allocation2 + $0x1e8] sm:$0xff]  ;;  %v264_v19 = vadd.f32 1.0, %v136_v11  ;;  %v150_v3 = vld [vmem:[#allocation2 + $0x238] sm:$0xff]  ;;  %v277_v9 = vadd.f32 1.0, %v149_v1 }
  0x6b   :  { %1410 = vmatpush.bf16.msrb.mxu3 %v764_v8  ;;  %v268_v32 = vadd.f32 1.0, %v140_v12  ;;  %v488_v35 = vld [vmem:[#allocation5 + $0x2c8] sm:$0xff]  ;;  %v273_v8 = vadd.f32 1.0, %v145_v0  ;;  %v278_v11 = vadd.f32 1.0, %v150_v3  ;;  %v4780_v12 = vpack.c.bf16 %v275_v5, %v271_v4  ;;  %v153_v5 = vld [vmem:[#allocation2 + $0x250] sm:$0xff] }
  0x6c   :  { %v492_v36 = vld [vmem:[#allocation5 + $0x2e8] sm:$0xff] }
  0x6d   :  { %v700_v39 = vpack.c.bf16 %v492_v36, %v488_v35  ;;  %v4770_v41 = vpack.c.bf16 %v268_v32, %v264_v19  ;;  %v144_v54 = vld [vmem:[#allocation2 + $0x208] sm:$0xff]  ;;  %v4784_v15 = vpack.c.bf16 %v277_v9, %v273_v8  ;;  %v4786_v17 = vpack.c.bf16 %v278_v11, %v274_v10  ;;  %v154_v9 = vld [vmem:[#allocation2 + $0x258] sm:$0xff] }
  0x6e   :  { %v148_v56 = vld [vmem:[#allocation2 + $0x228] sm:$0xff]  ;;  %v272_v6 = vadd.f32 1.0, %v144_v54  ;;  %v151_v54 = vld [vmem:[#allocation2 + $0x240] sm:$0xff]  ;;  %v158_v10 = vld [vmem:[#allocation2 + $0x278] sm:$0xff] }
  0x6f   :  { %1232 = vmatpush.bf16.msrb.mxu1 %v700_v39  ;;  %v276_v7 = vadd.f32 1.0, %v148_v56  ;;  %5722 = vst [vmem:[#allocation15_spill] sm:$0xff] %v4784_v15  ;;  %v544_v19 = vld [vmem:[#allocation5 + $0x488] sm:$0xff]  ;;  %v155_v56 = vld [vmem:[#allocation2 + $0x260] sm:$0xff]  ;;  %v279_v11 = vadd.f32 1.0, %v151_v54 }
  0x70   :  { %5723 = vst [vmem:[#allocation16_spill] sm:$0xff] %v4786_v17  ;;  %v548_v32 = vld [vmem:[#allocation5 + $0x4a8] sm:$0xff] }
  0x71   :  { %v4782_v14 = vpack.c.bf16 %v276_v7, %v272_v6  ;;  %v416_v33 = vld [vmem:[#allocation5 + $0x88] sm:$0xff]  ;;  %v728_v35 = vpack.c.bf16 %v548_v32, %v544_v19  ;;  %v157_v6 = vld [vmem:[#allocation2 + $0x270] sm:$0xff]  ;;  %v281_v19 = vadd.f32 1.0, %v153_v5 }
  0x72   :  { %v420_v36 = vld [vmem:[#allocation5 + $0xa8] sm:$0xff]  ;;  %v285_v32 = vadd.f32 1.0, %v157_v6 }
  0x73   :  { %v608_v37 = vld [vmem:[#allocation5 + $0x688] sm:$0xff]  ;;  %v664_v1 = vpack.c.bf16 %v420_v36, %v416_v33  ;;  %1322 = vmatpush.bf16.msrb.mxu2 %v728_v35  ;;  %v282_v36 = vadd.f32 1.0, %v154_v9 }
  0x74   :  { %890 = vmatmul.bf16.gmra.mxu1 %v4710_v49  ;;  %v612_v38 = vld [vmem:[#allocation5 + $0x6a8] sm:$0xff]  ;;  %v4796_v54 = vpack.c.bf16 %v285_v32, %v281_v19  ;;  %v161_v19 = vld [vmem:[#allocation2 + $0x290] sm:$0xff] }
  0x75   :  { %v152_v0 = vld [vmem:[#allocation2 + $0x248] sm:$0xff]  ;;  %v760_v2 = vpack.c.bf16 %v612_v38, %v608_v37  ;;  %1144 = vmatpush.bf16.msrb.mxu0 %v664_v1  ;;  %v286_v37 = vadd.f32 1.0, %v158_v10  ;;  %v159_v10 = vld [vmem:[#allocation2 + $0x280] sm:$0xff] }
  0x76   :  { %979 = vmatmul.bf16.gmra.mxu2 %v4712_v50  ;;  %v156_v4 = vld [vmem:[#allocation2 + $0x268] sm:$0xff]  ;;  %5726 = vst [vmem:[#allocation19_spill] sm:$0xff] %v4796_v54 }
  0x77   :  { %1411 = vmatpush.bf16.msrb.mxu3 %v760_v2  ;;  %v484_v33 = vld [vmem:[#allocation5 + $0x2a8] sm:$0xff] }
  0x78   :  { %801 = vmatmul.bf16.gmra.mxu0 %v4708_v48 }
  0x7a   :  { %1068 = vmatmul.bf16.gmra.mxu3 %v4714_v51 }
  0x84   :  { %895 = vmatmul.bf16.gmra.mxu1 %v4722_v21 }
  0x86   :  { %984 = vmatmul.bf16.gmra.mxu2 %v4724_v22 }
  0x88   :  { %806 = vmatmul.bf16.gmra.mxu0 %v4720_v20 }
  0x8a   :  { %1073 = vmatmul.bf16.gmra.mxu3 %v4726_v23 }
  0x94   :  { %900 = vmatmul.bf16.gmra.mxu1 %v4734_v45 }
  0x96   :  { %989 = vmatmul.bf16.gmra.mxu2 %v4736_v46 }
  0x98   :  { %811 = vmatmul.bf16.gmra.mxu0 %v4732_v44 }
  0x9a   :  { %1078 = vmatmul.bf16.gmra.mxu3 %v4738_v47 }
  0xa4   :  { %905 = vmatmul.bf16.gmra.mxu1 %v4746_v25 }
  0xa6   :  { %994 = vmatmul.bf16.gmra.mxu2 %v4748_v26 }
  0xa8   :  { %816 = vmatmul.bf16.gmra.mxu0 %v4744_v24 }
  0xaa   :  { %1083 = vmatmul.bf16.gmra.mxu3 %v4750_v27 }
  0xb4   :  { %910 = vmatmul.bf16.gmra.mxu1 %v4758_v58 }
  0xb6   :  { %999 = vmatmul.bf16.gmra.mxu2 %v4760_v62 }
  0xb8   :  { %821 = vmatmul.bf16.gmra.mxu0 %v4756_v57 }
  0xba   :  { %1088 = vmatmul.bf16.gmra.mxu3 %v4762_v63 }
  0xc4   :  { %915 = vmatmul.bf16.gmra.mxu1 %v4770_v41 }
  0xc6   :  { %1004 = vmatmul.bf16.gmra.mxu2 %v4772_v42 }
  0xc8   :  { %826 = vmatmul.bf16.gmra.mxu0 %v4768_v40 }
  0xca   :  { %1093 = vmatmul.bf16.gmra.mxu3 %v4774_v43 }
  0xd1   :  { %v881_v16 = vpop.f32.mrf.mxu1 }
  0xd4   :  { %920 = vmatmul.bf16.gmra.mxu1 %v4782_v14 }
  0xd5   :  { %v792_v13 = vpop.f32.mrf.mxu0 }
  0xd6   :  { %v882_v18 = vadd.f32 %v881_v16, %v792_v13  ;;  %1009 = vmatmul.bf16.gmra.mxu2 %v4784_v15  ;;  %v283_v13 = vadd.f32 1.0, %v155_v56  ;;  %v280_v16 = vadd.f32 1.0, %v152_v0  ;;  %v4798_v0 = vpack.c.bf16 %v286_v37, %v282_v36  ;;  %v166_v36 = vld [vmem:[#allocation2 + $0x2b8] sm:$0xff] }
  0xd7   :  { %v287_v37 = vadd.f32 1.0, %v159_v10 }
  0xd8   :  { %831 = vmatmul.bf16.gmra.mxu0 %v4780_v12  ;;  %v4792_v15 = vpack.c.bf16 %v283_v13, %v279_v11  ;;  %5727 = vst [vmem:[#allocation20_spill] sm:$0xff] %v4798_v0  ;;  %v163_v11 = vld [vmem:[#allocation2 + $0x2a0] sm:$0xff]  ;;  %v160_v13 = vld [vmem:[#allocation2 + $0x288] sm:$0xff] }
  0xd9   :  { %v970_v34 = vpop.f32.mrf.mxu2  ;;  %v883_v3 = vpop.f32.mrf.mxu1 }
  0xda   :  { %1098 = vmatmul.bf16.gmra.mxu3 %v4786_v17  ;;  %v971_v39 = vadd.f32 %v970_v34, %v882_v18  ;;  %v284_v18 = vadd.f32 1.0, %v156_v4  ;;  %v480_v34 = vld [vmem:[#allocation5 + $0x288] sm:$0xff]  ;;  %5724 = vst [vmem:[#allocation17_spill] sm:$0xff] %v4792_v15 }
  0xdb   :  { %v696_v38 = vpack.c.bf16 %v484_v33, %v480_v34  ;;  %v162_v33 = vld [vmem:[#allocation2 + $0x298] sm:$0xff] }
  0xdd   :  { %v1059_v52 = vpop.f32.mrf.mxu3  ;;  %v794_v53 = vpop.f32.mrf.mxu0  ;;  %1233 = vmatpush.bf16.msrb.mxu1 %v696_v38  ;;  %v291_v38 = vadd.f32 1.0, %v163_v11 }
  0xde   :  { %v1060_v7 = vadd.f32 %v1059_v52, %v971_v39  ;;  %v884_v8 = vadd.f32 %v883_v3, %v794_v53  ;;  %v4794_v53 = vpack.c.bf16 %v284_v18, %v280_v16  ;;  %v164_v18 = vld [vmem:[#allocation2 + $0x2a8] sm:$0xff] }
  0xe0   :  { %5725 = vst [vmem:[#allocation18_spill] sm:$0xff] %v4794_v53  ;;  %v2207_v3 = vmax.f32 %v1060_v7, 0.0  ;;  %v165_v7 = vld [vmem:[#allocation2 + $0x2b0] sm:$0xff] }
  0xe1   :  { %v972_v17 = vpop.f32.mrf.mxu2  ;;  %v886_v56 = vpop.f32.mrf.mxu1 }
  0xe2   :  { %v973_v35 = vadd.f32 %v972_v17, %v884_v8 }
  0xe4   :  { %925 = vmatmul.bf16.gmra.mxu1 %v4794_v53 }
  0xe5   :  { %v1061_v39 = vpop.f32.mrf.mxu3  ;;  %v797_v52 = vpop.f32.mrf.mxu0 }
  0xe6   :  { %v1062_v1 = vadd.f32 %v1061_v39, %v973_v35  ;;  %v887_v2 = vadd.f32 %v886_v56, %v797_v52  ;;  %1014 = vmatmul.bf16.gmra.mxu2 %v4796_v54  ;;  %v288_v35 = vadd.f32 1.0, %v160_v13  ;;  %v292_v39 = vadd.f32 1.0, %v164_v18 }
  0xe7   :  { %v289_v52 = vadd.f32 1.0, %v161_v19  ;;  %v293_v56 = vadd.f32 1.0, %v165_v7  ;;  %v536_v19 = vld [vmem:[#allocation5 + $0x448] sm:$0xff] }
  0xe8   :  { %836 = vmatmul.bf16.gmra.mxu0 %v4792_v15  ;;  %v2211_v4 = vmax.f32 %v1062_v1, 0.0  ;;  %v290_v1 = vadd.f32 1.0, %v162_v33  ;;  %v4808_v54 = vpack.c.bf16 %v292_v39, %v288_v35  ;;  %v540_v7 = vld [vmem:[#allocation5 + $0x468] sm:$0xff]  ;;  %v167_v39 = vld [vmem:[#allocation2 + $0x2c0] sm:$0xff] }
  0xe9   :  { %v975_v5 = vpop.f32.mrf.mxu2  ;;  %v888_v16 = vpop.f32.mrf.mxu1 }
  0xea   :  { %1103 = vmatmul.bf16.gmra.mxu3 %v4798_v0  ;;  %v4804_v17 = vpack.c.bf16 %v2211_v4, %v2207_v3  ;;  %v976_v6 = vadd.f32 %v975_v5, %v887_v2  ;;  %v294_v2 = vadd.f32 1.0, %v166_v36  ;;  %v4806_v4 = vpack.c.bf16 %v291_v38, %v287_v37  ;;  %5730 = vst [vmem:[#allocation23_spill] sm:$0xff] %v4808_v54  ;;  %v412_v37 = vld [vmem:[#allocation5 + $0x68] sm:$0xff] }
  0xeb   :  { %v724_v36 = vpack.c.bf16 %v540_v7, %v536_v19  ;;  %v174_v19 = vld [vmem:[#allocation2 + $0x2f8] sm:$0xff]  ;;  %v295_v7 = vadd.f32 1.0, %v167_v39 }
  0xec   :  { %5728 = vst [vmem:[#allocation21_spill] sm:$0xff] %v4804_v17 }
  0xed   :  { %v1064_v8 = vpop.f32.mrf.mxu3  ;;  %v799_v9 = vpop.f32.mrf.mxu0  ;;  %5729 = vst [vmem:[#allocation22_spill] sm:$0xff] %v4806_v4  ;;  %1323 = vmatpush.bf16.msrb.mxu2 %v724_v36 }
  0xee   :  { %v1065_v32 = vadd.f32 %v1064_v8, %v976_v6  ;;  %v889_v34 = vadd.f32 %v888_v16, %v799_v9  ;;  %v4810_v6 = vpack.c.bf16 %v293_v56, %v289_v52  ;;  %v4812_v9 = vpack.c.bf16 %v294_v2, %v290_v1  ;;  %v171_v52 = vld [vmem:[#allocation2 + $0x2e0] sm:$0xff]  ;;  %v168_v56 = vld [vmem:[#allocation2 + $0x2c8] sm:$0xff] }
  0xf0   :  { %5731 = vst [vmem:[#allocation24_spill] sm:$0xff] %v4810_v6  ;;  %v2215_v13 = vmax.f32 %v1065_v32, 0.0 }
  0xf1   :  { %v977_v3 = vpop.f32.mrf.mxu2  ;;  %v891_v8 = vpop.f32.mrf.mxu1  ;;  %5732 = vst [vmem:[#allocation25_spill] sm:$0xff] %v4812_v9 }
  0xf2   :  { %v978_v5 = vadd.f32 %v977_v3, %v889_v34  ;;  %v408_v34 = vld [vmem:[#allocation5 + $0x48] sm:$0xff] }
  0xf3   :  { %v660_v1 = vpack.c.bf16 %v412_v37, %v408_v34  ;;  %v476_v34 = vld [vmem:[#allocation5 + $0x268] sm:$0xff] }
  0xf4   :  { %930 = vmatmul.bf16.gmra.mxu1 %v4808_v54 }
  0xf5   :  { %v1066_v17 = vpop.f32.mrf.mxu3  ;;  %v802_v0 = vpop.f32.mrf.mxu0  ;;  %1145 = vmatpush.bf16.msrb.mxu0 %v660_v1 }
  0xf6   :  { %v1067_v10 = vadd.f32 %v1066_v17, %v978_v5  ;;  %v892_v11 = vadd.f32 %v891_v8, %v802_v0  ;;  %1019 = vmatmul.bf16.gmra.mxu2 %v4810_v6  ;;  %v600_v17 = vld [vmem:[#allocation5 + $0x648] sm:$0xff]  ;;  %v169_v8 = vld [vmem:[#allocation2 + $0x2d0] sm:$0xff] }
  0xf7   :  { %v604_v0 = vld [vmem:[#allocation5 + $0x668] sm:$0xff]  ;;  %v297_v6 = vadd.f32 1.0, %v169_v8  ;;  %v179_v8 = vld [vmem:[#allocation2 + $0x320] sm:$0xff] }
  0xf8   :  { %841 = vmatmul.bf16.gmra.mxu0 %v4806_v4  ;;  %v2219_v16 = vmax.f32 %v1067_v10, 0.0  ;;  %v756_v2 = vpack.c.bf16 %v604_v0, %v600_v17  ;;  %v172_v5 = vld [vmem:[#allocation2 + $0x2e8] sm:$0xff]  ;;  %v173_v10 = vld [vmem:[#allocation2 + $0x2f0] sm:$0xff]  ;;  %v302_v17 = vadd.f32 1.0, %v174_v19 }
  0xf9   :  { %v980_v33 = vpop.f32.mrf.mxu2  ;;  %v893_v3 = vpop.f32.mrf.mxu1  ;;  %v301_v54 = vadd.f32 1.0, %v173_v10  ;;  %v472_v4 = vld [vmem:[#allocation5 + $0x248] sm:$0xff] }
  0xfa   :  { %1108 = vmatmul.bf16.gmra.mxu3 %v4812_v9  ;;  %v4818_v18 = vpack.c.bf16 %v2219_v16, %v2215_v13  ;;  %v981_v38 = vadd.f32 %v980_v33, %v892_v11  ;;  %v299_v11 = vadd.f32 1.0, %v171_v52  ;;  %v296_v33 = vadd.f32 1.0, %v168_v56  ;;  %v176_v10 = vld [vmem:[#allocation2 + $0x308] sm:$0xff] }
  0xfb   :  { %1412 = vmatpush.bf16.msrb.mxu3 %v756_v2  ;;  %v300_v9 = vadd.f32 1.0, %v172_v5  ;;  %v692_v0 = vpack.c.bf16 %v476_v34, %v472_v4  ;;  %v4824_v39 = vpack.c.bf16 %v301_v54, %v297_v6  ;;  %v175_v5 = vld [vmem:[#allocation2 + $0x300] sm:$0xff]  ;;  %v180_v19 = vld [vmem:[#allocation2 + $0x328] sm:$0xff]  ;;  %v178_v34 = vld [vmem:[#allocation2 + $0x318] sm:$0xff] }
  0xfc   :  { %5733 = vst [vmem:[#allocation26_spill] sm:$0xff] %v4818_v18  ;;  %v170_v18 = vld [vmem:[#allocation2 + $0x2d8] sm:$0xff]  ;;  %v4820_v15 = vpack.c.bf16 %v299_v11, %v295_v7  ;;  %v177_v7 = vld [vmem:[#allocation2 + $0x310] sm:$0xff] }
  0xfd   :  { %v1069_v35 = vpop.f32.mrf.mxu3  ;;  %v804_v32 = vpop.f32.mrf.mxu0  ;;  %v298_v37 = vadd.f32 1.0, %v170_v18  ;;  %1234 = vmatpush.bf16.msrb.mxu1 %v692_v0  ;;  %5736 = vst [vmem:[#allocation29_spill] sm:$0xff] %v4824_v39  ;;  %v307_v0 = vadd.f32 1.0, %v179_v8 }
  0xfe   :  { %v1070_v13 = vadd.f32 %v1069_v35, %v981_v38  ;;  %v894_v16 = vadd.f32 %v893_v3, %v804_v32  ;;  %5734 = vst [vmem:[#allocation27_spill] sm:$0xff] %v4820_v15  ;;  %v4822_v32 = vpack.c.bf16 %v300_v9, %v296_v33 }
  0xff   :  { %v4826_v56 = vpack.c.bf16 %v302_v17, %v298_v37  ;;  %v182_v37 = vld [vmem:[#allocation2 + $0x338] sm:$0xff]  ;;  %v303_v17 = vadd.f32 1.0, %v175_v5 }
 0x100   :  { %5735 = vst [vmem:[#allocation28_spill] sm:$0xff] %v4822_v32  ;;  %v2223_v18 = vmax.f32 %v1070_v13, 0.0  ;;  %v181_v13 = vld [vmem:[#allocation2 + $0x330] sm:$0xff] }
 0x101   :  { %v982_v53 = vpop.f32.mrf.mxu2  ;;  %v896_v52 = vpop.f32.mrf.mxu1  ;;  %5737 = vst [vmem:[#allocation30_spill] sm:$0xff] %v4826_v56 }
 0x102   :  { %v983_v36 = vadd.f32 %v982_v53, %v894_v16 }
 0x104   :  { %935 = vmatmul.bf16.gmra.mxu1 %v4822_v32 }
 0x105   :  { %v1071_v38 = vpop.f32.mrf.mxu3  ;;  %v807_v35 = vpop.f32.mrf.mxu0 }
 0x106   :  { %v1072_v1 = vadd.f32 %v1071_v38, %v983_v36  ;;  %v897_v2 = vadd.f32 %v896_v52, %v807_v35  ;;  %1024 = vmatmul.bf16.gmra.mxu2 %v4824_v39  ;;  %v304_v36 = vadd.f32 1.0, %v176_v10  ;;  %v308_v38 = vadd.f32 1.0, %v180_v19 }
 0x107   :  { %v305_v35 = vadd.f32 1.0, %v177_v7  ;;  %v309_v52 = vadd.f32 1.0, %v181_v13  ;;  %v528_v7 = vld [vmem:[#allocation5 + $0x408] sm:$0xff] }
 0x108   :  { %846 = vmatmul.bf16.gmra.mxu0 %v4820_v15  ;;  %v2227_v4 = vmax.f32 %v1072_v1, 0.0  ;;  %v306_v1 = vadd.f32 1.0, %v178_v34  ;;  %v4836_v39 = vpack.c.bf16 %v308_v38, %v304_v36  ;;  %v532_v13 = vld [vmem:[#allocation5 + $0x428] sm:$0xff]  ;;  %v183_v38 = vld [vmem:[#allocation2 + $0x340] sm:$0xff] }
 0x109   :  { %v985_v9 = vpop.f32.mrf.mxu2  ;;  %v898_v16 = vpop.f32.mrf.mxu1 }
 0x10a   :  { %1113 = vmatmul.bf16.gmra.mxu3 %v4826_v56  ;;  %v4832_v53 = vpack.c.bf16 %v2227_v4, %v2223_v18  ;;  %v986_v54 = vadd.f32 %v985_v9, %v897_v2  ;;  %v310_v2 = vadd.f32 1.0, %v182_v37  ;;  %v4834_v4 = vpack.c.bf16 %v307_v0, %v303_v17  ;;  %5740 = vst [vmem:[#allocation33_spill] sm:$0xff] %v4836_v39  ;;  %v404_v17 = vld [vmem:[#allocation5 + $0x28] sm:$0xff] }
 0x10b   :  { %v720_v37 = vpack.c.bf16 %v532_v13, %v528_v7  ;;  %v190_v7 = vld [vmem:[#allocation2 + $0x378] sm:$0xff]  ;;  %v311_v13 = vadd.f32 1.0, %v183_v38 }
 0x10c   :  { %5738 = vst [vmem:[#allocation31_spill] sm:$0xff] %v4832_v53 }
 0x10d   :  { %v1074_v6 = vpop.f32.mrf.mxu3  ;;  %v809_v3 = vpop.f32.mrf.mxu0  ;;  %5739 = vst [vmem:[#allocation32_spill] sm:$0xff] %v4834_v4  ;;  %1324 = vmatpush.bf16.msrb.mxu2 %v720_v37 }
 0x10e   :  { %v1075_v11 = vadd.f32 %v1074_v6, %v986_v54  ;;  %v899_v33 = vadd.f32 %v898_v16, %v809_v3  ;;  %v4838_v54 = vpack.c.bf16 %v309_v52, %v305_v35  ;;  %v4840_v3 = vpack.c.bf16 %v310_v2, %v306_v1  ;;  %v187_v35 = vld [vmem:[#allocation2 + $0x360] sm:$0xff]  ;;  %v184_v52 = vld [vmem:[#allocation2 + $0x348] sm:$0xff] }
 0x110   :  { %5741 = vst [vmem:[#allocation34_spill] sm:$0xff] %v4838_v54  ;;  %v2231_v10 = vmax.f32 %v1075_v11, 0.0 }
 0x111   :  { %v987_v18 = vpop.f32.mrf.mxu2  ;;  %v901_v6 = vpop.f32.mrf.mxu1  ;;  %5742 = vst [vmem:[#allocation35_spill] sm:$0xff] %v4840_v3 }
 0x112   :  { %v988_v9 = vadd.f32 %v987_v18, %v899_v33  ;;  %v400_v33 = vld [vmem:[#allocation5 + $0x8] sm:$0xff] }
 0x113   :  { %v656_v1 = vpack.c.bf16 %v404_v17, %v400_v33  ;;  %v468_v33 = vld [vmem:[#allocation5 + $0x228] sm:$0xff] }
 0x114   :  { %940 = vmatmul.bf16.gmra.mxu1 %v4836_v39 }
 0x115   :  { %v1076_v53 = vpop.f32.mrf.mxu3  ;;  %v812_v56 = vpop.f32.mrf.mxu0  ;;  %1146 = vmatpush.bf16.msrb.mxu0 %v656_v1 }
 0x116   :  { %v1077_v5 = vadd.f32 %v1076_v53, %v988_v9  ;;  %v902_v8 = vadd.f32 %v901_v6, %v812_v56  ;;  %1029 = vmatmul.bf16.gmra.mxu2 %v4838_v54  ;;  %v592_v53 = vld [vmem:[#allocation5 + $0x608] sm:$0xff]  ;;  %v185_v6 = vld [vmem:[#allocation2 + $0x350] sm:$0xff] }
 0x117   :  { %v596_v56 = vld [vmem:[#allocation5 + $0x628] sm:$0xff]  ;;  %v313_v54 = vadd.f32 1.0, %v185_v6  ;;  %v195_v6 = vld [vmem:[#allocation2 + $0x3a0] sm:$0xff] }
 0x118   :  { %851 = vmatmul.bf16.gmra.mxu0 %v4834_v4  ;;  %v2235_v16 = vmax.f32 %v1077_v5, 0.0  ;;  %v752_v2 = vpack.c.bf16 %v596_v56, %v592_v53  ;;  %v188_v9 = vld [vmem:[#allocation2 + $0x368] sm:$0xff]  ;;  %v189_v5 = vld [vmem:[#allocation2 + $0x370] sm:$0xff]  ;;  %v318_v53 = vadd.f32 1.0, %v190_v7 }
 0x119   :  { %v990_v34 = vpop.f32.mrf.mxu2  ;;  %v903_v18 = vpop.f32.mrf.mxu1  ;;  %v317_v39 = vadd.f32 1.0, %v189_v5  ;;  %v464_v4 = vld [vmem:[#allocation5 + $0x208] sm:$0xff] }
 0x11a   :  { %1118 = vmatmul.bf16.gmra.mxu3 %v4840_v3  ;;  %v4846_v19 = vpack.c.bf16 %v2235_v16, %v2231_v10  ;;  %v991_v0 = vadd.f32 %v990_v34, %v902_v8  ;;  %v315_v8 = vadd.f32 1.0, %v187_v35  ;;  %v312_v34 = vadd.f32 1.0, %v184_v52  ;;  %v192_v5 = vld [vmem:[#allocation2 + $0x388] sm:$0xff] }
 0x11b   :  { %1413 = vmatpush.bf16.msrb.mxu3 %v752_v2  ;;  %v316_v3 = vadd.f32 1.0, %v188_v9  ;;  %v688_v56 = vpack.c.bf16 %v468_v33, %v464_v4  ;;  %v4852_v38 = vpack.c.bf16 %v317_v39, %v313_v54  ;;  %v191_v9 = vld [vmem:[#allocation2 + $0x380] sm:$0xff]  ;;  %v196_v7 = vld [vmem:[#allocation2 + $0x3a8] sm:$0xff]  ;;  %v194_v33 = vld [vmem:[#allocation2 + $0x398] sm:$0xff] }
 0x11c   :  { %5743 = vst [vmem:[#allocation36_spill] sm:$0xff] %v4846_v19  ;;  %v186_v19 = vld [vmem:[#allocation2 + $0x358] sm:$0xff]  ;;  %v4848_v15 = vpack.c.bf16 %v315_v8, %v311_v13  ;;  %v193_v13 = vld [vmem:[#allocation2 + $0x390] sm:$0xff] }
 0x11d   :  { %v1079_v36 = vpop.f32.mrf.mxu3  ;;  %v814_v11 = vpop.f32.mrf.mxu0  ;;  %v314_v17 = vadd.f32 1.0, %v186_v19  ;;  %1235 = vmatpush.bf16.msrb.mxu1 %v688_v56  ;;  %5746 = vst [vmem:[#allocation39_spill] sm:$0xff] %v4852_v38  ;;  %v323_v56 = vadd.f32 1.0, %v195_v6 }
 0x11e   :  { %v1080_v10 = vadd.f32 %v1079_v36, %v991_v0  ;;  %v904_v16 = vadd.f32 %v903_v18, %v814_v11  ;;  %5744 = vst [vmem:[#allocation37_spill] sm:$0xff] %v4848_v15  ;;  %v4850_v11 = vpack.c.bf16 %v316_v3, %v312_v34 }
 0x11f   :  { %v4854_v52 = vpack.c.bf16 %v318_v53, %v314_v17  ;;  %v198_v17 = vld [vmem:[#allocation2 + $0x3b8] sm:$0xff]  ;;  %v319_v53 = vadd.f32 1.0, %v191_v9 }
 0x120   :  { %5745 = vst [vmem:[#allocation38_spill] sm:$0xff] %v4850_v11  ;;  %v2239_v19 = vmax.f32 %v1080_v10, 0.0  ;;  %v197_v10 = vld [vmem:[#allocation2 + $0x3b0] sm:$0xff] }
 0x121   :  { %v992_v32 = vpop.f32.mrf.mxu2  ;;  %v906_v35 = vpop.f32.mrf.mxu1  ;;  %5747 = vst [vmem:[#allocation40_spill] sm:$0xff] %v4854_v52 }
 0x122   :  { %v993_v37 = vadd.f32 %v992_v32, %v904_v16 }
 0x124   :  { %945 = vmatmul.bf16.gmra.mxu1 %v4850_v11 }
 0x125   :  { %v1081_v0 = vpop.f32.mrf.mxu3  ;;  %v817_v36 = vpop.f32.mrf.mxu0 }
 0x126   :  { %v1082_v1 = vadd.f32 %v1081_v0, %v993_v37  ;;  %v907_v2 = vadd.f32 %v906_v35, %v817_v36  ;;  %1034 = vmatmul.bf16.gmra.mxu2 %v4852_v38  ;;  %v320_v37 = vadd.f32 1.0, %v192_v5  ;;  %v324_v0 = vadd.f32 1.0, %v196_v7 }
 0x127   :  { %v321_v36 = vadd.f32 1.0, %v193_v13  ;;  %v325_v35 = vadd.f32 1.0, %v197_v10  ;;  %v585_v13 = vld [vmem:[#allocation5 + $0x5d0] sm:$0xff] }
 0x128   :  { %856 = vmatmul.bf16.gmra.mxu0 %v4848_v15  ;;  %v2243_v4 = vmax.f32 %v1082_v1, 0.0  ;;  %v322_v1 = vadd.f32 1.0, %v194_v33  ;;  %v4864_v38 = vpack.c.bf16 %v324_v0, %v320_v37  ;;  %v589_v10 = vld [vmem:[#allocation5 + $0x5f0] sm:$0xff]  ;;  %v199_v0 = vld [vmem:[#allocation2 + $0x3c0] sm:$0xff] }
 0x129   :  { %v995_v3 = vpop.f32.mrf.mxu2  ;;  %v908_v16 = vpop.f32.mrf.mxu1 }
 0x12a   :  { %1123 = vmatmul.bf16.gmra.mxu3 %v4854_v52  ;;  %v4860_v32 = vpack.c.bf16 %v2243_v4, %v2239_v19  ;;  %v996_v39 = vadd.f32 %v995_v3, %v907_v2  ;;  %v326_v2 = vadd.f32 1.0, %v198_v17  ;;  %v4862_v4 = vpack.c.bf16 %v323_v56, %v319_v53  ;;  %5750 = vst [vmem:[#allocation43_spill] sm:$0xff] %v4864_v38  ;;  %v461_v53 = vld [vmem:[#allocation5 + $0x1f0] sm:$0xff] }
 0x12b   :  { %v749_v17 = vpack.c.bf16 %v589_v10, %v585_v13  ;;  %v206_v13 = vld [vmem:[#allocation2 + $0x3f8] sm:$0xff]  ;;  %v327_v10 = vadd.f32 1.0, %v199_v0 }
 0x12c   :  { %5748 = vst [vmem:[#allocation41_spill] sm:$0xff] %v4860_v32 }
 0x12d   :  { %v1084_v54 = vpop.f32.mrf.mxu3  ;;  %v819_v18 = vpop.f32.mrf.mxu0  ;;  %5749 = vst [vmem:[#allocation42_spill] sm:$0xff] %v4862_v4  ;;  %1673 = vmatpush.bf16.msra.mxu2 %v749_v17 }
 0x12e   :  { %v1085_v8 = vadd.f32 %v1084_v54, %v996_v39  ;;  %v909_v34 = vadd.f32 %v908_v16, %v819_v18  ;;  %v4866_v39 = vpack.c.bf16 %v325_v35, %v321_v36  ;;  %v4868_v18 = vpack.c.bf16 %v326_v2, %v322_v1  ;;  %v203_v36 = vld [vmem:[#allocation2 + $0x3e0] sm:$0xff]  ;;  %v200_v35 = vld [vmem:[#allocation2 + $0x3c8] sm:$0xff] }
 0x130   :  { %5751 = vst [vmem:[#allocation44_spill] sm:$0xff] %v4866_v39  ;;  %v2247_v5 = vmax.f32 %v1085_v8, 0.0 }
 0x131   :  { %v997_v19 = vpop.f32.mrf.mxu2  ;;  %v911_v54 = vpop.f32.mrf.mxu1  ;;  %5752 = vst [vmem:[#allocation45_spill] sm:$0xff] %v4868_v18 }
 0x132   :  { %v998_v3 = vadd.f32 %v997_v19, %v909_v34  ;;  %v457_v34 = vld [vmem:[#allocation5 + $0x1d0] sm:$0xff] }
 0x133   :  { %v685_v1 = vpack.c.bf16 %v461_v53, %v457_v34  ;;  %v525_v34 = vld [vmem:[#allocation5 + $0x3f0] sm:$0xff] }
 0x134   :  { %950 = vmatmul.bf16.gmra.mxu1 %v4864_v38 }
 0x135   :  { %v1086_v32 = vpop.f32.mrf.mxu3  ;;  %v822_v52 = vpop.f32.mrf.mxu0  ;;  %1495 = vmatpush.bf16.msra.mxu0 %v685_v1 }
 0x136   :  { %v1087_v9 = vadd.f32 %v1086_v32, %v998_v3  ;;  %v912_v6 = vadd.f32 %v911_v54, %v822_v52  ;;  %1039 = vmatmul.bf16.gmra.mxu2 %v4866_v39  ;;  %v649_v32 = vld [vmem:[#allocation5 + $0x7d0] sm:$0xff]  ;;  %v204_v3 = vld [vmem:[#allocation2 + $0x3e8] sm:$0xff] }
 0x137   :  { %v653_v52 = vld [vmem:[#allocation5 + $0x7f0] sm:$0xff] }
 0x138   :  { %861 = vmatmul.bf16.gmra.mxu0 %v4862_v4  ;;  %v2251_v16 = vmax.f32 %v1087_v9, 0.0  ;;  %v781_v2 = vpack.c.bf16 %v653_v52, %v649_v32  ;;  %v201_v54 = vld [vmem:[#allocation2 + $0x3d0] sm:$0xff]  ;;  %v334_v32 = vadd.f32 1.0, %v206_v13 }
 0x139   :  { %v1000_v33 = vpop.f32.mrf.mxu2  ;;  %v913_v19 = vpop.f32.mrf.mxu1  ;;  %v205_v9 = vld [vmem:[#allocation2 + $0x3f0] sm:$0xff]  ;;  %v329_v39 = vadd.f32 1.0, %v201_v54 }
 0x13a   :  { %1128 = vmatmul.bf16.gmra.mxu3 %v4868_v18  ;;  %v4874_v7 = vpack.c.bf16 %v2251_v16, %v2247_v5  ;;  %v1001_v56 = vadd.f32 %v1000_v33, %v912_v6  ;;  %v331_v6 = vadd.f32 1.0, %v203_v36  ;;  %v328_v33 = vadd.f32 1.0, %v200_v35  ;;  %v521_v4 = vld [vmem:[#allocation5 + $0x3d0] sm:$0xff] }
 0x13b   :  { %1762 = vmatpush.bf16.msra.mxu3 %v781_v2  ;;  %v332_v18 = vadd.f32 1.0, %v204_v3  ;;  %v333_v38 = vadd.f32 1.0, %v205_v9  ;;  %v717_v52 = vpack.c.bf16 %v525_v34, %v521_v4 }
 0x13c   :  { %5753 = vst [vmem:[#allocation46_spill] sm:$0xff] %v4874_v7  ;;  %v202_v7 = vld [vmem:[#allocation2 + $0x3d8] sm:$0xff]  ;;  %v4876_v15 = vpack.c.bf16 %v331_v6, %v327_v10 }
 0x13d   :  { %v1089_v37 = vpop.f32.mrf.mxu3  ;;  %v824_v8 = vpop.f32.mrf.mxu0  ;;  %v330_v53 = vadd.f32 1.0, %v202_v7  ;;  %1584 = vmatpush.bf16.msra.mxu1 %v717_v52  ;;  %v4880_v0 = vpack.c.bf16 %v333_v38, %v329_v39 }
 0x13e   :  { %v1090_v5 = vadd.f32 %v1089_v37, %v1001_v56  ;;  %v914_v16 = vadd.f32 %v913_v19, %v824_v8  ;;  %v4878_v8 = vpack.c.bf16 %v332_v18, %v328_v33 }
 0x13f   :  { %v4882_v35 = vpack.c.bf16 %v334_v32, %v330_v53 }
 0x140   :  { %v2255_v7 = vmax.f32 %v1090_v5, 0.0 }
 0x141   :  { %v1002_v11 = vpop.f32.mrf.mxu2  ;;  %v916_v36 = vpop.f32.mrf.mxu1 }
 0x142   :  { %v1003_v17 = vadd.f32 %v1002_v11, %v914_v16 }
 0x144   :  { %955 = vmatmul.bf16.gmra.mxu1 %v4878_v8 }
 0x145   :  { %v1091_v56 = vpop.f32.mrf.mxu3  ;;  %v827_v37 = vpop.f32.mrf.mxu0 }
 0x146   :  { %v1092_v1 = vadd.f32 %v1091_v56, %v1003_v17  ;;  %v917_v2 = vadd.f32 %v916_v36, %v827_v37  ;;  %1044 = vmatmul.bf16.gmra.mxu2 %v4880_v0  ;;  %v577_v17 = vld [vmem:[#allocation5 + $0x590] sm:$0xff] }
 0x147   :  { %v581_v56 = vld [vmem:[#allocation5 + $0x5b0] sm:$0xff] }
 0x148   :  { %866 = vmatmul.bf16.gmra.mxu0 %v4876_v15  ;;  %v2259_v4 = vmax.f32 %v1092_v1, 0.0  ;;  %v449_v37 = vld [vmem:[#allocation5 + $0x190] sm:$0xff]  ;;  %v745_v1 = vpack.c.bf16 %v581_v56, %v577_v17 }
 0x149   :  { %v1005_v18 = vpop.f32.mrf.mxu2  ;;  %v918_v3 = vpop.f32.mrf.mxu1 }
 0x14a   :  { %1133 = vmatmul.bf16.gmra.mxu3 %v4882_v35  ;;  %v4888_v11 = vpack.c.bf16 %v2259_v4, %v2255_v7  ;;  %v1006_v38 = vadd.f32 %v1005_v18, %v917_v2  ;;  %v453_v2 = vld [vmem:[#allocation5 + $0x1b0] sm:$0xff]  ;;  %1674 = vmatpush.bf16.msra.mxu2 %v745_v1 }
 0x14b   :  { %v641_v7 = vld [vmem:[#allocation5 + $0x790] sm:$0xff] }
 0x14c   :  { %5754 = vst [vmem:[#allocation47_spill] sm:$0xff] %v4888_v11  ;;  %v645_v4 = vld [vmem:[#allocation5 + $0x7b0] sm:$0xff] }
 0x14d   :  { %v1094_v39 = vpop.f32.mrf.mxu3  ;;  %v829_v19 = vpop.f32.mrf.mxu0  ;;  %v5766_v11 = vld [vmem:[#allocation17_spill] sm:$0xff] }
 0x14e   :  { %v1095_v54 = vadd.f32 %v1094_v39, %v1006_v38  ;;  %v919_v9 = vadd.f32 %v918_v3, %v829_v19  ;;  %v681_v19 = vpack.c.bf16 %v453_v2, %v449_v37  ;;  %v777_v3 = vpack.c.bf16 %v645_v4, %v641_v7 }
 0x150   :  { %v2263_v53 = vmax.f32 %v1095_v54, 0.0  ;;  %1496 = vmatpush.bf16.msra.mxu0 %v681_v19  ;;  %1763 = vmatpush.bf16.msra.mxu3 %v777_v3 }
 0x151   :  { %v1007_v16 = vpop.f32.mrf.mxu2  ;;  %v921_v6 = vpop.f32.mrf.mxu1 }
 0x152   :  { %v1008_v13 = vadd.f32 %v1007_v16, %v919_v9 }
 0x154   :  { %1236 = vmatmul.bf16.vlgmr.msrb.gmra.mxu1 %v4686_v59 }
 0x155   :  { %v1096_v10 = vpop.f32.mrf.mxu3  ;;  %v832_v5 = vpop.f32.mrf.mxu0 }
 0x156   :  { %v1097_v33 = vadd.f32 %v1096_v10, %v1008_v13  ;;  %v922_v34 = vadd.f32 %v921_v6, %v832_v5  ;;  %1325 = vmatmul.bf16.vlgmr.msrb.gmra.mxu2 %v4688_v60  ;;  %v513_v13 = vld [vmem:[#allocation5 + $0x390] sm:$0xff] }
 0x157   :  { %v517_v10 = vld [vmem:[#allocation5 + $0x3b0] sm:$0xff] }
 0x158   :  { %1147 = vmatmul.bf16.vlgmr.msrb.gmra.mxu0 %v4684_v55  ;;  %v2267_v32 = vmax.f32 %v1097_v33, 0.0  ;;  %v713_v5 = vpack.c.bf16 %v517_v10, %v513_v13 }
 0x159   :  { %v1010_v36 = vpop.f32.mrf.mxu2  ;;  %v923_v54 = vpop.f32.mrf.mxu1 }
 0x15a   :  { %1414 = vmatmul.bf16.vlgmr.msrb.gmra.mxu3 %v4690_v61  ;;  %v4894_v52 = vpack.c.bf16 %v2267_v32, %v2263_v53  ;;  %v1011_v18 = vadd.f32 %v1010_v36, %v922_v34  ;;  %1585 = vmatpush.bf16.msra.mxu1 %v713_v5 }
 0x15c   :  { %5755 = vst [vmem:[#allocation48_spill] sm:$0xff] %v4894_v52 }
 0x15d   :  { %v1099_v38 = vpop.f32.mrf.mxu3  ;;  %v834_v39 = vpop.f32.mrf.mxu0 }
 0x15e   :  { %v1100_v9 = vadd.f32 %v1099_v38, %v1011_v18  ;;  %v924_v16 = vadd.f32 %v923_v54, %v834_v39 }
 0x160   :  { %v2271_v37 = vmax.f32 %v1100_v9, 0.0 }
 0x161   :  { %v1012_v6 = vpop.f32.mrf.mxu2  ;;  %v926_v17 = vpop.f32.mrf.mxu1 }
 0x162   :  { %v1013_v33 = vadd.f32 %v1012_v6, %v924_v16 }
 0x164   :  { %1241 = vmatmul.bf16.gmra.mxu1 %v4698_v29 }
 0x165   :  { %v1101_v53 = vpop.f32.mrf.mxu3  ;;  %v837_v32 = vpop.f32.mrf.mxu0 }
 0x166   :  { %v1102_v34 = vadd.f32 %v1101_v53, %v1013_v33  ;;  %v927_v56 = vadd.f32 %v926_v17, %v837_v32  ;;  %1330 = vmatmul.bf16.gmra.mxu2 %v4700_v30  ;;  %v569_v32 = vld [vmem:[#allocation5 + $0x550] sm:$0xff] }
 0x167   :  { %v573_v17 = vld [vmem:[#allocation5 + $0x570] sm:$0xff] }
 0x168   :  { %1152 = vmatmul.bf16.gmra.mxu0 %v4696_v28  ;;  %v2275_v36 = vmax.f32 %v1102_v34, 0.0  ;;  %v441_v34 = vld [vmem:[#allocation5 + $0x150] sm:$0xff] }
 0x169   :  { %v1015_v2 = vpop.f32.mrf.mxu2  ;;  %v928_v38 = vpop.f32.mrf.mxu1 }
 0x16a   :  { %1419 = vmatmul.bf16.gmra.mxu3 %v4702_v31  ;;  %v4900_v1 = vpack.c.bf16 %v2275_v36, %v2271_v37  ;;  %v1016_v7 = vadd.f32 %v1015_v2, %v927_v56  ;;  %v741_v37 = vpack.c.bf16 %v573_v17, %v569_v32  ;;  %v445_v36 = vld [vmem:[#allocation5 + $0x170] sm:$0xff] }
 0x16b   :  { %v633_v2 = vld [vmem:[#allocation5 + $0x750] sm:$0xff] }
 0x16c   :  { %5756 = vst [vmem:[#allocation49_spill] sm:$0xff] %v4900_v1  ;;  %1675 = vmatpush.bf16.msra.mxu2 %v741_v37 }
 0x16d   :  { %v1104_v4 = vpop.f32.mrf.mxu3  ;;  %v839_v18 = vpop.f32.mrf.mxu0 }
 0x16e   :  { %v1105_v39 = vadd.f32 %v1104_v4, %v1016_v7  ;;  %v929_v19 = vadd.f32 %v928_v38, %v839_v18  ;;  %v637_v7 = vld [vmem:[#allocation5 + $0x770] sm:$0xff] }
 0x170   :  { %v2279_v6 = vmax.f32 %v1105_v39, 0.0  ;;  %v677_v39 = vpack.c.bf16 %v445_v36, %v441_v34 }
 0x171   :  { %v1017_v3 = vpop.f32.mrf.mxu2  ;;  %v931_v13 = vpop.f32.mrf.mxu1 }
 0x172   :  { %v1018_v54 = vadd.f32 %v1017_v3, %v929_v19  ;;  %v773_v19 = vpack.c.bf16 %v637_v7, %v633_v2  ;;  %1497 = vmatpush.bf16.msra.mxu0 %v677_v39 }
 0x174   :  { %1246 = vmatmul.bf16.gmra.mxu1 %v4710_v49  ;;  %1764 = vmatpush.bf16.msra.mxu3 %v773_v19 }
 0x175   :  { %v1106_v16 = vpop.f32.mrf.mxu3  ;;  %v842_v9 = vpop.f32.mrf.mxu0 }
 0x176   :  { %v1107_v10 = vadd.f32 %v1106_v16, %v1018_v54  ;;  %v932_v5 = vadd.f32 %v931_v13, %v842_v9  ;;  %1335 = vmatmul.bf16.gmra.mxu2 %v4712_v50  ;;  %v505_v9 = vld [vmem:[#allocation5 + $0x350] sm:$0xff] }
 0x177   :  { %v509_v13 = vld [vmem:[#allocation5 + $0x370] sm:$0xff] }
 0x178   :  { %1157 = vmatmul.bf16.gmra.mxu0 %v4708_v48  ;;  %v2283_v33 = vmax.f32 %v1107_v10, 0.0  ;;  %v709_v10 = vpack.c.bf16 %v509_v13, %v505_v9 }
 0x179   :  { %v1020_v56 = vpop.f32.mrf.mxu2  ;;  %v933_v3 = vpop.f32.mrf.mxu1 }
 0x17a   :  { %1424 = vmatmul.bf16.gmra.mxu3 %v4714_v51  ;;  %v4906_v53 = vpack.c.bf16 %v2283_v33, %v2279_v6  ;;  %v1021_v4 = vadd.f32 %v1020_v56, %v932_v5  ;;  %1586 = vmatpush.bf16.msra.mxu1 %v709_v10 }
 0x17c   :  { %5757 = vst [vmem:[#allocation50_spill] sm:$0xff] %v4906_v53 }
 0x17d   :  { %v1109_v18 = vpop.f32.mrf.mxu3  ;;  %v844_v38 = vpop.f32.mrf.mxu0 }
 0x17e   :  { %v1110_v54 = vadd.f32 %v1109_v18, %v1021_v4  ;;  %v934_v16 = vadd.f32 %v933_v3, %v844_v38 }
 0x180   :  { %v2287_v34 = vmax.f32 %v1110_v54, 0.0 }
 0x181   :  { %v1022_v6 = vpop.f32.mrf.mxu2  ;;  %v936_v53 = vpop.f32.mrf.mxu1 }
 0x182   :  { %v1023_v33 = vadd.f32 %v1022_v6, %v934_v16 }
 0x184   :  { %1251 = vmatmul.bf16.gmra.mxu1 %v4722_v21 }
 0x185   :  { %v1111_v32 = vpop.f32.mrf.mxu3  ;;  %v847_v17 = vpop.f32.mrf.mxu0 }
 0x186   :  { %v1112_v5 = vadd.f32 %v1111_v32, %v1023_v33  ;;  %v937_v56 = vadd.f32 %v936_v53, %v847_v17  ;;  %1340 = vmatmul.bf16.gmra.mxu2 %v4724_v22  ;;  %v561_v17 = vld [vmem:[#allocation5 + $0x510] sm:$0xff] }
 0x188   :  { %1162 = vmatmul.bf16.gmra.mxu0 %v4720_v20  ;;  %v2291_v36 = vmax.f32 %v1112_v5, 0.0  ;;  %v565_v5 = vld [vmem:[#allocation5 + $0x530] sm:$0xff] }
 0x189   :  { %v1025_v2 = vpop.f32.mrf.mxu2  ;;  %v938_v38 = vpop.f32.mrf.mxu1 }
 0x18a   :  { %1429 = vmatmul.bf16.gmra.mxu3 %v4726_v23  ;;  %v4912_v37 = vpack.c.bf16 %v2291_v36, %v2287_v34  ;;  %v1026_v7 = vadd.f32 %v1025_v2, %v937_v56  ;;  %v433_v56 = vld [vmem:[#allocation5 + $0x110] sm:$0xff]  ;;  %v737_v36 = vpack.c.bf16 %v565_v5, %v561_v17 }
 0x18b   :  { %v437_v2 = vld [vmem:[#allocation5 + $0x130] sm:$0xff] }
 0x18c   :  { %5758 = vst [vmem:[#allocation51_spill] sm:$0xff] %v4912_v37  ;;  %1676 = vmatpush.bf16.msra.mxu2 %v737_v36 }
 0x18d   :  { %v1114_v4 = vpop.f32.mrf.mxu3  ;;  %v849_v18 = vpop.f32.mrf.mxu0 }
 0x18e   :  { %v1115_v39 = vadd.f32 %v1114_v4, %v1026_v7  ;;  %v939_v19 = vadd.f32 %v938_v38, %v849_v18  ;;  %v625_v7 = vld [vmem:[#allocation5 + $0x710] sm:$0xff] }
 0x18f   :  { %v629_v4 = vld [vmem:[#allocation5 + $0x730] sm:$0xff] }
 0x190   :  { %v2295_v6 = vmax.f32 %v1115_v39, 0.0 }
 0x191   :  { %v1027_v53 = vpop.f32.mrf.mxu2  ;;  %v941_v9 = vpop.f32.mrf.mxu1 }
 0x192   :  { %v1028_v3 = vadd.f32 %v1027_v53, %v939_v19  ;;  %v673_v19 = vpack.c.bf16 %v437_v2, %v433_v56  ;;  %v769_v53 = vpack.c.bf16 %v629_v4, %v625_v7 }
 0x194   :  { %1256 = vmatmul.bf16.gmra.mxu1 %v4734_v45  ;;  %1498 = vmatpush.bf16.msra.mxu0 %v673_v19 }
 0x195   :  { %v1116_v16 = vpop.f32.mrf.mxu3  ;;  %v852_v54 = vpop.f32.mrf.mxu0  ;;  %1765 = vmatpush.bf16.msra.mxu3 %v769_v53 }
 0x196   :  { %v1117_v13 = vadd.f32 %v1116_v16, %v1028_v3  ;;  %v942_v10 = vadd.f32 %v941_v9, %v852_v54  ;;  %1345 = vmatmul.bf16.gmra.mxu2 %v4736_v46  ;;  %v497_v9 = vld [vmem:[#allocation5 + $0x310] sm:$0xff] }
 0x198   :  { %1167 = vmatmul.bf16.gmra.mxu0 %v4732_v44  ;;  %v2299_v33 = vmax.f32 %v1117_v13, 0.0  ;;  %v501_v13 = vld [vmem:[#allocation5 + $0x330] sm:$0xff] }
 0x199   :  { %v1030_v34 = vpop.f32.mrf.mxu2  ;;  %v943_v3 = vpop.f32.mrf.mxu1 }
 0x19a   :  { %1434 = vmatmul.bf16.gmra.mxu3 %v4738_v47  ;;  %v4918_v32 = vpack.c.bf16 %v2299_v33, %v2295_v6  ;;  %v1031_v18 = vadd.f32 %v1030_v34, %v942_v10  ;;  %v705_v6 = vpack.c.bf16 %v501_v13, %v497_v9 }
 0x19c   :  { %5759 = vst [vmem:[#allocation52_spill] sm:$0xff] %v4918_v32  ;;  %1587 = vmatpush.bf16.msra.mxu1 %v705_v6 }
 0x19d   :  { %v1119_v38 = vpop.f32.mrf.mxu3  ;;  %v854_v39 = vpop.f32.mrf.mxu0 }
 0x19e   :  { %v1120_v16 = vadd.f32 %v1119_v38, %v1031_v18  ;;  %v944_v54 = vadd.f32 %v943_v3, %v854_v39 }
 0x1a0   :  { %v2303_v56 = vmax.f32 %v1120_v16, 0.0 }
 0x1a1   :  { %v1032_v33 = vpop.f32.mrf.mxu2  ;;  %v946_v37 = vpop.f32.mrf.mxu1 }
 0x1a2   :  { %v1033_v17 = vadd.f32 %v1032_v33, %v944_v54 }
 0x1a4   :  { %1261 = vmatmul.bf16.gmra.mxu1 %v4746_v25 }
 0x1a5   :  { %v1121_v5 = vpop.f32.mrf.mxu3  ;;  %v857_v32 = vpop.f32.mrf.mxu0 }
 0x1a6   :  { %v1122_v10 = vadd.f32 %v1121_v5, %v1033_v17  ;;  %v947_v34 = vadd.f32 %v946_v37, %v857_v32  ;;  %1350 = vmatmul.bf16.gmra.mxu2 %v4748_v26  ;;  %v553_v5 = vld [vmem:[#allocation5 + $0x4d0] sm:$0xff] }
 0x1a8   :  { %1172 = vmatmul.bf16.gmra.mxu0 %v4744_v24  ;;  %v2307_v2 = vmax.f32 %v1122_v10, 0.0  ;;  %v557_v10 = vld [vmem:[#allocation5 + $0x4f0] sm:$0xff] }
 0x1a9   :  { %v1035_v7 = vpop.f32.mrf.mxu2  ;;  %v948_v39 = vpop.f32.mrf.mxu1 }
 0x1aa   :  { %1439 = vmatmul.bf16.gmra.mxu3 %v4750_v27  ;;  %v4924_v36 = vpack.c.bf16 %v2307_v2, %v2303_v56  ;;  %v1036_v4 = vadd.f32 %v1035_v7, %v947_v34  ;;  %v425_v34 = vld [vmem:[#allocation5 + $0xd0] sm:$0xff]  ;;  %v733_v2 = vpack.c.bf16 %v557_v10, %v553_v5 }
 0x1ab   :  { %v429_v7 = vld [vmem:[#allocation5 + $0xf0] sm:$0xff] }
 0x1ac   :  { %5760 = vst [vmem:[#allocation53_spill] sm:$0xff] %v4924_v36  ;;  %1677 = vmatpush.bf16.msra.mxu2 %v733_v2 }
 0x1ad   :  { %v1124_v18 = vpop.f32.mrf.mxu3  ;;  %v859_v38 = vpop.f32.mrf.mxu0 }
 0x1ae   :  { %v1125_v19 = vadd.f32 %v1124_v18, %v1036_v4  ;;  %v949_v53 = vadd.f32 %v948_v39, %v859_v38  ;;  %v617_v4 = vld [vmem:[#allocation5 + $0x6d0] sm:$0xff] }
 0x1af   :  { %v621_v18 = vld [vmem:[#allocation5 + $0x6f0] sm:$0xff] }
 0x1b0   :  { %v2311_v6 = vmax.f32 %v1125_v19, 0.0 }
 0x1b1   :  { %v1037_v37 = vpop.f32.mrf.mxu2  ;;  %v951_v54 = vpop.f32.mrf.mxu1 }
 0x1b2   :  { %v1038_v32 = vadd.f32 %v1037_v37, %v949_v53  ;;  %v669_v53 = vpack.c.bf16 %v429_v7, %v425_v34  ;;  %v765_v37 = vpack.c.bf16 %v621_v18, %v617_v4 }
 0x1b4   :  { %1266 = vmatmul.bf16.gmra.mxu1 %v4758_v58  ;;  %1499 = vmatpush.bf16.msra.mxu0 %v669_v53 }
 0x1b5   :  { %v1126_v3 = vpop.f32.mrf.mxu3  ;;  %v862_v16 = vpop.f32.mrf.mxu0  ;;  %1766 = vmatpush.bf16.msra.mxu3 %v765_v37 }
 0x1b6   :  { %v1127_v9 = vadd.f32 %v1126_v3, %v1038_v32  ;;  %v952_v13 = vadd.f32 %v951_v54, %v862_v16  ;;  %1355 = vmatmul.bf16.gmra.mxu2 %v4760_v62  ;;  %v489_v54 = vld [vmem:[#allocation5 + $0x2d0] sm:$0xff] }
 0x1b8   :  { %1177 = vmatmul.bf16.gmra.mxu0 %v4756_v57  ;;  %v2315_v33 = vmax.f32 %v1127_v9, 0.0  ;;  %v493_v9 = vld [vmem:[#allocation5 + $0x2f0] sm:$0xff] }
 0x1b9   :  { %v1040_v56 = vpop.f32.mrf.mxu2  ;;  %v953_v32 = vpop.f32.mrf.mxu1 }
 0x1ba   :  { %1444 = vmatmul.bf16.gmra.mxu3 %v4762_v63  ;;  %v4930_v17 = vpack.c.bf16 %v2315_v33, %v2311_v6  ;;  %v1041_v38 = vadd.f32 %v1040_v56, %v952_v13  ;;  %v701_v6 = vpack.c.bf16 %v493_v9, %v489_v54 }
 0x1bc   :  { %5761 = vst [vmem:[#allocation54_spill] sm:$0xff] %v4930_v17  ;;  %1588 = vmatpush.bf16.msra.mxu1 %v701_v6 }
 0x1bd   :  { %v1129_v39 = vpop.f32.mrf.mxu3  ;;  %v864_v19 = vpop.f32.mrf.mxu0 }
 0x1be   :  { %v1130_v3 = vadd.f32 %v1129_v39, %v1041_v38  ;;  %v954_v16 = vadd.f32 %v953_v32, %v864_v19 }
 0x1c0   :  { %v2319_v34 = vmax.f32 %v1130_v3, 0.0 }
 0x1c1   :  { %v1042_v33 = vpop.f32.mrf.mxu2  ;;  %v956_v36 = vpop.f32.mrf.mxu1 }
 0x1c2   :  { %v1043_v5 = vadd.f32 %v1042_v33, %v954_v16 }
 0x1c4   :  { %1271 = vmatmul.bf16.gmra.mxu1 %v4770_v41 }
 0x1c5   :  { %v1131_v10 = vpop.f32.mrf.mxu3  ;;  %v867_v17 = vpop.f32.mrf.mxu0 }
 0x1c6   :  { %v1132_v13 = vadd.f32 %v1131_v10, %v1043_v5  ;;  %v957_v56 = vadd.f32 %v956_v36, %v867_v17  ;;  %1360 = vmatmul.bf16.gmra.mxu2 %v4772_v42  ;;  %v5763_v5 = vld [vmem:[#allocation15_spill] sm:$0xff]  ;;  %v5764_v10 = vld [vmem:[#allocation16_spill] sm:$0xff] }
 0x1c8   :  { %1182 = vmatmul.bf16.gmra.mxu0 %v4768_v40  ;;  %v2323_v7 = vmax.f32 %v1132_v13, 0.0 }
 0x1c9   :  { %v1045_v4 = vpop.f32.mrf.mxu2  ;;  %v958_v19 = vpop.f32.mrf.mxu1 }
 0x1ca   :  { %1449 = vmatmul.bf16.gmra.mxu3 %v4774_v43  ;;  %v4936_v2 = vpack.c.bf16 %v2323_v7, %v2319_v34  ;;  %v1046_v18 = vadd.f32 %v1045_v4, %v957_v56  ;;  %v545_v56 = vld [vmem:[#allocation5 + $0x490] sm:$0xff] }
 0x1cb   :  { %v549_v34 = vld [vmem:[#allocation5 + $0x4b0] sm:$0xff] }
 0x1cc   :  { %5762 = vst [vmem:[#allocation55_spill] sm:$0xff] %v4936_v2  ;;  %v417_v7 = vld [vmem:[#allocation5 + $0x90] sm:$0xff] }
 0x1cd   :  { %v1134_v38 = vpop.f32.mrf.mxu3  ;;  %v869_v39 = vpop.f32.mrf.mxu0 }
 0x1ce   :  { %v1135_v53 = vadd.f32 %v1134_v38, %v1046_v18  ;;  %v959_v37 = vadd.f32 %v958_v19, %v869_v39  ;;  %v729_v18 = vpack.c.bf16 %v549_v34, %v545_v56  ;;  %v421_v38 = vld [vmem:[#allocation5 + $0xb0] sm:$0xff] }
 0x1cf   :  { %v609_v39 = vld [vmem:[#allocation5 + $0x690] sm:$0xff] }
 0x1d0   :  { %v2327_v6 = vmax.f32 %v1135_v53, 0.0  ;;  %v613_v19 = vld [vmem:[#allocation5 + $0x6b0] sm:$0xff]  ;;  %1678 = vmatpush.bf16.msra.mxu2 %v729_v18  ;;  %v5767_v18 = vld [vmem:[#allocation18_spill] sm:$0xff] }
 0x1d1   :  { %v1047_v36 = vpop.f32.mrf.mxu2  ;;  %v1237_v16 = vpop.f32.mrf.mxu1 }
 0x1d2   :  { %v1048_v17 = vadd.f32 %v1047_v36, %v959_v37 }
 0x1d4   :  { %1276 = vmatmul.bf16.gmra.mxu1 %v4782_v14 }
 0x1d5   :  { %v1136_v32 = vpop.f32.mrf.mxu3  ;;  %v1148_v3 = vpop.f32.mrf.mxu0 }
 0x1d6   :  { %v1137_v54 = vadd.f32 %v1136_v32, %v1048_v17  ;;  %v1238_v9 = vadd.f32 %v1237_v16, %v1148_v3  ;;  %1365 = vmatmul.bf16.gmra.mxu2 %v5763_v5  ;;  %v665_v17 = vpack.c.bf16 %v421_v38, %v417_v7  ;;  %v761_v32 = vpack.c.bf16 %v613_v19, %v609_v39  ;;  %v5768_v39 = vld [vmem:[#allocation19_spill] sm:$0xff]  ;;  %v5769_v19 = vld [vmem:[#allocation20_spill] sm:$0xff] }
 0x1d8   :  { %1187 = vmatmul.bf16.gmra.mxu0 %v4780_v12  ;;  %v2331_v33 = vmax.f32 %v1137_v54, 0.0  ;;  %1767 = vmatpush.bf16.msra.mxu3 %v761_v32 }
 0x1d9   :  { %v1326_v4 = vpop.f32.mrf.mxu2  ;;  %v1239_v3 = vpop.f32.mrf.mxu1  ;;  %1500 = vmatpush.bf16.msra.mxu0 %v665_v17 }
 0x1da   :  { %1454 = vmatmul.bf16.gmra.mxu3 %v5764_v10  ;;  %v4942_v13 = vpack.c.bf16 %v2331_v33, %v2327_v6  ;;  %v1327_v37 = vadd.f32 %v1326_v4, %v1238_v9  ;;  %v481_v6 = vld [vmem:[#allocation5 + $0x290] sm:$0xff] }
 0x1db   :  { %v485_v33 = vld [vmem:[#allocation5 + $0x2b0] sm:$0xff] }
 0x1dc   :  { %5765 = vst [vmem:[#allocation15_spill] sm:$0xff] %v4942_v13  ;;  %v697_v13 = vpack.c.bf16 %v485_v33, %v481_v6 }
 0x1dd   :  { %v1415_v36 = vpop.f32.mrf.mxu3  ;;  %v1150_v53 = vpop.f32.mrf.mxu0 }
 0x1de   :  { %v1416_v16 = vadd.f32 %v1415_v36, %v1327_v37  ;;  %v1240_v54 = vadd.f32 %v1239_v3, %v1150_v53  ;;  %1589 = vmatpush.bf16.msra.mxu1 %v697_v13 }
 0x1e0   :  { %v2208_v7 = vmax.f32 %v1416_v16, 0.0 }
 0x1e1   :  { %v1328_v2 = vpop.f32.mrf.mxu2  ;;  %v1242_v52 = vpop.f32.mrf.mxu1 }
 0x1e2   :  { %v1329_v56 = vadd.f32 %v1328_v2, %v1240_v54 }
 0x1e4   :  { %1281 = vmatmul.bf16.gmra.mxu1 %v5767_v18 }
 0x1e5   :  { %v1417_v34 = vpop.f32.mrf.mxu3  ;;  %v1153_v1 = vpop.f32.mrf.mxu0 }
 0x1e6   :  { %v1418_v9 = vadd.f32 %v1417_v34, %v1329_v56  ;;  %v1243_v4 = vadd.f32 %v1242_v52, %v1153_v1  ;;  %1370 = vmatmul.bf16.gmra.mxu2 %v5768_v39  ;;  %v5771_v34 = vld [vmem:[#allocation22_spill] sm:$0xff] }
 0x1e8   :  { %1192 = vmatmul.bf16.gmra.mxu0 %v5766_v11  ;;  %v2212_v38 = vmax.f32 %v1418_v9, 0.0  ;;  %v5776_v11 = vld [vmem:[#allocation27_spill] sm:$0xff] }
 0x1e9   :  { %v1331_v36 = vpop.f32.mrf.mxu2  ;;  %v1244_v17 = vpop.f32.mrf.mxu1 }
 0x1ea   :  { %1459 = vmatmul.bf16.gmra.mxu3 %v5769_v19  ;;  %v4948_v37 = vpack.c.bf16 %v2212_v38, %v2208_v7  ;;  %v1332_v13 = vadd.f32 %v1331_v36, %v1243_v4  ;;  %v5772_v7 = vld [vmem:[#allocation23_spill] sm:$0xff]  ;;  %v5773_v38 = vld [vmem:[#allocation24_spill] sm:$0xff]  ;;  %v5774_v4 = vld [vmem:[#allocation25_spill] sm:$0xff] }
 0x1ec   :  { %5770 = vst [vmem:[#allocation56_spill] sm:$0xff] %v4948_v37 }
 0x1ed   :  { %v1420_v2 = vpop.f32.mrf.mxu3  ;;  %v1155_v53 = vpop.f32.mrf.mxu0 }
 0x1ee   :  { %v1421_v32 = vadd.f32 %v1420_v2, %v1332_v13  ;;  %v1245_v3 = vadd.f32 %v1244_v17, %v1155_v53  ;;  %v537_v13 = vld [vmem:[#allocation5 + $0x450] sm:$0xff] }
 0x1ef   :  { %v541_v2 = vld [vmem:[#allocation5 + $0x470] sm:$0xff] }
 0x1f0   :  { %v2216_v9 = vmax.f32 %v1421_v32, 0.0  ;;  %v409_v53 = vld [vmem:[#allocation5 + $0x50] sm:$0xff] }
 0x1f1   :  { %v1333_v52 = vpop.f32.mrf.mxu2  ;;  %v1247_v6 = vpop.f32.mrf.mxu1 }
 0x1f2   :  { %v1334_v1 = vadd.f32 %v1333_v52, %v1245_v3  ;;  %v725_v3 = vpack.c.bf16 %v541_v2, %v537_v13  ;;  %v413_v52 = vld [vmem:[#allocation5 + $0x70] sm:$0xff] }
 0x1f4   :  { %1286 = vmatmul.bf16.gmra.mxu1 %v5772_v7  ;;  %1679 = vmatpush.bf16.msra.mxu2 %v725_v3  ;;  %v5777_v3 = vld [vmem:[#allocation28_spill] sm:$0xff] }
 0x1f5   :  { %v1422_v54 = vpop.f32.mrf.mxu3  ;;  %v1158_v16 = vpop.f32.mrf.mxu0 }
 0x1f6   :  { %v1423_v33 = vadd.f32 %v1422_v54, %v1334_v1  ;;  %v1248_v56 = vadd.f32 %v1247_v6, %v1158_v16  ;;  %1375 = vmatmul.bf16.gmra.mxu2 %v5773_v38  ;;  %v601_v1 = vld [vmem:[#allocation5 + $0x650] sm:$0xff] }
 0x1f7   :  { %v605_v54 = vld [vmem:[#allocation5 + $0x670] sm:$0xff] }
 0x1f8   :  { %1197 = vmatmul.bf16.gmra.mxu0 %v5771_v34  ;;  %v2220_v19 = vmax.f32 %v1423_v33, 0.0  ;;  %v661_v33 = vpack.c.bf16 %v413_v52, %v409_v53  ;;  %v757_v37 = vpack.c.bf16 %v605_v54, %v601_v1 }
 0x1f9   :  { %v1336_v17 = vpop.f32.mrf.mxu2  ;;  %v1249_v7 = vpop.f32.mrf.mxu1 }
 0x1fa   :  { %1464 = vmatmul.bf16.gmra.mxu3 %v5774_v4  ;;  %v4954_v36 = vpack.c.bf16 %v2220_v19, %v2216_v9  ;;  %v1337_v16 = vadd.f32 %v1336_v17, %v1248_v56  ;;  %1501 = vmatpush.bf16.msra.mxu0 %v661_v33  ;;  %v473_v19 = vld [vmem:[#allocation5 + $0x250] sm:$0xff] }
 0x1fb   :  { %1768 = vmatpush.bf16.msra.mxu3 %v757_v37  ;;  %v477_v9 = vld [vmem:[#allocation5 + $0x270] sm:$0xff]  ;;  %v5779_v37 = vld [vmem:[#allocation30_spill] sm:$0xff] }
 0x1fc   :  { %5775 = vst [vmem:[#allocation57_spill] sm:$0xff] %v4954_v36  ;;  %v693_v36 = vpack.c.bf16 %v477_v9, %v473_v19 }
 0x1fd   :  { %v1425_v6 = vpop.f32.mrf.mxu3  ;;  %v1160_v32 = vpop.f32.mrf.mxu0 }
 0x1fe   :  { %v1426_v38 = vadd.f32 %v1425_v6, %v1337_v16  ;;  %v1250_v34 = vadd.f32 %v1249_v7, %v1160_v32  ;;  %1590 = vmatpush.bf16.msra.mxu1 %v693_v36  ;;  %v5778_v7 = vld [vmem:[#allocation29_spill] sm:$0xff] }
 0x200   :  { %v2224_v53 = vmax.f32 %v1426_v38, 0.0 }
 0x201   :  { %v1338_v4 = vpop.f32.mrf.mxu2  ;;  %v1252_v18 = vpop.f32.mrf.mxu1 }
 0x202   :  { %v1339_v13 = vadd.f32 %v1338_v4, %v1250_v34 }
 0x204   :  { %1291 = vmatmul.bf16.gmra.mxu1 %v5777_v3 }
 0x205   :  { %v1427_v2 = vpop.f32.mrf.mxu3  ;;  %v1163_v39 = vpop.f32.mrf.mxu0 }
 0x206   :  { %v1428_v56 = vadd.f32 %v1427_v2, %v1339_v13  ;;  %v1253_v17 = vadd.f32 %v1252_v18, %v1163_v39  ;;  %1380 = vmatmul.bf16.gmra.mxu2 %v5778_v7  ;;  %v5781_v2 = vld [vmem:[#allocation32_spill] sm:$0xff] }
 0x208   :  { %1202 = vmatmul.bf16.gmra.mxu0 %v5776_v11  ;;  %v2228_v52 = vmax.f32 %v1428_v56, 0.0  ;;  %v5786_v11 = vld [vmem:[#allocation37_spill] sm:$0xff] }
 0x209   :  { %v1341_v54 = vpop.f32.mrf.mxu2  ;;  %v1254_v16 = vpop.f32.mrf.mxu1 }
 0x20a   :  { %1469 = vmatmul.bf16.gmra.mxu3 %v5779_v37  ;;  %v4960_v1 = vpack.c.bf16 %v2228_v52, %v2224_v53  ;;  %v1342_v36 = vadd.f32 %v1341_v54, %v1253_v17  ;;  %v5782_v53 = vld [vmem:[#allocation33_spill] sm:$0xff]  ;;  %v5783_v52 = vld [vmem:[#allocation34_spill] sm:$0xff]  ;;  %v5784_v17 = vld [vmem:[#allocation35_spill] sm:$0xff] }
 0x20c   :  { %5780 = vst [vmem:[#allocation58_spill] sm:$0xff] %v4960_v1 }
 0x20d   :  { %v1430_v34 = vpop.f32.mrf.mxu3  ;;  %v1165_v4 = vpop.f32.mrf.mxu0 }
 0x20e   :  { %v1431_v6 = vadd.f32 %v1430_v34, %v1342_v36  ;;  %v1255_v32 = vadd.f32 %v1254_v16, %v1165_v4  ;;  %v529_v36 = vld [vmem:[#allocation5 + $0x410] sm:$0xff] }
 0x20f   :  { %v533_v34 = vld [vmem:[#allocation5 + $0x430] sm:$0xff] }
 0x210   :  { %v2232_v56 = vmax.f32 %v1431_v6, 0.0  ;;  %v401_v4 = vld [vmem:[#allocation5 + $0x10] sm:$0xff] }
 0x211   :  { %v1343_v18 = vpop.f32.mrf.mxu2  ;;  %v1257_v19 = vpop.f32.mrf.mxu1 }
 0x212   :  { %v1344_v39 = vadd.f32 %v1343_v18, %v1255_v32  ;;  %v721_v32 = vpack.c.bf16 %v533_v34, %v529_v36  ;;  %v405_v18 = vld [vmem:[#allocation5 + $0x30] sm:$0xff] }
 0x214   :  { %1296 = vmatmul.bf16.gmra.mxu1 %v5782_v53  ;;  %1680 = vmatpush.bf16.msra.mxu2 %v721_v32  ;;  %v5787_v32 = vld [vmem:[#allocation38_spill] sm:$0xff] }
 0x215   :  { %v1432_v33 = vpop.f32.mrf.mxu3  ;;  %v1168_v38 = vpop.f32.mrf.mxu0 }
 0x216   :  { %v1433_v9 = vadd.f32 %v1432_v33, %v1344_v39  ;;  %v1258_v13 = vadd.f32 %v1257_v19, %v1168_v38  ;;  %1385 = vmatmul.bf16.gmra.mxu2 %v5783_v52  ;;  %v593_v39 = vld [vmem:[#allocation5 + $0x610] sm:$0xff] }
 0x217   :  { %v597_v33 = vld [vmem:[#allocation5 + $0x630] sm:$0xff] }
 0x218   :  { %1207 = vmatmul.bf16.gmra.mxu0 %v5781_v2  ;;  %v2236_v37 = vmax.f32 %v1433_v9, 0.0  ;;  %v657_v9 = vpack.c.bf16 %v405_v18, %v401_v4  ;;  %v753_v1 = vpack.c.bf16 %v597_v33, %v593_v39 }
 0x219   :  { %v1346_v16 = vpop.f32.mrf.mxu2  ;;  %v1259_v53 = vpop.f32.mrf.mxu1 }
 0x21a   :  { %1474 = vmatmul.bf16.gmra.mxu3 %v5784_v17  ;;  %v4966_v54 = vpack.c.bf16 %v2236_v37, %v2232_v56  ;;  %v1347_v38 = vadd.f32 %v1346_v16, %v1258_v13  ;;  %1502 = vmatpush.bf16.msra.mxu0 %v657_v9  ;;  %v465_v37 = vld [vmem:[#allocation5 + $0x210] sm:$0xff] }
 0x21b   :  { %1769 = vmatpush.bf16.msra.mxu3 %v753_v1  ;;  %v469_v56 = vld [vmem:[#allocation5 + $0x230] sm:$0xff] }
 0x21c   :  { %5785 = vst [vmem:[#allocation59_spill] sm:$0xff] %v4966_v54  ;;  %v689_v54 = vpack.c.bf16 %v469_v56, %v465_v37  ;;  %v5789_v1 = vld [vmem:[#allocation40_spill] sm:$0xff] }
 0x21d   :  { %v1435_v19 = vpop.f32.mrf.mxu3  ;;  %v1170_v6 = vpop.f32.mrf.mxu0 }
 0x21e   :  { %v1436_v52 = vadd.f32 %v1435_v19, %v1347_v38  ;;  %v1260_v2 = vadd.f32 %v1259_v53, %v1170_v6  ;;  %1591 = vmatpush.bf16.msra.mxu1 %v689_v54  ;;  %v5788_v53 = vld [vmem:[#allocation39_spill] sm:$0xff] }
 0x220   :  { %v2240_v4 = vmax.f32 %v1436_v52, 0.0 }
 0x221   :  { %v1348_v17 = vpop.f32.mrf.mxu2  ;;  %v1262_v3 = vpop.f32.mrf.mxu1 }
 0x222   :  { %v1349_v36 = vadd.f32 %v1348_v17, %v1260_v2 }
 0x224   :  { %1301 = vmatmul.bf16.gmra.mxu1 %v5787_v32 }
 0x225   :  { %v1437_v34 = vpop.f32.mrf.mxu3  ;;  %v1173_v7 = vpop.f32.mrf.mxu0 }
 0x226   :  { %v1438_v13 = vadd.f32 %v1437_v34, %v1349_v36  ;;  %v1263_v16 = vadd.f32 %v1262_v3, %v1173_v7  ;;  %1390 = vmatmul.bf16.gmra.mxu2 %v5788_v53  ;;  %v5791_v34 = vld [vmem:[#allocation42_spill] sm:$0xff] }
 0x228   :  { %1212 = vmatmul.bf16.gmra.mxu0 %v5786_v11  ;;  %v2244_v18 = vmax.f32 %v1438_v13, 0.0 }
 0x229   :  { %v1351_v33 = vpop.f32.mrf.mxu2  ;;  %v1264_v38 = vpop.f32.mrf.mxu1 }
 0x22a   :  { %1479 = vmatmul.bf16.gmra.mxu3 %v5789_v1  ;;  %v4972_v39 = vpack.c.bf16 %v2244_v18, %v2240_v4  ;;  %v1352_v54 = vadd.f32 %v1351_v33, %v1263_v16  ;;  %v5792_v4 = vld [vmem:[#allocation43_spill] sm:$0xff]  ;;  %v5793_v18 = vld [vmem:[#allocation44_spill] sm:$0xff]  ;;  %v5794_v16 = vld [vmem:[#allocation45_spill] sm:$0xff] }
 0x22c   :  { %5790 = vst [vmem:[#allocation37_spill] sm:$0xff] %v4972_v39 }
 0x22d   :  { %v1440_v2 = vpop.f32.mrf.mxu3  ;;  %v1175_v17 = vpop.f32.mrf.mxu0 }
 0x22e   :  { %v1441_v19 = vadd.f32 %v1440_v2, %v1352_v54  ;;  %v1265_v6 = vadd.f32 %v1264_v38, %v1175_v17  ;;  %v586_v54 = vld [vmem:[#allocation5 + $0x5d8] sm:$0xff] }
 0x22f   :  { %v590_v2 = vld [vmem:[#allocation5 + $0x5f8] sm:$0xff] }
 0x230   :  { %v2248_v13 = vmax.f32 %v1441_v19, 0.0  ;;  %v458_v17 = vld [vmem:[#allocation5 + $0x1d8] sm:$0xff] }
 0x231   :  { %v1353_v3 = vpop.f32.mrf.mxu2  ;;  %v1267_v37 = vpop.f32.mrf.mxu1 }
 0x232   :  { %v1354_v7 = vadd.f32 %v1353_v3, %v1265_v6  ;;  %v750_v6 = vpack.c.bf16 %v590_v2, %v586_v54  ;;  %v462_v3 = vld [vmem:[#allocation5 + $0x1f8] sm:$0xff] }
 0x234   :  { %1306 = vmatmul.bf16.gmra.mxu1 %v5792_v4  ;;  %2029 = vmatpush.bf16.msrb.mxu2 %v750_v6 }
 0x235   :  { %v1442_v9 = vpop.f32.mrf.mxu3  ;;  %v1178_v52 = vpop.f32.mrf.mxu0 }
 0x236   :  { %v1443_v56 = vadd.f32 %v1442_v9, %v1354_v7  ;;  %v1268_v36 = vadd.f32 %v1267_v37, %v1178_v52  ;;  %1395 = vmatmul.bf16.gmra.mxu2 %v5793_v18  ;;  %v650_v7 = vld [vmem:[#allocation5 + $0x7d8] sm:$0xff] }
 0x237   :  { %v654_v9 = vld [vmem:[#allocation5 + $0x7f8] sm:$0xff] }
 0x238   :  { %1217 = vmatmul.bf16.gmra.mxu0 %v5791_v34  ;;  %v2252_v1 = vmax.f32 %v1443_v56, 0.0  ;;  %v686_v56 = vpack.c.bf16 %v462_v3, %v458_v17  ;;  %v782_v39 = vpack.c.bf16 %v654_v9, %v650_v7 }
 0x239   :  { %v1356_v38 = vpop.f32.mrf.mxu2  ;;  %v1269_v4 = vpop.f32.mrf.mxu1 }
 0x23a   :  { %1484 = vmatmul.bf16.gmra.mxu3 %v5794_v16  ;;  %v4978_v33 = vpack.c.bf16 %v2252_v1, %v2248_v13  ;;  %v1357_v52 = vadd.f32 %v1356_v38, %v1268_v36  ;;  %1851 = vmatpush.bf16.msrb.mxu0 %v686_v56  ;;  %v522_v1 = vld [vmem:[#allocation5 + $0x3d8] sm:$0xff] }
 0x23b   :  { %2118 = vmatpush.bf16.msrb.mxu3 %v782_v39  ;;  %v526_v13 = vld [vmem:[#allocation5 + $0x3f8] sm:$0xff] }
 0x23c   :  { %5795 = vst [vmem:[#allocation60_spill] sm:$0xff] %v4978_v33  ;;  %v718_v33 = vpack.c.bf16 %v526_v13, %v522_v1 }
 0x23d   :  { %v1445_v37 = vpop.f32.mrf.mxu3  ;;  %v1180_v19 = vpop.f32.mrf.mxu0 }
 0x23e   :  { %v1446_v18 = vadd.f32 %v1445_v37, %v1357_v52  ;;  %v1270_v34 = vadd.f32 %v1269_v4, %v1180_v19  ;;  %1940 = vmatpush.bf16.msrb.mxu1 %v718_v33 }
 0x240   :  { %v2256_v17 = vmax.f32 %v1446_v18, 0.0 }
 0x241   :  { %v1358_v16 = vpop.f32.mrf.mxu2  ;;  %v1272_v32 = vpop.f32.mrf.mxu1 }
 0x242   :  { %v1359_v54 = vadd.f32 %v1358_v16, %v1270_v34 }
 0x244   :  { %1311 = vmatmul.bf16.gmra.mxu1 %v4878_v8 }
 0x245   :  { %v1447_v2 = vpop.f32.mrf.mxu3  ;;  %v1183_v53 = vpop.f32.mrf.mxu0 }
 0x246   :  { %v1448_v36 = vadd.f32 %v1447_v2, %v1359_v54  ;;  %v1273_v38 = vadd.f32 %v1272_v32, %v1183_v53  ;;  %1400 = vmatmul.bf16.gmra.mxu2 %v4880_v0  ;;  %v578_v2 = vld [vmem:[#allocation5 + $0x598] sm:$0xff] }
 0x248   :  { %1222 = vmatmul.bf16.gmra.mxu0 %v4876_v15  ;;  %v2260_v3 = vmax.f32 %v1448_v36, 0.0  ;;  %v582_v36 = vld [vmem:[#allocation5 + $0x5b8] sm:$0xff] }
 0x249   :  { %v1361_v4 = vpop.f32.mrf.mxu2  ;;  %v1274_v6 = vpop.f32.mrf.mxu1 }
 0x24a   :  { %1489 = vmatmul.bf16.gmra.mxu3 %v4882_v35  ;;  %v4984_v39 = vpack.c.bf16 %v2260_v3, %v2256_v17  ;;  %v1362_v33 = vadd.f32 %v1361_v4, %v1273_v38  ;;  %v450_v38 = vld [vmem:[#allocation5 + $0x198] sm:$0xff]  ;;  %v746_v3 = vpack.c.bf16 %v582_v36, %v578_v2 }
 0x24b   :  { %v454_v4 = vld [vmem:[#allocation5 + $0x1b8] sm:$0xff] }
 0x24c   :  { %5796 = vst [vmem:[#allocation61_spill] sm:$0xff] %v4984_v39  ;;  %2030 = vmatpush.bf16.msrb.mxu2 %v746_v3 }
 0x24d   :  { %v1450_v34 = vpop.f32.mrf.mxu3  ;;  %v1185_v16 = vpop.f32.mrf.mxu0 }
 0x24e   :  { %v1451_v7 = vadd.f32 %v1450_v34, %v1362_v33  ;;  %v1275_v9 = vadd.f32 %v1274_v6, %v1185_v16  ;;  %v642_v33 = vld [vmem:[#allocation5 + $0x798] sm:$0xff] }
 0x24f   :  { %v646_v34 = vld [vmem:[#allocation5 + $0x7b8] sm:$0xff] }
 0x250   :  { %v2264_v1 = vmax.f32 %v1451_v7, 0.0 }
 0x251   :  { %v1363_v32 = vpop.f32.mrf.mxu2  ;;  %v1277_v37 = vpop.f32.mrf.mxu1 }
 0x252   :  { %v1364_v53 = vadd.f32 %v1363_v32, %v1275_v9  ;;  %v682_v9 = vpack.c.bf16 %v454_v4, %v450_v38  ;;  %v778_v32 = vpack.c.bf16 %v646_v34, %v642_v33 }
 0x254   :  { %1592 = vmatmul.bf16.vlgmr.msra.gmra.mxu1 %v4686_v59  ;;  %1852 = vmatpush.bf16.msrb.mxu0 %v682_v9 }
 0x255   :  { %v1452_v52 = vpop.f32.mrf.mxu3  ;;  %v1188_v18 = vpop.f32.mrf.mxu0  ;;  %2119 = vmatpush.bf16.msrb.mxu3 %v778_v32 }
 0x256   :  { %v1453_v19 = vadd.f32 %v1452_v52, %v1364_v53  ;;  %v1278_v56 = vadd.f32 %v1277_v37, %v1188_v18  ;;  %1681 = vmatmul.bf16.vlgmr.msra.gmra.mxu2 %v4688_v60  ;;  %v514_v37 = vld [vmem:[#allocation5 + $0x398] sm:$0xff] }
 0x258   :  { %1503 = vmatmul.bf16.vlgmr.msra.gmra.mxu0 %v4684_v55  ;;  %v2268_v13 = vmax.f32 %v1453_v19, 0.0  ;;  %v518_v19 = vld [vmem:[#allocation5 + $0x3b8] sm:$0xff] }
 0x259   :  { %v1366_v17 = vpop.f32.mrf.mxu2  ;;  %v1279_v53 = vpop.f32.mrf.mxu1 }
 0x25a   :  { %1770 = vmatmul.bf16.vlgmr.msra.gmra.mxu3 %v4690_v61  ;;  %v4990_v54 = vpack.c.bf16 %v2268_v13, %v2264_v1  ;;  %v1367_v16 = vadd.f32 %v1366_v17, %v1278_v56  ;;  %v714_v1 = vpack.c.bf16 %v518_v19, %v514_v37 }
 0x25c   :  { %5797 = vst [vmem:[#allocation62_spill] sm:$0xff] %v4990_v54  ;;  %1941 = vmatpush.bf16.msrb.mxu1 %v714_v1 }
 0x25d   :  { %v1455_v6 = vpop.f32.mrf.mxu3  ;;  %v1190_v7 = vpop.f32.mrf.mxu0 }
 0x25e   :  { %v1456_v52 = vadd.f32 %v1455_v6, %v1367_v16  ;;  %v1280_v18 = vadd.f32 %v1279_v53, %v1190_v7 }
 0x260   :  { %v2272_v38 = vmax.f32 %v1456_v52, 0.0 }
 0x261   :  { %v1368_v13 = vpop.f32.mrf.mxu2  ;;  %v1282_v39 = vpop.f32.mrf.mxu1 }
 0x262   :  { %v1369_v2 = vadd.f32 %v1368_v13, %v1280_v18 }
 0x264   :  { %1597 = vmatmul.bf16.gmra.mxu1 %v4698_v29 }
 0x265   :  { %v1457_v36 = vpop.f32.mrf.mxu3  ;;  %v1193_v54 = vpop.f32.mrf.mxu0 }
 0x266   :  { %v1458_v56 = vadd.f32 %v1457_v36, %v1369_v2  ;;  %v1283_v17 = vadd.f32 %v1282_v39, %v1193_v54  ;;  %1686 = vmatmul.bf16.gmra.mxu2 %v4700_v30  ;;  %v570_v36 = vld [vmem:[#allocation5 + $0x558] sm:$0xff] }
 0x268   :  { %1508 = vmatmul.bf16.gmra.mxu0 %v4696_v28  ;;  %v2276_v4 = vmax.f32 %v1458_v56, 0.0  ;;  %v574_v56 = vld [vmem:[#allocation5 + $0x578] sm:$0xff] }
 0x269   :  { %v1371_v33 = vpop.f32.mrf.mxu2  ;;  %v1284_v7 = vpop.f32.mrf.mxu1 }
 0x26a   :  { %1775 = vmatmul.bf16.gmra.mxu3 %v4702_v31  ;;  %v4996_v3 = vpack.c.bf16 %v2276_v4, %v2272_v38  ;;  %v1372_v34 = vadd.f32 %v1371_v33, %v1283_v17  ;;  %v442_v17 = vld [vmem:[#allocation5 + $0x158] sm:$0xff]  ;;  %v742_v4 = vpack.c.bf16 %v574_v56, %v570_v36 }
 0x26b   :  { %v446_v33 = vld [vmem:[#allocation5 + $0x178] sm:$0xff] }
 0x26c   :  { %5798 = vst [vmem:[#allocation63_spill] sm:$0xff] %v4996_v3  ;;  %2031 = vmatpush.bf16.msrb.mxu2 %v742_v4 }
 0x26d   :  { %v1460_v16 = vpop.f32.mrf.mxu3  ;;  %v1195_v6 = vpop.f32.mrf.mxu0 }
 0x26e   :  { %v1461_v9 = vadd.f32 %v1460_v16, %v1372_v34  ;;  %v1285_v32 = vadd.f32 %v1284_v7, %v1195_v6  ;;  %v634_v34 = vld [vmem:[#allocation5 + $0x758] sm:$0xff] }
 0x26f   :  { %v638_v16 = vld [vmem:[#allocation5 + $0x778] sm:$0xff] }
 0x270   :  { %v2280_v1 = vmax.f32 %v1461_v9, 0.0 }
 0x271   :  { %v1373_v39 = vpop.f32.mrf.mxu2  ;;  %v1287_v18 = vpop.f32.mrf.mxu1 }
 0x272   :  { %v1374_v54 = vadd.f32 %v1373_v39, %v1285_v32  ;;  %v678_v32 = vpack.c.bf16 %v446_v33, %v442_v17  ;;  %v774_v39 = vpack.c.bf16 %v638_v16, %v634_v34 }
 0x274   :  { %1602 = vmatmul.bf16.gmra.mxu1 %v4710_v49  ;;  %1853 = vmatpush.bf16.msrb.mxu0 %v678_v32 }
 0x275   :  { %v1462_v53 = vpop.f32.mrf.mxu3  ;;  %v1198_v52 = vpop.f32.mrf.mxu0  ;;  %2120 = vmatpush.bf16.msrb.mxu3 %v774_v39 }
 0x276   :  { %v1463_v37 = vadd.f32 %v1462_v53, %v1374_v54  ;;  %v1288_v19 = vadd.f32 %v1287_v18, %v1198_v52  ;;  %1691 = vmatmul.bf16.gmra.mxu2 %v4712_v50  ;;  %v506_v18 = vld [vmem:[#allocation5 + $0x358] sm:$0xff] }
 0x278   :  { %1513 = vmatmul.bf16.gmra.mxu0 %v4708_v48  ;;  %v2284_v13 = vmax.f32 %v1463_v37, 0.0  ;;  %v510_v37 = vld [vmem:[#allocation5 + $0x378] sm:$0xff] }
 0x279   :  { %v1376_v38 = vpop.f32.mrf.mxu2  ;;  %v1289_v54 = vpop.f32.mrf.mxu1 }
 0x27a   :  { %1780 = vmatmul.bf16.gmra.mxu3 %v4714_v51  ;;  %v5002_v2 = vpack.c.bf16 %v2284_v13, %v2280_v1  ;;  %v1377_v6 = vadd.f32 %v1376_v38, %v1288_v19  ;;  %v710_v1 = vpack.c.bf16 %v510_v37, %v506_v18 }
 0x27c   :  { %5799 = vst [vmem:[#allocation64_spill] sm:$0xff] %v5002_v2  ;;  %1942 = vmatpush.bf16.msrb.mxu1 %v710_v1 }
 0x27d   :  { %v1465_v7 = vpop.f32.mrf.mxu3  ;;  %v1200_v9 = vpop.f32.mrf.mxu0 }
 0x27e   :  { %v1466_v53 = vadd.f32 %v1465_v7, %v1377_v6  ;;  %v1290_v52 = vadd.f32 %v1289_v54, %v1200_v9 }
 0x280   :  { %v2288_v17 = vmax.f32 %v1466_v53, 0.0 }
 0x281   :  { %v1378_v13 = vpop.f32.mrf.mxu2  ;;  %v1292_v3 = vpop.f32.mrf.mxu1 }
 0x282   :  { %v1379_v36 = vadd.f32 %v1378_v13, %v1290_v52 }
 0x284   :  { %1607 = vmatmul.bf16.gmra.mxu1 %v4722_v21 }
 0x285   :  { %v1467_v56 = vpop.f32.mrf.mxu3  ;;  %v1203_v2 = vpop.f32.mrf.mxu0 }
 0x286   :  { %v1468_v19 = vadd.f32 %v1467_v56, %v1379_v36  ;;  %v1293_v38 = vadd.f32 %v1292_v3, %v1203_v2  ;;  %1696 = vmatmul.bf16.gmra.mxu2 %v4724_v22  ;;  %v562_v56 = vld [vmem:[#allocation5 + $0x518] sm:$0xff] }
 0x288   :  { %1518 = vmatmul.bf16.gmra.mxu0 %v4720_v20  ;;  %v2292_v33 = vmax.f32 %v1468_v19, 0.0  ;;  %v566_v19 = vld [vmem:[#allocation5 + $0x538] sm:$0xff] }
 0x289   :  { %v1381_v34 = vpop.f32.mrf.mxu2  ;;  %v1294_v9 = vpop.f32.mrf.mxu1 }
 0x28a   :  { %1785 = vmatmul.bf16.gmra.mxu3 %v4726_v23  ;;  %v5008_v4 = vpack.c.bf16 %v2292_v33, %v2288_v17  ;;  %v1382_v16 = vadd.f32 %v1381_v34, %v1293_v38  ;;  %v434_v38 = vld [vmem:[#allocation5 + $0x118] sm:$0xff]  ;;  %v738_v33 = vpack.c.bf16 %v566_v19, %v562_v56 }
 0x28b   :  { %v438_v34 = vld [vmem:[#allocation5 + $0x138] sm:$0xff] }
 0x28c   :  { %5800 = vst [vmem:[#allocation65_spill] sm:$0xff] %v5008_v4  ;;  %2032 = vmatpush.bf16.msrb.mxu2 %v738_v33 }
 0x28d   :  { %v1470_v6 = vpop.f32.mrf.mxu3  ;;  %v1205_v7 = vpop.f32.mrf.mxu0 }
 0x28e   :  { %v1471_v32 = vadd.f32 %v1470_v6, %v1382_v16  ;;  %v1295_v39 = vadd.f32 %v1294_v9, %v1205_v7  ;;  %v626_v16 = vld [vmem:[#allocation5 + $0x718] sm:$0xff] }
 0x28f   :  { %v630_v6 = vld [vmem:[#allocation5 + $0x738] sm:$0xff] }
 0x290   :  { %v2296_v1 = vmax.f32 %v1471_v32, 0.0 }
 0x291   :  { %v1383_v3 = vpop.f32.mrf.mxu2  ;;  %v1297_v52 = vpop.f32.mrf.mxu1 }
 0x292   :  { %v1384_v2 = vadd.f32 %v1383_v3, %v1295_v39  ;;  %v674_v39 = vpack.c.bf16 %v438_v34, %v434_v38  ;;  %v770_v3 = vpack.c.bf16 %v630_v6, %v626_v16 }
 0x294   :  { %1612 = vmatmul.bf16.gmra.mxu1 %v4734_v45  ;;  %1854 = vmatpush.bf16.msrb.mxu0 %v674_v39 }
 0x295   :  { %v1472_v54 = vpop.f32.mrf.mxu3  ;;  %v1208_v53 = vpop.f32.mrf.mxu0  ;;  %2121 = vmatpush.bf16.msrb.mxu3 %v770_v3 }
 0x296   :  { %v1473_v18 = vadd.f32 %v1472_v54, %v1384_v2  ;;  %v1298_v37 = vadd.f32 %v1297_v52, %v1208_v53  ;;  %1701 = vmatmul.bf16.gmra.mxu2 %v4736_v46  ;;  %v498_v52 = vld [vmem:[#allocation5 + $0x318] sm:$0xff] }
 0x298   :  { %1523 = vmatmul.bf16.gmra.mxu0 %v4732_v44  ;;  %v2300_v13 = vmax.f32 %v1473_v18, 0.0  ;;  %v502_v18 = vld [vmem:[#allocation5 + $0x338] sm:$0xff] }
 0x299   :  { %v1386_v17 = vpop.f32.mrf.mxu2  ;;  %v1299_v2 = vpop.f32.mrf.mxu1 }
 0x29a   :  { %1790 = vmatmul.bf16.gmra.mxu3 %v4738_v47  ;;  %v5014_v36 = vpack.c.bf16 %v2300_v13, %v2296_v1  ;;  %v1387_v7 = vadd.f32 %v1386_v17, %v1298_v37  ;;  %v706_v1 = vpack.c.bf16 %v502_v18, %v498_v52 }
 0x29c   :  { %5801 = vst [vmem:[#allocation66_spill] sm:$0xff] %v5014_v36  ;;  %1943 = vmatpush.bf16.msrb.mxu1 %v706_v1 }
 0x29d   :  { %v1475_v9 = vpop.f32.mrf.mxu3  ;;  %v1210_v32 = vpop.f32.mrf.mxu0 }
 0x29e   :  { %v1476_v54 = vadd.f32 %v1475_v9, %v1387_v7  ;;  %v1300_v53 = vadd.f32 %v1299_v2, %v1210_v32 }
 0x2a0   :  { %v2304_v38 = vmax.f32 %v1476_v54, 0.0 }
 0x2a1   :  { %v1388_v13 = vpop.f32.mrf.mxu2  ;;  %v1302_v4 = vpop.f32.mrf.mxu1 }
 0x2a2   :  { %v1389_v56 = vadd.f32 %v1388_v13, %v1300_v53 }
 0x2a4   :  { %1617 = vmatmul.bf16.gmra.mxu1 %v4746_v25 }
 0x2a5   :  { %v1477_v19 = vpop.f32.mrf.mxu3  ;;  %v1213_v36 = vpop.f32.mrf.mxu0 }
 0x2a6   :  { %v1478_v37 = vadd.f32 %v1477_v19, %v1389_v56  ;;  %v1303_v17 = vadd.f32 %v1302_v4, %v1213_v36  ;;  %1706 = vmatmul.bf16.gmra.mxu2 %v4748_v26  ;;  %v554_v19 = vld [vmem:[#allocation5 + $0x4d8] sm:$0xff] }
 0x2a8   :  { %1528 = vmatmul.bf16.gmra.mxu0 %v4744_v24  ;;  %v2308_v34 = vmax.f32 %v1478_v37, 0.0  ;;  %v558_v37 = vld [vmem:[#allocation5 + $0x4f8] sm:$0xff] }
 0x2a9   :  { %v1391_v16 = vpop.f32.mrf.mxu2  ;;  %v1304_v32 = vpop.f32.mrf.mxu1 }
 0x2aa   :  { %1795 = vmatmul.bf16.gmra.mxu3 %v4750_v27  ;;  %v5020_v33 = vpack.c.bf16 %v2308_v34, %v2304_v38  ;;  %v1392_v6 = vadd.f32 %v1391_v16, %v1303_v17  ;;  %v426_v17 = vld [vmem:[#allocation5 + $0xd8] sm:$0xff]  ;;  %v734_v34 = vpack.c.bf16 %v558_v37, %v554_v19 }
 0x2ab   :  { %v430_v16 = vld [vmem:[#allocation5 + $0xf8] sm:$0xff] }
 0x2ac   :  { %5802 = vst [vmem:[#allocation67_spill] sm:$0xff] %v5020_v33  ;;  %2033 = vmatpush.bf16.msrb.mxu2 %v734_v34 }
 0x2ad   :  { %v1480_v7 = vpop.f32.mrf.mxu3  ;;  %v1215_v9 = vpop.f32.mrf.mxu0 }
 0x2ae   :  { %v1481_v39 = vadd.f32 %v1480_v7, %v1392_v6  ;;  %v1305_v3 = vadd.f32 %v1304_v32, %v1215_v9  ;;  %v618_v6 = vld [vmem:[#allocation5 + $0x6d8] sm:$0xff] }
 0x2af   :  { %v622_v7 = vld [vmem:[#allocation5 + $0x6f8] sm:$0xff] }
 0x2b0   :  { %v2312_v1 = vmax.f32 %v1481_v39, 0.0 }
 0x2b1   :  { %v1393_v4 = vpop.f32.mrf.mxu2  ;;  %v1307_v53 = vpop.f32.mrf.mxu1 }
 0x2b2   :  { %v1394_v36 = vadd.f32 %v1393_v4, %v1305_v3  ;;  %v670_v3 = vpack.c.bf16 %v430_v16, %v426_v17  ;;  %v766_v4 = vpack.c.bf16 %v622_v7, %v618_v6 }
 0x2b4   :  { %1622 = vmatmul.bf16.gmra.mxu1 %v4758_v58  ;;  %1855 = vmatpush.bf16.msrb.mxu0 %v670_v3 }
 0x2b5   :  { %v1482_v2 = vpop.f32.mrf.mxu3  ;;  %v1218_v54 = vpop.f32.mrf.mxu0  ;;  %2122 = vmatpush.bf16.msrb.mxu3 %v766_v4 }
 0x2b6   :  { %v1483_v52 = vadd.f32 %v1482_v2, %v1394_v36  ;;  %v1308_v18 = vadd.f32 %v1307_v53, %v1218_v54  ;;  %1711 = vmatmul.bf16.gmra.mxu2 %v4760_v62  ;;  %v490_v53 = vld [vmem:[#allocation5 + $0x2d8] sm:$0xff] }
 0x2b8   :  { %1533 = vmatmul.bf16.gmra.mxu0 %v4756_v57  ;;  %v2316_v13 = vmax.f32 %v1483_v52, 0.0  ;;  %v494_v52 = vld [vmem:[#allocation5 + $0x2f8] sm:$0xff] }
 0x2b9   :  { %v1396_v38 = vpop.f32.mrf.mxu2  ;;  %v1309_v36 = vpop.f32.mrf.mxu1 }
 0x2ba   :  { %1800 = vmatmul.bf16.gmra.mxu3 %v4762_v63  ;;  %v5026_v56 = vpack.c.bf16 %v2316_v13, %v2312_v1  ;;  %v1397_v9 = vadd.f32 %v1396_v38, %v1308_v18  ;;  %v702_v1 = vpack.c.bf16 %v494_v52, %v490_v53 }
 0x2bc   :  { %5803 = vst [vmem:[#allocation68_spill] sm:$0xff] %v5026_v56  ;;  %1944 = vmatpush.bf16.msrb.mxu1 %v702_v1 }
 0x2bd   :  { %v1485_v32 = vpop.f32.mrf.mxu3  ;;  %v1220_v39 = vpop.f32.mrf.mxu0 }
 0x2be   :  { %v1486_v2 = vadd.f32 %v1485_v32, %v1397_v9  ;;  %v1310_v54 = vadd.f32 %v1309_v36, %v1220_v39 }
 0x2c0   :  { %v2320_v17 = vmax.f32 %v1486_v2, 0.0 }
 0x2c1   :  { %v1398_v13 = vpop.f32.mrf.mxu2  ;;  %v1312_v33 = vpop.f32.mrf.mxu1 }
 0x2c2   :  { %v1399_v19 = vadd.f32 %v1398_v13, %v1310_v54 }
 0x2c4   :  { %1627 = vmatmul.bf16.gmra.mxu1 %v4770_v41 }
 0x2c5   :  { %v1487_v37 = vpop.f32.mrf.mxu3  ;;  %v1223_v56 = vpop.f32.mrf.mxu0 }
 0x2c6   :  { %v1488_v18 = vadd.f32 %v1487_v37, %v1399_v19  ;;  %v1313_v38 = vadd.f32 %v1312_v33, %v1223_v56  ;;  %1716 = vmatmul.bf16.gmra.mxu2 %v4772_v42  ;;  %v546_v37 = vld [vmem:[#allocation5 + $0x498] sm:$0xff] }
 0x2c8   :  { %1538 = vmatmul.bf16.gmra.mxu0 %v4768_v40  ;;  %v2324_v16 = vmax.f32 %v1488_v18, 0.0  ;;  %v550_v18 = vld [vmem:[#allocation5 + $0x4b8] sm:$0xff] }
 0x2c9   :  { %v1401_v6 = vpop.f32.mrf.mxu2  ;;  %v1314_v39 = vpop.f32.mrf.mxu1 }
 0x2ca   :  { %1805 = vmatmul.bf16.gmra.mxu3 %v4774_v43  ;;  %v5032_v34 = vpack.c.bf16 %v2324_v16, %v2320_v17  ;;  %v1402_v7 = vadd.f32 %v1401_v6, %v1313_v38  ;;  %v418_v38 = vld [vmem:[#allocation5 + $0x98] sm:$0xff]  ;;  %v730_v16 = vpack.c.bf16 %v550_v18, %v546_v37 }
 0x2cb   :  { %v422_v6 = vld [vmem:[#allocation5 + $0xb8] sm:$0xff] }
 0x2cc   :  { %5804 = vst [vmem:[#allocation69_spill] sm:$0xff] %v5032_v34  ;;  %2034 = vmatpush.bf16.msrb.mxu2 %v730_v16  ;;  %v5807_v16 = vld [vmem:[#allocation18_spill] sm:$0xff] }
 0x2cd   :  { %v1490_v9 = vpop.f32.mrf.mxu3  ;;  %v1225_v32 = vpop.f32.mrf.mxu0 }
 0x2ce   :  { %v1491_v3 = vadd.f32 %v1490_v9, %v1402_v7  ;;  %v1315_v4 = vadd.f32 %v1314_v39, %v1225_v32  ;;  %v610_v7 = vld [vmem:[#allocation5 + $0x698] sm:$0xff] }
 0x2cf   :  { %v614_v9 = vld [vmem:[#allocation5 + $0x6b8] sm:$0xff] }
 0x2d0   :  { %v2328_v1 = vmax.f32 %v1491_v3, 0.0 }
 0x2d1   :  { %v1403_v33 = vpop.f32.mrf.mxu2  ;;  %v1593_v54 = vpop.f32.mrf.mxu1 }
 0x2d2   :  { %v1404_v56 = vadd.f32 %v1403_v33, %v1315_v4  ;;  %v666_v4 = vpack.c.bf16 %v422_v6, %v418_v38  ;;  %v762_v33 = vpack.c.bf16 %v614_v9, %v610_v7  ;;  %v5808_v7 = vld [vmem:[#allocation19_spill] sm:$0xff]  ;;  %v5809_v9 = vld [vmem:[#allocation20_spill] sm:$0xff] }
 0x2d4   :  { %1632 = vmatmul.bf16.gmra.mxu1 %v4782_v14  ;;  %1856 = vmatpush.bf16.msrb.mxu0 %v666_v4 }
 0x2d5   :  { %v1492_v36 = vpop.f32.mrf.mxu3  ;;  %v1504_v2 = vpop.f32.mrf.mxu0  ;;  %2123 = vmatpush.bf16.msrb.mxu3 %v762_v33 }
 0x2d6   :  { %v1493_v53 = vadd.f32 %v1492_v36, %v1404_v56  ;;  %v1594_v52 = vadd.f32 %v1593_v54, %v1504_v2  ;;  %1721 = vmatmul.bf16.gmra.mxu2 %v5763_v5  ;;  %v482_v54 = vld [vmem:[#allocation5 + $0x298] sm:$0xff] }
 0x2d8   :  { %1543 = vmatmul.bf16.gmra.mxu0 %v4780_v12  ;;  %v2332_v13 = vmax.f32 %v1493_v53, 0.0  ;;  %v486_v53 = vld [vmem:[#allocation5 + $0x2b8] sm:$0xff] }
 0x2d9   :  { %v1682_v17 = vpop.f32.mrf.mxu2  ;;  %v1595_v56 = vpop.f32.mrf.mxu1 }
 0x2da   :  { %1810 = vmatmul.bf16.gmra.mxu3 %v5764_v10  ;;  %v5038_v19 = vpack.c.bf16 %v2332_v13, %v2328_v1  ;;  %v1683_v32 = vadd.f32 %v1682_v17, %v1594_v52  ;;  %v698_v1 = vpack.c.bf16 %v486_v53, %v482_v54  ;;  %v5806_v10 = vld [vmem:[#allocation17_spill] sm:$0xff] }
 0x2dc   :  { %5805 = vst [vmem:[#allocation70_spill] sm:$0xff] %v5038_v19  ;;  %1945 = vmatpush.bf16.msrb.mxu1 %v698_v1 }
 0x2dd   :  { %v1771_v39 = vpop.f32.mrf.mxu3  ;;  %v1506_v3 = vpop.f32.mrf.mxu0 }
 0x2de   :  { %v1772_v36 = vadd.f32 %v1771_v39, %v1683_v32  ;;  %v1596_v2 = vadd.f32 %v1595_v56, %v1506_v3 }
 0x2e0   :  { %v2209_v38 = vmax.f32 %v1772_v36, 0.0 }
 0x2e1   :  { %v1684_v13 = vpop.f32.mrf.mxu2  ;;  %v1598_v34 = vpop.f32.mrf.mxu1 }
 0x2e2   :  { %v1685_v37 = vadd.f32 %v1684_v13, %v1596_v2 }
 0x2e4   :  { %1637 = vmatmul.bf16.gmra.mxu1 %v5807_v16 }
 0x2e5   :  { %v1773_v18 = vpop.f32.mrf.mxu3  ;;  %v1509_v19 = vpop.f32.mrf.mxu0 }
 0x2e6   :  { %v1774_v52 = vadd.f32 %v1773_v18, %v1685_v37  ;;  %v1599_v17 = vadd.f32 %v1598_v34, %v1509_v19  ;;  %1726 = vmatmul.bf16.gmra.mxu2 %v5808_v7  ;;  %v5811_v18 = vld [vmem:[#allocation22_spill] sm:$0xff] }
 0x2e8   :  { %1548 = vmatmul.bf16.gmra.mxu0 %v5806_v10  ;;  %v2213_v6 = vmax.f32 %v1774_v52, 0.0  ;;  %v5816_v10 = vld [vmem:[#allocation27_spill] sm:$0xff] }
 0x2e9   :  { %v1687_v39 = vpop.f32.mrf.mxu2  ;;  %v1600_v56 = vpop.f32.mrf.mxu1 }
 0x2ea   :  { %1815 = vmatmul.bf16.gmra.mxu3 %v5809_v9  ;;  %v5044_v32 = vpack.c.bf16 %v2213_v6, %v2209_v38  ;;  %v1688_v3 = vadd.f32 %v1687_v39, %v1599_v17  ;;  %v5812_v38 = vld [vmem:[#allocation23_spill] sm:$0xff]  ;;  %v5813_v6 = vld [vmem:[#allocation24_spill] sm:$0xff]  ;;  %v5814_v17 = vld [vmem:[#allocation25_spill] sm:$0xff] }
 0x2ec   :  { %5810 = vst [vmem:[#allocation71_spill] sm:$0xff] %v5044_v32 }
 0x2ed   :  { %v1776_v4 = vpop.f32.mrf.mxu3  ;;  %v1511_v33 = vpop.f32.mrf.mxu0 }
 0x2ee   :  { %v1777_v2 = vadd.f32 %v1776_v4, %v1688_v3  ;;  %v1601_v54 = vadd.f32 %v1600_v56, %v1511_v33  ;;  %v538_v3 = vld [vmem:[#allocation5 + $0x458] sm:$0xff] }
 0x2ef   :  { %v542_v4 = vld [vmem:[#allocation5 + $0x478] sm:$0xff] }
 0x2f0   :  { %v2217_v52 = vmax.f32 %v1777_v2, 0.0  ;;  %v410_v33 = vld [vmem:[#allocation5 + $0x58] sm:$0xff] }
 0x2f1   :  { %v1689_v34 = vpop.f32.mrf.mxu2  ;;  %v1603_v1 = vpop.f32.mrf.mxu1 }
 0x2f2   :  { %v1690_v19 = vadd.f32 %v1689_v34, %v1601_v54  ;;  %v726_v54 = vpack.c.bf16 %v542_v4, %v538_v3  ;;  %v414_v34 = vld [vmem:[#allocation5 + $0x78] sm:$0xff] }
 0x2f4   :  { %1642 = vmatmul.bf16.gmra.mxu1 %v5812_v38  ;;  %2035 = vmatpush.bf16.msrb.mxu2 %v726_v54  ;;  %v5817_v54 = vld [vmem:[#allocation28_spill] sm:$0xff] }
 0x2f5   :  { %v1778_v53 = vpop.f32.mrf.mxu3  ;;  %v1514_v36 = vpop.f32.mrf.mxu0 }
 0x2f6   :  { %v1779_v13 = vadd.f32 %v1778_v53, %v1690_v19  ;;  %v1604_v37 = vadd.f32 %v1603_v1, %v1514_v36  ;;  %1731 = vmatmul.bf16.gmra.mxu2 %v5813_v6  ;;  %v602_v19 = vld [vmem:[#allocation5 + $0x658] sm:$0xff] }
 0x2f7   :  { %v606_v53 = vld [vmem:[#allocation5 + $0x678] sm:$0xff] }
 0x2f8   :  { %1553 = vmatmul.bf16.gmra.mxu0 %v5811_v18  ;;  %v2221_v9 = vmax.f32 %v1779_v13, 0.0  ;;  %v662_v13 = vpack.c.bf16 %v414_v34, %v410_v33  ;;  %v758_v32 = vpack.c.bf16 %v606_v53, %v602_v19 }
 0x2f9   :  { %v1692_v56 = vpop.f32.mrf.mxu2  ;;  %v1605_v38 = vpop.f32.mrf.mxu1 }
 0x2fa   :  { %1820 = vmatmul.bf16.gmra.mxu3 %v5814_v17  ;;  %v5050_v39 = vpack.c.bf16 %v2221_v9, %v2217_v52  ;;  %v1693_v36 = vadd.f32 %v1692_v56, %v1604_v37  ;;  %1857 = vmatpush.bf16.msrb.mxu0 %v662_v13  ;;  %v474_v9 = vld [vmem:[#allocation5 + $0x258] sm:$0xff] }
 0x2fb   :  { %2124 = vmatpush.bf16.msrb.mxu3 %v758_v32  ;;  %v478_v52 = vld [vmem:[#allocation5 + $0x278] sm:$0xff] }
 0x2fc   :  { %5815 = vst [vmem:[#allocation72_spill] sm:$0xff] %v5050_v39  ;;  %v694_v39 = vpack.c.bf16 %v478_v52, %v474_v9  ;;  %v5819_v32 = vld [vmem:[#allocation30_spill] sm:$0xff] }
 0x2fd   :  { %v1781_v1 = vpop.f32.mrf.mxu3  ;;  %v1516_v2 = vpop.f32.mrf.mxu0 }
 0x2fe   :  { %v1782_v6 = vadd.f32 %v1781_v1, %v1693_v36  ;;  %v1606_v18 = vadd.f32 %v1605_v38, %v1516_v2  ;;  %1946 = vmatpush.bf16.msrb.mxu1 %v694_v39  ;;  %v5818_v38 = vld [vmem:[#allocation29_spill] sm:$0xff] }
 0x300   :  { %v2225_v33 = vmax.f32 %v1782_v6, 0.0 }
 0x301   :  { %v1694_v17 = vpop.f32.mrf.mxu2  ;;  %v1608_v16 = vpop.f32.mrf.mxu1 }
 0x302   :  { %v1695_v3 = vadd.f32 %v1694_v17, %v1606_v18 }
 0x304   :  { %1647 = vmatmul.bf16.gmra.mxu1 %v5817_v54 }
 0x305   :  { %v1783_v4 = vpop.f32.mrf.mxu3  ;;  %v1519_v7 = vpop.f32.mrf.mxu0 }
 0x306   :  { %v1784_v37 = vadd.f32 %v1783_v4, %v1695_v3  ;;  %v1609_v56 = vadd.f32 %v1608_v16, %v1519_v7  ;;  %1736 = vmatmul.bf16.gmra.mxu2 %v5818_v38  ;;  %v5821_v4 = vld [vmem:[#allocation32_spill] sm:$0xff] }
 0x308   :  { %1558 = vmatmul.bf16.gmra.mxu0 %v5816_v10  ;;  %v2229_v34 = vmax.f32 %v1784_v37, 0.0 }
 0x309   :  { %v1697_v53 = vpop.f32.mrf.mxu2  ;;  %v1610_v36 = vpop.f32.mrf.mxu1 }
 0x30a   :  { %1825 = vmatmul.bf16.gmra.mxu3 %v5819_v32  ;;  %v5056_v19 = vpack.c.bf16 %v2229_v34, %v2225_v33  ;;  %v1698_v39 = vadd.f32 %v1697_v53, %v1609_v56  ;;  %v5822_v33 = vld [vmem:[#allocation33_spill] sm:$0xff]  ;;  %v5823_v34 = vld [vmem:[#allocation34_spill] sm:$0xff]  ;;  %v5824_v56 = vld [vmem:[#allocation35_spill] sm:$0xff] }
 0x30c   :  { %5820 = vst [vmem:[#allocation27_spill] sm:$0xff] %v5056_v19 }
 0x30d   :  { %v1786_v18 = vpop.f32.mrf.mxu3  ;;  %v1521_v17 = vpop.f32.mrf.mxu0 }
 0x30e   :  { %v1787_v1 = vadd.f32 %v1786_v18, %v1698_v39  ;;  %v1611_v2 = vadd.f32 %v1610_v36, %v1521_v17  ;;  %v530_v39 = vld [vmem:[#allocation5 + $0x418] sm:$0xff] }
 0x30f   :  { %v534_v18 = vld [vmem:[#allocation5 + $0x438] sm:$0xff] }
 0x310   :  { %v2233_v37 = vmax.f32 %v1787_v1, 0.0  ;;  %v402_v17 = vld [vmem:[#allocation5 + $0x18] sm:$0xff] }
 0x311   :  { %v1699_v16 = vpop.f32.mrf.mxu2  ;;  %v1613_v9 = vpop.f32.mrf.mxu1 }
 0x312   :  { %v1700_v7 = vadd.f32 %v1699_v16, %v1611_v2  ;;  %v722_v2 = vpack.c.bf16 %v534_v18, %v530_v39  ;;  %v406_v16 = vld [vmem:[#allocation5 + $0x38] sm:$0xff] }
 0x314   :  { %1652 = vmatmul.bf16.gmra.mxu1 %v5822_v33  ;;  %2036 = vmatpush.bf16.msrb.mxu2 %v722_v2  ;;  %v5826_v2 = vld [vmem:[#allocation38_spill] sm:$0xff] }
 0x315   :  { %v1788_v13 = vpop.f32.mrf.mxu3  ;;  %v1524_v6 = vpop.f32.mrf.mxu0 }
 0x316   :  { %v1789_v52 = vadd.f32 %v1788_v13, %v1700_v7  ;;  %v1614_v3 = vadd.f32 %v1613_v9, %v1524_v6  ;;  %1741 = vmatmul.bf16.gmra.mxu2 %v5823_v34  ;;  %v594_v7 = vld [vmem:[#allocation5 + $0x618] sm:$0xff] }
 0x317   :  { %v598_v13 = vld [vmem:[#allocation5 + $0x638] sm:$0xff] }
 0x318   :  { %1563 = vmatmul.bf16.gmra.mxu0 %v5821_v4  ;;  %v2237_v32 = vmax.f32 %v1789_v52, 0.0  ;;  %v658_v52 = vpack.c.bf16 %v406_v16, %v402_v17  ;;  %v754_v19 = vpack.c.bf16 %v598_v13, %v594_v7 }
 0x319   :  { %v1702_v36 = vpop.f32.mrf.mxu2  ;;  %v1615_v33 = vpop.f32.mrf.mxu1 }
 0x31a   :  { %1830 = vmatmul.bf16.gmra.mxu3 %v5824_v56  ;;  %v5062_v53 = vpack.c.bf16 %v2237_v32, %v2233_v37  ;;  %v1703_v6 = vadd.f32 %v1702_v36, %v1614_v3  ;;  %1858 = vmatpush.bf16.msrb.mxu0 %v658_v52  ;;  %v466_v32 = vld [vmem:[#allocation5 + $0x218] sm:$0xff] }
 0x31b   :  { %2125 = vmatpush.bf16.msrb.mxu3 %v754_v19  ;;  %v470_v37 = vld [vmem:[#allocation5 + $0x238] sm:$0xff]  ;;  %v5828_v19 = vld [vmem:[#allocation40_spill] sm:$0xff] }
 0x31c   :  { %5825 = vst [vmem:[#allocation73_spill] sm:$0xff] %v5062_v53  ;;  %v690_v53 = vpack.c.bf16 %v470_v37, %v466_v32 }
 0x31d   :  { %v1791_v9 = vpop.f32.mrf.mxu3  ;;  %v1526_v1 = vpop.f32.mrf.mxu0 }
 0x31e   :  { %v1792_v34 = vadd.f32 %v1791_v9, %v1703_v6  ;;  %v1616_v4 = vadd.f32 %v1615_v33, %v1526_v1  ;;  %1947 = vmatpush.bf16.msrb.mxu1 %v690_v53  ;;  %v5827_v33 = vld [vmem:[#allocation39_spill] sm:$0xff] }
 0x320   :  { %v2241_v17 = vmax.f32 %v1792_v34, 0.0 }
 0x321   :  { %v1704_v56 = vpop.f32.mrf.mxu2  ;;  %v1618_v54 = vpop.f32.mrf.mxu1 }
 0x322   :  { %v1705_v39 = vadd.f32 %v1704_v56, %v1616_v4 }
 0x324   :  { %1657 = vmatmul.bf16.gmra.mxu1 %v5826_v2 }
 0x325   :  { %v1793_v18 = vpop.f32.mrf.mxu3  ;;  %v1529_v38 = vpop.f32.mrf.mxu0 }
 0x326   :  { %v1794_v3 = vadd.f32 %v1793_v18, %v1705_v39  ;;  %v1619_v36 = vadd.f32 %v1618_v54, %v1529_v38  ;;  %1746 = vmatmul.bf16.gmra.mxu2 %v5827_v33  ;;  %v5830_v18 = vld [vmem:[#allocation42_spill] sm:$0xff] }
 0x328   :  { %1568 = vmatmul.bf16.gmra.mxu0 %v5786_v11  ;;  %v2245_v16 = vmax.f32 %v1794_v3, 0.0 }
 0x329   :  { %v1707_v13 = vpop.f32.mrf.mxu2  ;;  %v1620_v6 = vpop.f32.mrf.mxu1 }
 0x32a   :  { %1835 = vmatmul.bf16.gmra.mxu3 %v5828_v19  ;;  %v5068_v7 = vpack.c.bf16 %v2245_v16, %v2241_v17  ;;  %v1708_v53 = vadd.f32 %v1707_v13, %v1619_v36  ;;  %v5831_v17 = vld [vmem:[#allocation43_spill] sm:$0xff]  ;;  %v5832_v16 = vld [vmem:[#allocation44_spill] sm:$0xff]  ;;  %v5833_v36 = vld [vmem:[#allocation45_spill] sm:$0xff] }
 0x32c   :  { %5829 = vst [vmem:[#allocation74_spill] sm:$0xff] %v5068_v7 }
 0x32d   :  { %v1796_v4 = vpop.f32.mrf.mxu3  ;;  %v1531_v56 = vpop.f32.mrf.mxu0 }
 0x32e   :  { %v1797_v9 = vadd.f32 %v1796_v4, %v1708_v53  ;;  %v1621_v1 = vadd.f32 %v1620_v6, %v1531_v56  ;;  %v2457_v53 = vld [vmem:[#allocation7 + $0x1d0] sm:$0xff]  ;;  %v2455_v56 = vld [vmem:[#allocation7 + $0x1c0] sm:$0xff] }
 0x32f   :  { %v2461_v4 = vld [vmem:[#allocation7 + $0x1f0] sm:$0xff] }
 0x330   :  { %v2249_v3 = vmax.f32 %v1797_v9, 0.0 }
 0x331   :  { %v1709_v54 = vpop.f32.mrf.mxu2  ;;  %v1623_v32 = vpop.f32.mrf.mxu1 }
 0x332   :  { %v1710_v38 = vadd.f32 %v1709_v54, %v1621_v1  ;;  %v2685_v1 = vpack.c.bf16 %v2461_v4, %v2457_v53  ;;  %v2459_v54 = vld [vmem:[#allocation7 + $0x1e0] sm:$0xff] }
 0x334   :  { %1662 = vmatmul.bf16.gmra.mxu1 %v5831_v17  ;;  %2971 = vmatpush.bf16.xpose.msra.mxu2 %v2685_v1 }
 0x335   :  { %v1798_v52 = vpop.f32.mrf.mxu3  ;;  %v1534_v34 = vpop.f32.mrf.mxu0 }
 0x336   :  { %v1799_v37 = vadd.f32 %v1798_v52, %v1710_v38  ;;  %v1624_v39 = vadd.f32 %v1623_v32, %v1534_v34  ;;  %1751 = vmatmul.bf16.gmra.mxu2 %v5832_v16  ;;  %v2458_v38 = vld [vmem:[#allocation7 + $0x1d8] sm:$0xff] }
 0x337   :  { %v2462_v52 = vld [vmem:[#allocation7 + $0x1f8] sm:$0xff] }
 0x338   :  { %1573 = vmatmul.bf16.gmra.mxu0 %v5830_v18  ;;  %v2253_v19 = vmax.f32 %v1799_v37, 0.0  ;;  %v2683_v37 = vpack.c.bf16 %v2459_v54, %v2455_v56  ;;  %v2686_v7 = vpack.c.bf16 %v2462_v52, %v2458_v38 }
 0x339   :  { %v1712_v6 = vpop.f32.mrf.mxu2  ;;  %v1625_v17 = vpop.f32.mrf.mxu1 }
 0x33a   :  { %1840 = vmatmul.bf16.gmra.mxu3 %v5833_v36  ;;  %v5074_v13 = vpack.c.bf16 %v2253_v19, %v2249_v3  ;;  %v1713_v34 = vadd.f32 %v1712_v6, %v1624_v39  ;;  %2793 = vmatpush.bf16.xpose.msra.mxu0 %v2683_v37  ;;  %v2456_v19 = vld [vmem:[#allocation7 + $0x1c8] sm:$0xff] }
 0x33b   :  { %3060 = vmatpush.bf16.xpose.msra.mxu3 %v2686_v7  ;;  %v2460_v3 = vld [vmem:[#allocation7 + $0x1e8] sm:$0xff] }
 0x33c   :  { %5834 = vst [vmem:[#allocation75_spill] sm:$0xff] %v5074_v13  ;;  %v2684_v13 = vpack.c.bf16 %v2460_v3, %v2456_v19 }
 0x33d   :  { %v1801_v32 = vpop.f32.mrf.mxu3  ;;  %v1536_v9 = vpop.f32.mrf.mxu0 }
 0x33e   :  { %v1802_v16 = vadd.f32 %v1801_v32, %v1713_v34  ;;  %v1626_v18 = vadd.f32 %v1625_v17, %v1536_v9  ;;  %2882 = vmatpush.bf16.xpose.msra.mxu1 %v2684_v13 }
 0x340   :  { %v2257_v56 = vmax.f32 %v1802_v16, 0.0 }
 0x341   :  { %v1714_v36 = vpop.f32.mrf.mxu2  ;;  %v1628_v2 = vpop.f32.mrf.mxu1 }
 0x342   :  { %v1715_v53 = vadd.f32 %v1714_v36, %v1626_v18 }
 0x344   :  { %1667 = vmatmul.bf16.gmra.mxu1 %v4878_v8 }
 0x345   :  { %v1803_v4 = vpop.f32.mrf.mxu3  ;;  %v1539_v33 = vpop.f32.mrf.mxu0 }
 0x346   :  { %v1804_v39 = vadd.f32 %v1803_v4, %v1715_v53  ;;  %v1629_v6 = vadd.f32 %v1628_v2, %v1539_v33  ;;  %1756 = vmatmul.bf16.gmra.mxu2 %v4880_v0  ;;  %v2449_v4 = vld [vmem:[#allocation7 + $0x190] sm:$0xff] }
 0x348   :  { %1578 = vmatmul.bf16.gmra.mxu0 %v4876_v15  ;;  %v2261_v54 = vmax.f32 %v1804_v39, 0.0  ;;  %v2453_v39 = vld [vmem:[#allocation7 + $0x1b0] sm:$0xff] }
 0x349   :  { %v1717_v17 = vpop.f32.mrf.mxu2  ;;  %v1630_v1 = vpop.f32.mrf.mxu1 }
 0x34a   :  { %1845 = vmatmul.bf16.gmra.mxu3 %v4882_v35  ;;  %v5080_v7 = vpack.c.bf16 %v2261_v54, %v2257_v56  ;;  %v1718_v13 = vadd.f32 %v1717_v17, %v1629_v6  ;;  %v2447_v6 = vld [vmem:[#allocation7 + $0x180] sm:$0xff]  ;;  %v2681_v54 = vpack.c.bf16 %v2453_v39, %v2449_v4 }
 0x34b   :  { %v2451_v17 = vld [vmem:[#allocation7 + $0x1a0] sm:$0xff] }
 0x34c   :  { %5835 = vst [vmem:[#allocation76_spill] sm:$0xff] %v5080_v7  ;;  %2972 = vmatpush.bf16.xpose.msra.mxu2 %v2681_v54 }
 0x34d   :  { %v1806_v18 = vpop.f32.mrf.mxu3  ;;  %v1541_v36 = vpop.f32.mrf.mxu0 }
 0x34e   :  { %v1807_v38 = vadd.f32 %v1806_v18, %v1718_v13  ;;  %v1631_v52 = vadd.f32 %v1630_v1, %v1541_v36  ;;  %v2450_v13 = vld [vmem:[#allocation7 + $0x198] sm:$0xff] }
 0x34f   :  { %v2454_v18 = vld [vmem:[#allocation7 + $0x1b8] sm:$0xff] }
 0x350   :  { %v2265_v19 = vmax.f32 %v1807_v38, 0.0  ;;  %v2679_v38 = vpack.c.bf16 %v2451_v17, %v2447_v6 }
 0x351   :  { %v1719_v2 = vpop.f32.mrf.mxu2  ;;  %v1633_v32 = vpop.f32.mrf.mxu1 }
 0x352   :  { %v1720_v33 = vadd.f32 %v1719_v2, %v1631_v52  ;;  %v2682_v52 = vpack.c.bf16 %v2454_v18, %v2450_v13  ;;  %2794 = vmatpush.bf16.xpose.msra.mxu0 %v2679_v38 }
 0x354   :  { %1948 = vmatmul.bf16.vlgmr.msrb.gmra.mxu1 %v4686_v59  ;;  %3061 = vmatpush.bf16.xpose.msra.mxu3 %v2682_v52 }
 0x355   :  { %v1808_v34 = vpop.f32.mrf.mxu3  ;;  %v1544_v16 = vpop.f32.mrf.mxu0 }
 0x356   :  { %v1809_v9 = vadd.f32 %v1808_v34, %v1720_v33  ;;  %v1634_v37 = vadd.f32 %v1633_v32, %v1544_v16  ;;  %2037 = vmatmul.bf16.vlgmr.msrb.gmra.mxu2 %v4688_v60  ;;  %v2452_v33 = vld [vmem:[#allocation7 + $0x1a8] sm:$0xff] }
 0x358   :  { %1859 = vmatmul.bf16.vlgmr.msrb.gmra.mxu0 %v4684_v55  ;;  %v2269_v3 = vmax.f32 %v1809_v9, 0.0 }
 0x359   :  { %v1722_v56 = vpop.f32.mrf.mxu2  ;;  %v1635_v59 = vpop.f32.mrf.mxu1 }
 0x35a   :  { %2126 = vmatmul.bf16.vlgmr.msrb.gmra.mxu3 %v4690_v61  ;;  %v5086_v53 = vpack.c.bf16 %v2269_v3, %v2265_v19  ;;  %v1723_v36 = vadd.f32 %v1722_v56, %v1634_v37  ;;  %v2448_v61 = vld [vmem:[#allocation7 + $0x188] sm:$0xff] }
 0x35b   :  { %v2680_v34 = vpack.c.bf16 %v2452_v33, %v2448_v61  ;;  %v2441_v33 = vld [vmem:[#allocation7 + $0x150] sm:$0xff] }
 0x35c   :  { %5836 = vst [vmem:[#allocation77_spill] sm:$0xff] %v5086_v53 }
 0x35d   :  { %v1811_v55 = vpop.f32.mrf.mxu3  ;;  %v1546_v1 = vpop.f32.mrf.mxu0  ;;  %2883 = vmatpush.bf16.xpose.msra.mxu1 %v2680_v34  ;;  %v2445_v34 = vld [vmem:[#allocation7 + $0x170] sm:$0xff] }
 0x35e   :  { %v1812_v60 = vadd.f32 %v1811_v55, %v1723_v36  ;;  %v1636_v2 = vadd.f32 %v1635_v59, %v1546_v1 }
 0x360   :  { %v2273_v39 = vmax.f32 %v1812_v60, 0.0 }
 0x361   :  { %v1724_v16 = vpop.f32.mrf.mxu2  ;;  %v1638_v3 = vpop.f32.mrf.mxu1 }
 0x362   :  { %v1725_v32 = vadd.f32 %v1724_v16, %v1636_v2  ;;  %v2439_v16 = vld [vmem:[#allocation7 + $0x140] sm:$0xff] }
 0x364   :  { %1953 = vmatmul.bf16.gmra.mxu1 %v4698_v29 }
 0x365   :  { %v1813_v9 = vpop.f32.mrf.mxu3  ;;  %v1549_v19 = vpop.f32.mrf.mxu0 }
 0x366   :  { %v1814_v37 = vadd.f32 %v1813_v9, %v1725_v32  ;;  %v1639_v4 = vadd.f32 %v1638_v3, %v1549_v19  ;;  %2042 = vmatmul.bf16.gmra.mxu2 %v4700_v30  ;;  %v2677_v9 = vpack.c.bf16 %v2445_v34, %v2441_v33  ;;  %v2443_v19 = vld [vmem:[#allocation7 + $0x160] sm:$0xff]  ;;  %v2442_v3 = vld [vmem:[#allocation7 + $0x158] sm:$0xff] }
 0x368   :  { %1864 = vmatmul.bf16.gmra.mxu0 %v4696_v28  ;;  %v2277_v6 = vmax.f32 %v1814_v37, 0.0  ;;  %v2446_v37 = vld [vmem:[#allocation7 + $0x178] sm:$0xff]  ;;  %2973 = vmatpush.bf16.xpose.msra.mxu2 %v2677_v9 }
 0x369   :  { %v1727_v54 = vpop.f32.mrf.mxu2  ;;  %v1640_v36 = vpop.f32.mrf.mxu1 }
 0x36a   :  { %2131 = vmatmul.bf16.gmra.mxu3 %v4702_v31  ;;  %v5092_v56 = vpack.c.bf16 %v2277_v6, %v2273_v39  ;;  %v1728_v17 = vadd.f32 %v1727_v54, %v1639_v4  ;;  %v2675_v6 = vpack.c.bf16 %v2443_v19, %v2439_v16  ;;  %v2678_v54 = vpack.c.bf16 %v2446_v37, %v2442_v3 }
 0x36c   :  { %5837 = vst [vmem:[#allocation78_spill] sm:$0xff] %v5092_v56  ;;  %2795 = vmatpush.bf16.xpose.msra.mxu0 %v2675_v6  ;;  %3062 = vmatpush.bf16.xpose.msra.mxu3 %v2678_v54  ;;  %v2433_v6 = vld [vmem:[#allocation7 + $0x110] sm:$0xff] }
 0x36d   :  { %v1816_v13 = vpop.f32.mrf.mxu3  ;;  %v1551_v18 = vpop.f32.mrf.mxu0  ;;  %v2437_v54 = vld [vmem:[#allocation7 + $0x130] sm:$0xff] }
 0x36e   :  { %v1817_v55 = vadd.f32 %v1816_v13, %v1728_v17  ;;  %v1641_v1 = vadd.f32 %v1640_v36, %v1551_v18  ;;  %v2444_v13 = vld [vmem:[#allocation7 + $0x168] sm:$0xff] }
 0x370   :  { %v2281_v30 = vmax.f32 %v1817_v55, 0.0 }
 0x371   :  { %v1729_v38 = vpop.f32.mrf.mxu2  ;;  %v1643_v60 = vpop.f32.mrf.mxu1 }
 0x372   :  { %v1730_v52 = vadd.f32 %v1729_v38, %v1641_v1 }
 0x374   :  { %1958 = vmatmul.bf16.gmra.mxu1 %v4710_v49 }
 0x375   :  { %v1818_v28 = vpop.f32.mrf.mxu3  ;;  %v1554_v59 = vpop.f32.mrf.mxu0 }
 0x376   :  { %v1819_v2 = vadd.f32 %v1818_v28, %v1730_v52  ;;  %v1644_v29 = vadd.f32 %v1643_v60, %v1554_v59  ;;  %2047 = vmatmul.bf16.gmra.mxu2 %v4712_v50 }
 0x378   :  { %1869 = vmatmul.bf16.gmra.mxu0 %v4708_v48  ;;  %v2285_v31 = vmax.f32 %v1819_v2, 0.0 }
 0x379   :  { %v1732_v32 = vpop.f32.mrf.mxu2  ;;  %v1645_v49 = vpop.f32.mrf.mxu1 }
 0x37a   :  { %2136 = vmatmul.bf16.gmra.mxu3 %v4714_v51  ;;  %v5098_v61 = vpack.c.bf16 %v2285_v31, %v2281_v30  ;;  %v1733_v4 = vadd.f32 %v1732_v32, %v1644_v29  ;;  %v2440_v51 = vld [vmem:[#allocation7 + $0x148] sm:$0xff] }
 0x37b   :  { %v2676_v18 = vpack.c.bf16 %v2444_v13, %v2440_v51  ;;  %v2435_v51 = vld [vmem:[#allocation7 + $0x120] sm:$0xff]  ;;  %v2434_v13 = vld [vmem:[#allocation7 + $0x118] sm:$0xff] }
 0x37d   :  { %v1821_v48 = vpop.f32.mrf.mxu3  ;;  %v1556_v39 = vpop.f32.mrf.mxu0  ;;  %2884 = vmatpush.bf16.xpose.msra.mxu1 %v2676_v18  ;;  %v2438_v18 = vld [vmem:[#allocation7 + $0x138] sm:$0xff] }
 0x37e   :  { %v1822_v50 = vadd.f32 %v1821_v48, %v1733_v4  ;;  %v1646_v17 = vadd.f32 %v1645_v49, %v1556_v39  ;;  %v2431_v49 = vld [vmem:[#allocation7 + $0x100] sm:$0xff] }
 0x380   :  { %v2289_v60 = vmax.f32 %v1822_v50, 0.0 }
 0x381   :  { %v1734_v36 = vpop.f32.mrf.mxu2  ;;  %v1648_v52 = vpop.f32.mrf.mxu1 }
 0x382   :  { %v1735_v55 = vadd.f32 %v1734_v36, %v1646_v17  ;;  %v2673_v17 = vpack.c.bf16 %v2437_v54, %v2433_v6 }
 0x384   :  { %1963 = vmatmul.bf16.gmra.mxu1 %v4722_v21  ;;  %2974 = vmatpush.bf16.xpose.msra.mxu2 %v2673_v17 }
 0x385   :  { %v1823_v1 = vpop.f32.mrf.mxu3  ;;  %v1559_v38 = vpop.f32.mrf.mxu0 }
 0x386   :  { %v1824_v28 = vadd.f32 %v1823_v1, %v1735_v55  ;;  %v1649_v59 = vadd.f32 %v1648_v52, %v1559_v38  ;;  %2052 = vmatmul.bf16.gmra.mxu2 %v4724_v22  ;;  %v2671_v1 = vpack.c.bf16 %v2435_v51, %v2431_v49  ;;  %v2674_v38 = vpack.c.bf16 %v2438_v18, %v2434_v13  ;;  %v2425_v51 = vld [vmem:[#allocation7 + $0xd0] sm:$0xff]  ;;  %v2423_v18 = vld [vmem:[#allocation7 + $0xc0] sm:$0xff] }
 0x387   :  { %v2429_v13 = vld [vmem:[#allocation7 + $0xf0] sm:$0xff] }
 0x388   :  { %1874 = vmatmul.bf16.gmra.mxu0 %v4720_v20  ;;  %v2293_v2 = vmax.f32 %v1824_v28, 0.0  ;;  %3063 = vmatpush.bf16.xpose.msra.mxu3 %v2674_v38  ;;  %v2436_v28 = vld [vmem:[#allocation7 + $0x128] sm:$0xff]  ;;  %v2430_v38 = vld [vmem:[#allocation7 + $0xf8] sm:$0xff] }
 0x389   :  { %v1737_v30 = vpop.f32.mrf.mxu2  ;;  %v1650_v16 = vpop.f32.mrf.mxu1  ;;  %2796 = vmatpush.bf16.xpose.msra.mxu0 %v2671_v1  ;;  %v2426_v1 = vld [vmem:[#allocation7 + $0xd8] sm:$0xff] }
 0x38a   :  { %2141 = vmatmul.bf16.gmra.mxu3 %v4726_v23  ;;  %v5104_v29 = vpack.c.bf16 %v2293_v2, %v2289_v60  ;;  %v1738_v31 = vadd.f32 %v1737_v30, %v1649_v59 }
 0x38c   :  { %5838 = vst [vmem:[#allocation79_spill] sm:$0xff] %v5104_v29 }
 0x38d   :  { %v1826_v33 = vpop.f32.mrf.mxu3  ;;  %v1561_v34 = vpop.f32.mrf.mxu0 }
 0x38e   :  { %v1827_v32 = vadd.f32 %v1826_v33, %v1738_v31  ;;  %v1651_v9 = vadd.f32 %v1650_v16, %v1561_v34 }
 0x390   :  { %v2297_v22 = vmax.f32 %v1827_v32, 0.0 }
 0x391   :  { %v1739_v19 = vpop.f32.mrf.mxu2  ;;  %v1653_v4 = vpop.f32.mrf.mxu1 }
 0x392   :  { %v1740_v3 = vadd.f32 %v1739_v19, %v1651_v9 }
 0x394   :  { %1968 = vmatmul.bf16.gmra.mxu1 %v4734_v45 }
 0x395   :  { %v1828_v20 = vpop.f32.mrf.mxu3  ;;  %v1564_v37 = vpop.f32.mrf.mxu0 }
 0x396   :  { %v1829_v48 = vadd.f32 %v1828_v20, %v1740_v3  ;;  %v1654_v21 = vadd.f32 %v1653_v4, %v1564_v37  ;;  %2057 = vmatmul.bf16.gmra.mxu2 %v4736_v46 }
 0x398   :  { %1879 = vmatmul.bf16.gmra.mxu0 %v4732_v44  ;;  %v2301_v23 = vmax.f32 %v1829_v48, 0.0 }
 0x399   :  { %v1742_v50 = vpop.f32.mrf.mxu2  ;;  %v1655_v45 = vpop.f32.mrf.mxu1 }
 0x39a   :  { %2146 = vmatmul.bf16.gmra.mxu3 %v4738_v47  ;;  %v5110_v39 = vpack.c.bf16 %v2301_v23, %v2297_v22  ;;  %v1743_v36 = vadd.f32 %v1742_v50, %v1654_v21  ;;  %v2432_v47 = vld [vmem:[#allocation7 + $0x108] sm:$0xff] }
 0x39b   :  { %v2672_v59 = vpack.c.bf16 %v2436_v28, %v2432_v47  ;;  %v2670_v47 = vpack.c.bf16 %v2430_v38, %v2426_v1  ;;  %v2418_v1 = vld [vmem:[#allocation7 + $0x98] sm:$0xff] }
 0x39c   :  { %v2422_v38 = vld [vmem:[#allocation7 + $0xb8] sm:$0xff] }
 0x39d   :  { %v1831_v44 = vpop.f32.mrf.mxu3  ;;  %v1566_v55 = vpop.f32.mrf.mxu0  ;;  %2885 = vmatpush.bf16.xpose.msra.mxu1 %v2672_v59  ;;  %3064 = vmatpush.bf16.xpose.msra.mxu3 %v2670_v47  ;;  %v2428_v59 = vld [vmem:[#allocation7 + $0xe8] sm:$0xff] }
 0x39e   :  { %v1832_v46 = vadd.f32 %v1831_v44, %v1743_v36  ;;  %v1656_v52 = vadd.f32 %v1655_v45, %v1566_v55  ;;  %v2669_v44 = vpack.c.bf16 %v2429_v13, %v2425_v51  ;;  %v2427_v55 = vld [vmem:[#allocation7 + $0xe0] sm:$0xff]  ;;  %v2417_v51 = vld [vmem:[#allocation7 + $0x90] sm:$0xff] }
 0x39f   :  { %v2421_v13 = vld [vmem:[#allocation7 + $0xb0] sm:$0xff] }
 0x3a0   :  { %v2305_v32 = vmax.f32 %v1832_v46, 0.0  ;;  %2975 = vmatpush.bf16.xpose.msra.mxu2 %v2669_v44  ;;  %v2665_v44 = vpack.c.bf16 %v2421_v13, %v2417_v51 }
 0x3a1   :  { %v1744_v60 = vpop.f32.mrf.mxu2  ;;  %v1658_v33 = vpop.f32.mrf.mxu1 }
 0x3a2   :  { %v1745_v2 = vadd.f32 %v1744_v60, %v1656_v52  ;;  %v2667_v52 = vpack.c.bf16 %v2427_v55, %v2423_v18  ;;  %v2415_v18 = vld [vmem:[#allocation7 + $0x80] sm:$0xff] }
 0x3a3   :  { %v2419_v55 = vld [vmem:[#allocation7 + $0xa0] sm:$0xff] }
 0x3a4   :  { %1973 = vmatmul.bf16.gmra.mxu1 %v4746_v25  ;;  %2797 = vmatpush.bf16.xpose.msra.mxu0 %v2667_v52  ;;  %v2666_v52 = vpack.c.bf16 %v2422_v38, %v2418_v1  ;;  %v2409_v1 = vld [vmem:[#allocation7 + $0x50] sm:$0xff] }
 0x3a5   :  { %v1833_v30 = vpop.f32.mrf.mxu3  ;;  %v1569_v31 = vpop.f32.mrf.mxu0  ;;  %v2413_v38 = vld [vmem:[#allocation7 + $0x70] sm:$0xff] }
 0x3a6   :  { %v1834_v34 = vadd.f32 %v1833_v30, %v1745_v2  ;;  %v1659_v16 = vadd.f32 %v1658_v33, %v1569_v31  ;;  %2062 = vmatmul.bf16.gmra.mxu2 %v4748_v26  ;;  %3065 = vmatpush.bf16.xpose.msra.mxu3 %v2666_v52  ;;  %v2410_v52 = vld [vmem:[#allocation7 + $0x58] sm:$0xff] }
 0x3a8   :  { %1884 = vmatmul.bf16.gmra.mxu0 %v4744_v24  ;;  %v2309_v9 = vmax.f32 %v1834_v34, 0.0  ;;  %2976 = vmatpush.bf16.xpose.msra.mxu2 %v2665_v44  ;;  %v5850_v44 = vld [vmem:[#allocation25_spill] sm:$0xff] }
 0x3a9   :  { %v1747_v3 = vpop.f32.mrf.mxu2  ;;  %v1660_v48 = vpop.f32.mrf.mxu1 }
 0x3aa   :  { %2151 = vmatmul.bf16.gmra.mxu3 %v4750_v27  ;;  %v5116_v19 = vpack.c.bf16 %v2309_v9, %v2305_v32  ;;  %v1748_v20 = vadd.f32 %v1747_v3, %v1659_v16 }
 0x3ac   :  { %5839 = vst [vmem:[#allocation80_spill] sm:$0xff] %v5116_v19 }
 0x3ad   :  { %v1836_v37 = vpop.f32.mrf.mxu3  ;;  %v1571_v4 = vpop.f32.mrf.mxu0 }
 0x3ae   :  { %v1837_v21 = vadd.f32 %v1836_v37, %v1748_v20  ;;  %v1661_v22 = vadd.f32 %v1660_v48, %v1571_v4 }
 0x3b0   :  { %v2313_v26 = vmax.f32 %v1837_v21, 0.0 }
 0x3b1   :  { %v1749_v23 = vpop.f32.mrf.mxu2  ;;  %v1663_v49 = vpop.f32.mrf.mxu1 }
 0x3b2   :  { %v1750_v6 = vadd.f32 %v1749_v23, %v1661_v22 }
 0x3b4   :  { %1978 = vmatmul.bf16.gmra.mxu1 %v4758_v58 }
 0x3b5   :  { %v1838_v24 = vpop.f32.mrf.mxu3  ;;  %v1574_v54 = vpop.f32.mrf.mxu0 }
 0x3b6   :  { %v1839_v50 = vadd.f32 %v1838_v24, %v1750_v6  ;;  %v1664_v25 = vadd.f32 %v1663_v49, %v1574_v54  ;;  %2067 = vmatmul.bf16.gmra.mxu2 %v4760_v62 }
 0x3b8   :  { %1889 = vmatmul.bf16.gmra.mxu0 %v4756_v57  ;;  %v2317_v27 = vmax.f32 %v1839_v50, 0.0 }
 0x3b9   :  { %v1752_v36 = vpop.f32.mrf.mxu2  ;;  %v1665_v58 = vpop.f32.mrf.mxu1 }
 0x3ba   :  { %2156 = vmatmul.bf16.gmra.mxu3 %v4762_v63  ;;  %v5122_v17 = vpack.c.bf16 %v2317_v27, %v2313_v26  ;;  %v1753_v45 = vadd.f32 %v1752_v36, %v1664_v25  ;;  %v2424_v63 = vld [vmem:[#allocation7 + $0xc8] sm:$0xff] }
 0x3bb   :  { %v2668_v60 = vpack.c.bf16 %v2428_v59, %v2424_v63  ;;  %v5841_v26 = vld [vmem:[#allocation16_spill] sm:$0xff] }
 0x3bd   :  { %v1841_v57 = vpop.f32.mrf.mxu3  ;;  %v1576_v46 = vpop.f32.mrf.mxu0  ;;  %2886 = vmatpush.bf16.xpose.msra.mxu1 %v2668_v60 }
 0x3be   :  { %v1842_v62 = vadd.f32 %v1841_v57, %v1753_v45  ;;  %v1666_v28 = vadd.f32 %v1665_v58, %v1576_v46  ;;  %v2663_v46 = vpack.c.bf16 %v2419_v55, %v2415_v18  ;;  %v2416_v58 = vld [vmem:[#allocation7 + $0x88] sm:$0xff] }
 0x3bf   :  { %v5848_v18 = vld [vmem:[#allocation23_spill] sm:$0xff] }
 0x3c0   :  { %v2321_v9 = vmax.f32 %v1842_v62, 0.0  ;;  %2798 = vmatpush.bf16.xpose.msra.mxu0 %v2663_v46  ;;  %v2420_v62 = vld [vmem:[#allocation7 + $0xa8] sm:$0xff]  ;;  %v2411_v46 = vld [vmem:[#allocation7 + $0x60] sm:$0xff] }
 0x3c1   :  { %v1754_v2 = vpop.f32.mrf.mxu2  ;;  %v1668_v34 = vpop.f32.mrf.mxu1 }
 0x3c2   :  { %v1755_v30 = vadd.f32 %v1754_v2, %v1666_v28  ;;  %v2664_v28 = vpack.c.bf16 %v2420_v62, %v2416_v58 }
 0x3c4   :  { %1983 = vmatmul.bf16.gmra.mxu1 %v4770_v41 }
 0x3c5   :  { %v1843_v31 = vpop.f32.mrf.mxu3  ;;  %v1579_v33 = vpop.f32.mrf.mxu0  ;;  %2887 = vmatpush.bf16.xpose.msra.mxu1 %v2664_v28 }
 0x3c6   :  { %v1844_v16 = vadd.f32 %v1843_v31, %v1755_v30  ;;  %v1669_v32 = vadd.f32 %v1668_v34, %v1579_v33  ;;  %2072 = vmatmul.bf16.gmra.mxu2 %v4772_v42  ;;  %v5842_v34 = vld [vmem:[#allocation17_spill] sm:$0xff] }
 0x3c8   :  { %1894 = vmatmul.bf16.gmra.mxu0 %v4768_v40  ;;  %v2325_v3 = vmax.f32 %v1844_v16, 0.0 }
 0x3c9   :  { %v1757_v37 = vpop.f32.mrf.mxu2  ;;  %v1670_v22 = vpop.f32.mrf.mxu1 }
 0x3ca   :  { %2161 = vmatmul.bf16.gmra.mxu3 %v4774_v43  ;;  %v5128_v20 = vpack.c.bf16 %v2325_v3, %v2321_v9  ;;  %v1758_v4 = vadd.f32 %v1757_v37, %v1669_v32  ;;  %v5843_v9 = vld [vmem:[#allocation18_spill] sm:$0xff]  ;;  %v5844_v3 = vld [vmem:[#allocation19_spill] sm:$0xff]  ;;  %v5845_v37 = vld [vmem:[#allocation20_spill] sm:$0xff] }
 0x3cc   :  { %5840 = vst [vmem:[#allocation81_spill] sm:$0xff] %v5128_v20 }
 0x3cd   :  { %v1846_v48 = vpop.f32.mrf.mxu3  ;;  %v1581_v21 = vpop.f32.mrf.mxu0 }
 0x3ce   :  { %v1847_v23 = vadd.f32 %v1846_v48, %v1758_v4  ;;  %v1671_v6 = vadd.f32 %v1670_v22, %v1581_v21 }
 0x3d0   :  { %v2329_v42 = vmax.f32 %v1847_v23, 0.0 }
 0x3d1   :  { %v1759_v24 = vpop.f32.mrf.mxu2  ;;  %v1949_v50 = vpop.f32.mrf.mxu1 }
 0x3d2   :  { %v1760_v54 = vadd.f32 %v1759_v24, %v1671_v6 }
 0x3d4   :  { %1988 = vmatmul.bf16.gmra.mxu1 %v4782_v14 }
 0x3d5   :  { %v1848_v40 = vpop.f32.mrf.mxu3  ;;  %v1860_v49 = vpop.f32.mrf.mxu0 }
 0x3d6   :  { %v1849_v25 = vadd.f32 %v1848_v40, %v1760_v54  ;;  %v1950_v41 = vadd.f32 %v1949_v50, %v1860_v49  ;;  %2077 = vmatmul.bf16.gmra.mxu2 %v5763_v5 }
 0x3d8   :  { %1899 = vmatmul.bf16.gmra.mxu0 %v4780_v12  ;;  %v2333_v43 = vmax.f32 %v1849_v25, 0.0 }
 0x3d9   :  { %v2038_v36 = vpop.f32.mrf.mxu2  ;;  %v1951_v14 = vpop.f32.mrf.mxu1 }
 0x3da   :  { %2166 = vmatmul.bf16.gmra.mxu3 %v5841_v26  ;;  %v5134_v27 = vpack.c.bf16 %v2333_v43, %v2329_v42  ;;  %v2039_v45 = vadd.f32 %v2038_v36, %v1950_v41  ;;  %v5847_v26 = vld [vmem:[#allocation22_spill] sm:$0xff]  ;;  %v5849_v36 = vld [vmem:[#allocation24_spill] sm:$0xff] }
 0x3dd   :  { %v2127_v12 = vpop.f32.mrf.mxu3  ;;  %v1862_v57 = vpop.f32.mrf.mxu0 }
 0x3de   :  { %v2128_v5 = vadd.f32 %v2127_v12, %v2039_v45  ;;  %v1952_v47 = vadd.f32 %v1951_v14, %v1862_v57  ;;  %v2407_v45 = vld [vmem:[#allocation7 + $0x40] sm:$0xff]  ;;  %v2661_v57 = vpack.c.bf16 %v2413_v38, %v2409_v1  ;;  %v2414_v14 = vld [vmem:[#allocation7 + $0x78] sm:$0xff] }
 0x3df   :  { %v2659_v62 = vpack.c.bf16 %v2411_v46, %v2407_v45  ;;  %v2662_v28 = vpack.c.bf16 %v2414_v14, %v2410_v52  ;;  %v5855_v45 = vld [vmem:[#allocation33_spill] sm:$0xff] }
 0x3e0   :  { %v2210_v16 = vmax.f32 %v2128_v5, 0.0  ;;  %2977 = vmatpush.bf16.xpose.msra.mxu2 %v2661_v57  ;;  %v5857_v57 = vld [vmem:[#allocation35_spill] sm:$0xff]  ;;  %v2401_v52 = vld [vmem:[#allocation7 + $0x10] sm:$0xff] }
 0x3e1   :  { %v2040_v63 = vpop.f32.mrf.mxu2  ;;  %v1954_v30 = vpop.f32.mrf.mxu1  ;;  %2799 = vmatpush.bf16.xpose.msra.mxu0 %v2659_v62  ;;  %3066 = vmatpush.bf16.xpose.msra.mxu3 %v2662_v28  ;;  %v2405_v14 = vld [vmem:[#allocation7 + $0x30] sm:$0xff]  ;;  %v2403_v62 = vld [vmem:[#allocation7 + $0x20] sm:$0xff]  ;;  %v2402_v28 = vld [vmem:[#allocation7 + $0x18] sm:$0xff] }
 0x3e2   :  { %v2041_v59 = vadd.f32 %v2040_v63, %v1952_v47 }
 0x3e4   :  { %1993 = vmatmul.bf16.gmra.mxu1 %v5843_v9 }
 0x3e5   :  { %v2129_v60 = vpop.f32.mrf.mxu3  ;;  %v1865_v2 = vpop.f32.mrf.mxu0 }
 0x3e6   :  { %v2130_v31 = vadd.f32 %v2129_v60, %v2041_v59  ;;  %v1955_v33 = vadd.f32 %v1954_v30, %v1865_v2  ;;  %2082 = vmatmul.bf16.gmra.mxu2 %v5844_v3  ;;  %v2408_v2 = vld [vmem:[#allocation7 + $0x48] sm:$0xff] }
 0x3e7   :  { %v2412_v30 = vld [vmem:[#allocation7 + $0x68] sm:$0xff] }
 0x3e8   :  { %1904 = vmatmul.bf16.gmra.mxu0 %v5842_v34  ;;  %v2214_v32 = vmax.f32 %v2130_v31, 0.0  ;;  %v2660_v31 = vpack.c.bf16 %v2412_v30, %v2408_v2 }
 0x3e9   :  { %v2043_v48 = vpop.f32.mrf.mxu2  ;;  %v1956_v6 = vpop.f32.mrf.mxu1 }
 0x3ea   :  { %2171 = vmatmul.bf16.gmra.mxu3 %v5845_v37  ;;  %v5140_v4 = vpack.c.bf16 %v2214_v32, %v2210_v16  ;;  %v2044_v21 = vadd.f32 %v2043_v48, %v1955_v33  ;;  %2888 = vmatpush.bf16.xpose.msra.mxu1 %v2660_v31 }
 0x3ec   :  { %5846 = vst [vmem:[#allocation16_spill] sm:$0xff] %v5140_v4 }
 0x3ed   :  { %v2132_v22 = vpop.f32.mrf.mxu3  ;;  %v1867_v23 = vpop.f32.mrf.mxu0 }
 0x3ee   :  { %v2133_v24 = vadd.f32 %v2132_v22, %v2044_v21  ;;  %v1957_v54 = vadd.f32 %v1956_v6, %v1867_v23  ;;  %v5851_v22 = vld [vmem:[#allocation28_spill] sm:$0xff]  ;;  %v5852_v23 = vld [vmem:[#allocation29_spill] sm:$0xff]  ;;  %v5853_v6 = vld [vmem:[#allocation30_spill] sm:$0xff] }
 0x3f0   :  { %v2218_v51 = vmax.f32 %v2133_v24, 0.0 }
 0x3f1   :  { %v2045_v40 = vpop.f32.mrf.mxu2  ;;  %v1959_v41 = vpop.f32.mrf.mxu1 }
 0x3f2   :  { %v2046_v49 = vadd.f32 %v2045_v40, %v1957_v54 }
 0x3f4   :  { %1998 = vmatmul.bf16.gmra.mxu1 %v5848_v18 }
 0x3f5   :  { %v2134_v50 = vpop.f32.mrf.mxu3  ;;  %v1870_v25 = vpop.f32.mrf.mxu0 }
 0x3f6   :  { %v2135_v42 = vadd.f32 %v2134_v50, %v2046_v49  ;;  %v1960_v43 = vadd.f32 %v1959_v41, %v1870_v25  ;;  %2087 = vmatmul.bf16.gmra.mxu2 %v5849_v36 }
 0x3f8   :  { %1909 = vmatmul.bf16.gmra.mxu0 %v5847_v26  ;;  %v2222_v13 = vmax.f32 %v2135_v42, 0.0 }
 0x3f9   :  { %v2048_v12 = vpop.f32.mrf.mxu2  ;;  %v1961_v63 = vpop.f32.mrf.mxu1 }
 0x3fa   :  { %2176 = vmatmul.bf16.gmra.mxu3 %v5850_v44  ;;  %v5146_v55 = vpack.c.bf16 %v2222_v13, %v2218_v51  ;;  %v2049_v5 = vadd.f32 %v2048_v12, %v1960_v43  ;;  %v5854_v44 = vld [vmem:[#allocation32_spill] sm:$0xff]  ;;  %v5856_v12 = vld [vmem:[#allocation34_spill] sm:$0xff] }
 0x3fd   :  { %v2137_v47 = vpop.f32.mrf.mxu3  ;;  %v1872_v58 = vpop.f32.mrf.mxu0 }
 0x3fe   :  { %v2138_v59 = vadd.f32 %v2137_v47, %v2049_v5  ;;  %v1962_v60 = vadd.f32 %v1961_v63, %v1872_v58  ;;  %v2399_v5 = vld [vmem:[#allocation7] sm:$0xff]  ;;  %v2657_v58 = vpack.c.bf16 %v2405_v14, %v2401_v52  ;;  %v2406_v63 = vld [vmem:[#allocation7 + $0x38] sm:$0xff] }
 0x3ff   :  { %v2655_v30 = vpack.c.bf16 %v2403_v62, %v2399_v5  ;;  %v2658_v31 = vpack.c.bf16 %v2406_v63, %v2402_v28  ;;  %v5861_v52 = vld [vmem:[#allocation42_spill] sm:$0xff]  ;;  %v5864_v62 = vld [vmem:[#allocation45_spill] sm:$0xff] }
 0x400   :  { %v2226_v48 = vmax.f32 %v2138_v59, 0.0  ;;  %2978 = vmatpush.bf16.xpose.msra.mxu2 %v2657_v58  ;;  %v5863_v58 = vld [vmem:[#allocation44_spill] sm:$0xff] }
 0x401   :  { %v2050_v33 = vpop.f32.mrf.mxu2  ;;  %v1964_v9 = vpop.f32.mrf.mxu1  ;;  %2800 = vmatpush.bf16.xpose.msra.mxu0 %v2655_v30  ;;  %3067 = vmatpush.bf16.xpose.msra.mxu3 %v2658_v31  ;;  %v2521_v63 = vld [vmem:[#allocation7 + $0x3d0] sm:$0xff]  ;;  %v2523_v31 = vld [vmem:[#allocation7 + $0x3e0] sm:$0xff] }
 0x402   :  { %v2051_v34 = vadd.f32 %v2050_v33, %v1962_v60 }
 0x404   :  { %2003 = vmatmul.bf16.gmra.mxu1 %v5851_v22 }
 0x405   :  { %v2139_v16 = vpop.f32.mrf.mxu3  ;;  %v1875_v32 = vpop.f32.mrf.mxu0 }
 0x406   :  { %v2140_v3 = vadd.f32 %v2139_v16, %v2051_v34  ;;  %v1965_v37 = vadd.f32 %v1964_v9, %v1875_v32  ;;  %2092 = vmatmul.bf16.gmra.mxu2 %v5852_v23  ;;  %v2400_v32 = vld [vmem:[#allocation7 + $0x8] sm:$0xff] }
 0x407   :  { %v2404_v9 = vld [vmem:[#allocation7 + $0x28] sm:$0xff] }
 0x408   :  { %1914 = vmatmul.bf16.gmra.mxu0 %v5816_v10  ;;  %v2230_v21 = vmax.f32 %v2140_v3, 0.0  ;;  %v2656_v3 = vpack.c.bf16 %v2404_v9, %v2400_v32 }
 0x409   :  { %v2053_v54 = vpop.f32.mrf.mxu2  ;;  %v1966_v25 = vpop.f32.mrf.mxu1 }
 0x40a   :  { %2181 = vmatmul.bf16.gmra.mxu3 %v5853_v6  ;;  %v5152_v24 = vpack.c.bf16 %v2230_v21, %v2226_v48  ;;  %v2054_v40 = vadd.f32 %v2053_v54, %v1965_v37  ;;  %2889 = vmatpush.bf16.xpose.msra.mxu1 %v2656_v3 }
 0x40d   :  { %v2142_v49 = vpop.f32.mrf.mxu3  ;;  %v1877_v50 = vpop.f32.mrf.mxu0 }
 0x40e   :  { %v2143_v41 = vadd.f32 %v2142_v49, %v2054_v40  ;;  %v1967_v42 = vadd.f32 %v1966_v25, %v1877_v50  ;;  %v5858_v50 = vld [vmem:[#allocation38_spill] sm:$0xff]  ;;  %v5859_v25 = vld [vmem:[#allocation39_spill] sm:$0xff] }
 0x410   :  { %v2234_v1 = vmax.f32 %v2143_v41, 0.0  ;;  %v5860_v41 = vld [vmem:[#allocation40_spill] sm:$0xff] }
 0x411   :  { %v2055_v43 = vpop.f32.mrf.mxu2  ;;  %v1969_v13 = vpop.f32.mrf.mxu1 }
 0x412   :  { %v2056_v26 = vadd.f32 %v2055_v43, %v1967_v42 }
 0x414   :  { %2008 = vmatmul.bf16.gmra.mxu1 %v5855_v45 }
 0x415   :  { %v2144_v10 = vpop.f32.mrf.mxu3  ;;  %v1880_v51 = vpop.f32.mrf.mxu0 }
 0x416   :  { %v2145_v18 = vadd.f32 %v2144_v10, %v2056_v26  ;;  %v1970_v36 = vadd.f32 %v1969_v13, %v1880_v51  ;;  %2097 = vmatmul.bf16.gmra.mxu2 %v5856_v12 }
 0x418   :  { %1919 = vmatmul.bf16.gmra.mxu0 %v5854_v44  ;;  %v2238_v38 = vmax.f32 %v2145_v18, 0.0 }
 0x419   :  { %v2058_v47 = vpop.f32.mrf.mxu2  ;;  %v1971_v33 = vpop.f32.mrf.mxu1 }
 0x41a   :  { %2186 = vmatmul.bf16.gmra.mxu3 %v5857_v57  ;;  %v5158_v46 = vpack.c.bf16 %v2238_v38, %v2234_v1  ;;  %v2059_v59 = vadd.f32 %v2058_v47, %v1970_v36  ;;  %v5862_v47 = vld [vmem:[#allocation43_spill] sm:$0xff] }
 0x41d   :  { %v2147_v60 = vpop.f32.mrf.mxu3  ;;  %v1882_v2 = vpop.f32.mrf.mxu0 }
 0x41e   :  { %v2148_v34 = vadd.f32 %v2147_v60, %v2059_v59  ;;  %v1972_v16 = vadd.f32 %v1971_v33, %v1882_v2  ;;  %v2525_v59 = vld [vmem:[#allocation7 + $0x3f0] sm:$0xff]  ;;  %v2519_v60 = vld [vmem:[#allocation7 + $0x3c0] sm:$0xff]  ;;  %v2522_v33 = vld [vmem:[#allocation7 + $0x3d8] sm:$0xff] }
 0x41f   :  { %v2717_v30 = vpack.c.bf16 %v2525_v59, %v2521_v63  ;;  %v2715_v3 = vpack.c.bf16 %v2523_v31, %v2519_v60  ;;  %v2513_v59 = vld [vmem:[#allocation7 + $0x390] sm:$0xff] }
 0x420   :  { %v2242_v40 = vmax.f32 %v2148_v34, 0.0  ;;  %v2526_v34 = vld [vmem:[#allocation7 + $0x3f8] sm:$0xff]  ;;  %v2517_v60 = vld [vmem:[#allocation7 + $0x3b0] sm:$0xff] }
 0x421   :  { %v2060_v37 = vpop.f32.mrf.mxu2  ;;  %v1974_v23 = vpop.f32.mrf.mxu1  ;;  %3327 = vmatpush.bf16.xpose.msrb.mxu2 %v2717_v30  ;;  %3149 = vmatpush.bf16.xpose.msrb.mxu0 %v2715_v3  ;;  %v2713_v31 = vpack.c.bf16 %v2517_v60, %v2513_v59 }
 0x422   :  { %v2061_v48 = vadd.f32 %v2060_v37, %v1972_v16  ;;  %v2718_v37 = vpack.c.bf16 %v2526_v34, %v2522_v33  ;;  %v2515_v33 = vld [vmem:[#allocation7 + $0x3a0] sm:$0xff]  ;;  %v2514_v34 = vld [vmem:[#allocation7 + $0x398] sm:$0xff] }
 0x424   :  { %2013 = vmatmul.bf16.gmra.mxu1 %v5858_v50  ;;  %3416 = vmatpush.bf16.xpose.msrb.mxu3 %v2718_v37 }
 0x425   :  { %v2149_v21 = vpop.f32.mrf.mxu3  ;;  %v1885_v22 = vpop.f32.mrf.mxu0 }
 0x426   :  { %v2150_v6 = vadd.f32 %v2149_v21, %v2061_v48  ;;  %v1975_v54 = vadd.f32 %v1974_v23, %v1885_v22  ;;  %2102 = vmatmul.bf16.gmra.mxu2 %v5859_v25  ;;  %v2520_v23 = vld [vmem:[#allocation7 + $0x3c8] sm:$0xff] }
 0x428   :  { %1924 = vmatmul.bf16.gmra.mxu0 %v5786_v11  ;;  %v2246_v49 = vmax.f32 %v2150_v6, 0.0  ;;  %v2524_v6 = vld [vmem:[#allocation7 + $0x3e8] sm:$0xff] }
 0x429   :  { %v2063_v43 = vpop.f32.mrf.mxu2  ;;  %v1976_v13 = vpop.f32.mrf.mxu1  ;;  %3328 = vmatpush.bf16.xpose.msrb.mxu2 %v2713_v31 }
 0x42a   :  { %2191 = vmatmul.bf16.gmra.mxu3 %v5860_v41  ;;  %v5164_v42 = vpack.c.bf16 %v2246_v49, %v2242_v40  ;;  %v2064_v26 = vadd.f32 %v2063_v43, %v1975_v54  ;;  %v2716_v54 = vpack.c.bf16 %v2524_v6, %v2520_v23  ;;  %v2512_v6 = vld [vmem:[#allocation7 + $0x388] sm:$0xff] }
 0x42c   :  { %3238 = vmatpush.bf16.xpose.msrb.mxu1 %v2716_v54  ;;  %v2516_v54 = vld [vmem:[#allocation7 + $0x3a8] sm:$0xff] }
 0x42d   :  { %v2152_v10 = vpop.f32.mrf.mxu3  ;;  %v1887_v51 = vpop.f32.mrf.mxu0 }
 0x42e   :  { %v2153_v18 = vadd.f32 %v2152_v10, %v2064_v26  ;;  %v1977_v36 = vadd.f32 %v1976_v13, %v1887_v51 }
 0x430   :  { %v2250_v14 = vmax.f32 %v2153_v18, 0.0 }
 0x431   :  { %v2065_v44 = vpop.f32.mrf.mxu2  ;;  %v1979_v45 = vpop.f32.mrf.mxu1 }
 0x432   :  { %v2066_v1 = vadd.f32 %v2065_v44, %v1977_v36 }
 0x434   :  { %2018 = vmatmul.bf16.gmra.mxu1 %v5862_v47  ;;  %v5866_v47 = vld [vmem:[#allocation21_spill] sm:$0xff] }
 0x435   :  { %v2154_v11 = vpop.f32.mrf.mxu3  ;;  %v1890_v38 = vpop.f32.mrf.mxu0 }
 0x436   :  { %v2155_v12 = vadd.f32 %v2154_v11, %v2066_v1  ;;  %v1980_v57 = vadd.f32 %v1979_v45, %v1890_v38  ;;  %2107 = vmatmul.bf16.gmra.mxu2 %v5863_v58  ;;  %v5867_v58 = vld [vmem:[#allocation56_spill] sm:$0xff] }
 0x438   :  { %1929 = vmatmul.bf16.gmra.mxu0 %v5861_v52  ;;  %v2254_v5 = vmax.f32 %v2155_v12, 0.0 }
 0x439   :  { %v2068_v2 = vpop.f32.mrf.mxu2  ;;  %v1981_v48 = vpop.f32.mrf.mxu1 }
 0x43a   :  { %2196 = vmatmul.bf16.gmra.mxu3 %v5864_v62  ;;  %v5170_v28 = vpack.c.bf16 %v2254_v5, %v2250_v14  ;;  %v2069_v16 = vadd.f32 %v2068_v2, %v1980_v57  ;;  %v5868_v62 = vld [vmem:[#allocation71_spill] sm:$0xff] }
 0x43b   :  { %v2511_v2 = vld [vmem:[#allocation7 + $0x380] sm:$0xff] }
 0x43c   :  { %v2711_v37 = vpack.c.bf16 %v2515_v33, %v2511_v2 }
 0x43d   :  { %v2157_v32 = vpop.f32.mrf.mxu3  ;;  %v1892_v9 = vpop.f32.mrf.mxu0 }
 0x43e   :  { %v2158_v21 = vadd.f32 %v2157_v32, %v2069_v16  ;;  %v1982_v22 = vadd.f32 %v1981_v48, %v1892_v9  ;;  %v2518_v16 = vld [vmem:[#allocation7 + $0x3b8] sm:$0xff]  ;;  %3150 = vmatpush.bf16.xpose.msrb.mxu0 %v2711_v37  ;;  %v2503_v37 = vld [vmem:[#allocation7 + $0x340] sm:$0xff] }
 0x43f   :  { %v2714_v48 = vpack.c.bf16 %v2518_v16, %v2514_v34  ;;  %v5875_v34 = vld [vmem:[#allocation58_spill] sm:$0xff]  ;;  %v5876_v16 = vld [vmem:[#allocation27_spill] sm:$0xff] }
 0x440   :  { %v2258_v10 = vmax.f32 %v2158_v21, 0.0 }
 0x441   :  { %v2070_v40 = vpop.f32.mrf.mxu2  ;;  %v1984_v41 = vpop.f32.mrf.mxu1  ;;  %3417 = vmatpush.bf16.xpose.msrb.mxu3 %v2714_v48 }
 0x442   :  { %v2071_v49 = vadd.f32 %v2070_v40, %v1982_v22  ;;  %v2712_v40 = vpack.c.bf16 %v2516_v54, %v2512_v6  ;;  %v2510_v6 = vld [vmem:[#allocation7 + $0x378] sm:$0xff] }
 0x444   :  { %2023 = vmatmul.bf16.gmra.mxu1 %v4878_v8 }
 0x445   :  { %v2159_v50 = vpop.f32.mrf.mxu3  ;;  %v1895_v25 = vpop.f32.mrf.mxu0  ;;  %3239 = vmatpush.bf16.xpose.msrb.mxu1 %v2712_v40 }
 0x446   :  { %v2160_v43 = vadd.f32 %v2159_v50, %v2071_v49  ;;  %v1985_v26 = vadd.f32 %v1984_v41, %v1895_v25  ;;  %2112 = vmatmul.bf16.gmra.mxu2 %v4880_v0 }
 0x448   :  { %1934 = vmatmul.bf16.gmra.mxu0 %v4876_v15  ;;  %v2262_v51 = vmax.f32 %v2160_v43, 0.0 }
 0x449   :  { %v2073_v18 = vpop.f32.mrf.mxu2  ;;  %v1986_v11 = vpop.f32.mrf.mxu1 }
 0x44a   :  { %2201 = vmatmul.bf16.gmra.mxu3 %v4882_v35  ;;  %v5176_v13 = vpack.c.bf16 %v2262_v51, %v2258_v10  ;;  %v2074_v36 = vadd.f32 %v2073_v18, %v1985_v26  ;;  %v5870_v51 = vld [vmem:[#allocation26_spill] sm:$0xff] }
 0x44c   :  { %5865 = vst [vmem:[#allocation17_spill] sm:$0xff] %v5176_v13 }
 0x44d   :  { %v2162_v44 = vpop.f32.mrf.mxu3  ;;  %v1897_v1 = vpop.f32.mrf.mxu0 }
 0x44e   :  { %v2163_v38 = vadd.f32 %v2162_v44, %v2074_v36  ;;  %v1987_v45 = vadd.f32 %v1986_v11, %v1897_v1  ;;  %v5871_v44 = vld [vmem:[#allocation57_spill] sm:$0xff]  ;;  %v5872_v1 = vld [vmem:[#allocation72_spill] sm:$0xff] }
 0x450   :  { %v2266_v0 = vmax.f32 %v2163_v38, 0.0 }
 0x451   :  { %v2075_v12 = vpop.f32.mrf.mxu2  ;;  %v1989_v14 = vpop.f32.mrf.mxu1 }
 0x452   :  { %v2076_v57 = vadd.f32 %v2075_v12, %v1987_v45 }
 0x454   :  { %2890 = vmatmul.bf16.vlgmr.msra.gmra.mxu1 %v5867_v58 }
 0x455   :  { %v2164_v15 = vpop.f32.mrf.mxu3  ;;  %v1900_v52 = vpop.f32.mrf.mxu0 }
 0x456   :  { %v2165_v5 = vadd.f32 %v2164_v15, %v2076_v57  ;;  %v1990_v8 = vadd.f32 %v1989_v14, %v1900_v52  ;;  %2979 = vmatmul.bf16.vlgmr.msra.gmra.mxu2 %v5868_v62 }
 0x458   :  { %2801 = vmatmul.bf16.vlgmr.msra.gmra.mxu0 %v5866_v47  ;;  %v2270_v35 = vmax.f32 %v2165_v5, 0.0 }
 0x459   :  { %v2078_v30 = vpop.f32.mrf.mxu2  ;;  %v1991_v21 = vpop.f32.mrf.mxu1 }
 0x45a   :  { %3068 = vmatmul.bf16.vlgmr.msra.gmra.mxu3 %v5140_v4  ;;  %v5182_v63 = vpack.c.bf16 %v2270_v35, %v2266_v0  ;;  %v2079_v32 = vadd.f32 %v2078_v30, %v1990_v8  ;;  %v5874_v30 = vld [vmem:[#allocation31_spill] sm:$0xff] }
 0x45c   :  { %5869 = vst [vmem:[#allocation18_spill] sm:$0xff] %v5182_v63 }
 0x45d   :  { %v2167_v9 = vpop.f32.mrf.mxu3  ;;  %v1902_v3 = vpop.f32.mrf.mxu0 }
 0x45e   :  { %v2168_v22 = vadd.f32 %v2167_v9, %v2079_v32  ;;  %v1992_v23 = vadd.f32 %v1991_v21, %v1902_v3  ;;  %v2505_v9 = vld [vmem:[#allocation7 + $0x350] sm:$0xff] }
 0x45f   :  { %v2509_v3 = vld [vmem:[#allocation7 + $0x370] sm:$0xff] }
 0x460   :  { %v2274_v18 = vmax.f32 %v2168_v22, 0.0  ;;  %v2709_v21 = vpack.c.bf16 %v2509_v3, %v2505_v9  ;;  %v2507_v22 = vld [vmem:[#allocation7 + $0x360] sm:$0xff] }
 0x461   :  { %v2080_v49 = vpop.f32.mrf.mxu2  ;;  %v1994_v43 = vpop.f32.mrf.mxu1 }
 0x462   :  { %v2081_v50 = vadd.f32 %v2080_v49, %v1992_v23  ;;  %v2506_v23 = vld [vmem:[#allocation7 + $0x358] sm:$0xff]  ;;  %3329 = vmatpush.bf16.xpose.msrb.mxu2 %v2709_v21 }
 0x464   :  { %2895 = vmatmul.bf16.gmra.mxu1 %v5871_v44 }
 0x465   :  { %v2169_v25 = vpop.f32.mrf.mxu3  ;;  %v1905_v41 = vpop.f32.mrf.mxu0 }
 0x466   :  { %v2170_v26 = vadd.f32 %v2169_v25, %v2081_v50  ;;  %v1995_v10 = vadd.f32 %v1994_v43, %v1905_v41  ;;  %2984 = vmatmul.bf16.gmra.mxu2 %v5872_v1  ;;  %v2707_v50 = vpack.c.bf16 %v2507_v22, %v2503_v37  ;;  %v2710_v25 = vpack.c.bf16 %v2510_v6, %v2506_v23 }
 0x468   :  { %2806 = vmatmul.bf16.gmra.mxu0 %v5870_v51  ;;  %v2278_v36 = vmax.f32 %v2170_v26, 0.0  ;;  %3418 = vmatpush.bf16.xpose.msrb.mxu3 %v2710_v25 }
 0x469   :  { %v2083_v38 = vpop.f32.mrf.mxu2  ;;  %v1996_v15 = vpop.f32.mrf.mxu1  ;;  %3151 = vmatpush.bf16.xpose.msrb.mxu0 %v2707_v50  ;;  %v5881_v50 = vld [vmem:[#allocation41_spill] sm:$0xff] }
 0x46a   :  { %3073 = vmatmul.bf16.gmra.mxu3 %v5146_v55  ;;  %v5188_v11 = vpack.c.bf16 %v2278_v36, %v2274_v18  ;;  %v2084_v45 = vadd.f32 %v2083_v38, %v1995_v10  ;;  %v2504_v10 = vld [vmem:[#allocation7 + $0x348] sm:$0xff] }
 0x46b   :  { %v2508_v18 = vld [vmem:[#allocation7 + $0x368] sm:$0xff] }
 0x46c   :  { %5873 = vst [vmem:[#allocation19_spill] sm:$0xff] %v5188_v11  ;;  %v2708_v36 = vpack.c.bf16 %v2508_v18, %v2504_v10  ;;  %v2497_v18 = vld [vmem:[#allocation7 + $0x310] sm:$0xff] }
 0x46d   :  { %v2172_v12 = vpop.f32.mrf.mxu3  ;;  %v1907_v57 = vpop.f32.mrf.mxu0 }
 0x46e   :  { %v2173_v52 = vadd.f32 %v2172_v12, %v2084_v45  ;;  %v1997_v14 = vadd.f32 %v1996_v15, %v1907_v57  ;;  %3240 = vmatpush.bf16.xpose.msrb.mxu1 %v2708_v36  ;;  %v2501_v36 = vld [vmem:[#allocation7 + $0x330] sm:$0xff] }
 0x470   :  { %v2282_v31 = vmax.f32 %v2173_v52, 0.0 }
 0x471   :  { %v2085_v5 = vpop.f32.mrf.mxu2  ;;  %v1999_v59 = vpop.f32.mrf.mxu1 }
 0x472   :  { %v2086_v8 = vadd.f32 %v2085_v5, %v1997_v14  ;;  %v5877_v5 = vld [vmem:[#allocation36_spill] sm:$0xff] }
 0x474   :  { %2900 = vmatmul.bf16.gmra.mxu1 %v5875_v34 }
 0x475   :  { %v2174_v0 = vpop.f32.mrf.mxu3  ;;  %v1910_v35 = vpop.f32.mrf.mxu0 }
 0x476   :  { %v2175_v60 = vadd.f32 %v2174_v0, %v2086_v8  ;;  %v2000_v2 = vadd.f32 %v1999_v59, %v1910_v35  ;;  %2989 = vmatmul.bf16.gmra.mxu2 %v5876_v16  ;;  %v5878_v35 = vld [vmem:[#allocation59_spill] sm:$0xff]  ;;  %v5879_v59 = vld [vmem:[#allocation73_spill] sm:$0xff] }
 0x478   :  { %2811 = vmatmul.bf16.gmra.mxu0 %v5874_v30  ;;  %v2286_v33 = vmax.f32 %v2175_v60, 0.0 }
 0x479   :  { %v2088_v48 = vpop.f32.mrf.mxu2  ;;  %v2001_v41 = vpop.f32.mrf.mxu1 }
 0x47a   :  { %3078 = vmatmul.bf16.gmra.mxu3 %v5152_v24  ;;  %v5194_v32 = vpack.c.bf16 %v2286_v33, %v2282_v31  ;;  %v2089_v54 = vadd.f32 %v2088_v48, %v2000_v2 }
 0x47d   :  { %v2177_v40 = vpop.f32.mrf.mxu3  ;;  %v1912_v49 = vpop.f32.mrf.mxu0 }
 0x47e   :  { %v2178_v43 = vadd.f32 %v2177_v40, %v2089_v54  ;;  %v2002_v26 = vadd.f32 %v2001_v41, %v1912_v49 }
 0x480   :  { %v2290_v8 = vmax.f32 %v2178_v43, 0.0  ;;  %v5882_v43 = vld [vmem:[#allocation37_spill] sm:$0xff] }
 0x481   :  { %v2090_v38 = vpop.f32.mrf.mxu2  ;;  %v2004_v15 = vpop.f32.mrf.mxu1 }
 0x482   :  { %v2091_v45 = vadd.f32 %v2090_v38, %v2002_v26  ;;  %v5883_v26 = vld [vmem:[#allocation74_spill] sm:$0xff] }
 0x483   :  { %v2495_v38 = vld [vmem:[#allocation7 + $0x300] sm:$0xff] }
 0x484   :  { %2905 = vmatmul.bf16.gmra.mxu1 %v5878_v35 }
 0x485   :  { %v2179_v12 = vpop.f32.mrf.mxu3  ;;  %v1915_v57 = vpop.f32.mrf.mxu0 }
 0x486   :  { %v2180_v52 = vadd.f32 %v2179_v12, %v2091_v45  ;;  %v2005_v14 = vadd.f32 %v2004_v15, %v1915_v57  ;;  %2994 = vmatmul.bf16.gmra.mxu2 %v5879_v59  ;;  %v2705_v12 = vpack.c.bf16 %v2501_v36, %v2497_v18  ;;  %v2499_v57 = vld [vmem:[#allocation7 + $0x320] sm:$0xff]  ;;  %v2498_v15 = vld [vmem:[#allocation7 + $0x318] sm:$0xff] }
 0x488   :  { %2816 = vmatmul.bf16.gmra.mxu0 %v5877_v5  ;;  %v2294_v0 = vmax.f32 %v2180_v52, 0.0  ;;  %v2502_v52 = vld [vmem:[#allocation7 + $0x338] sm:$0xff]  ;;  %3330 = vmatpush.bf16.xpose.msrb.mxu2 %v2705_v12 }
 0x489   :  { %v2093_v2 = vpop.f32.mrf.mxu2  ;;  %v2006_v3 = vpop.f32.mrf.mxu1 }
 0x48a   :  { %3083 = vmatmul.bf16.gmra.mxu3 %v5158_v46  ;;  %v5200_v60 = vpack.c.bf16 %v2294_v0, %v2290_v8  ;;  %v2094_v31 = vadd.f32 %v2093_v2, %v2005_v14  ;;  %v2703_v2 = vpack.c.bf16 %v2499_v57, %v2495_v38  ;;  %v5885_v38 = vld [vmem:[#allocation60_spill] sm:$0xff] }
 0x48c   :  { %5880 = vst [vmem:[#allocation20_spill] sm:$0xff] %v5200_v60  ;;  %3152 = vmatpush.bf16.xpose.msrb.mxu0 %v2703_v2 }
 0x48d   :  { %v2182_v33 = vpop.f32.mrf.mxu3  ;;  %v1917_v9 = vpop.f32.mrf.mxu0 }
 0x48e   :  { %v2183_v37 = vadd.f32 %v2182_v33, %v2094_v31  ;;  %v2007_v48 = vadd.f32 %v2006_v3, %v1917_v9  ;;  %v2706_v31 = vpack.c.bf16 %v2502_v52, %v2498_v15 }
 0x490   :  { %v2298_v25 = vmax.f32 %v2183_v37, 0.0  ;;  %3419 = vmatpush.bf16.xpose.msrb.mxu3 %v2706_v31  ;;  %v2496_v37 = vld [vmem:[#allocation7 + $0x308] sm:$0xff] }
 0x491   :  { %v2095_v21 = vpop.f32.mrf.mxu2  ;;  %v2009_v54 = vpop.f32.mrf.mxu1 }
 0x492   :  { %v2096_v22 = vadd.f32 %v2095_v21, %v2007_v48  ;;  %v2500_v48 = vld [vmem:[#allocation7 + $0x328] sm:$0xff] }
 0x493   :  { %v2704_v21 = vpack.c.bf16 %v2500_v48, %v2496_v37 }
 0x494   :  { %2910 = vmatmul.bf16.gmra.mxu1 %v5882_v43 }
 0x495   :  { %v2184_v23 = vpop.f32.mrf.mxu3  ;;  %v1920_v6 = vpop.f32.mrf.mxu0  ;;  %3241 = vmatpush.bf16.xpose.msrb.mxu1 %v2704_v21 }
 0x496   :  { %v2185_v40 = vadd.f32 %v2184_v23, %v2096_v22  ;;  %v2010_v49 = vadd.f32 %v2009_v54, %v1920_v6  ;;  %2999 = vmatmul.bf16.gmra.mxu2 %v5883_v26 }
 0x498   :  { %2821 = vmatmul.bf16.gmra.mxu0 %v5881_v50  ;;  %v2302_v41 = vmax.f32 %v2185_v40, 0.0 }
 0x499   :  { %v2098_v45 = vpop.f32.mrf.mxu2  ;;  %v2011_v33 = vpop.f32.mrf.mxu1 }
 0x49a   :  { %3088 = vmatmul.bf16.gmra.mxu3 %v5164_v42  ;;  %v5206_v10 = vpack.c.bf16 %v2302_v41, %v2298_v25  ;;  %v2099_v14 = vadd.f32 %v2098_v45, %v2010_v49  ;;  %v5884_v41 = vld [vmem:[#allocation46_spill] sm:$0xff]  ;;  %v5886_v45 = vld [vmem:[#allocation75_spill] sm:$0xff] }
 0x49d   :  { %v2187_v8 = vpop.f32.mrf.mxu3  ;;  %v1922_v0 = vpop.f32.mrf.mxu0 }
 0x49e   :  { %v2188_v9 = vadd.f32 %v2187_v8, %v2099_v14  ;;  %v2012_v3 = vadd.f32 %v2011_v33, %v1922_v0 }
 0x4a0   :  { %v2306_v18 = vmax.f32 %v2188_v9, 0.0 }
 0x4a1   :  { %v2100_v22 = vpop.f32.mrf.mxu2  ;;  %v2014_v40 = vpop.f32.mrf.mxu1 }
 0x4a2   :  { %v2101_v23 = vadd.f32 %v2100_v22, %v2012_v3  ;;  %v5888_v22 = vld [vmem:[#allocation47_spill] sm:$0xff] }
 0x4a4   :  { %2915 = vmatmul.bf16.gmra.mxu1 %v5885_v38 }
 0x4a5   :  { %v2189_v6 = vpop.f32.mrf.mxu3  ;;  %v1925_v54 = vpop.f32.mrf.mxu0 }
 0x4a6   :  { %v2190_v49 = vadd.f32 %v2189_v6, %v2101_v23  ;;  %v2015_v25 = vadd.f32 %v2014_v40, %v1925_v54  ;;  %3004 = vmatmul.bf16.gmra.mxu2 %v5886_v45  ;;  %v5889_v54 = vld [vmem:[#allocation61_spill] sm:$0xff] }
 0x4a8   :  { %2826 = vmatmul.bf16.gmra.mxu0 %v5884_v41  ;;  %v2310_v36 = vmax.f32 %v2190_v49, 0.0  ;;  %v2489_v49 = vld [vmem:[#allocation7 + $0x2d0] sm:$0xff] }
 0x4a9   :  { %v2103_v57 = vpop.f32.mrf.mxu2  ;;  %v2016_v8 = vpop.f32.mrf.mxu1 }
 0x4aa   :  { %3093 = vmatmul.bf16.gmra.mxu3 %v5170_v28  ;;  %v5212_v12 = vpack.c.bf16 %v2310_v36, %v2306_v18  ;;  %v2104_v15 = vadd.f32 %v2103_v57, %v2015_v25  ;;  %v2493_v25 = vld [vmem:[#allocation7 + $0x2f0] sm:$0xff]  ;;  %v2487_v18 = vld [vmem:[#allocation7 + $0x2c0] sm:$0xff] }
 0x4ab   :  { %v2701_v57 = vpack.c.bf16 %v2493_v25, %v2489_v49 }
 0x4ac   :  { %5887 = vst [vmem:[#allocation22_spill] sm:$0xff] %v5212_v12 }
 0x4ad   :  { %v2192_v52 = vpop.f32.mrf.mxu3  ;;  %v1927_v14 = vpop.f32.mrf.mxu0  ;;  %3331 = vmatpush.bf16.xpose.msrb.mxu2 %v2701_v57  ;;  %v5891_v57 = vld [vmem:[#allocation62_spill] sm:$0xff] }
 0x4ae   :  { %v2193_v0 = vadd.f32 %v2192_v52, %v2104_v15  ;;  %v2017_v2 = vadd.f32 %v2016_v8, %v1927_v14  ;;  %v2491_v15 = vld [vmem:[#allocation7 + $0x2e0] sm:$0xff]  ;;  %v2490_v52 = vld [vmem:[#allocation7 + $0x2d8] sm:$0xff] }
 0x4af   :  { %v2494_v14 = vld [vmem:[#allocation7 + $0x2f8] sm:$0xff] }
 0x4b0   :  { %v2314_v23 = vmax.f32 %v2193_v0, 0.0 }
 0x4b1   :  { %v2105_v31 = vpop.f32.mrf.mxu2  ;;  %v2019_v37 = vpop.f32.mrf.mxu1 }
 0x4b2   :  { %v2106_v33 = vadd.f32 %v2105_v31, %v2017_v2  ;;  %v2699_v31 = vpack.c.bf16 %v2491_v15, %v2487_v18 }
 0x4b4   :  { %2920 = vmatmul.bf16.gmra.mxu1 %v5889_v54  ;;  %3153 = vmatpush.bf16.xpose.msrb.mxu0 %v2699_v31 }
 0x4b5   :  { %v2194_v3 = vpop.f32.mrf.mxu3  ;;  %v1930_v9 = vpop.f32.mrf.mxu0 }
 0x4b6   :  { %v2195_v48 = vadd.f32 %v2194_v3, %v2106_v33  ;;  %v2020_v21 = vadd.f32 %v2019_v37, %v1930_v9  ;;  %3009 = vmatmul.bf16.gmra.mxu2 %v5080_v7  ;;  %v2702_v33 = vpack.c.bf16 %v2494_v14, %v2490_v52 }
 0x4b8   :  { %2831 = vmatmul.bf16.gmra.mxu0 %v5888_v22  ;;  %v2318_v6 = vmax.f32 %v2195_v48, 0.0  ;;  %3420 = vmatpush.bf16.xpose.msrb.mxu3 %v2702_v33  ;;  %v2488_v48 = vld [vmem:[#allocation7 + $0x2c8] sm:$0xff] }
 0x4b9   :  { %v2108_v36 = vpop.f32.mrf.mxu2  ;;  %v2021_v3 = vpop.f32.mrf.mxu1  ;;  %v5890_v22 = vld [vmem:[#allocation48_spill] sm:$0xff] }
 0x4ba   :  { %3098 = vmatmul.bf16.gmra.mxu3 %v5176_v13  ;;  %v5218_v40 = vpack.c.bf16 %v2318_v6, %v2314_v23  ;;  %v2109_v8 = vadd.f32 %v2108_v36, %v2020_v21  ;;  %v2492_v23 = vld [vmem:[#allocation7 + $0x2e8] sm:$0xff] }
 0x4bb   :  { %v2700_v13 = vpack.c.bf16 %v2492_v23, %v2488_v48 }
 0x4bd   :  { %v2197_v2 = vpop.f32.mrf.mxu3  ;;  %v1932_v0 = vpop.f32.mrf.mxu0  ;;  %3242 = vmatpush.bf16.xpose.msrb.mxu1 %v2700_v13 }
 0x4be   :  { %v2198_v9 = vadd.f32 %v2197_v2, %v2109_v8  ;;  %v2022_v37 = vadd.f32 %v2021_v3, %v1932_v0 }
 0x4c0   :  { %v2322_v18 = vmax.f32 %v2198_v9, 0.0 }
 0x4c1   :  { %v2110_v6 = vpop.f32.mrf.mxu2  ;;  %v2024_v54 = vpop.f32.mrf.mxu1 }
 0x4c2   :  { %v2111_v7 = vadd.f32 %v2110_v6, %v2022_v37 }
 0x4c4   :  { %2925 = vmatmul.bf16.gmra.mxu1 %v5891_v57 }
 0x4c5   :  { %v2199_v49 = vpop.f32.mrf.mxu3  ;;  %v1935_v25 = vpop.f32.mrf.mxu0 }
 0x4c6   :  { %v2200_v21 = vadd.f32 %v2199_v49, %v2111_v7  ;;  %v2025_v36 = vadd.f32 %v2024_v54, %v1935_v25  ;;  %3014 = vmatmul.bf16.gmra.mxu2 %v5086_v53  ;;  %v2783_v54 = vld [vmem:[#allocation8] sm:$0xf]  ;;  %v5893_v25 = vld [vmem:[#allocation49_spill] sm:$0xff] }
 0x4c7   :  { %v5226_v33 = vperm.slane %v2783_v54, 0  ;;  %v2483_v54 = vld [vmem:[#allocation7 + $0x2a0] sm:$0xff] }
 0x4c8   :  { %2836 = vmatmul.bf16.gmra.mxu0 %v5890_v22  ;;  %v2326_v15 = vmax.f32 %v2200_v21, 0.0 }
 0x4c9   :  { %v2113_v14 = vpop.f32.mrf.mxu2  ;;  %v2026_v31 = vpop.f32.mrf.mxu1 }
 0x4ca   :  { %3103 = vmatmul.bf16.gmra.mxu3 %v5182_v63  ;;  %v5224_v52 = vpack.c.bf16 %v2326_v15, %v2322_v18  ;;  %v2114_v8 = vadd.f32 %v2113_v14, %v2025_v36  ;;  %v5894_v18 = vld [vmem:[#allocation63_spill] sm:$0xff] }
 0x4cc   :  { %5892 = vst [vmem:[#allocation23_spill] sm:$0xff] %v5224_v52 }
 0x4cd   :  { %v2202_v2 = vpop.f32.mrf.mxu3  ;;  %v1937_v0 = vpop.f32.mrf.mxu0 }
 0x4ce   :  { %v2203_v13 = vadd.f32 %v2202_v2, %v2114_v8  ;;  %v2027_v7 = vadd.f32 %v2026_v31, %v1937_v0  ;;  %v2481_v8 = vld [vmem:[#allocation7 + $0x290] sm:$0xff]  ;;  %v2479_v0 = vld [vmem:[#allocation7 + $0x280] sm:$0xff] }
 0x4cf   :  { %v2485_v2 = vld [vmem:[#allocation7 + $0x2b0] sm:$0xff] }
 0x4d0   :  { %v2330_v21 = vmax.f32 %v2203_v13, 0.0 }
 0x4d1   :  { %v2115_v3 = vpop.f32.mrf.mxu2  ;;  %v2891_v23 = vpop.f32.mrf.mxu1 }
 0x4d2   :  { %v2116_v9 = vadd.f32 %v2115_v3, %v2027_v7  ;;  %v2697_v7 = vpack.c.bf16 %v2485_v2, %v2481_v8  ;;  %v2482_v3 = vld [vmem:[#allocation7 + $0x298] sm:$0xff]  ;;  %v2484_v8 = vld [vmem:[#allocation7 + $0x2a8] sm:$0xff] }
 0x4d4   :  { %2930 = vmatmul.bf16.gmra.mxu1 %v5894_v18  ;;  %3332 = vmatpush.bf16.xpose.msrb.mxu2 %v2697_v7 }
 0x4d5   :  { %v2204_v37 = vpop.f32.mrf.mxu3  ;;  %v2802_v48 = vpop.f32.mrf.mxu0 }
 0x4d6   :  { %v2205_v6 = vadd.f32 %v2204_v37, %v2116_v9  ;;  %v2803_v49 = vadd.f32 %v2802_v48, %v5226_v33  ;;  %3019 = vmatmul.bf16.gmra.mxu2 %v5092_v56  ;;  %v2486_v9 = vld [vmem:[#allocation7 + $0x2b8] sm:$0xff] }
 0x4d7   :  { %v2698_v18 = vpack.c.bf16 %v2486_v9, %v2482_v3  ;;  %v5896_v9 = vld [vmem:[#allocation64_spill] sm:$0xff] }
 0x4d8   :  { %2841 = vmatmul.bf16.gmra.mxu0 %v5893_v25  ;;  %v2334_v36 = vmax.f32 %v2205_v6, 0.0  ;;  %v2892_v14 = vadd.f32 %v2891_v23, %v2803_v49  ;;  %v2695_v6 = vpack.c.bf16 %v2483_v54, %v2479_v0  ;;  %v5895_v54 = vld [vmem:[#allocation50_spill] sm:$0xff] }
 0x4d9   :  { %v2980_v31 = vpop.f32.mrf.mxu2  ;;  %v2893_v25 = vpop.f32.mrf.mxu1  ;;  %3421 = vmatpush.bf16.xpose.msrb.mxu3 %v2698_v18 }
 0x4da   :  { %3108 = vmatmul.bf16.gmra.mxu3 %v5188_v11  ;;  %v5233_v15 = vpack.c.bf16 %v2334_v36, %v2330_v21  ;;  %v2981_v37 = vadd.f32 %v2980_v31, %v2892_v14  ;;  %3154 = vmatpush.bf16.xpose.msrb.mxu0 %v2695_v6  ;;  %v2480_v36 = vld [vmem:[#allocation7 + $0x288] sm:$0xff] }
 0x4db   :  { %v2696_v11 = vpack.c.bf16 %v2484_v8, %v2480_v36 }
 0x4dd   :  { %v3069_v13 = vpop.f32.mrf.mxu3  ;;  %v2804_v48 = vpop.f32.mrf.mxu0  ;;  %3243 = vmatpush.bf16.xpose.msrb.mxu1 %v2696_v11 }
 0x4de   :  { %v3070_v56 = vadd.f32 %v3069_v13, %v2981_v37  ;;  %v2805_v21 = vadd.f32 %v2804_v48, %v5226_v33 }
 0x4e0   :  { %v4217_v23 = vmax.f32 %v3070_v56, 0.0  ;;  %v2894_v49 = vadd.f32 %v2893_v25, %v2805_v21 }
 0x4e1   :  { %v2982_v2 = vpop.f32.mrf.mxu2  ;;  %v2896_v53 = vpop.f32.mrf.mxu1 }
 0x4e2   :  { %4345 = vst [vmem:[#allocation10] sm:$0xff] %v4217_v23  ;;  %v2983_v63 = vadd.f32 %v2982_v2, %v2894_v49 }
 0x4e4   :  { %2935 = vmatmul.bf16.gmra.mxu1 %v5896_v9 }
 0x4e5   :  { %v3071_v14 = vpop.f32.mrf.mxu3  ;;  %v2807_v31 = vpop.f32.mrf.mxu0 }
 0x4e6   :  { %v3072_v0 = vadd.f32 %v3071_v14, %v2983_v63  ;;  %v2808_v7 = vadd.f32 %v2807_v31, %v5226_v33  ;;  %3024 = vmatmul.bf16.gmra.mxu2 %v5098_v61 }
 0x4e8   :  { %2846 = vmatmul.bf16.gmra.mxu0 %v5895_v54  ;;  %v4221_v3 = vmax.f32 %v3072_v0, 0.0  ;;  %v2897_v56 = vadd.f32 %v2896_v53, %v2808_v7  ;;  %v5897_v53 = vld [vmem:[#allocation51_spill] sm:$0xff]  ;;  %v5898_v7 = vld [vmem:[#allocation65_spill] sm:$0xff] }
 0x4e9   :  { %v2985_v25 = vpop.f32.mrf.mxu2  ;;  %v2898_v48 = vpop.f32.mrf.mxu1 }
 0x4ea   :  { %3113 = vmatmul.bf16.gmra.mxu3 %v5194_v32  ;;  %4349 = vst [vmem:[#allocation10 + $0x20] sm:$0xff] %v4221_v3  ;;  %v2986_v18 = vadd.f32 %v2985_v25, %v2897_v56  ;;  %v2473_v56 = vld [vmem:[#allocation7 + $0x250] sm:$0xff] }
 0x4eb   :  { %v2477_v25 = vld [vmem:[#allocation7 + $0x270] sm:$0xff] }
 0x4ed   :  { %v3074_v37 = vpop.f32.mrf.mxu3  ;;  %v2809_v13 = vpop.f32.mrf.mxu0 }
 0x4ee   :  { %v3075_v11 = vadd.f32 %v3074_v37, %v2986_v18  ;;  %v2810_v63 = vadd.f32 %v2809_v13, %v5226_v33  ;;  %v2471_v18 = vld [vmem:[#allocation7 + $0x240] sm:$0xff]  ;;  %v2693_v13 = vpack.c.bf16 %v2477_v25, %v2473_v56  ;;  %v2476_v56 = vld [vmem:[#allocation7 + $0x268] sm:$0xff] }
 0x4f0   :  { %v4225_v6 = vmax.f32 %v3075_v11, 0.0  ;;  %v2899_v21 = vadd.f32 %v2898_v48, %v2810_v63  ;;  %v2475_v48 = vld [vmem:[#allocation7 + $0x260] sm:$0xff]  ;;  %v2474_v11 = vld [vmem:[#allocation7 + $0x258] sm:$0xff]  ;;  %3333 = vmatpush.bf16.xpose.msrb.mxu2 %v2693_v13 }
 0x4f1   :  { %v2987_v23 = vpop.f32.mrf.mxu2  ;;  %v2901_v2 = vpop.f32.mrf.mxu1  ;;  %v2478_v63 = vld [vmem:[#allocation7 + $0x278] sm:$0xff] }
 0x4f2   :  { %4353 = vst [vmem:[#allocation10 + $0x40] sm:$0xff] %v4225_v6  ;;  %v2988_v49 = vadd.f32 %v2987_v23, %v2899_v21 }
 0x4f4   :  { %2940 = vmatmul.bf16.gmra.mxu1 %v5898_v7 }
 0x4f5   :  { %v3076_v36 = vpop.f32.mrf.mxu3  ;;  %v2812_v8 = vpop.f32.mrf.mxu0 }
 0x4f6   :  { %v3077_v14 = vadd.f32 %v3076_v36, %v2988_v49  ;;  %v2813_v31 = vadd.f32 %v2812_v8, %v5226_v33  ;;  %3029 = vmatmul.bf16.gmra.mxu2 %v5104_v29  ;;  %v2691_v49 = vpack.c.bf16 %v2475_v48, %v2471_v18  ;;  %v2694_v36 = vpack.c.bf16 %v2478_v63, %v2474_v11  ;;  %v5899_v48 = vld [vmem:[#allocation52_spill] sm:$0xff]  ;;  %v5900_v63 = vld [vmem:[#allocation66_spill] sm:$0xff] }
 0x4f8   :  { %2851 = vmatmul.bf16.gmra.mxu0 %v5897_v53  ;;  %v4229_v0 = vmax.f32 %v3077_v14, 0.0  ;;  %v2902_v3 = vadd.f32 %v2901_v2, %v2813_v31  ;;  %3422 = vmatpush.bf16.xpose.msrb.mxu3 %v2694_v36 }
 0x4f9   :  { %v2990_v37 = vpop.f32.mrf.mxu2  ;;  %v2903_v8 = vpop.f32.mrf.mxu1  ;;  %3155 = vmatpush.bf16.xpose.msrb.mxu0 %v2691_v49 }
 0x4fa   :  { %3118 = vmatmul.bf16.gmra.mxu3 %v5200_v60  ;;  %4357 = vst [vmem:[#allocation10 + $0x60] sm:$0xff] %v4229_v0  ;;  %v2991_v6 = vadd.f32 %v2990_v37, %v2902_v3  ;;  %v2472_v0 = vld [vmem:[#allocation7 + $0x248] sm:$0xff] }
 0x4fb   :  { %v2692_v29 = vpack.c.bf16 %v2476_v56, %v2472_v0 }
 0x4fd   :  { %v3079_v21 = vpop.f32.mrf.mxu3  ;;  %v2814_v23 = vpop.f32.mrf.mxu0  ;;  %3244 = vmatpush.bf16.xpose.msrb.mxu1 %v2692_v29 }
 0x4fe   :  { %v3080_v14 = vadd.f32 %v3079_v21, %v2991_v6  ;;  %v2815_v60 = vadd.f32 %v2814_v23, %v5226_v33 }
 0x500   :  { %v4233_v2 = vmax.f32 %v3080_v14, 0.0  ;;  %v2904_v31 = vadd.f32 %v2903_v8, %v2815_v60 }
 0x501   :  { %v2992_v25 = vpop.f32.mrf.mxu2  ;;  %v2906_v53 = vpop.f32.mrf.mxu1 }
 0x502   :  { %4361 = vst [vmem:[#allocation10 + $0x80] sm:$0xff] %v4233_v2  ;;  %v2993_v7 = vadd.f32 %v2992_v25, %v2904_v31 }
 0x504   :  { %2945 = vmatmul.bf16.gmra.mxu1 %v5900_v63 }
 0x505   :  { %v3081_v3 = vpop.f32.mrf.mxu3  ;;  %v2817_v37 = vpop.f32.mrf.mxu0 }
 0x506   :  { %v3082_v18 = vadd.f32 %v3081_v3, %v2993_v7  ;;  %v2818_v13 = vadd.f32 %v2817_v37, %v5226_v33  ;;  %3034 = vmatmul.bf16.gmra.mxu2 %v5110_v39 }
 0x508   :  { %2856 = vmatmul.bf16.gmra.mxu0 %v5899_v48  ;;  %v4237_v11 = vmax.f32 %v3082_v18, 0.0  ;;  %v2907_v60 = vadd.f32 %v2906_v53, %v2818_v13  ;;  %v5901_v53 = vld [vmem:[#allocation53_spill] sm:$0xff]  ;;  %v5902_v13 = vld [vmem:[#allocation67_spill] sm:$0xff] }
 0x509   :  { %v2995_v6 = vpop.f32.mrf.mxu2  ;;  %v2908_v36 = vpop.f32.mrf.mxu1 }
 0x50a   :  { %3123 = vmatmul.bf16.gmra.mxu3 %v5206_v10  ;;  %4365 = vst [vmem:[#allocation10 + $0xa0] sm:$0xff] %v4237_v11  ;;  %v2996_v21 = vadd.f32 %v2995_v6, %v2907_v60  ;;  %v2465_v60 = vld [vmem:[#allocation7 + $0x210] sm:$0xff] }
 0x50b   :  { %v2469_v6 = vld [vmem:[#allocation7 + $0x230] sm:$0xff] }
 0x50d   :  { %v3084_v23 = vpop.f32.mrf.mxu3  ;;  %v2819_v49 = vpop.f32.mrf.mxu0 }
 0x50e   :  { %v3085_v29 = vadd.f32 %v3084_v23, %v2996_v21  ;;  %v2820_v7 = vadd.f32 %v2819_v49, %v5226_v33  ;;  %v2463_v21 = vld [vmem:[#allocation7 + $0x200] sm:$0xff]  ;;  %v2689_v49 = vpack.c.bf16 %v2469_v6, %v2465_v60  ;;  %v2468_v60 = vld [vmem:[#allocation7 + $0x228] sm:$0xff] }
 0x510   :  { %v4241_v8 = vmax.f32 %v3085_v29, 0.0  ;;  %v2909_v14 = vadd.f32 %v2908_v36, %v2820_v7  ;;  %v2467_v36 = vld [vmem:[#allocation7 + $0x220] sm:$0xff]  ;;  %v2466_v29 = vld [vmem:[#allocation7 + $0x218] sm:$0xff]  ;;  %3334 = vmatpush.bf16.xpose.msrb.mxu2 %v2689_v49 }
 0x511   :  { %v2997_v2 = vpop.f32.mrf.mxu2  ;;  %v2911_v25 = vpop.f32.mrf.mxu1  ;;  %v2470_v7 = vld [vmem:[#allocation7 + $0x238] sm:$0xff] }
 0x512   :  { %4369 = vst [vmem:[#allocation10 + $0xc0] sm:$0xff] %v4241_v8  ;;  %v2998_v31 = vadd.f32 %v2997_v2, %v2909_v14 }
 0x514   :  { %2950 = vmatmul.bf16.gmra.mxu1 %v5902_v13 }
 0x515   :  { %v3086_v0 = vpop.f32.mrf.mxu3  ;;  %v2822_v56 = vpop.f32.mrf.mxu0 }
 0x516   :  { %v3087_v3 = vadd.f32 %v3086_v0, %v2998_v31  ;;  %v2823_v37 = vadd.f32 %v2822_v56, %v5226_v33  ;;  %3039 = vmatmul.bf16.gmra.mxu2 %v5116_v19  ;;  %v2687_v31 = vpack.c.bf16 %v2467_v36, %v2463_v21  ;;  %v2690_v0 = vpack.c.bf16 %v2470_v7, %v2466_v29  ;;  %v5903_v36 = vld [vmem:[#allocation54_spill] sm:$0xff]  ;;  %v5904_v7 = vld [vmem:[#allocation68_spill] sm:$0xff] }
 0x518   :  { %2861 = vmatmul.bf16.gmra.mxu0 %v5901_v53  ;;  %v4245_v18 = vmax.f32 %v3087_v3, 0.0  ;;  %v2912_v11 = vadd.f32 %v2911_v25, %v2823_v37  ;;  %3423 = vmatpush.bf16.xpose.msrb.mxu3 %v2690_v0 }
 0x519   :  { %v3000_v23 = vpop.f32.mrf.mxu2  ;;  %v2913_v56 = vpop.f32.mrf.mxu1  ;;  %3156 = vmatpush.bf16.xpose.msrb.mxu0 %v2687_v31 }
 0x51a   :  { %3128 = vmatmul.bf16.gmra.mxu3 %v5212_v12  ;;  %4373 = vst [vmem:[#allocation10 + $0xe0] sm:$0xff] %v4245_v18  ;;  %v3001_v8 = vadd.f32 %v3000_v23, %v2912_v11  ;;  %v2464_v18 = vld [vmem:[#allocation7 + $0x208] sm:$0xff] }
 0x51b   :  { %v2688_v19 = vpack.c.bf16 %v2468_v60, %v2464_v18 }
 0x51d   :  { %v3089_v14 = vpop.f32.mrf.mxu3  ;;  %v2824_v2 = vpop.f32.mrf.mxu0  ;;  %3245 = vmatpush.bf16.xpose.msrb.mxu1 %v2688_v19 }
 0x51e   :  { %v3090_v3 = vadd.f32 %v3089_v14, %v3001_v8  ;;  %v2825_v12 = vadd.f32 %v2824_v2, %v5226_v33 }
 0x520   :  { %v4249_v25 = vmax.f32 %v3090_v3, 0.0  ;;  %v2914_v37 = vadd.f32 %v2913_v56, %v2825_v12 }
 0x521   :  { %v3002_v6 = vpop.f32.mrf.mxu2  ;;  %v2916_v53 = vpop.f32.mrf.mxu1 }
 0x522   :  { %4377 = vst [vmem:[#allocation10 + $0x100] sm:$0xff] %v4249_v25  ;;  %v3003_v13 = vadd.f32 %v3002_v6, %v2914_v37 }
 0x524   :  { %2955 = vmatmul.bf16.gmra.mxu1 %v5904_v7 }
 0x525   :  { %v3091_v11 = vpop.f32.mrf.mxu3  ;;  %v2827_v23 = vpop.f32.mrf.mxu0 }
 0x526   :  { %v3092_v21 = vadd.f32 %v3091_v11, %v3003_v13  ;;  %v2828_v49 = vadd.f32 %v2827_v23, %v5226_v33  ;;  %3044 = vmatmul.bf16.gmra.mxu2 %v5122_v17 }
 0x528   :  { %2866 = vmatmul.bf16.gmra.mxu0 %v5903_v36  ;;  %v4253_v29 = vmax.f32 %v3092_v21, 0.0  ;;  %v2917_v12 = vadd.f32 %v2916_v53, %v2828_v49  ;;  %v5905_v53 = vld [vmem:[#allocation55_spill] sm:$0xff]  ;;  %v5906_v49 = vld [vmem:[#allocation69_spill] sm:$0xff] }
 0x529   :  { %v3005_v8 = vpop.f32.mrf.mxu2  ;;  %v2918_v0 = vpop.f32.mrf.mxu1 }
 0x52a   :  { %3133 = vmatmul.bf16.gmra.mxu3 %v5218_v40  ;;  %4381 = vst [vmem:[#allocation10 + $0x120] sm:$0xff] %v4253_v29  ;;  %v3006_v14 = vadd.f32 %v3005_v8, %v2917_v12  ;;  %v2585_v12 = vld [vmem:[#allocation7 + $0x5d0] sm:$0xff] }
 0x52b   :  { %v2589_v8 = vld [vmem:[#allocation7 + $0x5f0] sm:$0xff] }
 0x52d   :  { %v3094_v2 = vpop.f32.mrf.mxu3  ;;  %v2829_v31 = vpop.f32.mrf.mxu0 }
 0x52e   :  { %v3095_v19 = vadd.f32 %v3094_v2, %v3006_v14  ;;  %v2830_v13 = vadd.f32 %v2829_v31, %v5226_v33  ;;  %v2583_v14 = vld [vmem:[#allocation7 + $0x5c0] sm:$0xff]  ;;  %v2749_v31 = vpack.c.bf16 %v2589_v8, %v2585_v12  ;;  %v2588_v12 = vld [vmem:[#allocation7 + $0x5e8] sm:$0xff] }
 0x530   :  { %v4257_v56 = vmax.f32 %v3095_v19, 0.0  ;;  %v2919_v3 = vadd.f32 %v2918_v0, %v2830_v13  ;;  %v2587_v0 = vld [vmem:[#allocation7 + $0x5e0] sm:$0xff]  ;;  %v2586_v19 = vld [vmem:[#allocation7 + $0x5d8] sm:$0xff]  ;;  %3683 = vmatpush.bf16.xpose.msra.mxu2 %v2749_v31 }
 0x531   :  { %v3007_v25 = vpop.f32.mrf.mxu2  ;;  %v2921_v6 = vpop.f32.mrf.mxu1  ;;  %v2590_v13 = vld [vmem:[#allocation7 + $0x5f8] sm:$0xff] }
 0x532   :  { %4385 = vst [vmem:[#allocation10 + $0x140] sm:$0xff] %v4257_v56  ;;  %v3008_v37 = vadd.f32 %v3007_v25, %v2919_v3 }
 0x534   :  { %2960 = vmatmul.bf16.gmra.mxu1 %v5906_v49 }
 0x535   :  { %v3096_v18 = vpop.f32.mrf.mxu3  ;;  %v2832_v60 = vpop.f32.mrf.mxu0 }
 0x536   :  { %v3097_v11 = vadd.f32 %v3096_v18, %v3008_v37  ;;  %v2833_v23 = vadd.f32 %v2832_v60, %v5226_v33  ;;  %3049 = vmatmul.bf16.gmra.mxu2 %v5128_v20  ;;  %v2747_v37 = vpack.c.bf16 %v2587_v0, %v2583_v14  ;;  %v2750_v18 = vpack.c.bf16 %v2590_v13, %v2586_v19  ;;  %v5907_v0 = vld [vmem:[#allocation15_spill] sm:$0xff]  ;;  %v5908_v13 = vld [vmem:[#allocation70_spill] sm:$0xff] }
 0x538   :  { %2871 = vmatmul.bf16.gmra.mxu0 %v5905_v53  ;;  %v4261_v21 = vmax.f32 %v3097_v11, 0.0  ;;  %v2922_v29 = vadd.f32 %v2921_v6, %v2833_v23  ;;  %3772 = vmatpush.bf16.xpose.msra.mxu3 %v2750_v18 }
 0x539   :  { %v3010_v2 = vpop.f32.mrf.mxu2  ;;  %v2923_v60 = vpop.f32.mrf.mxu1  ;;  %3505 = vmatpush.bf16.xpose.msra.mxu0 %v2747_v37 }
 0x53a   :  { %3138 = vmatmul.bf16.gmra.mxu3 %v5224_v52  ;;  %4389 = vst [vmem:[#allocation10 + $0x160] sm:$0xff] %v4261_v21  ;;  %v3011_v56 = vadd.f32 %v3010_v2, %v2922_v29  ;;  %v2584_v21 = vld [vmem:[#allocation7 + $0x5c8] sm:$0xff] }
 0x53b   :  { %v2748_v20 = vpack.c.bf16 %v2588_v12, %v2584_v21 }
 0x53d   :  { %v3099_v3 = vpop.f32.mrf.mxu3  ;;  %v2834_v25 = vpop.f32.mrf.mxu0  ;;  %3594 = vmatpush.bf16.xpose.msra.mxu1 %v2748_v20 }
 0x53e   :  { %v3100_v11 = vadd.f32 %v3099_v3, %v3011_v56  ;;  %v2835_v52 = vadd.f32 %v2834_v25, %v5226_v33 }
 0x540   :  { %v4265_v6 = vmax.f32 %v3100_v11, 0.0  ;;  %v2924_v23 = vadd.f32 %v2923_v60, %v2835_v52 }
 0x541   :  { %v3012_v8 = vpop.f32.mrf.mxu2  ;;  %v2926_v53 = vpop.f32.mrf.mxu1 }
 0x542   :  { %4393 = vst [vmem:[#allocation10 + $0x180] sm:$0xff] %v4265_v6  ;;  %v3013_v49 = vadd.f32 %v3012_v8, %v2924_v23 }
 0x544   :  { %2965 = vmatmul.bf16.gmra.mxu1 %v5908_v13 }
 0x545   :  { %v3101_v29 = vpop.f32.mrf.mxu3  ;;  %v2837_v2 = vpop.f32.mrf.mxu0 }
 0x546   :  { %v3102_v14 = vadd.f32 %v3101_v29, %v3013_v49  ;;  %v2838_v31 = vadd.f32 %v2837_v2, %v5226_v33  ;;  %3054 = vmatmul.bf16.gmra.mxu2 %v5134_v27 }
 0x548   :  { %2876 = vmatmul.bf16.gmra.mxu0 %v5907_v0  ;;  %v4269_v19 = vmax.f32 %v3102_v14, 0.0  ;;  %v2927_v52 = vadd.f32 %v2926_v53, %v2838_v31  ;;  %v2577_v31 = vld [vmem:[#allocation7 + $0x590] sm:$0xff] }
 0x549   :  { %v3015_v56 = vpop.f32.mrf.mxu2  ;;  %v2928_v18 = vpop.f32.mrf.mxu1 }
 0x54a   :  { %3143 = vmatmul.bf16.gmra.mxu3 %v5233_v15  ;;  %4397 = vst [vmem:[#allocation10 + $0x1a0] sm:$0xff] %v4269_v19  ;;  %v3016_v3 = vadd.f32 %v3015_v56, %v2927_v52  ;;  %v2581_v19 = vld [vmem:[#allocation7 + $0x5b0] sm:$0xff]  ;;  %v2575_v52 = vld [vmem:[#allocation7 + $0x580] sm:$0xff] }
 0x54d   :  { %v3104_v25 = vpop.f32.mrf.mxu3  ;;  %v2839_v37 = vpop.f32.mrf.mxu0 }
 0x54e   :  { %v3105_v20 = vadd.f32 %v3104_v25, %v3016_v3  ;;  %v2840_v49 = vadd.f32 %v2839_v37, %v5226_v33  ;;  %v2745_v3 = vpack.c.bf16 %v2581_v19, %v2577_v31  ;;  %v2579_v25 = vld [vmem:[#allocation7 + $0x5a0] sm:$0xff]  ;;  %v2578_v37 = vld [vmem:[#allocation7 + $0x598] sm:$0xff] }
 0x550   :  { %v4273_v60 = vmax.f32 %v3105_v20, 0.0  ;;  %v2929_v11 = vadd.f32 %v2928_v18, %v2840_v49  ;;  %v2582_v18 = vld [vmem:[#allocation7 + $0x5b8] sm:$0xff]  ;;  %3684 = vmatpush.bf16.xpose.msra.mxu2 %v2745_v3 }
 0x551   :  { %v3017_v6 = vpop.f32.mrf.mxu2  ;;  %v2931_v8 = vpop.f32.mrf.mxu1 }
 0x552   :  { %4401 = vst [vmem:[#allocation10 + $0x1c0] sm:$0xff] %v4273_v60  ;;  %v3018_v23 = vadd.f32 %v3017_v6, %v2929_v11  ;;  %v2743_v11 = vpack.c.bf16 %v2579_v25, %v2575_v52  ;;  %v2746_v6 = vpack.c.bf16 %v2582_v18, %v2578_v37 }
 0x554   :  { %3246 = vmatmul.bf16.vlgmr.msrb.gmra.mxu1 %v5867_v58  ;;  %3506 = vmatpush.bf16.xpose.msra.mxu0 %v2743_v11 }
 0x555   :  { %v3106_v21 = vpop.f32.mrf.mxu3  ;;  %v2842_v12 = vpop.f32.mrf.mxu0  ;;  %3773 = vmatpush.bf16.xpose.msra.mxu3 %v2746_v6 }
 0x556   :  { %v3107_v29 = vadd.f32 %v3106_v21, %v3018_v23  ;;  %v2843_v2 = vadd.f32 %v2842_v12, %v5226_v33  ;;  %3335 = vmatmul.bf16.vlgmr.msrb.gmra.mxu2 %v5868_v62 }
 0x558   :  { %3157 = vmatmul.bf16.vlgmr.msrb.gmra.mxu0 %v5866_v47  ;;  %v4277_v53 = vmax.f32 %v3107_v29, 0.0  ;;  %v2932_v14 = vadd.f32 %v2931_v8, %v2843_v2  ;;  %v2576_v2 = vld [vmem:[#allocation7 + $0x588] sm:$0xff] }
 0x559   :  { %v3020_v56 = vpop.f32.mrf.mxu2  ;;  %v2933_v23 = vpop.f32.mrf.mxu1 }
 0x55a   :  { %3424 = vmatmul.bf16.vlgmr.msrb.gmra.mxu3 %v5140_v4  ;;  %4405 = vst [vmem:[#allocation10 + $0x1e0] sm:$0xff] %v4277_v53  ;;  %v3021_v20 = vadd.f32 %v3020_v56, %v2932_v14  ;;  %v2580_v53 = vld [vmem:[#allocation7 + $0x5a8] sm:$0xff] }
 0x55b   :  { %v2744_v19 = vpack.c.bf16 %v2580_v53, %v2576_v2 }
 0x55d   :  { %v3109_v49 = vpop.f32.mrf.mxu3  ;;  %v2844_v60 = vpop.f32.mrf.mxu0  ;;  %3595 = vmatpush.bf16.xpose.msra.mxu1 %v2744_v19 }
 0x55e   :  { %v3110_v21 = vadd.f32 %v3109_v49, %v3021_v20  ;;  %v2845_v12 = vadd.f32 %v2844_v60, %v5226_v33 }
 0x560   :  { %v4281_v8 = vmax.f32 %v3110_v21, 0.0  ;;  %v2934_v29 = vadd.f32 %v2933_v23, %v2845_v12 }
 0x561   :  { %v3022_v31 = vpop.f32.mrf.mxu2  ;;  %v2936_v62 = vpop.f32.mrf.mxu1 }
 0x562   :  { %4409 = vst [vmem:[#allocation10 + $0x200] sm:$0xff] %v4281_v8  ;;  %v3023_v4 = vadd.f32 %v3022_v31, %v2934_v29 }
 0x564   :  { %3251 = vmatmul.bf16.gmra.mxu1 %v5871_v44 }
 0x565   :  { %v3111_v14 = vpop.f32.mrf.mxu3  ;;  %v2847_v56 = vpop.f32.mrf.mxu0 }
 0x566   :  { %v3112_v52 = vadd.f32 %v3111_v14, %v3023_v4  ;;  %v2848_v3 = vadd.f32 %v2847_v56, %v5226_v33  ;;  %3340 = vmatmul.bf16.gmra.mxu2 %v5872_v1  ;;  %v2569_v56 = vld [vmem:[#allocation7 + $0x550] sm:$0xff] }
 0x568   :  { %3162 = vmatmul.bf16.gmra.mxu0 %v5870_v51  ;;  %v4285_v25 = vmax.f32 %v3112_v52, 0.0  ;;  %v2937_v37 = vadd.f32 %v2936_v62, %v2848_v3  ;;  %v2573_v52 = vld [vmem:[#allocation7 + $0x570] sm:$0xff]  ;;  %v2567_v3 = vld [vmem:[#allocation7 + $0x540] sm:$0xff] }
 0x569   :  { %v3025_v18 = vpop.f32.mrf.mxu2  ;;  %v2938_v11 = vpop.f32.mrf.mxu1 }
 0x56a   :  { %3429 = vmatmul.bf16.gmra.mxu3 %v5146_v55  ;;  %4413 = vst [vmem:[#allocation10 + $0x220] sm:$0xff] %v4285_v25  ;;  %v3026_v20 = vadd.f32 %v3025_v18, %v2937_v37  ;;  %v2741_v37 = vpack.c.bf16 %v2573_v52, %v2569_v56  ;;  %v2571_v18 = vld [vmem:[#allocation7 + $0x560] sm:$0xff] }
 0x56c   :  { %3685 = vmatpush.bf16.xpose.msra.mxu2 %v2741_v37 }
 0x56d   :  { %v3114_v49 = vpop.f32.mrf.mxu3  ;;  %v2849_v60 = vpop.f32.mrf.mxu0 }
 0x56e   :  { %v3115_v6 = vadd.f32 %v3114_v49, %v3026_v20  ;;  %v2850_v4 = vadd.f32 %v2849_v60, %v5226_v33  ;;  %v2570_v20 = vld [vmem:[#allocation7 + $0x558] sm:$0xff] }
 0x56f   :  { %v2574_v49 = vld [vmem:[#allocation7 + $0x578] sm:$0xff] }
 0x570   :  { %v4289_v23 = vmax.f32 %v3115_v6, 0.0  ;;  %v2939_v21 = vadd.f32 %v2938_v11, %v2850_v4  ;;  %v2739_v4 = vpack.c.bf16 %v2571_v18, %v2567_v3 }
 0x571   :  { %v3027_v12 = vpop.f32.mrf.mxu2  ;;  %v2941_v53 = vpop.f32.mrf.mxu1 }
 0x572   :  { %4417 = vst [vmem:[#allocation10 + $0x240] sm:$0xff] %v4289_v23  ;;  %v3028_v8 = vadd.f32 %v3027_v12, %v2939_v21  ;;  %v2742_v23 = vpack.c.bf16 %v2574_v49, %v2570_v20  ;;  %3507 = vmatpush.bf16.xpose.msra.mxu0 %v2739_v4 }
 0x574   :  { %3256 = vmatmul.bf16.gmra.mxu1 %v5875_v34  ;;  %3774 = vmatpush.bf16.xpose.msra.mxu3 %v2742_v23 }
 0x575   :  { %v3116_v29 = vpop.f32.mrf.mxu3  ;;  %v2852_v2 = vpop.f32.mrf.mxu0 }
 0x576   :  { %v3117_v31 = vadd.f32 %v3116_v29, %v3028_v8  ;;  %v2853_v19 = vadd.f32 %v2852_v2, %v5226_v33  ;;  %3345 = vmatmul.bf16.gmra.mxu2 %v5876_v16 }
 0x578   :  { %3167 = vmatmul.bf16.gmra.mxu0 %v5874_v30  ;;  %v4293_v62 = vmax.f32 %v3117_v31, 0.0  ;;  %v2942_v14 = vadd.f32 %v2941_v53, %v2853_v19  ;;  %v2568_v53 = vld [vmem:[#allocation7 + $0x548] sm:$0xff] }
 0x579   :  { %v3030_v25 = vpop.f32.mrf.mxu2  ;;  %v2943_v21 = vpop.f32.mrf.mxu1  ;;  %v2572_v31 = vld [vmem:[#allocation7 + $0x568] sm:$0xff] }
 0x57a   :  { %3434 = vmatmul.bf16.gmra.mxu3 %v5152_v24  ;;  %4421 = vst [vmem:[#allocation10 + $0x260] sm:$0xff] %v4293_v62  ;;  %v3031_v60 = vadd.f32 %v3030_v25, %v2942_v14  ;;  %v2740_v62 = vpack.c.bf16 %v2572_v31, %v2568_v53 }
 0x57c   :  { %3596 = vmatpush.bf16.xpose.msra.mxu1 %v2740_v62 }
 0x57d   :  { %v3119_v11 = vpop.f32.mrf.mxu3  ;;  %v2854_v6 = vpop.f32.mrf.mxu0 }
 0x57e   :  { %v3120_v12 = vadd.f32 %v3119_v11, %v3031_v60  ;;  %v2855_v8 = vadd.f32 %v2854_v6, %v5226_v33 }
 0x580   :  { %v4297_v29 = vmax.f32 %v3120_v12, 0.0  ;;  %v2944_v2 = vadd.f32 %v2943_v21, %v2855_v8 }
 0x581   :  { %v3032_v19 = vpop.f32.mrf.mxu2  ;;  %v2946_v25 = vpop.f32.mrf.mxu1 }
 0x582   :  { %4425 = vst [vmem:[#allocation10 + $0x280] sm:$0xff] %v4297_v29  ;;  %v3033_v56 = vadd.f32 %v3032_v19, %v2944_v2 }
 0x584   :  { %3261 = vmatmul.bf16.gmra.mxu1 %v5878_v35 }
 0x585   :  { %v3121_v14 = vpop.f32.mrf.mxu3  ;;  %v2857_v52 = vpop.f32.mrf.mxu0 }
 0x586   :  { %v3122_v3 = vadd.f32 %v3121_v14, %v3033_v56  ;;  %v2858_v37 = vadd.f32 %v2857_v52, %v5226_v33  ;;  %3350 = vmatmul.bf16.gmra.mxu2 %v5879_v59 }
 0x588   :  { %3172 = vmatmul.bf16.gmra.mxu0 %v5877_v5  ;;  %v4301_v18 = vmax.f32 %v3122_v3, 0.0  ;;  %v2947_v20 = vadd.f32 %v2946_v25, %v2858_v37  ;;  %v2561_v25 = vld [vmem:[#allocation7 + $0x510] sm:$0xff]  ;;  %v2559_v37 = vld [vmem:[#allocation7 + $0x500] sm:$0xff] }
 0x589   :  { %v3035_v49 = vpop.f32.mrf.mxu2  ;;  %v2948_v4 = vpop.f32.mrf.mxu1  ;;  %v2565_v3 = vld [vmem:[#allocation7 + $0x530] sm:$0xff] }
 0x58a   :  { %3439 = vmatmul.bf16.gmra.mxu3 %v5158_v46  ;;  %4429 = vst [vmem:[#allocation10 + $0x2a0] sm:$0xff] %v4301_v18  ;;  %v3036_v60 = vadd.f32 %v3035_v49, %v2947_v20  ;;  %v2737_v20 = vpack.c.bf16 %v2565_v3, %v2561_v25  ;;  %v2563_v49 = vld [vmem:[#allocation7 + $0x520] sm:$0xff] }
 0x58c   :  { %3686 = vmatpush.bf16.xpose.msra.mxu2 %v2737_v20 }
 0x58d   :  { %v3124_v11 = vpop.f32.mrf.mxu3  ;;  %v2859_v6 = vpop.f32.mrf.mxu0 }
 0x58e   :  { %v3125_v23 = vadd.f32 %v3124_v11, %v3036_v60  ;;  %v2860_v21 = vadd.f32 %v2859_v6, %v5226_v33  ;;  %v2562_v60 = vld [vmem:[#allocation7 + $0x518] sm:$0xff] }
 0x58f   :  { %v2566_v11 = vld [vmem:[#allocation7 + $0x538] sm:$0xff] }
 0x590   :  { %v4305_v12 = vmax.f32 %v3125_v23, 0.0  ;;  %v2949_v8 = vadd.f32 %v2948_v4, %v2860_v21  ;;  %v2735_v21 = vpack.c.bf16 %v2563_v49, %v2559_v37 }
 0x591   :  { %v3037_v29 = vpop.f32.mrf.mxu2  ;;  %v2951_v19 = vpop.f32.mrf.mxu1 }
 0x592   :  { %4433 = vst [vmem:[#allocation10 + $0x2c0] sm:$0xff] %v4305_v12  ;;  %v3038_v2 = vadd.f32 %v3037_v29, %v2949_v8  ;;  %v2738_v12 = vpack.c.bf16 %v2566_v11, %v2562_v60  ;;  %3508 = vmatpush.bf16.xpose.msra.mxu0 %v2735_v21 }
 0x594   :  { %3266 = vmatmul.bf16.gmra.mxu1 %v5882_v43  ;;  %3775 = vmatpush.bf16.xpose.msra.mxu3 %v2738_v12 }
 0x595   :  { %v3126_v53 = vpop.f32.mrf.mxu3  ;;  %v2862_v31 = vpop.f32.mrf.mxu0 }
 0x596   :  { %v3127_v62 = vadd.f32 %v3126_v53, %v3038_v2  ;;  %v2863_v56 = vadd.f32 %v2862_v31, %v5226_v33  ;;  %3355 = vmatmul.bf16.gmra.mxu2 %v5883_v26 }
 0x598   :  { %3177 = vmatmul.bf16.gmra.mxu0 %v5881_v50  ;;  %v4309_v14 = vmax.f32 %v3127_v62, 0.0  ;;  %v2952_v52 = vadd.f32 %v2951_v19, %v2863_v56  ;;  %v2560_v19 = vld [vmem:[#allocation7 + $0x508] sm:$0xff] }
 0x599   :  { %v3040_v18 = vpop.f32.mrf.mxu2  ;;  %v2953_v8 = vpop.f32.mrf.mxu1  ;;  %v2564_v62 = vld [vmem:[#allocation7 + $0x528] sm:$0xff] }
 0x59a   :  { %3444 = vmatmul.bf16.gmra.mxu3 %v5164_v42  ;;  %4437 = vst [vmem:[#allocation10 + $0x2e0] sm:$0xff] %v4309_v14  ;;  %v3041_v6 = vadd.f32 %v3040_v18, %v2952_v52  ;;  %v2736_v14 = vpack.c.bf16 %v2564_v62, %v2560_v19 }
 0x59c   :  { %3597 = vmatpush.bf16.xpose.msra.mxu1 %v2736_v14 }
 0x59d   :  { %v3129_v4 = vpop.f32.mrf.mxu3  ;;  %v2864_v23 = vpop.f32.mrf.mxu0 }
 0x59e   :  { %v3130_v29 = vadd.f32 %v3129_v4, %v3041_v6  ;;  %v2865_v2 = vadd.f32 %v2864_v23, %v5226_v33 }
 0x5a0   :  { %v4313_v53 = vmax.f32 %v3130_v29, 0.0  ;;  %v2954_v31 = vadd.f32 %v2953_v8, %v2865_v2 }
 0x5a1   :  { %v3042_v56 = vpop.f32.mrf.mxu2  ;;  %v2956_v18 = vpop.f32.mrf.mxu1 }
 0x5a2   :  { %4441 = vst [vmem:[#allocation10 + $0x300] sm:$0xff] %v4313_v53  ;;  %v3043_v25 = vadd.f32 %v3042_v56, %v2954_v31 }
 0x5a4   :  { %3271 = vmatmul.bf16.gmra.mxu1 %v5885_v38 }
 0x5a5   :  { %v3131_v52 = vpop.f32.mrf.mxu3  ;;  %v2867_v3 = vpop.f32.mrf.mxu0 }
 0x5a6   :  { %v3132_v37 = vadd.f32 %v3131_v52, %v3043_v25  ;;  %v2868_v20 = vadd.f32 %v2867_v3, %v5226_v33  ;;  %3360 = vmatmul.bf16.gmra.mxu2 %v5886_v45  ;;  %v5909_v52 = vld [vmem:[#allocation47_spill] sm:$0xff] }
 0x5a8   :  { %3182 = vmatmul.bf16.gmra.mxu0 %v5884_v41  ;;  %v4317_v49 = vmax.f32 %v3132_v37, 0.0  ;;  %v2957_v60 = vadd.f32 %v2956_v18, %v2868_v20  ;;  %v5910_v18 = vld [vmem:[#allocation61_spill] sm:$0xff]  ;;  %v5911_v37 = vld [vmem:[#allocation76_spill] sm:$0xff] }
 0x5a9   :  { %v3045_v11 = vpop.f32.mrf.mxu2  ;;  %v2958_v21 = vpop.f32.mrf.mxu1  ;;  %v5912_v20 = vld [vmem:[#allocation17_spill] sm:$0xff] }
 0x5aa   :  { %3449 = vmatmul.bf16.gmra.mxu3 %v5170_v28  ;;  %4445 = vst [vmem:[#allocation10 + $0x320] sm:$0xff] %v4317_v49  ;;  %v3046_v6 = vadd.f32 %v3045_v11, %v2957_v60  ;;  %v2553_v60 = vld [vmem:[#allocation7 + $0x4d0] sm:$0xff] }
 0x5ab   :  { %v2557_v11 = vld [vmem:[#allocation7 + $0x4f0] sm:$0xff] }
 0x5ad   :  { %v3134_v4 = vpop.f32.mrf.mxu3  ;;  %v2869_v23 = vpop.f32.mrf.mxu0 }
 0x5ae   :  { %v3135_v12 = vadd.f32 %v3134_v4, %v3046_v6  ;;  %v2870_v8 = vadd.f32 %v2869_v23, %v5226_v33  ;;  %v2551_v6 = vld [vmem:[#allocation7 + $0x4c0] sm:$0xff]  ;;  %v2733_v23 = vpack.c.bf16 %v2557_v11, %v2553_v60  ;;  %v2556_v60 = vld [vmem:[#allocation7 + $0x4e8] sm:$0xff] }
 0x5b0   :  { %v4321_v29 = vmax.f32 %v3135_v12, 0.0  ;;  %v2959_v2 = vadd.f32 %v2958_v21, %v2870_v8  ;;  %v2555_v21 = vld [vmem:[#allocation7 + $0x4e0] sm:$0xff]  ;;  %v2554_v12 = vld [vmem:[#allocation7 + $0x4d8] sm:$0xff]  ;;  %3687 = vmatpush.bf16.xpose.msra.mxu2 %v2733_v23 }
 0x5b1   :  { %v3047_v53 = vpop.f32.mrf.mxu2  ;;  %v2961_v56 = vpop.f32.mrf.mxu1  ;;  %v2558_v8 = vld [vmem:[#allocation7 + $0x4f8] sm:$0xff] }
 0x5b2   :  { %4449 = vst [vmem:[#allocation10 + $0x340] sm:$0xff] %v4321_v29  ;;  %v3048_v31 = vadd.f32 %v3047_v53, %v2959_v2 }
 0x5b4   :  { %3276 = vmatmul.bf16.gmra.mxu1 %v5910_v18 }
 0x5b5   :  { %v3136_v19 = vpop.f32.mrf.mxu3  ;;  %v2872_v62 = vpop.f32.mrf.mxu0 }
 0x5b6   :  { %v3137_v14 = vadd.f32 %v3136_v19, %v3048_v31  ;;  %v2873_v25 = vadd.f32 %v2872_v62, %v5226_v33  ;;  %3365 = vmatmul.bf16.gmra.mxu2 %v5911_v37  ;;  %v2731_v31 = vpack.c.bf16 %v2555_v21, %v2551_v6  ;;  %v2734_v19 = vpack.c.bf16 %v2558_v8, %v2554_v12  ;;  %v5913_v12 = vld [vmem:[#allocation77_spill] sm:$0xff] }
 0x5b8   :  { %3187 = vmatmul.bf16.gmra.mxu0 %v5909_v52  ;;  %v4325_v3 = vmax.f32 %v3137_v14, 0.0  ;;  %v2962_v49 = vadd.f32 %v2961_v56, %v2873_v25  ;;  %3776 = vmatpush.bf16.xpose.msra.mxu3 %v2734_v19 }
 0x5b9   :  { %v3050_v4 = vpop.f32.mrf.mxu2  ;;  %v2963_v62 = vpop.f32.mrf.mxu1  ;;  %3509 = vmatpush.bf16.xpose.msra.mxu0 %v2731_v31 }
 0x5ba   :  { %3454 = vmatmul.bf16.gmra.mxu3 %v5912_v20  ;;  %4453 = vst [vmem:[#allocation10 + $0x360] sm:$0xff] %v4325_v3  ;;  %v3051_v29 = vadd.f32 %v3050_v4, %v2962_v49  ;;  %v2552_v3 = vld [vmem:[#allocation7 + $0x4c8] sm:$0xff] }
 0x5bb   :  { %v2732_v37 = vpack.c.bf16 %v2556_v60, %v2552_v3 }
 0x5bd   :  { %v3139_v2 = vpop.f32.mrf.mxu3  ;;  %v2874_v53 = vpop.f32.mrf.mxu0  ;;  %3598 = vmatpush.bf16.xpose.msra.mxu1 %v2732_v37 }
 0x5be   :  { %v3140_v14 = vadd.f32 %v3139_v2, %v3051_v29  ;;  %v2875_v20 = vadd.f32 %v2874_v53, %v5226_v33 }
 0x5c0   :  { %v4329_v56 = vmax.f32 %v3140_v14, 0.0  ;;  %v2964_v25 = vadd.f32 %v2963_v62, %v2875_v20  ;;  %v5914_v20 = vld [vmem:[#allocation18_spill] sm:$0xff] }
 0x5c1   :  { %v3052_v11 = vpop.f32.mrf.mxu2  ;;  %v2966_v52 = vpop.f32.mrf.mxu1 }
 0x5c2   :  { %4457 = vst [vmem:[#allocation10 + $0x380] sm:$0xff] %v4329_v56  ;;  %v3053_v18 = vadd.f32 %v3052_v11, %v2964_v25  ;;  %v4501_v56 = vld [vmem:[#allocation8] sm:$0xf] }
 0x5c3   :  { %v5326_v25 = vperm.slane %v4501_v56, 1  ;;  %v2550_v56 = vld [vmem:[#allocation7 + $0x4b8] sm:$0xff] }
 0x5c4   :  { %3281 = vmatmul.bf16.gmra.mxu1 %v5891_v57 }
 0x5c5   :  { %v3141_v49 = vpop.f32.mrf.mxu3  ;;  %v2877_v4 = vpop.f32.mrf.mxu0 }
 0x5c6   :  { %v3142_v6 = vadd.f32 %v3141_v49, %v3053_v18  ;;  %v2878_v23 = vadd.f32 %v2877_v4, %v5226_v33  ;;  %3370 = vmatmul.bf16.gmra.mxu2 %v5913_v12 }
 0x5c8   :  { %3192 = vmatmul.bf16.gmra.mxu0 %v5890_v22  ;;  %v4333_v21 = vmax.f32 %v3142_v6, 0.0  ;;  %v2967_v8 = vadd.f32 %v2966_v52, %v2878_v23  ;;  %v5915_v23 = vld [vmem:[#allocation49_spill] sm:$0xff] }
 0x5c9   :  { %v3055_v29 = vpop.f32.mrf.mxu2  ;;  %v2968_v19 = vpop.f32.mrf.mxu1 }
 0x5ca   :  { %3459 = vmatmul.bf16.gmra.mxu3 %v5914_v20  ;;  %4461 = vst [vmem:[#allocation10 + $0x3a0] sm:$0xff] %v4333_v21  ;;  %v3056_v2 = vadd.f32 %v3055_v29, %v2967_v8  ;;  %v5916_v8 = vld [vmem:[#allocation63_spill] sm:$0xff] }
 0x5cb   :  { %v5918_v29 = vld [vmem:[#allocation19_spill] sm:$0xff] }
 0x5cd   :  { %v3144_v53 = vpop.f32.mrf.mxu3  ;;  %v2879_v31 = vpop.f32.mrf.mxu0 }
 0x5ce   :  { %v3145_v37 = vadd.f32 %v3144_v53, %v3056_v2  ;;  %v2880_v18 = vadd.f32 %v2879_v31, %v5226_v33  ;;  %v5917_v33 = vld [vmem:[#allocation78_spill] sm:$0xff]  ;;  %v2545_v53 = vld [vmem:[#allocation7 + $0x490] sm:$0xff] }
 0x5cf   :  { %v2549_v31 = vld [vmem:[#allocation7 + $0x4b0] sm:$0xff] }
 0x5d0   :  { %v4337_v62 = vmax.f32 %v3145_v37, 0.0  ;;  %v2969_v14 = vadd.f32 %v2968_v19, %v2880_v18  ;;  %v2543_v19 = vld [vmem:[#allocation7 + $0x480] sm:$0xff]  ;;  %v2729_v18 = vpack.c.bf16 %v2549_v31, %v2545_v53  ;;  %v2548_v53 = vld [vmem:[#allocation7 + $0x4a8] sm:$0xff] }
 0x5d1   :  { %v3057_v3 = vpop.f32.mrf.mxu2  ;;  %v3247_v4 = vpop.f32.mrf.mxu1 }
 0x5d2   :  { %4465 = vst [vmem:[#allocation10 + $0x3c0] sm:$0xff] %v4337_v62  ;;  %v3058_v60 = vadd.f32 %v3057_v3, %v2969_v14  ;;  %v2547_v62 = vld [vmem:[#allocation7 + $0x4a0] sm:$0xff]  ;;  %v2546_v14 = vld [vmem:[#allocation7 + $0x498] sm:$0xff]  ;;  %3688 = vmatpush.bf16.xpose.msra.mxu2 %v2729_v18 }
 0x5d4   :  { %3286 = vmatmul.bf16.gmra.mxu1 %v5916_v8 }
 0x5d5   :  { %v3146_v11 = vpop.f32.mrf.mxu3  ;;  %v3158_v49 = vpop.f32.mrf.mxu0 }
 0x5d6   :  { %v3147_v52 = vadd.f32 %v3146_v11, %v3058_v60  ;;  %v3159_v6 = vadd.f32 %v3158_v49, %v5326_v25  ;;  %3375 = vmatmul.bf16.gmra.mxu2 %v5917_v33  ;;  %v2727_v49 = vpack.c.bf16 %v2547_v62, %v2543_v19 }
 0x5d8   :  { %3197 = vmatmul.bf16.gmra.mxu0 %v5915_v23  ;;  %v4341_v21 = vmax.f32 %v3147_v52, 0.0  ;;  %v3248_v2 = vadd.f32 %v3247_v4, %v3159_v6  ;;  %v2730_v52 = vpack.c.bf16 %v2550_v56, %v2546_v14 }
 0x5d9   :  { %v3336_v37 = vpop.f32.mrf.mxu2  ;;  %v3249_v8 = vpop.f32.mrf.mxu1  ;;  %3510 = vmatpush.bf16.xpose.msra.mxu0 %v2727_v49 }
 0x5da   :  { %3464 = vmatmul.bf16.gmra.mxu3 %v5918_v29  ;;  %4469 = vst [vmem:[#allocation10 + $0x3e0] sm:$0xff] %v4341_v21  ;;  %v3337_v3 = vadd.f32 %v3336_v37, %v3248_v2  ;;  %v2544_v21 = vld [vmem:[#allocation7 + $0x488] sm:$0xff] }
 0x5db   :  { %3777 = vmatpush.bf16.xpose.msra.mxu3 %v2730_v52  ;;  %v2728_v23 = vpack.c.bf16 %v2548_v53, %v2544_v21 }
 0x5dd   :  { %v3425_v60 = vpop.f32.mrf.mxu3  ;;  %v3160_v11 = vpop.f32.mrf.mxu0  ;;  %3599 = vmatpush.bf16.xpose.msra.mxu1 %v2728_v23 }
 0x5de   :  { %v3426_v33 = vadd.f32 %v3425_v60, %v3337_v3  ;;  %v3161_v29 = vadd.f32 %v3160_v11, %v5326_v25 }
 0x5e0   :  { %v4218_v4 = vmax.f32 %v3426_v33, 0.0  ;;  %v3250_v6 = vadd.f32 %v3249_v8, %v3161_v29 }
 0x5e1   :  { %v3338_v31 = vpop.f32.mrf.mxu2  ;;  %v3252_v12 = vpop.f32.mrf.mxu1 }
 0x5e2   :  { %4346 = vst [vmem:[#allocation10 + $0x8] sm:$0xff] %v4218_v4  ;;  %v3339_v20 = vadd.f32 %v3338_v31, %v3250_v6 }
 0x5e4   :  { %3291 = vmatmul.bf16.gmra.mxu1 %v5896_v9 }
 0x5e5   :  { %v3427_v2 = vpop.f32.mrf.mxu3  ;;  %v3163_v37 = vpop.f32.mrf.mxu0 }
 0x5e6   :  { %v3428_v19 = vadd.f32 %v3427_v2, %v3339_v20  ;;  %v3164_v18 = vadd.f32 %v3163_v37, %v5326_v25  ;;  %3380 = vmatmul.bf16.gmra.mxu2 %v5098_v61  ;;  %v5920_v37 = vld [vmem:[#allocation65_spill] sm:$0xff] }
 0x5e8   :  { %3202 = vmatmul.bf16.gmra.mxu0 %v5895_v54  ;;  %v4222_v62 = vmax.f32 %v3428_v19, 0.0  ;;  %v3253_v8 = vadd.f32 %v3252_v12, %v3164_v18  ;;  %v5919_v12 = vld [vmem:[#allocation51_spill] sm:$0xff]  ;;  %v5922_v18 = vld [vmem:[#allocation20_spill] sm:$0xff] }
 0x5e9   :  { %v3341_v33 = vpop.f32.mrf.mxu2  ;;  %v3254_v3 = vpop.f32.mrf.mxu1  ;;  %v5921_v19 = vld [vmem:[#allocation79_spill] sm:$0xff] }
 0x5ea   :  { %3469 = vmatmul.bf16.gmra.mxu3 %v5194_v32  ;;  %4350 = vst [vmem:[#allocation10 + $0x28] sm:$0xff] %v4222_v62  ;;  %v3342_v29 = vadd.f32 %v3341_v33, %v3253_v8  ;;  %v2537_v8 = vld [vmem:[#allocation7 + $0x450] sm:$0xff] }
 0x5eb   :  { %v2541_v33 = vld [vmem:[#allocation7 + $0x470] sm:$0xff] }
 0x5ed   :  { %v3430_v14 = vpop.f32.mrf.mxu3  ;;  %v3165_v56 = vpop.f32.mrf.mxu0 }
 0x5ee   :  { %v3431_v23 = vadd.f32 %v3430_v14, %v3342_v29  ;;  %v3166_v20 = vadd.f32 %v3165_v56, %v5326_v25  ;;  %v2535_v29 = vld [vmem:[#allocation7 + $0x440] sm:$0xff]  ;;  %v2725_v56 = vpack.c.bf16 %v2541_v33, %v2537_v8  ;;  %v2540_v8 = vld [vmem:[#allocation7 + $0x468] sm:$0xff] }
 0x5f0   :  { %v4226_v60 = vmax.f32 %v3431_v23, 0.0  ;;  %v3255_v11 = vadd.f32 %v3254_v3, %v3166_v20  ;;  %v2539_v3 = vld [vmem:[#allocation7 + $0x460] sm:$0xff]  ;;  %v2538_v23 = vld [vmem:[#allocation7 + $0x458] sm:$0xff]  ;;  %3689 = vmatpush.bf16.xpose.msra.mxu2 %v2725_v56 }
 0x5f1   :  { %v3343_v49 = vpop.f32.mrf.mxu2  ;;  %v3257_v21 = vpop.f32.mrf.mxu1  ;;  %v2542_v20 = vld [vmem:[#allocation7 + $0x478] sm:$0xff] }
 0x5f2   :  { %4354 = vst [vmem:[#allocation10 + $0x48] sm:$0xff] %v4226_v60  ;;  %v3344_v52 = vadd.f32 %v3343_v49, %v3255_v11 }
 0x5f4   :  { %3296 = vmatmul.bf16.gmra.mxu1 %v5920_v37 }
 0x5f5   :  { %v3432_v4 = vpop.f32.mrf.mxu3  ;;  %v3168_v6 = vpop.f32.mrf.mxu0 }
 0x5f6   :  { %v3433_v53 = vadd.f32 %v3432_v4, %v3344_v52  ;;  %v3169_v31 = vadd.f32 %v3168_v6, %v5326_v25  ;;  %3385 = vmatmul.bf16.gmra.mxu2 %v5921_v19  ;;  %v2723_v52 = vpack.c.bf16 %v2539_v3, %v2535_v29  ;;  %v2726_v4 = vpack.c.bf16 %v2542_v20, %v2538_v23 }
 0x5f8   :  { %3207 = vmatmul.bf16.gmra.mxu0 %v5919_v12  ;;  %v4230_v2 = vmax.f32 %v3433_v53, 0.0  ;;  %v3258_v62 = vadd.f32 %v3257_v21, %v3169_v31  ;;  %3778 = vmatpush.bf16.xpose.msra.mxu3 %v2726_v4 }
 0x5f9   :  { %v3346_v14 = vpop.f32.mrf.mxu2  ;;  %v3259_v6 = vpop.f32.mrf.mxu1  ;;  %3511 = vmatpush.bf16.xpose.msra.mxu0 %v2723_v52 }
 0x5fa   :  { %3474 = vmatmul.bf16.gmra.mxu3 %v5922_v18  ;;  %4358 = vst [vmem:[#allocation10 + $0x68] sm:$0xff] %v4230_v2  ;;  %v3347_v60 = vadd.f32 %v3346_v14, %v3258_v62  ;;  %v2536_v2 = vld [vmem:[#allocation7 + $0x448] sm:$0xff] }
 0x5fb   :  { %v2724_v19 = vpack.c.bf16 %v2540_v8, %v2536_v2 }
 0x5fd   :  { %v3435_v11 = vpop.f32.mrf.mxu3  ;;  %v3170_v49 = vpop.f32.mrf.mxu0  ;;  %3600 = vmatpush.bf16.xpose.msra.mxu1 %v2724_v19 }
 0x5fe   :  { %v3436_v53 = vadd.f32 %v3435_v11, %v3347_v60  ;;  %v3171_v18 = vadd.f32 %v3170_v49, %v5326_v25 }
 0x600   :  { %v4234_v21 = vmax.f32 %v3436_v53, 0.0  ;;  %v3260_v31 = vadd.f32 %v3259_v6, %v3171_v18 }
 0x601   :  { %v3348_v33 = vpop.f32.mrf.mxu2  ;;  %v3262_v12 = vpop.f32.mrf.mxu1 }
 0x602   :  { %4362 = vst [vmem:[#allocation10 + $0x88] sm:$0xff] %v4234_v21  ;;  %v3349_v37 = vadd.f32 %v3348_v33, %v3260_v31 }
 0x604   :  { %3301 = vmatmul.bf16.gmra.mxu1 %v5900_v63 }
 0x605   :  { %v3437_v62 = vpop.f32.mrf.mxu3  ;;  %v3173_v14 = vpop.f32.mrf.mxu0 }
 0x606   :  { %v3438_v29 = vadd.f32 %v3437_v62, %v3349_v37  ;;  %v3174_v56 = vadd.f32 %v3173_v14, %v5326_v25  ;;  %3390 = vmatmul.bf16.gmra.mxu2 %v5110_v39  ;;  %v5924_v14 = vld [vmem:[#allocation67_spill] sm:$0xff] }
 0x608   :  { %3212 = vmatmul.bf16.gmra.mxu0 %v5899_v48  ;;  %v4238_v3 = vmax.f32 %v3438_v29, 0.0  ;;  %v3263_v18 = vadd.f32 %v3262_v12, %v3174_v56  ;;  %v5923_v12 = vld [vmem:[#allocation53_spill] sm:$0xff]  ;;  %v5925_v29 = vld [vmem:[#allocation80_spill] sm:$0xff]  ;;  %v5926_v56 = vld [vmem:[#allocation22_spill] sm:$0xff] }
 0x609   :  { %v3351_v23 = vpop.f32.mrf.mxu2  ;;  %v3264_v49 = vpop.f32.mrf.mxu1 }
 0x60a   :  { %3479 = vmatmul.bf16.gmra.mxu3 %v5206_v10  ;;  %4366 = vst [vmem:[#allocation10 + $0xa8] sm:$0xff] %v4238_v3  ;;  %v3352_v20 = vadd.f32 %v3351_v23, %v3263_v18  ;;  %v2529_v18 = vld [vmem:[#allocation7 + $0x410] sm:$0xff] }
 0x60b   :  { %v2533_v23 = vld [vmem:[#allocation7 + $0x430] sm:$0xff] }
 0x60d   :  { %v3440_v60 = vpop.f32.mrf.mxu3  ;;  %v3175_v11 = vpop.f32.mrf.mxu0 }
 0x60e   :  { %v3441_v19 = vadd.f32 %v3440_v60, %v3352_v20  ;;  %v3176_v37 = vadd.f32 %v3175_v11, %v5326_v25  ;;  %v2527_v20 = vld [vmem:[#allocation7 + $0x400] sm:$0xff]  ;;  %v2721_v11 = vpack.c.bf16 %v2533_v23, %v2529_v18  ;;  %v2532_v18 = vld [vmem:[#allocation7 + $0x428] sm:$0xff] }
 0x610   :  { %v4242_v52 = vmax.f32 %v3441_v19, 0.0  ;;  %v3265_v4 = vadd.f32 %v3264_v49, %v3176_v37  ;;  %v2531_v49 = vld [vmem:[#allocation7 + $0x420] sm:$0xff]  ;;  %v2530_v19 = vld [vmem:[#allocation7 + $0x418] sm:$0xff]  ;;  %3690 = vmatpush.bf16.xpose.msra.mxu2 %v2721_v11 }
 0x611   :  { %v3353_v6 = vpop.f32.mrf.mxu2  ;;  %v3267_v2 = vpop.f32.mrf.mxu1  ;;  %v2534_v37 = vld [vmem:[#allocation7 + $0x438] sm:$0xff] }
 0x612   :  { %4370 = vst [vmem:[#allocation10 + $0xc8] sm:$0xff] %v4242_v52  ;;  %v3354_v53 = vadd.f32 %v3353_v6, %v3265_v4 }
 0x614   :  { %3306 = vmatmul.bf16.gmra.mxu1 %v5924_v14 }
 0x615   :  { %v3442_v21 = vpop.f32.mrf.mxu3  ;;  %v3178_v31 = vpop.f32.mrf.mxu0 }
 0x616   :  { %v3443_v8 = vadd.f32 %v3442_v21, %v3354_v53  ;;  %v3179_v33 = vadd.f32 %v3178_v31, %v5326_v25  ;;  %3395 = vmatmul.bf16.gmra.mxu2 %v5925_v29  ;;  %v2719_v53 = vpack.c.bf16 %v2531_v49, %v2527_v20  ;;  %v2722_v21 = vpack.c.bf16 %v2534_v37, %v2530_v19 }
 0x618   :  { %3217 = vmatmul.bf16.gmra.mxu0 %v5923_v12  ;;  %v4246_v62 = vmax.f32 %v3443_v8, 0.0  ;;  %v3268_v3 = vadd.f32 %v3267_v2, %v3179_v33  ;;  %3779 = vmatpush.bf16.xpose.msra.mxu3 %v2722_v21 }
 0x619   :  { %v3356_v60 = vpop.f32.mrf.mxu2  ;;  %v3269_v31 = vpop.f32.mrf.mxu1  ;;  %3512 = vmatpush.bf16.xpose.msra.mxu0 %v2719_v53 }
 0x61a   :  { %3484 = vmatmul.bf16.gmra.mxu3 %v5926_v56  ;;  %4374 = vst [vmem:[#allocation10 + $0xe8] sm:$0xff] %v4246_v62  ;;  %v3357_v52 = vadd.f32 %v3356_v60, %v3268_v3  ;;  %v2528_v62 = vld [vmem:[#allocation7 + $0x408] sm:$0xff] }
 0x61b   :  { %v2720_v29 = vpack.c.bf16 %v2532_v18, %v2528_v62 }
 0x61d   :  { %v3445_v4 = vpop.f32.mrf.mxu3  ;;  %v3180_v6 = vpop.f32.mrf.mxu0  ;;  %3601 = vmatpush.bf16.xpose.msra.mxu1 %v2720_v29 }
 0x61e   :  { %v3446_v8 = vadd.f32 %v3445_v4, %v3357_v52  ;;  %v3181_v56 = vadd.f32 %v3180_v6, %v5326_v25 }
 0x620   :  { %v4250_v2 = vmax.f32 %v3446_v8, 0.0  ;;  %v3270_v33 = vadd.f32 %v3269_v31, %v3181_v56 }
 0x621   :  { %v3358_v23 = vpop.f32.mrf.mxu2  ;;  %v3272_v12 = vpop.f32.mrf.mxu1 }
 0x622   :  { %4378 = vst [vmem:[#allocation10 + $0x108] sm:$0xff] %v4250_v2  ;;  %v3359_v14 = vadd.f32 %v3358_v23, %v3270_v33 }
 0x624   :  { %3311 = vmatmul.bf16.gmra.mxu1 %v5904_v7 }
 0x625   :  { %v3447_v3 = vpop.f32.mrf.mxu3  ;;  %v3183_v60 = vpop.f32.mrf.mxu0 }
 0x626   :  { %v3448_v20 = vadd.f32 %v3447_v3, %v3359_v14  ;;  %v3184_v11 = vadd.f32 %v3183_v60, %v5326_v25  ;;  %3400 = vmatmul.bf16.gmra.mxu2 %v5122_v17  ;;  %v5928_v60 = vld [vmem:[#allocation69_spill] sm:$0xff] }
 0x628   :  { %3222 = vmatmul.bf16.gmra.mxu0 %v5903_v36  ;;  %v4254_v49 = vmax.f32 %v3448_v20, 0.0  ;;  %v3273_v56 = vadd.f32 %v3272_v12, %v3184_v11  ;;  %v5927_v12 = vld [vmem:[#allocation55_spill] sm:$0xff]  ;;  %v5929_v20 = vld [vmem:[#allocation81_spill] sm:$0xff] }
 0x629   :  { %v3361_v19 = vpop.f32.mrf.mxu2  ;;  %v3274_v6 = vpop.f32.mrf.mxu1  ;;  %v5930_v11 = vld [vmem:[#allocation23_spill] sm:$0xff] }
 0x62a   :  { %3489 = vmatmul.bf16.gmra.mxu3 %v5218_v40  ;;  %4382 = vst [vmem:[#allocation10 + $0x128] sm:$0xff] %v4254_v49  ;;  %v3362_v37 = vadd.f32 %v3361_v19, %v3273_v56  ;;  %v2649_v56 = vld [vmem:[#allocation7 + $0x7d0] sm:$0xff] }
 0x62b   :  { %v2653_v19 = vld [vmem:[#allocation7 + $0x7f0] sm:$0xff] }
 0x62d   :  { %v3450_v52 = vpop.f32.mrf.mxu3  ;;  %v3185_v4 = vpop.f32.mrf.mxu0 }
 0x62e   :  { %v3451_v29 = vadd.f32 %v3450_v52, %v3362_v37  ;;  %v3186_v14 = vadd.f32 %v3185_v4, %v5326_v25  ;;  %v2647_v37 = vld [vmem:[#allocation7 + $0x7c0] sm:$0xff]  ;;  %v2781_v4 = vpack.c.bf16 %v2653_v19, %v2649_v56  ;;  %v2652_v56 = vld [vmem:[#allocation7 + $0x7e8] sm:$0xff] }
 0x630   :  { %v4258_v53 = vmax.f32 %v3451_v29, 0.0  ;;  %v3275_v21 = vadd.f32 %v3274_v6, %v3186_v14  ;;  %v2651_v6 = vld [vmem:[#allocation7 + $0x7e0] sm:$0xff]  ;;  %v2650_v29 = vld [vmem:[#allocation7 + $0x7d8] sm:$0xff]  ;;  %4039 = vmatpush.bf16.xpose.msrb.mxu2 %v2781_v4 }
 0x631   :  { %v3363_v31 = vpop.f32.mrf.mxu2  ;;  %v3277_v62 = vpop.f32.mrf.mxu1  ;;  %v2654_v14 = vld [vmem:[#allocation7 + $0x7f8] sm:$0xff] }
 0x632   :  { %4386 = vst [vmem:[#allocation10 + $0x148] sm:$0xff] %v4258_v53  ;;  %v3364_v8 = vadd.f32 %v3363_v31, %v3275_v21 }
 0x634   :  { %3316 = vmatmul.bf16.gmra.mxu1 %v5928_v60 }
 0x635   :  { %v3452_v2 = vpop.f32.mrf.mxu3  ;;  %v3188_v33 = vpop.f32.mrf.mxu0 }
 0x636   :  { %v3453_v18 = vadd.f32 %v3452_v2, %v3364_v8  ;;  %v3189_v23 = vadd.f32 %v3188_v33, %v5326_v25  ;;  %3405 = vmatmul.bf16.gmra.mxu2 %v5929_v20  ;;  %v2779_v8 = vpack.c.bf16 %v2651_v6, %v2647_v37  ;;  %v2782_v2 = vpack.c.bf16 %v2654_v14, %v2650_v29 }
 0x638   :  { %3227 = vmatmul.bf16.gmra.mxu0 %v5927_v12  ;;  %v4262_v3 = vmax.f32 %v3453_v18, 0.0  ;;  %v3278_v49 = vadd.f32 %v3277_v62, %v3189_v23  ;;  %4128 = vmatpush.bf16.xpose.msrb.mxu3 %v2782_v2 }
 0x639   :  { %v3366_v52 = vpop.f32.mrf.mxu2  ;;  %v3279_v33 = vpop.f32.mrf.mxu1  ;;  %3861 = vmatpush.bf16.xpose.msrb.mxu0 %v2779_v8 }
 0x63a   :  { %3494 = vmatmul.bf16.gmra.mxu3 %v5930_v11  ;;  %4390 = vst [vmem:[#allocation10 + $0x168] sm:$0xff] %v4262_v3  ;;  %v3367_v53 = vadd.f32 %v3366_v52, %v3278_v49  ;;  %v2648_v3 = vld [vmem:[#allocation7 + $0x7c8] sm:$0xff] }
 0x63b   :  { %v2780_v20 = vpack.c.bf16 %v2652_v56, %v2648_v3 }
 0x63d   :  { %v3455_v21 = vpop.f32.mrf.mxu3  ;;  %v3190_v31 = vpop.f32.mrf.mxu0  ;;  %3950 = vmatpush.bf16.xpose.msrb.mxu1 %v2780_v20 }
 0x63e   :  { %v3456_v18 = vadd.f32 %v3455_v21, %v3367_v53  ;;  %v3191_v11 = vadd.f32 %v3190_v31, %v5326_v25 }
 0x640   :  { %v4266_v62 = vmax.f32 %v3456_v18, 0.0  ;;  %v3280_v23 = vadd.f32 %v3279_v33, %v3191_v11 }
 0x641   :  { %v3368_v19 = vpop.f32.mrf.mxu2  ;;  %v3282_v12 = vpop.f32.mrf.mxu1 }
 0x642   :  { %4394 = vst [vmem:[#allocation10 + $0x188] sm:$0xff] %v4266_v62  ;;  %v3369_v60 = vadd.f32 %v3368_v19, %v3280_v23 }
 0x644   :  { %3321 = vmatmul.bf16.gmra.mxu1 %v5908_v13 }
 0x645   :  { %v3457_v49 = vpop.f32.mrf.mxu3  ;;  %v3193_v52 = vpop.f32.mrf.mxu0 }
 0x646   :  { %v3458_v37 = vadd.f32 %v3457_v49, %v3369_v60  ;;  %v3194_v4 = vadd.f32 %v3193_v52, %v5326_v25  ;;  %3410 = vmatmul.bf16.gmra.mxu2 %v5134_v27  ;;  %v5931_v49 = vld [vmem:[#allocation71_spill] sm:$0xff]  ;;  %v5932_v52 = vld [vmem:[#allocation16_spill] sm:$0xff] }
 0x648   :  { %3232 = vmatmul.bf16.gmra.mxu0 %v5907_v0  ;;  %v4270_v6 = vmax.f32 %v3458_v37, 0.0  ;;  %v3283_v11 = vadd.f32 %v3282_v12, %v3194_v4  ;;  %v2641_v4 = vld [vmem:[#allocation7 + $0x790] sm:$0xff] }
 0x649   :  { %v3371_v29 = vpop.f32.mrf.mxu2  ;;  %v3284_v31 = vpop.f32.mrf.mxu1 }
 0x64a   :  { %3499 = vmatmul.bf16.gmra.mxu3 %v5233_v15  ;;  %4398 = vst [vmem:[#allocation10 + $0x1a8] sm:$0xff] %v4270_v6  ;;  %v3372_v14 = vadd.f32 %v3371_v29, %v3283_v11  ;;  %v2645_v6 = vld [vmem:[#allocation7 + $0x7b0] sm:$0xff]  ;;  %v2639_v11 = vld [vmem:[#allocation7 + $0x780] sm:$0xff] }
 0x64d   :  { %v3460_v53 = vpop.f32.mrf.mxu3  ;;  %v3195_v21 = vpop.f32.mrf.mxu0 }
 0x64e   :  { %v3461_v20 = vadd.f32 %v3460_v53, %v3372_v14  ;;  %v3196_v60 = vadd.f32 %v3195_v21, %v5326_v25  ;;  %v2777_v14 = vpack.c.bf16 %v2645_v6, %v2641_v4  ;;  %v2643_v53 = vld [vmem:[#allocation7 + $0x7a0] sm:$0xff]  ;;  %v2642_v21 = vld [vmem:[#allocation7 + $0x798] sm:$0xff] }
 0x650   :  { %v4274_v8 = vmax.f32 %v3461_v20, 0.0  ;;  %v3285_v2 = vadd.f32 %v3284_v31, %v3196_v60  ;;  %v2646_v31 = vld [vmem:[#allocation7 + $0x7b8] sm:$0xff]  ;;  %4040 = vmatpush.bf16.xpose.msrb.mxu2 %v2777_v14 }
 0x651   :  { %v3373_v33 = vpop.f32.mrf.mxu2  ;;  %v3287_v3 = vpop.f32.mrf.mxu1 }
 0x652   :  { %4402 = vst [vmem:[#allocation10 + $0x1c8] sm:$0xff] %v4274_v8  ;;  %v3374_v18 = vadd.f32 %v3373_v33, %v3285_v2  ;;  %v2775_v2 = vpack.c.bf16 %v2643_v53, %v2639_v11  ;;  %v2778_v33 = vpack.c.bf16 %v2646_v31, %v2642_v21 }
 0x654   :  { %3602 = vmatmul.bf16.vlgmr.msra.gmra.mxu1 %v5867_v58  ;;  %3862 = vmatpush.bf16.xpose.msrb.mxu0 %v2775_v2 }
 0x655   :  { %v3462_v62 = vpop.f32.mrf.mxu3  ;;  %v3198_v23 = vpop.f32.mrf.mxu0  ;;  %4129 = vmatpush.bf16.xpose.msrb.mxu3 %v2778_v33 }
 0x656   :  { %v3463_v56 = vadd.f32 %v3462_v62, %v3374_v18  ;;  %v3199_v19 = vadd.f32 %v3198_v23, %v5326_v25  ;;  %3691 = vmatmul.bf16.vlgmr.msra.gmra.mxu2 %v5931_v49 }
 0x658   :  { %3513 = vmatmul.bf16.vlgmr.msra.gmra.mxu0 %v5866_v47  ;;  %v4278_v12 = vmax.f32 %v3463_v56, 0.0  ;;  %v3288_v37 = vadd.f32 %v3287_v3, %v3199_v19  ;;  %v2640_v19 = vld [vmem:[#allocation7 + $0x788] sm:$0xff] }
 0x659   :  { %v3376_v29 = vpop.f32.mrf.mxu2  ;;  %v3289_v18 = vpop.f32.mrf.mxu1 }
 0x65a   :  { %3780 = vmatmul.bf16.vlgmr.msra.gmra.mxu3 %v5932_v52  ;;  %4406 = vst [vmem:[#allocation10 + $0x1e8] sm:$0xff] %v4278_v12  ;;  %v3377_v20 = vadd.f32 %v3376_v29, %v3288_v37  ;;  %v2644_v12 = vld [vmem:[#allocation7 + $0x7a8] sm:$0xff] }
 0x65b   :  { %v2776_v6 = vpack.c.bf16 %v2644_v12, %v2640_v19 }
 0x65d   :  { %v3465_v60 = vpop.f32.mrf.mxu3  ;;  %v3200_v8 = vpop.f32.mrf.mxu0  ;;  %3951 = vmatpush.bf16.xpose.msrb.mxu1 %v2776_v6 }
 0x65e   :  { %v3466_v62 = vadd.f32 %v3465_v60, %v3377_v20  ;;  %v3201_v23 = vadd.f32 %v3200_v8, %v5326_v25 }
 0x660   :  { %v4282_v3 = vmax.f32 %v3466_v62, 0.0  ;;  %v3290_v56 = vadd.f32 %v3289_v18, %v3201_v23 }
 0x661   :  { %v3378_v4 = vpop.f32.mrf.mxu2  ;;  %v3292_v49 = vpop.f32.mrf.mxu1 }
 0x662   :  { %4410 = vst [vmem:[#allocation10 + $0x208] sm:$0xff] %v4282_v3  ;;  %v3379_v52 = vadd.f32 %v3378_v4, %v3290_v56 }
 0x664   :  { %3607 = vmatmul.bf16.gmra.mxu1 %v5871_v44 }
 0x665   :  { %v3467_v37 = vpop.f32.mrf.mxu3  ;;  %v3203_v29 = vpop.f32.mrf.mxu0 }
 0x666   :  { %v3468_v11 = vadd.f32 %v3467_v37, %v3379_v52  ;;  %v3204_v14 = vadd.f32 %v3203_v29, %v5326_v25  ;;  %3696 = vmatmul.bf16.gmra.mxu2 %v5872_v1  ;;  %v2633_v29 = vld [vmem:[#allocation7 + $0x750] sm:$0xff] }
 0x668   :  { %3518 = vmatmul.bf16.gmra.mxu0 %v5870_v51  ;;  %v4286_v53 = vmax.f32 %v3468_v11, 0.0  ;;  %v3293_v21 = vadd.f32 %v3292_v49, %v3204_v14  ;;  %v2637_v11 = vld [vmem:[#allocation7 + $0x770] sm:$0xff]  ;;  %v2631_v14 = vld [vmem:[#allocation7 + $0x740] sm:$0xff] }
 0x669   :  { %v3381_v31 = vpop.f32.mrf.mxu2  ;;  %v3294_v2 = vpop.f32.mrf.mxu1 }
 0x66a   :  { %3785 = vmatmul.bf16.gmra.mxu3 %v5146_v55  ;;  %4414 = vst [vmem:[#allocation10 + $0x228] sm:$0xff] %v4286_v53  ;;  %v3382_v20 = vadd.f32 %v3381_v31, %v3293_v21  ;;  %v2773_v21 = vpack.c.bf16 %v2637_v11, %v2633_v29  ;;  %v2635_v31 = vld [vmem:[#allocation7 + $0x760] sm:$0xff] }
 0x66c   :  { %4041 = vmatpush.bf16.xpose.msrb.mxu2 %v2773_v21 }
 0x66d   :  { %v3470_v60 = vpop.f32.mrf.mxu3  ;;  %v3205_v8 = vpop.f32.mrf.mxu0 }
 0x66e   :  { %v3471_v33 = vadd.f32 %v3470_v60, %v3382_v20  ;;  %v3206_v52 = vadd.f32 %v3205_v8, %v5326_v25  ;;  %v2634_v20 = vld [vmem:[#allocation7 + $0x758] sm:$0xff] }
 0x66f   :  { %v2638_v60 = vld [vmem:[#allocation7 + $0x778] sm:$0xff] }
 0x670   :  { %v4290_v18 = vmax.f32 %v3471_v33, 0.0  ;;  %v3295_v62 = vadd.f32 %v3294_v2, %v3206_v52  ;;  %v2771_v52 = vpack.c.bf16 %v2635_v31, %v2631_v14 }
 0x671   :  { %v3383_v23 = vpop.f32.mrf.mxu2  ;;  %v3297_v12 = vpop.f32.mrf.mxu1 }
 0x672   :  { %4418 = vst [vmem:[#allocation10 + $0x248] sm:$0xff] %v4290_v18  ;;  %v3384_v3 = vadd.f32 %v3383_v23, %v3295_v62  ;;  %v2774_v18 = vpack.c.bf16 %v2638_v60, %v2634_v20  ;;  %3863 = vmatpush.bf16.xpose.msrb.mxu0 %v2771_v52 }
 0x674   :  { %3612 = vmatmul.bf16.gmra.mxu1 %v5875_v34  ;;  %4130 = vmatpush.bf16.xpose.msrb.mxu3 %v2774_v18 }
 0x675   :  { %v3472_v56 = vpop.f32.mrf.mxu3  ;;  %v3208_v19 = vpop.f32.mrf.mxu0 }
 0x676   :  { %v3473_v4 = vadd.f32 %v3472_v56, %v3384_v3  ;;  %v3209_v6 = vadd.f32 %v3208_v19, %v5326_v25  ;;  %3701 = vmatmul.bf16.gmra.mxu2 %v5876_v16 }
 0x678   :  { %3523 = vmatmul.bf16.gmra.mxu0 %v5874_v30  ;;  %v4294_v49 = vmax.f32 %v3473_v4, 0.0  ;;  %v3298_v37 = vadd.f32 %v3297_v12, %v3209_v6  ;;  %v2632_v12 = vld [vmem:[#allocation7 + $0x748] sm:$0xff] }
 0x679   :  { %v3386_v53 = vpop.f32.mrf.mxu2  ;;  %v3299_v62 = vpop.f32.mrf.mxu1  ;;  %v2636_v4 = vld [vmem:[#allocation7 + $0x768] sm:$0xff] }
 0x67a   :  { %3790 = vmatmul.bf16.gmra.mxu3 %v5152_v24  ;;  %4422 = vst [vmem:[#allocation10 + $0x268] sm:$0xff] %v4294_v49  ;;  %v3387_v8 = vadd.f32 %v3386_v53, %v3298_v37  ;;  %v2772_v49 = vpack.c.bf16 %v2636_v4, %v2632_v12 }
 0x67c   :  { %3952 = vmatpush.bf16.xpose.msrb.mxu1 %v2772_v49 }
 0x67d   :  { %v3475_v2 = vpop.f32.mrf.mxu3  ;;  %v3210_v33 = vpop.f32.mrf.mxu0 }
 0x67e   :  { %v3476_v23 = vadd.f32 %v3475_v2, %v3387_v8  ;;  %v3211_v3 = vadd.f32 %v3210_v33, %v5326_v25 }
 0x680   :  { %v4298_v56 = vmax.f32 %v3476_v23, 0.0  ;;  %v3300_v19 = vadd.f32 %v3299_v62, %v3211_v3 }
 0x681   :  { %v3388_v6 = vpop.f32.mrf.mxu2  ;;  %v3302_v53 = vpop.f32.mrf.mxu1 }
 0x682   :  { %4426 = vst [vmem:[#allocation10 + $0x288] sm:$0xff] %v4298_v56  ;;  %v3389_v29 = vadd.f32 %v3388_v6, %v3300_v19 }
 0x684   :  { %3617 = vmatmul.bf16.gmra.mxu1 %v5878_v35 }
 0x685   :  { %v3477_v37 = vpop.f32.mrf.mxu3  ;;  %v3213_v11 = vpop.f32.mrf.mxu0 }
 0x686   :  { %v3478_v14 = vadd.f32 %v3477_v37, %v3389_v29  ;;  %v3214_v21 = vadd.f32 %v3213_v11, %v5326_v25  ;;  %3706 = vmatmul.bf16.gmra.mxu2 %v5879_v59 }
 0x688   :  { %3528 = vmatmul.bf16.gmra.mxu0 %v5877_v5  ;;  %v4302_v31 = vmax.f32 %v3478_v14, 0.0  ;;  %v3303_v20 = vadd.f32 %v3302_v53, %v3214_v21  ;;  %v2625_v53 = vld [vmem:[#allocation7 + $0x710] sm:$0xff]  ;;  %v2623_v21 = vld [vmem:[#allocation7 + $0x700] sm:$0xff] }
 0x689   :  { %v3391_v60 = vpop.f32.mrf.mxu2  ;;  %v3304_v52 = vpop.f32.mrf.mxu1  ;;  %v2629_v14 = vld [vmem:[#allocation7 + $0x730] sm:$0xff] }
 0x68a   :  { %3795 = vmatmul.bf16.gmra.mxu3 %v5158_v46  ;;  %4430 = vst [vmem:[#allocation10 + $0x2a8] sm:$0xff] %v4302_v31  ;;  %v3392_v8 = vadd.f32 %v3391_v60, %v3303_v20  ;;  %v2769_v20 = vpack.c.bf16 %v2629_v14, %v2625_v53  ;;  %v2627_v60 = vld [vmem:[#allocation7 + $0x720] sm:$0xff] }
 0x68c   :  { %4042 = vmatpush.bf16.xpose.msrb.mxu2 %v2769_v20 }
 0x68d   :  { %v3480_v2 = vpop.f32.mrf.mxu3  ;;  %v3215_v33 = vpop.f32.mrf.mxu0 }
 0x68e   :  { %v3481_v18 = vadd.f32 %v3480_v2, %v3392_v8  ;;  %v3216_v62 = vadd.f32 %v3215_v33, %v5326_v25  ;;  %v2626_v8 = vld [vmem:[#allocation7 + $0x718] sm:$0xff] }
 0x68f   :  { %v2630_v2 = vld [vmem:[#allocation7 + $0x738] sm:$0xff] }
 0x690   :  { %v4306_v23 = vmax.f32 %v3481_v18, 0.0  ;;  %v3305_v3 = vadd.f32 %v3304_v52, %v3216_v62  ;;  %v2767_v62 = vpack.c.bf16 %v2627_v60, %v2623_v21 }
 0x691   :  { %v3393_v56 = vpop.f32.mrf.mxu2  ;;  %v3307_v6 = vpop.f32.mrf.mxu1 }
 0x692   :  { %4434 = vst [vmem:[#allocation10 + $0x2c8] sm:$0xff] %v4306_v23  ;;  %v3394_v19 = vadd.f32 %v3393_v56, %v3305_v3  ;;  %v2770_v23 = vpack.c.bf16 %v2630_v2, %v2626_v8  ;;  %3864 = vmatpush.bf16.xpose.msrb.mxu0 %v2767_v62 }
 0x694   :  { %3622 = vmatmul.bf16.gmra.mxu1 %v5882_v43  ;;  %4131 = vmatpush.bf16.xpose.msrb.mxu3 %v2770_v23 }
 0x695   :  { %v3482_v12 = vpop.f32.mrf.mxu3  ;;  %v3218_v4 = vpop.f32.mrf.mxu0 }
 0x696   :  { %v3483_v49 = vadd.f32 %v3482_v12, %v3394_v19  ;;  %v3219_v29 = vadd.f32 %v3218_v4, %v5326_v25  ;;  %3711 = vmatmul.bf16.gmra.mxu2 %v5883_v26 }
 0x698   :  { %3533 = vmatmul.bf16.gmra.mxu0 %v5881_v50  ;;  %v4310_v37 = vmax.f32 %v3483_v49, 0.0  ;;  %v3308_v11 = vadd.f32 %v3307_v6, %v3219_v29  ;;  %v2624_v6 = vld [vmem:[#allocation7 + $0x708] sm:$0xff] }
 0x699   :  { %v3396_v31 = vpop.f32.mrf.mxu2  ;;  %v3309_v3 = vpop.f32.mrf.mxu1  ;;  %v2628_v49 = vld [vmem:[#allocation7 + $0x728] sm:$0xff] }
 0x69a   :  { %3800 = vmatmul.bf16.gmra.mxu3 %v5164_v42  ;;  %4438 = vst [vmem:[#allocation10 + $0x2e8] sm:$0xff] %v4310_v37  ;;  %v3397_v33 = vadd.f32 %v3396_v31, %v3308_v11  ;;  %v2768_v37 = vpack.c.bf16 %v2628_v49, %v2624_v6 }
 0x69c   :  { %3953 = vmatpush.bf16.xpose.msrb.mxu1 %v2768_v37 }
 0x69d   :  { %v3485_v52 = vpop.f32.mrf.mxu3  ;;  %v3220_v18 = vpop.f32.mrf.mxu0 }
 0x69e   :  { %v3486_v56 = vadd.f32 %v3485_v52, %v3397_v33  ;;  %v3221_v19 = vadd.f32 %v3220_v18, %v5326_v25 }
 0x6a0   :  { %v4314_v12 = vmax.f32 %v3486_v56, 0.0  ;;  %v3310_v4 = vadd.f32 %v3309_v3, %v3221_v19 }
 0x6a1   :  { %v3398_v29 = vpop.f32.mrf.mxu2  ;;  %v3312_v31 = vpop.f32.mrf.mxu1 }
 0x6a2   :  { %4442 = vst [vmem:[#allocation10 + $0x308] sm:$0xff] %v4314_v12  ;;  %v3399_v53 = vadd.f32 %v3398_v29, %v3310_v4 }
 0x6a4   :  { %3627 = vmatmul.bf16.gmra.mxu1 %v5885_v38 }
 0x6a5   :  { %v3487_v11 = vpop.f32.mrf.mxu3  ;;  %v3223_v14 = vpop.f32.mrf.mxu0 }
 0x6a6   :  { %v3488_v21 = vadd.f32 %v3487_v11, %v3399_v53  ;;  %v3224_v20 = vadd.f32 %v3223_v14, %v5326_v25  ;;  %3716 = vmatmul.bf16.gmra.mxu2 %v5886_v45  ;;  %v5933_v11 = vld [vmem:[#allocation47_spill] sm:$0xff] }
 0x6a8   :  { %3538 = vmatmul.bf16.gmra.mxu0 %v5884_v41  ;;  %v4318_v60 = vmax.f32 %v3488_v21, 0.0  ;;  %v3313_v8 = vadd.f32 %v3312_v31, %v3224_v20  ;;  %v5934_v31 = vld [vmem:[#allocation61_spill] sm:$0xff]  ;;  %v5935_v21 = vld [vmem:[#allocation76_spill] sm:$0xff] }
 0x6a9   :  { %v3401_v2 = vpop.f32.mrf.mxu2  ;;  %v3314_v62 = vpop.f32.mrf.mxu1  ;;  %v5936_v20 = vld [vmem:[#allocation17_spill] sm:$0xff] }
 0x6aa   :  { %3805 = vmatmul.bf16.gmra.mxu3 %v5170_v28  ;;  %4446 = vst [vmem:[#allocation10 + $0x328] sm:$0xff] %v4318_v60  ;;  %v3402_v33 = vadd.f32 %v3401_v2, %v3313_v8  ;;  %v2617_v8 = vld [vmem:[#allocation7 + $0x6d0] sm:$0xff] }
 0x6ab   :  { %v2621_v2 = vld [vmem:[#allocation7 + $0x6f0] sm:$0xff] }
 0x6ad   :  { %v3490_v52 = vpop.f32.mrf.mxu3  ;;  %v3225_v18 = vpop.f32.mrf.mxu0 }
 0x6ae   :  { %v3491_v23 = vadd.f32 %v3490_v52, %v3402_v33  ;;  %v3226_v3 = vadd.f32 %v3225_v18, %v5326_v25  ;;  %v2615_v33 = vld [vmem:[#allocation7 + $0x6c0] sm:$0xff]  ;;  %v2765_v18 = vpack.c.bf16 %v2621_v2, %v2617_v8  ;;  %v2620_v8 = vld [vmem:[#allocation7 + $0x6e8] sm:$0xff] }
 0x6b0   :  { %v4322_v56 = vmax.f32 %v3491_v23, 0.0  ;;  %v3315_v19 = vadd.f32 %v3314_v62, %v3226_v3  ;;  %v2619_v62 = vld [vmem:[#allocation7 + $0x6e0] sm:$0xff]  ;;  %v2618_v23 = vld [vmem:[#allocation7 + $0x6d8] sm:$0xff]  ;;  %4043 = vmatpush.bf16.xpose.msrb.mxu2 %v2765_v18 }
 0x6b1   :  { %v3403_v12 = vpop.f32.mrf.mxu2  ;;  %v3317_v29 = vpop.f32.mrf.mxu1  ;;  %v2622_v3 = vld [vmem:[#allocation7 + $0x6f8] sm:$0xff] }
 0x6b2   :  { %4450 = vst [vmem:[#allocation10 + $0x348] sm:$0xff] %v4322_v56  ;;  %v3404_v4 = vadd.f32 %v3403_v12, %v3315_v19 }
 0x6b4   :  { %3632 = vmatmul.bf16.gmra.mxu1 %v5934_v31 }
 0x6b5   :  { %v3492_v6 = vpop.f32.mrf.mxu3  ;;  %v3228_v49 = vpop.f32.mrf.mxu0 }
 0x6b6   :  { %v3493_v37 = vadd.f32 %v3492_v6, %v3404_v4  ;;  %v3229_v53 = vadd.f32 %v3228_v49, %v5326_v25  ;;  %3721 = vmatmul.bf16.gmra.mxu2 %v5935_v21  ;;  %v2763_v4 = vpack.c.bf16 %v2619_v62, %v2615_v33  ;;  %v2766_v6 = vpack.c.bf16 %v2622_v3, %v2618_v23  ;;  %v5937_v23 = vld [vmem:[#allocation77_spill] sm:$0xff] }
 0x6b8   :  { %3543 = vmatmul.bf16.gmra.mxu0 %v5933_v11  ;;  %v4326_v14 = vmax.f32 %v3493_v37, 0.0  ;;  %v3318_v60 = vadd.f32 %v3317_v29, %v3229_v53  ;;  %4132 = vmatpush.bf16.xpose.msrb.mxu3 %v2766_v6 }
 0x6b9   :  { %v3406_v52 = vpop.f32.mrf.mxu2  ;;  %v3319_v49 = vpop.f32.mrf.mxu1  ;;  %3865 = vmatpush.bf16.xpose.msrb.mxu0 %v2763_v4 }
 0x6ba   :  { %3810 = vmatmul.bf16.gmra.mxu3 %v5936_v20  ;;  %4454 = vst [vmem:[#allocation10 + $0x368] sm:$0xff] %v4326_v14  ;;  %v3407_v56 = vadd.f32 %v3406_v52, %v3318_v60  ;;  %v2616_v14 = vld [vmem:[#allocation7 + $0x6c8] sm:$0xff] }
 0x6bb   :  { %v2764_v21 = vpack.c.bf16 %v2620_v8, %v2616_v14 }
 0x6bd   :  { %v3495_v19 = vpop.f32.mrf.mxu3  ;;  %v3230_v12 = vpop.f32.mrf.mxu0  ;;  %3954 = vmatpush.bf16.xpose.msrb.mxu1 %v2764_v21 }
 0x6be   :  { %v3496_v37 = vadd.f32 %v3495_v19, %v3407_v56  ;;  %v3231_v20 = vadd.f32 %v3230_v12, %v5326_v25 }
 0x6c0   :  { %v4330_v29 = vmax.f32 %v3496_v37, 0.0  ;;  %v3320_v53 = vadd.f32 %v3319_v49, %v3231_v20  ;;  %v5938_v20 = vld [vmem:[#allocation18_spill] sm:$0xff] }
 0x6c1   :  { %v3408_v2 = vpop.f32.mrf.mxu2  ;;  %v3322_v11 = vpop.f32.mrf.mxu1 }
 0x6c2   :  { %4458 = vst [vmem:[#allocation10 + $0x388] sm:$0xff] %v4330_v29  ;;  %v3409_v31 = vadd.f32 %v3408_v2, %v3320_v53  ;;  %v5424_v29 = vld [vmem:[#allocation8] sm:$0xf] }
 0x6c3   :  { %5939 = vst [vmem:[#allocation24_spill] sm:$0xff] %v5424_v29  ;;  %v5427_v53 = vperm.slane %v5424_v29, 2 }
 0x6c4   :  { %3637 = vmatmul.bf16.gmra.mxu1 %v5891_v57 }
 0x6c5   :  { %v3497_v60 = vpop.f32.mrf.mxu3  ;;  %v3233_v52 = vpop.f32.mrf.mxu0 }
 0x6c6   :  { %v3498_v33 = vadd.f32 %v3497_v60, %v3409_v31  ;;  %v3234_v18 = vadd.f32 %v3233_v52, %v5326_v25  ;;  %3726 = vmatmul.bf16.gmra.mxu2 %v5937_v23 }
 0x6c8   :  { %3548 = vmatmul.bf16.gmra.mxu0 %v5890_v22  ;;  %v4334_v62 = vmax.f32 %v3498_v33, 0.0  ;;  %v3323_v3 = vadd.f32 %v3322_v11, %v3234_v18  ;;  %v5940_v18 = vld [vmem:[#allocation49_spill] sm:$0xff] }
 0x6c9   :  { %v3411_v56 = vpop.f32.mrf.mxu2  ;;  %v3324_v6 = vpop.f32.mrf.mxu1 }
 0x6ca   :  { %3815 = vmatmul.bf16.gmra.mxu3 %v5938_v20  ;;  %4462 = vst [vmem:[#allocation10 + $0x3a8] sm:$0xff] %v4334_v62  ;;  %v3412_v19 = vadd.f32 %v3411_v56, %v3323_v3  ;;  %v5942_v3 = vld [vmem:[#allocation78_spill] sm:$0xff]  ;;  %v5943_v56 = vld [vmem:[#allocation19_spill] sm:$0xff] }
 0x6cd   :  { %v3500_v12 = vpop.f32.mrf.mxu3  ;;  %v3235_v4 = vpop.f32.mrf.mxu0 }
 0x6ce   :  { %v3501_v21 = vadd.f32 %v3500_v12, %v3412_v19  ;;  %v3236_v31 = vadd.f32 %v3235_v4, %v5326_v25  ;;  %v5941_v25 = vld [vmem:[#allocation63_spill] sm:$0xff]  ;;  %v2609_v12 = vld [vmem:[#allocation7 + $0x690] sm:$0xff] }
 0x6cf   :  { %v2613_v4 = vld [vmem:[#allocation7 + $0x6b0] sm:$0xff] }
 0x6d0   :  { %v4338_v49 = vmax.f32 %v3501_v21, 0.0  ;;  %v3325_v37 = vadd.f32 %v3324_v6, %v3236_v31  ;;  %v2607_v6 = vld [vmem:[#allocation7 + $0x680] sm:$0xff]  ;;  %v2761_v31 = vpack.c.bf16 %v2613_v4, %v2609_v12  ;;  %v2612_v12 = vld [vmem:[#allocation7 + $0x6a8] sm:$0xff] }
 0x6d1   :  { %v3413_v14 = vpop.f32.mrf.mxu2  ;;  %v3603_v60 = vpop.f32.mrf.mxu1 }
 0x6d2   :  { %4466 = vst [vmem:[#allocation10 + $0x3c8] sm:$0xff] %v4338_v49  ;;  %v3414_v8 = vadd.f32 %v3413_v14, %v3325_v37  ;;  %v2611_v49 = vld [vmem:[#allocation7 + $0x6a0] sm:$0xff]  ;;  %v2610_v37 = vld [vmem:[#allocation7 + $0x698] sm:$0xff]  ;;  %4044 = vmatpush.bf16.xpose.msrb.mxu2 %v2761_v31 }
 0x6d3   :  { %v2614_v14 = vld [vmem:[#allocation7 + $0x6b8] sm:$0xff] }
 0x6d4   :  { %3642 = vmatmul.bf16.gmra.mxu1 %v5941_v25 }
 0x6d5   :  { %v3502_v2 = vpop.f32.mrf.mxu3  ;;  %v3514_v11 = vpop.f32.mrf.mxu0 }
 0x6d6   :  { %v3503_v52 = vadd.f32 %v3502_v2, %v3414_v8  ;;  %v3515_v33 = vadd.f32 %v3514_v11, %v5427_v53  ;;  %3731 = vmatmul.bf16.gmra.mxu2 %v5942_v3 }
 0x6d8   :  { %3553 = vmatmul.bf16.gmra.mxu0 %v5940_v18  ;;  %v4342_v62 = vmax.f32 %v3503_v52, 0.0  ;;  %v3604_v19 = vadd.f32 %v3603_v60, %v3515_v33  ;;  %v2759_v52 = vpack.c.bf16 %v2611_v49, %v2607_v6  ;;  %v2762_v18 = vpack.c.bf16 %v2614_v14, %v2610_v37 }
 0x6d9   :  { %v3692_v21 = vpop.f32.mrf.mxu2  ;;  %v3605_v25 = vpop.f32.mrf.mxu1 }
 0x6da   :  { %3820 = vmatmul.bf16.gmra.mxu3 %v5943_v56  ;;  %4470 = vst [vmem:[#allocation10 + $0x3e8] sm:$0xff] %v4342_v62  ;;  %v3693_v8 = vadd.f32 %v3692_v21, %v3604_v19  ;;  %3866 = vmatpush.bf16.xpose.msrb.mxu0 %v2759_v52  ;;  %v2608_v62 = vld [vmem:[#allocation7 + $0x688] sm:$0xff] }
 0x6db   :  { %4133 = vmatpush.bf16.xpose.msrb.mxu3 %v2762_v18  ;;  %v2760_v29 = vpack.c.bf16 %v2612_v12, %v2608_v62 }
 0x6dd   :  { %v3781_v2 = vpop.f32.mrf.mxu3  ;;  %v3516_v11 = vpop.f32.mrf.mxu0  ;;  %3955 = vmatpush.bf16.xpose.msrb.mxu1 %v2760_v29 }
 0x6de   :  { %v3782_v3 = vadd.f32 %v3781_v2, %v3693_v8  ;;  %v3517_v56 = vadd.f32 %v3516_v11, %v5427_v53 }
 0x6e0   :  { %v4219_v60 = vmax.f32 %v3782_v3, 0.0  ;;  %v3606_v33 = vadd.f32 %v3605_v25, %v3517_v56 }
 0x6e1   :  { %v3694_v4 = vpop.f32.mrf.mxu2  ;;  %v3608_v23 = vpop.f32.mrf.mxu1 }
 0x6e2   :  { %4347 = vst [vmem:[#allocation10 + $0x10] sm:$0xff] %v4219_v60  ;;  %v3695_v20 = vadd.f32 %v3694_v4, %v3606_v33 }
 0x6e4   :  { %3647 = vmatmul.bf16.gmra.mxu1 %v5896_v9 }
 0x6e5   :  { %v3783_v19 = vpop.f32.mrf.mxu3  ;;  %v3519_v21 = vpop.f32.mrf.mxu0 }
 0x6e6   :  { %v3784_v6 = vadd.f32 %v3783_v19, %v3695_v20  ;;  %v3520_v31 = vadd.f32 %v3519_v21, %v5427_v53  ;;  %3736 = vmatmul.bf16.gmra.mxu2 %v5098_v61  ;;  %v5945_v21 = vld [vmem:[#allocation65_spill] sm:$0xff] }
 0x6e8   :  { %3558 = vmatmul.bf16.gmra.mxu0 %v5895_v54  ;;  %v4223_v49 = vmax.f32 %v3784_v6, 0.0  ;;  %v3609_v18 = vadd.f32 %v3608_v23, %v3520_v31  ;;  %v5944_v23 = vld [vmem:[#allocation51_spill] sm:$0xff]  ;;  %v5947_v31 = vld [vmem:[#allocation20_spill] sm:$0xff] }
 0x6e9   :  { %v3697_v25 = vpop.f32.mrf.mxu2  ;;  %v3610_v14 = vpop.f32.mrf.mxu1  ;;  %v5946_v6 = vld [vmem:[#allocation79_spill] sm:$0xff] }
 0x6ea   :  { %3825 = vmatmul.bf16.gmra.mxu3 %v5194_v32  ;;  %4351 = vst [vmem:[#allocation10 + $0x30] sm:$0xff] %v4223_v49  ;;  %v3698_v3 = vadd.f32 %v3697_v25, %v3609_v18  ;;  %v2601_v18 = vld [vmem:[#allocation7 + $0x650] sm:$0xff] }
 0x6eb   :  { %v2605_v25 = vld [vmem:[#allocation7 + $0x670] sm:$0xff] }
 0x6ed   :  { %v3786_v56 = vpop.f32.mrf.mxu3  ;;  %v3521_v37 = vpop.f32.mrf.mxu0 }
 0x6ee   :  { %v3787_v29 = vadd.f32 %v3786_v56, %v3698_v3  ;;  %v3522_v20 = vadd.f32 %v3521_v37, %v5427_v53  ;;  %v2599_v3 = vld [vmem:[#allocation7 + $0x640] sm:$0xff]  ;;  %v2757_v37 = vpack.c.bf16 %v2605_v25, %v2601_v18  ;;  %v2604_v18 = vld [vmem:[#allocation7 + $0x668] sm:$0xff] }
 0x6f0   :  { %v4227_v8 = vmax.f32 %v3787_v29, 0.0  ;;  %v3611_v2 = vadd.f32 %v3610_v14, %v3522_v20  ;;  %v2603_v14 = vld [vmem:[#allocation7 + $0x660] sm:$0xff]  ;;  %v2602_v29 = vld [vmem:[#allocation7 + $0x658] sm:$0xff]  ;;  %4045 = vmatpush.bf16.xpose.msrb.mxu2 %v2757_v37 }
 0x6f1   :  { %v3699_v11 = vpop.f32.mrf.mxu2  ;;  %v3613_v62 = vpop.f32.mrf.mxu1  ;;  %v2606_v20 = vld [vmem:[#allocation7 + $0x678] sm:$0xff] }
 0x6f2   :  { %4355 = vst [vmem:[#allocation10 + $0x50] sm:$0xff] %v4227_v8  ;;  %v3700_v52 = vadd.f32 %v3699_v11, %v3611_v2 }
 0x6f4   :  { %3652 = vmatmul.bf16.gmra.mxu1 %v5945_v21 }
 0x6f5   :  { %v3788_v60 = vpop.f32.mrf.mxu3  ;;  %v3524_v33 = vpop.f32.mrf.mxu0 }
 0x6f6   :  { %v3789_v12 = vadd.f32 %v3788_v60, %v3700_v52  ;;  %v3525_v4 = vadd.f32 %v3524_v33, %v5427_v53  ;;  %3741 = vmatmul.bf16.gmra.mxu2 %v5946_v6  ;;  %v2755_v52 = vpack.c.bf16 %v2603_v14, %v2599_v3  ;;  %v2758_v60 = vpack.c.bf16 %v2606_v20, %v2602_v29 }
 0x6f8   :  { %3563 = vmatmul.bf16.gmra.mxu0 %v5944_v23  ;;  %v4231_v19 = vmax.f32 %v3789_v12, 0.0  ;;  %v3614_v49 = vadd.f32 %v3613_v62, %v3525_v4  ;;  %4134 = vmatpush.bf16.xpose.msrb.mxu3 %v2758_v60 }
 0x6f9   :  { %v3702_v56 = vpop.f32.mrf.mxu2  ;;  %v3615_v33 = vpop.f32.mrf.mxu1  ;;  %3867 = vmatpush.bf16.xpose.msrb.mxu0 %v2755_v52 }
 0x6fa   :  { %3830 = vmatmul.bf16.gmra.mxu3 %v5947_v31  ;;  %4359 = vst [vmem:[#allocation10 + $0x70] sm:$0xff] %v4231_v19  ;;  %v3703_v8 = vadd.f32 %v3702_v56, %v3614_v49  ;;  %v2600_v19 = vld [vmem:[#allocation7 + $0x648] sm:$0xff] }
 0x6fb   :  { %v2756_v6 = vpack.c.bf16 %v2604_v18, %v2600_v19 }
 0x6fd   :  { %v3791_v2 = vpop.f32.mrf.mxu3  ;;  %v3526_v11 = vpop.f32.mrf.mxu0  ;;  %3956 = vmatpush.bf16.xpose.msrb.mxu1 %v2756_v6 }
 0x6fe   :  { %v3792_v12 = vadd.f32 %v3791_v2, %v3703_v8  ;;  %v3527_v31 = vadd.f32 %v3526_v11, %v5427_v53 }
 0x700   :  { %v4235_v62 = vmax.f32 %v3792_v12, 0.0  ;;  %v3616_v4 = vadd.f32 %v3615_v33, %v3527_v31 }
 0x701   :  { %v3704_v25 = vpop.f32.mrf.mxu2  ;;  %v3618_v23 = vpop.f32.mrf.mxu1 }
 0x702   :  { %4363 = vst [vmem:[#allocation10 + $0x90] sm:$0xff] %v4235_v62  ;;  %v3705_v21 = vadd.f32 %v3704_v25, %v3616_v4 }
 0x704   :  { %3657 = vmatmul.bf16.gmra.mxu1 %v5900_v63 }
 0x705   :  { %v3793_v49 = vpop.f32.mrf.mxu3  ;;  %v3529_v56 = vpop.f32.mrf.mxu0 }
 0x706   :  { %v3794_v3 = vadd.f32 %v3793_v49, %v3705_v21  ;;  %v3530_v37 = vadd.f32 %v3529_v56, %v5427_v53  ;;  %3746 = vmatmul.bf16.gmra.mxu2 %v5110_v39  ;;  %v5949_v56 = vld [vmem:[#allocation67_spill] sm:$0xff] }
 0x708   :  { %3568 = vmatmul.bf16.gmra.mxu0 %v5899_v48  ;;  %v4239_v14 = vmax.f32 %v3794_v3, 0.0  ;;  %v3619_v31 = vadd.f32 %v3618_v23, %v3530_v37  ;;  %v5948_v23 = vld [vmem:[#allocation53_spill] sm:$0xff]  ;;  %v5950_v3 = vld [vmem:[#allocation80_spill] sm:$0xff]  ;;  %v5951_v37 = vld [vmem:[#allocation22_spill] sm:$0xff] }
 0x709   :  { %v3707_v29 = vpop.f32.mrf.mxu2  ;;  %v3620_v11 = vpop.f32.mrf.mxu1 }
 0x70a   :  { %3835 = vmatmul.bf16.gmra.mxu3 %v5206_v10  ;;  %4367 = vst [vmem:[#allocation10 + $0xb0] sm:$0xff] %v4239_v14  ;;  %v3708_v20 = vadd.f32 %v3707_v29, %v3619_v31  ;;  %v2593_v31 = vld [vmem:[#allocation7 + $0x610] sm:$0xff] }
 0x70b   :  { %v2597_v29 = vld [vmem:[#allocation7 + $0x630] sm:$0xff] }
 0x70d   :  { %v3796_v8 = vpop.f32.mrf.mxu3  ;;  %v3531_v2 = vpop.f32.mrf.mxu0 }
 0x70e   :  { %v3797_v6 = vadd.f32 %v3796_v8, %v3708_v20  ;;  %v3532_v21 = vadd.f32 %v3531_v2, %v5427_v53  ;;  %v2591_v20 = vld [vmem:[#allocation7 + $0x600] sm:$0xff]  ;;  %v2753_v2 = vpack.c.bf16 %v2597_v29, %v2593_v31  ;;  %v2596_v31 = vld [vmem:[#allocation7 + $0x628] sm:$0xff] }
 0x710   :  { %v4243_v52 = vmax.f32 %v3797_v6, 0.0  ;;  %v3621_v60 = vadd.f32 %v3620_v11, %v3532_v21  ;;  %v2595_v11 = vld [vmem:[#allocation7 + $0x620] sm:$0xff]  ;;  %v2594_v6 = vld [vmem:[#allocation7 + $0x618] sm:$0xff]  ;;  %4046 = vmatpush.bf16.xpose.msrb.mxu2 %v2753_v2 }
 0x711   :  { %v3709_v33 = vpop.f32.mrf.mxu2  ;;  %v3623_v19 = vpop.f32.mrf.mxu1  ;;  %v2598_v21 = vld [vmem:[#allocation7 + $0x638] sm:$0xff] }
 0x712   :  { %4371 = vst [vmem:[#allocation10 + $0xd0] sm:$0xff] %v4243_v52  ;;  %v3710_v12 = vadd.f32 %v3709_v33, %v3621_v60 }
 0x714   :  { %3662 = vmatmul.bf16.gmra.mxu1 %v5949_v56 }
 0x715   :  { %v3798_v62 = vpop.f32.mrf.mxu3  ;;  %v3534_v4 = vpop.f32.mrf.mxu0 }
 0x716   :  { %v3799_v18 = vadd.f32 %v3798_v62, %v3710_v12  ;;  %v3535_v25 = vadd.f32 %v3534_v4, %v5427_v53  ;;  %3751 = vmatmul.bf16.gmra.mxu2 %v5950_v3  ;;  %v2751_v12 = vpack.c.bf16 %v2595_v11, %v2591_v20  ;;  %v2754_v62 = vpack.c.bf16 %v2598_v21, %v2594_v6 }
 0x718   :  { %3573 = vmatmul.bf16.gmra.mxu0 %v5948_v23  ;;  %v4247_v49 = vmax.f32 %v3799_v18, 0.0  ;;  %v3624_v14 = vadd.f32 %v3623_v19, %v3535_v25  ;;  %4135 = vmatpush.bf16.xpose.msrb.mxu3 %v2754_v62 }
 0x719   :  { %v3712_v8 = vpop.f32.mrf.mxu2  ;;  %v3625_v4 = vpop.f32.mrf.mxu1  ;;  %3868 = vmatpush.bf16.xpose.msrb.mxu0 %v2751_v12 }
 0x71a   :  { %3840 = vmatmul.bf16.gmra.mxu3 %v5951_v37  ;;  %4375 = vst [vmem:[#allocation10 + $0xf0] sm:$0xff] %v4247_v49  ;;  %v3713_v52 = vadd.f32 %v3712_v8, %v3624_v14  ;;  %v2592_v49 = vld [vmem:[#allocation7 + $0x608] sm:$0xff] }
 0x71b   :  { %v2752_v3 = vpack.c.bf16 %v2596_v31, %v2592_v49 }
 0x71d   :  { %v3801_v60 = vpop.f32.mrf.mxu3  ;;  %v3536_v33 = vpop.f32.mrf.mxu0  ;;  %3957 = vmatpush.bf16.xpose.msrb.mxu1 %v2752_v3 }
 0x71e   :  { %v3802_v18 = vadd.f32 %v3801_v60, %v3713_v52  ;;  %v3537_v37 = vadd.f32 %v3536_v33, %v5427_v53 }
 0x720   :  { %v4251_v19 = vmax.f32 %v3802_v18, 0.0  ;;  %v3626_v25 = vadd.f32 %v3625_v4, %v3537_v37 }
 0x721   :  { %v3714_v29 = vpop.f32.mrf.mxu2  ;;  %v3628_v23 = vpop.f32.mrf.mxu1 }
 0x722   :  { %4379 = vst [vmem:[#allocation10 + $0x110] sm:$0xff] %v4251_v19  ;;  %v3715_v56 = vadd.f32 %v3714_v29, %v3626_v25 }
 0x724   :  { %3667 = vmatmul.bf16.gmra.mxu1 %v5904_v7 }
 0x725   :  { %v3803_v14 = vpop.f32.mrf.mxu3  ;;  %v3539_v8 = vpop.f32.mrf.mxu0 }
 0x726   :  { %v3804_v20 = vadd.f32 %v3803_v14, %v3715_v56  ;;  %v3540_v2 = vadd.f32 %v3539_v8, %v5427_v53  ;;  %3756 = vmatmul.bf16.gmra.mxu2 %v5122_v17  ;;  %v5953_v8 = vld [vmem:[#allocation69_spill] sm:$0xff] }
 0x728   :  { %3578 = vmatmul.bf16.gmra.mxu0 %v5903_v36  ;;  %v4255_v11 = vmax.f32 %v3804_v20, 0.0  ;;  %v3629_v37 = vadd.f32 %v3628_v23, %v3540_v2  ;;  %v5952_v23 = vld [vmem:[#allocation55_spill] sm:$0xff]  ;;  %v5954_v20 = vld [vmem:[#allocation81_spill] sm:$0xff] }
 0x729   :  { %v3717_v6 = vpop.f32.mrf.mxu2  ;;  %v3630_v33 = vpop.f32.mrf.mxu1  ;;  %v5955_v2 = vld [vmem:[#allocation23_spill] sm:$0xff] }
 0x72a   :  { %3845 = vmatmul.bf16.gmra.mxu3 %v5218_v40  ;;  %4383 = vst [vmem:[#allocation10 + $0x130] sm:$0xff] %v4255_v11  ;;  %v3718_v21 = vadd.f32 %v3717_v6, %v3629_v37 }
 0x72d   :  { %v3806_v52 = vpop.f32.mrf.mxu3  ;;  %v3541_v60 = vpop.f32.mrf.mxu0 }
 0x72e   :  { %v3807_v3 = vadd.f32 %v3806_v52, %v3718_v21  ;;  %v3542_v56 = vadd.f32 %v3541_v60, %v5427_v53 }
 0x730   :  { %v4259_v12 = vmax.f32 %v3807_v3, 0.0  ;;  %v3631_v62 = vadd.f32 %v3630_v33, %v3542_v56 }
 0x731   :  { %v3719_v4 = vpop.f32.mrf.mxu2  ;;  %v3633_v49 = vpop.f32.mrf.mxu1 }
 0x732   :  { %4387 = vst [vmem:[#allocation10 + $0x150] sm:$0xff] %v4259_v12  ;;  %v3720_v18 = vadd.f32 %v3719_v4, %v3631_v62 }
 0x734   :  { %3672 = vmatmul.bf16.gmra.mxu1 %v5953_v8 }
 0x735   :  { %v3808_v19 = vpop.f32.mrf.mxu3  ;;  %v3544_v25 = vpop.f32.mrf.mxu0 }
 0x736   :  { %v3809_v31 = vadd.f32 %v3808_v19, %v3720_v18  ;;  %v3545_v29 = vadd.f32 %v3544_v25, %v5427_v53  ;;  %3761 = vmatmul.bf16.gmra.mxu2 %v5954_v20 }
 0x738   :  { %3583 = vmatmul.bf16.gmra.mxu0 %v5952_v23  ;;  %v4263_v14 = vmax.f32 %v3809_v31, 0.0  ;;  %v3634_v11 = vadd.f32 %v3633_v49, %v3545_v29 }
 0x739   :  { %v3722_v37 = vpop.f32.mrf.mxu2  ;;  %v3635_v60 = vpop.f32.mrf.mxu1 }
 0x73a   :  { %3850 = vmatmul.bf16.gmra.mxu3 %v5955_v2  ;;  %4391 = vst [vmem:[#allocation10 + $0x170] sm:$0xff] %v4263_v14  ;;  %v3723_v6 = vadd.f32 %v3722_v37, %v3634_v11 }
 0x73d   :  { %v3811_v21 = vpop.f32.mrf.mxu3  ;;  %v3546_v52 = vpop.f32.mrf.mxu0 }
 0x73e   :  { %v3812_v33 = vadd.f32 %v3811_v21, %v3723_v6  ;;  %v3547_v3 = vadd.f32 %v3546_v52, %v5427_v53 }
 0x740   :  { %v4267_v56 = vmax.f32 %v3812_v33, 0.0  ;;  %v3636_v12 = vadd.f32 %v3635_v60, %v3547_v3 }
 0x741   :  { %v3724_v62 = vpop.f32.mrf.mxu2  ;;  %v3638_v25 = vpop.f32.mrf.mxu1 }
 0x742   :  { %4395 = vst [vmem:[#allocation10 + $0x190] sm:$0xff] %v4267_v56  ;;  %v3725_v4 = vadd.f32 %v3724_v62, %v3636_v12 }
 0x744   :  { %3677 = vmatmul.bf16.gmra.mxu1 %v5908_v13 }
 0x745   :  { %v3813_v18 = vpop.f32.mrf.mxu3  ;;  %v3549_v19 = vpop.f32.mrf.mxu0 }
 0x746   :  { %v3814_v31 = vadd.f32 %v3813_v18, %v3725_v4  ;;  %v3550_v14 = vadd.f32 %v3549_v19, %v5427_v53  ;;  %3766 = vmatmul.bf16.gmra.mxu2 %v5134_v27 }
 0x748   :  { %3588 = vmatmul.bf16.gmra.mxu0 %v5907_v0  ;;  %v4271_v49 = vmax.f32 %v3814_v31, 0.0  ;;  %v3639_v29 = vadd.f32 %v3638_v25, %v3550_v14  ;;  %v5956_v14 = vld [vmem:[#allocation71_spill] sm:$0xff] }
 0x749   :  { %v3727_v11 = vpop.f32.mrf.mxu2  ;;  %v3640_v52 = vpop.f32.mrf.mxu1 }
 0x74a   :  { %3855 = vmatmul.bf16.gmra.mxu3 %v5233_v15  ;;  %4399 = vst [vmem:[#allocation10 + $0x1b0] sm:$0xff] %v4271_v49  ;;  %v3728_v37 = vadd.f32 %v3727_v11, %v3639_v29  ;;  %v5957_v29 = vld [vmem:[#allocation16_spill] sm:$0xff] }
 0x74d   :  { %v3816_v6 = vpop.f32.mrf.mxu3  ;;  %v3551_v21 = vpop.f32.mrf.mxu0 }
 0x74e   :  { %v3817_v60 = vadd.f32 %v3816_v6, %v3728_v37  ;;  %v3552_v33 = vadd.f32 %v3551_v21, %v5427_v53 }
 0x750   :  { %v4275_v3 = vmax.f32 %v3817_v60, 0.0  ;;  %v3641_v56 = vadd.f32 %v3640_v52, %v3552_v33 }
 0x751   :  { %v3729_v12 = vpop.f32.mrf.mxu2  ;;  %v3643_v19 = vpop.f32.mrf.mxu1 }
 0x752   :  { %4403 = vst [vmem:[#allocation10 + $0x1d0] sm:$0xff] %v4275_v3  ;;  %v3730_v62 = vadd.f32 %v3729_v12, %v3641_v56 }
 0x754   :  { %3958 = vmatmul.bf16.vlgmr.msrb.gmra.mxu1 %v5867_v58 }
 0x755   :  { %v3818_v4 = vpop.f32.mrf.mxu3  ;;  %v3554_v18 = vpop.f32.mrf.mxu0 }
 0x756   :  { %v3819_v31 = vadd.f32 %v3818_v4, %v3730_v62  ;;  %v3555_v49 = vadd.f32 %v3554_v18, %v5427_v53  ;;  %4047 = vmatmul.bf16.vlgmr.msrb.gmra.mxu2 %v5956_v14 }
 0x758   :  { %3869 = vmatmul.bf16.vlgmr.msrb.gmra.mxu0 %v5866_v47  ;;  %v4279_v25 = vmax.f32 %v3819_v31, 0.0  ;;  %v3644_v11 = vadd.f32 %v3643_v19, %v3555_v49 }
 0x759   :  { %v3732_v37 = vpop.f32.mrf.mxu2  ;;  %v3645_v60 = vpop.f32.mrf.mxu1 }
 0x75a   :  { %4136 = vmatmul.bf16.vlgmr.msrb.gmra.mxu3 %v5957_v29  ;;  %4407 = vst [vmem:[#allocation10 + $0x1f0] sm:$0xff] %v4279_v25  ;;  %v3733_v6 = vadd.f32 %v3732_v37, %v3644_v11 }
 0x75d   :  { %v3821_v21 = vpop.f32.mrf.mxu3  ;;  %v3556_v52 = vpop.f32.mrf.mxu0 }
 0x75e   :  { %v3822_v33 = vadd.f32 %v3821_v21, %v3733_v6  ;;  %v3557_v3 = vadd.f32 %v3556_v52, %v5427_v53 }
 0x760   :  { %v4283_v56 = vmax.f32 %v3822_v33, 0.0  ;;  %v3646_v47 = vadd.f32 %v3645_v60, %v3557_v3 }
 0x761   :  { %v3734_v12 = vpop.f32.mrf.mxu2  ;;  %v3648_v18 = vpop.f32.mrf.mxu1 }
 0x762   :  { %4411 = vst [vmem:[#allocation10 + $0x210] sm:$0xff] %v4283_v56  ;;  %v3735_v62 = vadd.f32 %v3734_v12, %v3646_v47 }
 0x764   :  { %3963 = vmatmul.bf16.gmra.mxu1 %v5871_v44 }
 0x765   :  { %v3823_v58 = vpop.f32.mrf.mxu3  ;;  %v3559_v4 = vpop.f32.mrf.mxu0 }
 0x766   :  { %v3824_v31 = vadd.f32 %v3823_v58, %v3735_v62  ;;  %v3560_v25 = vadd.f32 %v3559_v4, %v5427_v53  ;;  %4052 = vmatmul.bf16.gmra.mxu2 %v5872_v1 }
 0x768   :  { %3874 = vmatmul.bf16.gmra.mxu0 %v5870_v51  ;;  %v4287_v19 = vmax.f32 %v3824_v31, 0.0  ;;  %v3649_v49 = vadd.f32 %v3648_v18, %v3560_v25 }
 0x769   :  { %v3737_v14 = vpop.f32.mrf.mxu2  ;;  %v3650_v6 = vpop.f32.mrf.mxu1 }
 0x76a   :  { %4141 = vmatmul.bf16.gmra.mxu3 %v5146_v55  ;;  %4415 = vst [vmem:[#allocation10 + $0x230] sm:$0xff] %v4287_v19  ;;  %v3738_v29 = vadd.f32 %v3737_v14, %v3649_v49 }
 0x76d   :  { %v3826_v11 = vpop.f32.mrf.mxu3  ;;  %v3561_v37 = vpop.f32.mrf.mxu0 }
 0x76e   :  { %v3827_v21 = vadd.f32 %v3826_v11, %v3738_v29  ;;  %v3562_v52 = vadd.f32 %v3561_v37, %v5427_v53 }
 0x770   :  { %v4291_v60 = vmax.f32 %v3827_v21, 0.0  ;;  %v3651_v51 = vadd.f32 %v3650_v6, %v3562_v52 }
 0x771   :  { %v3739_v33 = vpop.f32.mrf.mxu2  ;;  %v3653_v1 = vpop.f32.mrf.mxu1 }
 0x772   :  { %4419 = vst [vmem:[#allocation10 + $0x250] sm:$0xff] %v4291_v60  ;;  %v3740_v3 = vadd.f32 %v3739_v33, %v3651_v51 }
 0x774   :  { %3968 = vmatmul.bf16.gmra.mxu1 %v5875_v34 }
 0x775   :  { %v3828_v44 = vpop.f32.mrf.mxu3  ;;  %v3564_v56 = vpop.f32.mrf.mxu0 }
 0x776   :  { %v3829_v47 = vadd.f32 %v3828_v44, %v3740_v3  ;;  %v3565_v55 = vadd.f32 %v3564_v56, %v5427_v53  ;;  %4057 = vmatmul.bf16.gmra.mxu2 %v5876_v16 }
 0x778   :  { %3879 = vmatmul.bf16.gmra.mxu0 %v5874_v30  ;;  %v4295_v12 = vmax.f32 %v3829_v47, 0.0  ;;  %v3654_v62 = vadd.f32 %v3653_v1, %v3565_v55 }
 0x779   :  { %v3742_v58 = vpop.f32.mrf.mxu2  ;;  %v3655_v25 = vpop.f32.mrf.mxu1 }
 0x77a   :  { %4146 = vmatmul.bf16.gmra.mxu3 %v5152_v24  ;;  %4423 = vst [vmem:[#allocation10 + $0x270] sm:$0xff] %v4295_v12  ;;  %v3743_v4 = vadd.f32 %v3742_v58, %v3654_v62 }
 0x77d   :  { %v3831_v18 = vpop.f32.mrf.mxu3  ;;  %v3566_v31 = vpop.f32.mrf.mxu0 }
 0x77e   :  { %v3832_v19 = vadd.f32 %v3831_v18, %v3743_v4  ;;  %v3567_v49 = vadd.f32 %v3566_v31, %v5427_v53 }
 0x780   :  { %v4299_v14 = vmax.f32 %v3832_v19, 0.0  ;;  %v3656_v30 = vadd.f32 %v3655_v25, %v3567_v49 }
 0x781   :  { %v3744_v29 = vpop.f32.mrf.mxu2  ;;  %v3658_v16 = vpop.f32.mrf.mxu1 }
 0x782   :  { %4427 = vst [vmem:[#allocation10 + $0x290] sm:$0xff] %v4299_v14  ;;  %v3745_v11 = vadd.f32 %v3744_v29, %v3656_v30 }
 0x784   :  { %3973 = vmatmul.bf16.gmra.mxu1 %v5878_v35 }
 0x785   :  { %v3833_v34 = vpop.f32.mrf.mxu3  ;;  %v3569_v37 = vpop.f32.mrf.mxu0 }
 0x786   :  { %v3834_v6 = vadd.f32 %v3833_v34, %v3745_v11  ;;  %v3570_v24 = vadd.f32 %v3569_v37, %v5427_v53  ;;  %4062 = vmatmul.bf16.gmra.mxu2 %v5879_v59 }
 0x788   :  { %3884 = vmatmul.bf16.gmra.mxu0 %v5877_v5  ;;  %v4303_v21 = vmax.f32 %v3834_v6, 0.0  ;;  %v3659_v52 = vadd.f32 %v3658_v16, %v3570_v24 }
 0x789   :  { %v3747_v60 = vpop.f32.mrf.mxu2  ;;  %v3660_v44 = vpop.f32.mrf.mxu1 }
 0x78a   :  { %4151 = vmatmul.bf16.gmra.mxu3 %v5158_v46  ;;  %4431 = vst [vmem:[#allocation10 + $0x2b0] sm:$0xff] %v4303_v21  ;;  %v3748_v51 = vadd.f32 %v3747_v60, %v3659_v52 }
 0x78d   :  { %v3836_v33 = vpop.f32.mrf.mxu3  ;;  %v3571_v3 = vpop.f32.mrf.mxu0 }
 0x78e   :  { %v3837_v56 = vadd.f32 %v3836_v33, %v3748_v51  ;;  %v3572_v1 = vadd.f32 %v3571_v3, %v5427_v53 }
 0x790   :  { %v4307_v47 = vmax.f32 %v3837_v56, 0.0  ;;  %v3661_v5 = vadd.f32 %v3660_v44, %v3572_v1 }
 0x791   :  { %v3749_v55 = vpop.f32.mrf.mxu2  ;;  %v3663_v59 = vpop.f32.mrf.mxu1 }
 0x792   :  { %4435 = vst [vmem:[#allocation10 + $0x2d0] sm:$0xff] %v4307_v47  ;;  %v3750_v12 = vadd.f32 %v3749_v55, %v3661_v5 }
 0x794   :  { %3978 = vmatmul.bf16.gmra.mxu1 %v5882_v43 }
 0x795   :  { %v3838_v35 = vpop.f32.mrf.mxu3  ;;  %v3574_v62 = vpop.f32.mrf.mxu0 }
 0x796   :  { %v3839_v58 = vadd.f32 %v3838_v35, %v3750_v12  ;;  %v3575_v46 = vadd.f32 %v3574_v62, %v5427_v53  ;;  %4067 = vmatmul.bf16.gmra.mxu2 %v5883_v26  ;;  %v5958_v35 = vld [vmem:[#allocation47_spill] sm:$0xff] }
 0x798   :  { %3889 = vmatmul.bf16.gmra.mxu0 %v5881_v50  ;;  %v4311_v4 = vmax.f32 %v3839_v58, 0.0  ;;  %v3664_v18 = vadd.f32 %v3663_v59, %v3575_v46  ;;  %v5959_v59 = vld [vmem:[#allocation61_spill] sm:$0xff]  ;;  %v5960_v58 = vld [vmem:[#allocation76_spill] sm:$0xff] }
 0x799   :  { %v3752_v31 = vpop.f32.mrf.mxu2  ;;  %v3665_v14 = vpop.f32.mrf.mxu1  ;;  %v5961_v46 = vld [vmem:[#allocation17_spill] sm:$0xff] }
 0x79a   :  { %4156 = vmatmul.bf16.gmra.mxu3 %v5164_v42  ;;  %4439 = vst [vmem:[#allocation10 + $0x2f0] sm:$0xff] %v4311_v4  ;;  %v3753_v25 = vadd.f32 %v3752_v31, %v3664_v18 }
 0x79d   :  { %v3841_v19 = vpop.f32.mrf.mxu3  ;;  %v3576_v49 = vpop.f32.mrf.mxu0 }
 0x79e   :  { %v3842_v30 = vadd.f32 %v3841_v19, %v3753_v25  ;;  %v3577_v29 = vadd.f32 %v3576_v49, %v5427_v53 }
 0x7a0   :  { %v4315_v11 = vmax.f32 %v3842_v30, 0.0  ;;  %v3666_v50 = vadd.f32 %v3665_v14, %v3577_v29 }
 0x7a1   :  { %v3754_v34 = vpop.f32.mrf.mxu2  ;;  %v3668_v26 = vpop.f32.mrf.mxu1 }
 0x7a2   :  { %4443 = vst [vmem:[#allocation10 + $0x310] sm:$0xff] %v4315_v11  ;;  %v3755_v37 = vadd.f32 %v3754_v34, %v3666_v50 }
 0x7a4   :  { %3983 = vmatmul.bf16.gmra.mxu1 %v5885_v38 }
 0x7a5   :  { %v3843_v43 = vpop.f32.mrf.mxu3  ;;  %v3579_v16 = vpop.f32.mrf.mxu0 }
 0x7a6   :  { %v3844_v6 = vadd.f32 %v3843_v43, %v3755_v37  ;;  %v3580_v42 = vadd.f32 %v3579_v16, %v5427_v53  ;;  %4072 = vmatmul.bf16.gmra.mxu2 %v5886_v45 }
 0x7a8   :  { %3894 = vmatmul.bf16.gmra.mxu0 %v5884_v41  ;;  %v4319_v24 = vmax.f32 %v3844_v6, 0.0  ;;  %v3669_v21 = vadd.f32 %v3668_v26, %v3580_v42 }
 0x7a9   :  { %v3757_v52 = vpop.f32.mrf.mxu2  ;;  %v3670_v3 = vpop.f32.mrf.mxu1 }
 0x7aa   :  { %4161 = vmatmul.bf16.gmra.mxu3 %v5170_v28  ;;  %4447 = vst [vmem:[#allocation10 + $0x330] sm:$0xff] %v4319_v24  ;;  %v3758_v60 = vadd.f32 %v3757_v52, %v3669_v21  ;;  %v5962_v24 = vld [vmem:[#allocation77_spill] sm:$0xff]  ;;  %v5963_v21 = vld [vmem:[#allocation18_spill] sm:$0xff] }
 0x7ad   :  { %v3846_v51 = vpop.f32.mrf.mxu3  ;;  %v3581_v33 = vpop.f32.mrf.mxu0 }
 0x7ae   :  { %v3847_v44 = vadd.f32 %v3846_v51, %v3758_v60  ;;  %v3582_v56 = vadd.f32 %v3581_v33, %v5427_v53 }
 0x7b0   :  { %v4323_v1 = vmax.f32 %v3847_v44, 0.0  ;;  %v3671_v41 = vadd.f32 %v3670_v3, %v3582_v56 }
 0x7b1   :  { %v3759_v47 = vpop.f32.mrf.mxu2  ;;  %v3673_v45 = vpop.f32.mrf.mxu1 }
 0x7b2   :  { %4451 = vst [vmem:[#allocation10 + $0x350] sm:$0xff] %v4323_v1  ;;  %v3760_v5 = vadd.f32 %v3759_v47, %v3671_v41  ;;  %v5964_v47 = vld [vmem:[#allocation24_spill] sm:$0xff] }
 0x7b4   :  { %3988 = vmatmul.bf16.gmra.mxu1 %v5959_v59 }
 0x7b5   :  { %v3848_v38 = vpop.f32.mrf.mxu3  ;;  %v3584_v55 = vpop.f32.mrf.mxu0 }
 0x7b6   :  { %v3849_v12 = vadd.f32 %v3848_v38, %v3760_v5  ;;  %v3585_v28 = vadd.f32 %v3584_v55, %v5427_v53  ;;  %4077 = vmatmul.bf16.gmra.mxu2 %v5960_v58  ;;  %v5526_v5 = vperm.slane %v5964_v47, 3  ;;  %v5966_v58 = vld [vmem:[#allocation63_spill] sm:$0xff] }
 0x7b8   :  { %3899 = vmatmul.bf16.gmra.mxu0 %v5958_v35  ;;  %v4327_v62 = vmax.f32 %v3849_v12, 0.0  ;;  %v3674_v4 = vadd.f32 %v3673_v45, %v3585_v28 }
 0x7b9   :  { %v3762_v18 = vpop.f32.mrf.mxu2  ;;  %v3675_v49 = vpop.f32.mrf.mxu1 }
 0x7ba   :  { %4166 = vmatmul.bf16.gmra.mxu3 %v5961_v46  ;;  %4455 = vst [vmem:[#allocation10 + $0x370] sm:$0xff] %v4327_v62  ;;  %v3763_v31 = vadd.f32 %v3762_v18, %v3674_v4  ;;  %v5965_v62 = vld [vmem:[#allocation49_spill] sm:$0xff]  ;;  %v5968_v46 = vld [vmem:[#allocation19_spill] sm:$0xff] }
 0x7bd   :  { %v3851_v25 = vpop.f32.mrf.mxu3  ;;  %v3586_v19 = vpop.f32.mrf.mxu0 }
 0x7be   :  { %v3852_v14 = vadd.f32 %v3851_v25, %v3763_v31  ;;  %v3587_v30 = vadd.f32 %v3586_v19, %v5427_v53 }
 0x7c0   :  { %v4331_v29 = vmax.f32 %v3852_v14, 0.0  ;;  %v3676_v11 = vadd.f32 %v3675_v49, %v3587_v30 }
 0x7c1   :  { %v3764_v50 = vpop.f32.mrf.mxu2  ;;  %v3678_v16 = vpop.f32.mrf.mxu1 }
 0x7c2   :  { %4459 = vst [vmem:[#allocation10 + $0x390] sm:$0xff] %v4331_v29  ;;  %v3765_v34 = vadd.f32 %v3764_v50, %v3676_v11 }
 0x7c4   :  { %3993 = vmatmul.bf16.gmra.mxu1 %v5891_v57 }
 0x7c5   :  { %v3853_v37 = vpop.f32.mrf.mxu3  ;;  %v3589_v43 = vpop.f32.mrf.mxu0 }
 0x7c6   :  { %v3854_v26 = vadd.f32 %v3853_v37, %v3765_v34  ;;  %v3590_v6 = vadd.f32 %v3589_v43, %v5427_v53  ;;  %4082 = vmatmul.bf16.gmra.mxu2 %v5962_v24 }
 0x7c8   :  { %3904 = vmatmul.bf16.gmra.mxu0 %v5890_v22  ;;  %v4335_v42 = vmax.f32 %v3854_v26, 0.0  ;;  %v3679_v52 = vadd.f32 %v3678_v16, %v3590_v6 }
 0x7c9   :  { %v3767_v60 = vpop.f32.mrf.mxu2  ;;  %v3680_v44 = vpop.f32.mrf.mxu1 }
 0x7ca   :  { %4171 = vmatmul.bf16.gmra.mxu3 %v5963_v21  ;;  %4463 = vst [vmem:[#allocation10 + $0x3b0] sm:$0xff] %v4335_v42  ;;  %v3768_v51 = vadd.f32 %v3767_v60, %v3679_v52 }
 0x7cd   :  { %v3856_v33 = vpop.f32.mrf.mxu3  ;;  %v3591_v3 = vpop.f32.mrf.mxu0 }
 0x7ce   :  { %v3857_v56 = vadd.f32 %v3856_v33, %v3768_v51  ;;  %v3592_v1 = vadd.f32 %v3591_v3, %v5427_v53  ;;  %v5967_v53 = vld [vmem:[#allocation78_spill] sm:$0xff] }
 0x7d0   :  { %v4339_v41 = vmax.f32 %v3857_v56, 0.0  ;;  %v3681_v22 = vadd.f32 %v3680_v44, %v3592_v1 }
 0x7d1   :  { %v3769_v57 = vpop.f32.mrf.mxu2  ;;  %v3959_v12 = vpop.f32.mrf.mxu1 }
 0x7d2   :  { %4467 = vst [vmem:[#allocation10 + $0x3d0] sm:$0xff] %v4339_v41  ;;  %v3770_v38 = vadd.f32 %v3769_v57, %v3681_v22  ;;  %v5969_v57 = vld [vmem:[#allocation51_spill] sm:$0xff] }
 0x7d4   :  { %3998 = vmatmul.bf16.gmra.mxu1 %v5966_v58 }
 0x7d5   :  { %v3858_v55 = vpop.f32.mrf.mxu3  ;;  %v3870_v45 = vpop.f32.mrf.mxu0 }
 0x7d6   :  { %v3859_v28 = vadd.f32 %v3858_v55, %v3770_v38  ;;  %v3871_v35 = vadd.f32 %v3870_v45, %v5526_v5  ;;  %4087 = vmatmul.bf16.gmra.mxu2 %v5967_v53  ;;  %v5970_v55 = vld [vmem:[#allocation65_spill] sm:$0xff]  ;;  %v5971_v45 = vld [vmem:[#allocation79_spill] sm:$0xff] }
 0x7d8   :  { %3909 = vmatmul.bf16.gmra.mxu0 %v5965_v62  ;;  %v4343_v59 = vmax.f32 %v3859_v28, 0.0  ;;  %v3960_v4 = vadd.f32 %v3959_v12, %v3871_v35  ;;  %v5972_v12 = vld [vmem:[#allocation20_spill] sm:$0xff] }
 0x7d9   :  { %v4048_v18 = vpop.f32.mrf.mxu2  ;;  %v3961_v49 = vpop.f32.mrf.mxu1 }
 0x7da   :  { %4176 = vmatmul.bf16.gmra.mxu3 %v5968_v46  ;;  %4471 = vst [vmem:[#allocation10 + $0x3f0] sm:$0xff] %v4343_v59  ;;  %v4049_v31 = vadd.f32 %v4048_v18, %v3960_v4 }
 0x7dd   :  { %v4137_v25 = vpop.f32.mrf.mxu3  ;;  %v3872_v19 = vpop.f32.mrf.mxu0 }
 0x7de   :  { %v4138_v14 = vadd.f32 %v4137_v25, %v4049_v31  ;;  %v3873_v30 = vadd.f32 %v3872_v19, %v5526_v5 }
 0x7e0   :  { %v4220_v29 = vmax.f32 %v4138_v14, 0.0  ;;  %v3962_v11 = vadd.f32 %v3961_v49, %v3873_v30 }
 0x7e1   :  { %v4050_v50 = vpop.f32.mrf.mxu2  ;;  %v3964_v16 = vpop.f32.mrf.mxu1 }
 0x7e2   :  { %4348 = vst [vmem:[#allocation10 + $0x18] sm:$0xff] %v4220_v29  ;;  %v4051_v34 = vadd.f32 %v4050_v50, %v3962_v11 }
 0x7e4   :  { %4003 = vmatmul.bf16.gmra.mxu1 %v5896_v9 }
 0x7e5   :  { %v4139_v37 = vpop.f32.mrf.mxu3  ;;  %v3875_v43 = vpop.f32.mrf.mxu0 }
 0x7e6   :  { %v4140_v26 = vadd.f32 %v4139_v37, %v4051_v34  ;;  %v3876_v6 = vadd.f32 %v3875_v43, %v5526_v5  ;;  %4092 = vmatmul.bf16.gmra.mxu2 %v5098_v61 }
 0x7e8   :  { %3914 = vmatmul.bf16.gmra.mxu0 %v5895_v54  ;;  %v4224_v42 = vmax.f32 %v4140_v26, 0.0  ;;  %v3965_v24 = vadd.f32 %v3964_v16, %v3876_v6 }
 0x7e9   :  { %v4053_v21 = vpop.f32.mrf.mxu2  ;;  %v3966_v33 = vpop.f32.mrf.mxu1 }
 0x7ea   :  { %4181 = vmatmul.bf16.gmra.mxu3 %v5194_v32  ;;  %4352 = vst [vmem:[#allocation10 + $0x38] sm:$0xff] %v4224_v42  ;;  %v4054_v52 = vadd.f32 %v4053_v21, %v3965_v24 }
 0x7ed   :  { %v4142_v60 = vpop.f32.mrf.mxu3  ;;  %v3877_v51 = vpop.f32.mrf.mxu0 }
 0x7ee   :  { %v4143_v3 = vadd.f32 %v4142_v60, %v4054_v52  ;;  %v3878_v44 = vadd.f32 %v3877_v51, %v5526_v5 }
 0x7f0   :  { %v4228_v56 = vmax.f32 %v4143_v3, 0.0  ;;  %v3967_v54 = vadd.f32 %v3966_v33, %v3878_v44  ;;  %v5973_v3 = vld [vmem:[#allocation53_spill] sm:$0xff] }
 0x7f1   :  { %v4055_v1 = vpop.f32.mrf.mxu2  ;;  %v3969_v61 = vpop.f32.mrf.mxu1 }
 0x7f2   :  { %4356 = vst [vmem:[#allocation10 + $0x58] sm:$0xff] %v4228_v56  ;;  %v4056_v41 = vadd.f32 %v4055_v1, %v3967_v54  ;;  %v5974_v56 = vld [vmem:[#allocation67_spill] sm:$0xff]  ;;  %v5975_v54 = vld [vmem:[#allocation80_spill] sm:$0xff]  ;;  %v5976_v1 = vld [vmem:[#allocation22_spill] sm:$0xff] }
 0x7f4   :  { %4008 = vmatmul.bf16.gmra.mxu1 %v5970_v55 }
 0x7f5   :  { %v4144_v9 = vpop.f32.mrf.mxu3  ;;  %v3880_v22 = vpop.f32.mrf.mxu0 }
 0x7f6   :  { %v4145_v47 = vadd.f32 %v4144_v9, %v4056_v41  ;;  %v3881_v32 = vadd.f32 %v3880_v22, %v5526_v5  ;;  %4097 = vmatmul.bf16.gmra.mxu2 %v5971_v45 }
 0x7f8   :  { %3919 = vmatmul.bf16.gmra.mxu0 %v5969_v57  ;;  %v4232_v38 = vmax.f32 %v4145_v47, 0.0  ;;  %v3970_v28 = vadd.f32 %v3969_v61, %v3881_v32 }
 0x7f9   :  { %v4058_v35 = vpop.f32.mrf.mxu2  ;;  %v3971_v53 = vpop.f32.mrf.mxu1 }
 0x7fa   :  { %4186 = vmatmul.bf16.gmra.mxu3 %v5972_v12  ;;  %4360 = vst [vmem:[#allocation10 + $0x78] sm:$0xff] %v4232_v38  ;;  %v4059_v62 = vadd.f32 %v4058_v35, %v3970_v28 }
 0x7fd   :  { %v4147_v59 = vpop.f32.mrf.mxu3  ;;  %v3882_v58 = vpop.f32.mrf.mxu0 }
 0x7fe   :  { %v4148_v46 = vadd.f32 %v4147_v59, %v4059_v62  ;;  %v3883_v4 = vadd.f32 %v3882_v58, %v5526_v5 }
 0x800   :  { %v4236_v18 = vmax.f32 %v4148_v46, 0.0  ;;  %v3972_v31 = vadd.f32 %v3971_v53, %v3883_v4 }
 0x801   :  { %v4060_v25 = vpop.f32.mrf.mxu2  ;;  %v3974_v30 = vpop.f32.mrf.mxu1 }
 0x802   :  { %4364 = vst [vmem:[#allocation10 + $0x98] sm:$0xff] %v4236_v18  ;;  %v4061_v19 = vadd.f32 %v4060_v25, %v3972_v31 }
 0x804   :  { %4013 = vmatmul.bf16.gmra.mxu1 %v5900_v63 }
 0x805   :  { %v4149_v49 = vpop.f32.mrf.mxu3  ;;  %v3885_v14 = vpop.f32.mrf.mxu0 }
 0x806   :  { %v4150_v29 = vadd.f32 %v4149_v49, %v4061_v19  ;;  %v3886_v11 = vadd.f32 %v3885_v14, %v5526_v5  ;;  %4102 = vmatmul.bf16.gmra.mxu2 %v5110_v39 }
 0x808   :  { %3924 = vmatmul.bf16.gmra.mxu0 %v5899_v48  ;;  %v4240_v50 = vmax.f32 %v4150_v29, 0.0  ;;  %v3975_v34 = vadd.f32 %v3974_v30, %v3886_v11 }
 0x809   :  { %v4063_v37 = vpop.f32.mrf.mxu2  ;;  %v3976_v6 = vpop.f32.mrf.mxu1 }
 0x80a   :  { %4191 = vmatmul.bf16.gmra.mxu3 %v5206_v10  ;;  %4368 = vst [vmem:[#allocation10 + $0xb8] sm:$0xff] %v4240_v50  ;;  %v4064_v43 = vadd.f32 %v4063_v37, %v3975_v34 }
 0x80d   :  { %v4152_v16 = vpop.f32.mrf.mxu3  ;;  %v3887_v26 = vpop.f32.mrf.mxu0 }
 0x80e   :  { %v4153_v42 = vadd.f32 %v4152_v16, %v4064_v43  ;;  %v3888_v24 = vadd.f32 %v3887_v26, %v5526_v5 }
 0x810   :  { %v4244_v21 = vmax.f32 %v4153_v42, 0.0  ;;  %v3977_v48 = vadd.f32 %v3976_v6, %v3888_v24 }
 0x811   :  { %v4065_v52 = vpop.f32.mrf.mxu2  ;;  %v3979_v39 = vpop.f32.mrf.mxu1 }
 0x812   :  { %4372 = vst [vmem:[#allocation10 + $0xd8] sm:$0xff] %v4244_v21  ;;  %v4066_v60 = vadd.f32 %v4065_v52, %v3977_v48 }
 0x814   :  { %4018 = vmatmul.bf16.gmra.mxu1 %v5974_v56 }
 0x815   :  { %v4154_v63 = vpop.f32.mrf.mxu3  ;;  %v3890_v51 = vpop.f32.mrf.mxu0 }
 0x816   :  { %v4155_v33 = vadd.f32 %v4154_v63, %v4066_v60  ;;  %v3891_v10 = vadd.f32 %v3890_v51, %v5526_v5  ;;  %4107 = vmatmul.bf16.gmra.mxu2 %v5975_v54 }
 0x818   :  { %3929 = vmatmul.bf16.gmra.mxu0 %v5973_v3  ;;  %v4248_v44 = vmax.f32 %v4155_v33, 0.0  ;;  %v3980_v41 = vadd.f32 %v3979_v39, %v3891_v10 }
 0x819   :  { %v4068_v9 = vpop.f32.mrf.mxu2  ;;  %v3981_v32 = vpop.f32.mrf.mxu1 }
 0x81a   :  { %4196 = vmatmul.bf16.gmra.mxu3 %v5976_v1  ;;  %4376 = vst [vmem:[#allocation10 + $0xf8] sm:$0xff] %v4248_v44  ;;  %v4069_v22 = vadd.f32 %v4068_v9, %v3980_v41 }
 0x81d   :  { %v4157_v61 = vpop.f32.mrf.mxu3  ;;  %v3892_v47 = vpop.f32.mrf.mxu0 }
 0x81e   :  { %v4158_v57 = vadd.f32 %v4157_v61, %v4069_v22  ;;  %v3893_v38 = vadd.f32 %v3892_v47, %v5526_v5 }
 0x820   :  { %v4252_v55 = vmax.f32 %v4158_v57, 0.0  ;;  %v3982_v45 = vadd.f32 %v3981_v32, %v3893_v38 }
 0x821   :  { %v4070_v12 = vpop.f32.mrf.mxu2  ;;  %v3984_v59 = vpop.f32.mrf.mxu1 }
 0x822   :  { %4380 = vst [vmem:[#allocation10 + $0x118] sm:$0xff] %v4252_v55  ;;  %v4071_v28 = vadd.f32 %v4070_v12, %v3982_v45 }
 0x824   :  { %4023 = vmatmul.bf16.gmra.mxu1 %v5904_v7 }
 0x825   :  { %v4159_v35 = vpop.f32.mrf.mxu3  ;;  %v3895_v62 = vpop.f32.mrf.mxu0 }
 0x826   :  { %v4160_v58 = vadd.f32 %v4159_v35, %v4071_v28  ;;  %v3896_v53 = vadd.f32 %v3895_v62, %v5526_v5  ;;  %4112 = vmatmul.bf16.gmra.mxu2 %v5122_v17 }
 0x828   :  { %3934 = vmatmul.bf16.gmra.mxu0 %v5903_v36  ;;  %v4256_v46 = vmax.f32 %v4160_v58, 0.0  ;;  %v3985_v4 = vadd.f32 %v3984_v59, %v3896_v53 }
 0x829   :  { %v4073_v18 = vpop.f32.mrf.mxu2  ;;  %v3986_v49 = vpop.f32.mrf.mxu1 }
 0x82a   :  { %4201 = vmatmul.bf16.gmra.mxu3 %v5218_v40  ;;  %4384 = vst [vmem:[#allocation10 + $0x138] sm:$0xff] %v4256_v46  ;;  %v4074_v31 = vadd.f32 %v4073_v18, %v3985_v4 }
 0x82d   :  { %v4162_v25 = vpop.f32.mrf.mxu3  ;;  %v3897_v19 = vpop.f32.mrf.mxu0 }
 0x82e   :  { %v4163_v14 = vadd.f32 %v4162_v25, %v4074_v31  ;;  %v3898_v30 = vadd.f32 %v3897_v19, %v5526_v5 }
 0x830   :  { %v4260_v29 = vmax.f32 %v4163_v14, 0.0  ;;  %v3987_v36 = vadd.f32 %v3986_v49, %v3898_v30 }
 0x831   :  { %v4075_v11 = vpop.f32.mrf.mxu2  ;;  %v3989_v17 = vpop.f32.mrf.mxu1 }
 0x832   :  { %4388 = vst [vmem:[#allocation10 + $0x158] sm:$0xff] %v4260_v29  ;;  %v4076_v50 = vadd.f32 %v4075_v11, %v3987_v36 }
 0x834   :  { %4028 = vmatmul.bf16.gmra.mxu1 %v5953_v8 }
 0x835   :  { %v4164_v7 = vpop.f32.mrf.mxu3  ;;  %v3900_v34 = vpop.f32.mrf.mxu0 }
 0x836   :  { %v4165_v37 = vadd.f32 %v4164_v7, %v4076_v50  ;;  %v3901_v40 = vadd.f32 %v3900_v34, %v5526_v5  ;;  %4117 = vmatmul.bf16.gmra.mxu2 %v5954_v20 }
 0x838   :  { %3939 = vmatmul.bf16.gmra.mxu0 %v5952_v23  ;;  %v4264_v43 = vmax.f32 %v4165_v37, 0.0  ;;  %v3990_v16 = vadd.f32 %v3989_v17, %v3901_v40 }
 0x839   :  { %v4078_v26 = vpop.f32.mrf.mxu2  ;;  %v3991_v21 = vpop.f32.mrf.mxu1 }
 0x83a   :  { %4206 = vmatmul.bf16.gmra.mxu3 %v5955_v2  ;;  %4392 = vst [vmem:[#allocation10 + $0x178] sm:$0xff] %v4264_v43  ;;  %v4079_v6 = vadd.f32 %v4078_v26, %v3990_v16 }
 0x83d   :  { %v4167_v42 = vpop.f32.mrf.mxu3  ;;  %v3902_v24 = vpop.f32.mrf.mxu0 }
 0x83e   :  { %v4168_v48 = vadd.f32 %v4167_v42, %v4079_v6  ;;  %v3903_v52 = vadd.f32 %v3902_v24, %v5526_v5 }
 0x840   :  { %v4268_v60 = vmax.f32 %v4168_v48, 0.0  ;;  %v3992_v23 = vadd.f32 %v3991_v21, %v3903_v52 }
 0x841   :  { %v4080_v63 = vpop.f32.mrf.mxu2  ;;  %v3994_v20 = vpop.f32.mrf.mxu1 }
 0x842   :  { %4396 = vst [vmem:[#allocation10 + $0x198] sm:$0xff] %v4268_v60  ;;  %v4081_v51 = vadd.f32 %v4080_v63, %v3992_v23 }
 0x844   :  { %4033 = vmatmul.bf16.gmra.mxu1 %v5908_v13 }
 0x845   :  { %v4169_v8 = vpop.f32.mrf.mxu3  ;;  %v3905_v39 = vpop.f32.mrf.mxu0 }
 0x846   :  { %v4170_v33 = vadd.f32 %v4169_v8, %v4081_v51  ;;  %v3906_v2 = vadd.f32 %v3905_v39, %v5526_v5  ;;  %4122 = vmatmul.bf16.gmra.mxu2 %v5134_v27 }
 0x848   :  { %3944 = vmatmul.bf16.gmra.mxu0 %v5907_v0  ;;  %v4272_v10 = vmax.f32 %v4170_v33, 0.0  ;;  %v3995_v3 = vadd.f32 %v3994_v20, %v3906_v2 }
 0x849   :  { %v4083_v44 = vpop.f32.mrf.mxu2  ;;  %v3996_v41 = vpop.f32.mrf.mxu1 }
 0x84a   :  { %4211 = vmatmul.bf16.gmra.mxu3 %v5233_v15  ;;  %4400 = vst [vmem:[#allocation10 + $0x1b8] sm:$0xff] %v4272_v10  ;;  %v4084_v56 = vadd.f32 %v4083_v44, %v3995_v3 }
 0x84d   :  { %v4172_v54 = vpop.f32.mrf.mxu3  ;;  %v3907_v1 = vpop.f32.mrf.mxu0 }
 0x84e   :  { %v4173_v9 = vadd.f32 %v4172_v54, %v4084_v56  ;;  %v3908_v22 = vadd.f32 %v3907_v1, %v5526_v5 }
 0x850   :  { %v4276_v61 = vmax.f32 %v4173_v9, 0.0  ;;  %v3997_v0 = vadd.f32 %v3996_v41, %v3908_v22 }
 0x851   :  { %v4085_v47 = vpop.f32.mrf.mxu2  ;;  %v3999_v27 = vpop.f32.mrf.mxu1 }
 0x852   :  { %4404 = vst [vmem:[#allocation10 + $0x1d8] sm:$0xff] %v4276_v61  ;;  %v4086_v32 = vadd.f32 %v4085_v47, %v3997_v0 }
 0x855   :  { %v4174_v13 = vpop.f32.mrf.mxu3  ;;  %v3910_v57 = vpop.f32.mrf.mxu0 }
 0x856   :  { %v4175_v38 = vadd.f32 %v4174_v13, %v4086_v32  ;;  %v3911_v15 = vadd.f32 %v3910_v57, %v5526_v5 }
 0x858   :  { %v4280_v55 = vmax.f32 %v4175_v38, 0.0  ;;  %v4000_v45 = vadd.f32 %v3999_v27, %v3911_v15 }
 0x859   :  { %v4088_v12 = vpop.f32.mrf.mxu2  ;;  %v4001_v59 = vpop.f32.mrf.mxu1 }
 0x85a   :  { %4408 = vst [vmem:[#allocation10 + $0x1f8] sm:$0xff] %v4280_v55  ;;  %v4089_v28 = vadd.f32 %v4088_v12, %v4000_v45 }
 0x85d   :  { %v4177_v35 = vpop.f32.mrf.mxu3  ;;  %v3912_v62 = vpop.f32.mrf.mxu0 }
 0x85e   :  { %v4178_v58 = vadd.f32 %v4177_v35, %v4089_v28  ;;  %v3913_v53 = vadd.f32 %v3912_v62, %v5526_v5 }
 0x860   :  { %v4284_v46 = vmax.f32 %v4178_v58, 0.0  ;;  %v4002_v4 = vadd.f32 %v4001_v59, %v3913_v53 }
 0x861   :  { %v4090_v18 = vpop.f32.mrf.mxu2  ;;  %v4004_v49 = vpop.f32.mrf.mxu1 }
 0x862   :  { %4412 = vst [vmem:[#allocation10 + $0x218] sm:$0xff] %v4284_v46  ;;  %v4091_v31 = vadd.f32 %v4090_v18, %v4002_v4 }
 0x865   :  { %v4179_v25 = vpop.f32.mrf.mxu3  ;;  %v3915_v19 = vpop.f32.mrf.mxu0 }
 0x866   :  { %v4180_v14 = vadd.f32 %v4179_v25, %v4091_v31  ;;  %v3916_v30 = vadd.f32 %v3915_v19, %v5526_v5 }
 0x868   :  { %v4288_v29 = vmax.f32 %v4180_v14, 0.0  ;;  %v4005_v36 = vadd.f32 %v4004_v49, %v3916_v30 }
 0x869   :  { %v4093_v11 = vpop.f32.mrf.mxu2  ;;  %v4006_v17 = vpop.f32.mrf.mxu1 }
 0x86a   :  { %4416 = vst [vmem:[#allocation10 + $0x238] sm:$0xff] %v4288_v29  ;;  %v4094_v50 = vadd.f32 %v4093_v11, %v4005_v36 }
 0x86d   :  { %v4182_v7 = vpop.f32.mrf.mxu3  ;;  %v3917_v34 = vpop.f32.mrf.mxu0 }
 0x86e   :  { %v4183_v37 = vadd.f32 %v4182_v7, %v4094_v50  ;;  %v3918_v40 = vadd.f32 %v3917_v34, %v5526_v5 }
 0x870   :  { %v4292_v43 = vmax.f32 %v4183_v37, 0.0  ;;  %v4007_v16 = vadd.f32 %v4006_v17, %v3918_v40 }
 0x871   :  { %v4095_v26 = vpop.f32.mrf.mxu2  ;;  %v4009_v21 = vpop.f32.mrf.mxu1 }
 0x872   :  { %4420 = vst [vmem:[#allocation10 + $0x258] sm:$0xff] %v4292_v43  ;;  %v4096_v6 = vadd.f32 %v4095_v26, %v4007_v16 }
 0x875   :  { %v4184_v42 = vpop.f32.mrf.mxu3  ;;  %v3920_v24 = vpop.f32.mrf.mxu0 }
 0x876   :  { %v4185_v48 = vadd.f32 %v4184_v42, %v4096_v6  ;;  %v3921_v52 = vadd.f32 %v3920_v24, %v5526_v5 }
 0x878   :  { %v4296_v60 = vmax.f32 %v4185_v48, 0.0  ;;  %v4010_v23 = vadd.f32 %v4009_v21, %v3921_v52 }
 0x879   :  { %v4098_v63 = vpop.f32.mrf.mxu2  ;;  %v4011_v20 = vpop.f32.mrf.mxu1 }
 0x87a   :  { %4424 = vst [vmem:[#allocation10 + $0x278] sm:$0xff] %v4296_v60  ;;  %v4099_v51 = vadd.f32 %v4098_v63, %v4010_v23 }
 0x87d   :  { %v4187_v8 = vpop.f32.mrf.mxu3  ;;  %v3922_v39 = vpop.f32.mrf.mxu0 }
 0x87e   :  { %v4188_v33 = vadd.f32 %v4187_v8, %v4099_v51  ;;  %v3923_v2 = vadd.f32 %v3922_v39, %v5526_v5 }
 0x880   :  { %v4300_v10 = vmax.f32 %v4188_v33, 0.0  ;;  %v4012_v3 = vadd.f32 %v4011_v20, %v3923_v2 }
 0x881   :  { %v4100_v44 = vpop.f32.mrf.mxu2  ;;  %v4014_v41 = vpop.f32.mrf.mxu1 }
 0x882   :  { %4428 = vst [vmem:[#allocation10 + $0x298] sm:$0xff] %v4300_v10  ;;  %v4101_v56 = vadd.f32 %v4100_v44, %v4012_v3 }
 0x885   :  { %v4189_v54 = vpop.f32.mrf.mxu3  ;;  %v3925_v1 = vpop.f32.mrf.mxu0 }
 0x886   :  { %v4190_v9 = vadd.f32 %v4189_v54, %v4101_v56  ;;  %v3926_v22 = vadd.f32 %v3925_v1, %v5526_v5 }
 0x888   :  { %v4304_v61 = vmax.f32 %v4190_v9, 0.0  ;;  %v4015_v0 = vadd.f32 %v4014_v41, %v3926_v22 }
 0x889   :  { %v4103_v47 = vpop.f32.mrf.mxu2  ;;  %v4016_v27 = vpop.f32.mrf.mxu1 }
 0x88a   :  { %4432 = vst [vmem:[#allocation10 + $0x2b8] sm:$0xff] %v4304_v61  ;;  %v4104_v32 = vadd.f32 %v4103_v47, %v4015_v0 }
 0x88d   :  { %v4192_v13 = vpop.f32.mrf.mxu3  ;;  %v3927_v57 = vpop.f32.mrf.mxu0 }
 0x88e   :  { %v4193_v38 = vadd.f32 %v4192_v13, %v4104_v32  ;;  %v3928_v15 = vadd.f32 %v3927_v57, %v5526_v5 }
 0x890   :  { %v4308_v55 = vmax.f32 %v4193_v38, 0.0  ;;  %v4017_v45 = vadd.f32 %v4016_v27, %v3928_v15 }
 0x891   :  { %v4105_v12 = vpop.f32.mrf.mxu2  ;;  %v4019_v59 = vpop.f32.mrf.mxu1 }
 0x892   :  { %4436 = vst [vmem:[#allocation10 + $0x2d8] sm:$0xff] %v4308_v55  ;;  %v4106_v28 = vadd.f32 %v4105_v12, %v4017_v45 }
 0x895   :  { %v4194_v35 = vpop.f32.mrf.mxu3  ;;  %v3930_v62 = vpop.f32.mrf.mxu0 }
 0x896   :  { %v4195_v58 = vadd.f32 %v4194_v35, %v4106_v28  ;;  %v3931_v53 = vadd.f32 %v3930_v62, %v5526_v5 }
 0x898   :  { %v4312_v46 = vmax.f32 %v4195_v58, 0.0  ;;  %v4020_v4 = vadd.f32 %v4019_v59, %v3931_v53 }
 0x899   :  { %v4108_v18 = vpop.f32.mrf.mxu2  ;;  %v4021_v49 = vpop.f32.mrf.mxu1 }
 0x89a   :  { %4440 = vst [vmem:[#allocation10 + $0x2f8] sm:$0xff] %v4312_v46  ;;  %v4109_v31 = vadd.f32 %v4108_v18, %v4020_v4 }
 0x89d   :  { %v4197_v25 = vpop.f32.mrf.mxu3  ;;  %v3932_v19 = vpop.f32.mrf.mxu0 }
 0x89e   :  { %v4198_v14 = vadd.f32 %v4197_v25, %v4109_v31  ;;  %v3933_v30 = vadd.f32 %v3932_v19, %v5526_v5 }
 0x8a0   :  { %v4316_v29 = vmax.f32 %v4198_v14, 0.0  ;;  %v4022_v36 = vadd.f32 %v4021_v49, %v3933_v30 }
 0x8a1   :  { %v4110_v11 = vpop.f32.mrf.mxu2  ;;  %v4024_v17 = vpop.f32.mrf.mxu1 }
 0x8a2   :  { %4444 = vst [vmem:[#allocation10 + $0x318] sm:$0xff] %v4316_v29  ;;  %v4111_v50 = vadd.f32 %v4110_v11, %v4022_v36 }
 0x8a5   :  { %v4199_v7 = vpop.f32.mrf.mxu3  ;;  %v3935_v34 = vpop.f32.mrf.mxu0 }
 0x8a6   :  { %v4200_v37 = vadd.f32 %v4199_v7, %v4111_v50  ;;  %v3936_v40 = vadd.f32 %v3935_v34, %v5526_v5 }
 0x8a8   :  { %v4320_v43 = vmax.f32 %v4200_v37, 0.0  ;;  %v4025_v16 = vadd.f32 %v4024_v17, %v3936_v40 }
 0x8a9   :  { %v4113_v26 = vpop.f32.mrf.mxu2  ;;  %v4026_v21 = vpop.f32.mrf.mxu1 }
 0x8aa   :  { %4448 = vst [vmem:[#allocation10 + $0x338] sm:$0xff] %v4320_v43  ;;  %v4114_v6 = vadd.f32 %v4113_v26, %v4025_v16 }
 0x8ad   :  { %v4202_v42 = vpop.f32.mrf.mxu3  ;;  %v3937_v24 = vpop.f32.mrf.mxu0 }
 0x8ae   :  { %v4203_v48 = vadd.f32 %v4202_v42, %v4114_v6  ;;  %v3938_v52 = vadd.f32 %v3937_v24, %v5526_v5 }
 0x8b0   :  { %v4324_v60 = vmax.f32 %v4203_v48, 0.0  ;;  %v4027_v23 = vadd.f32 %v4026_v21, %v3938_v52 }
 0x8b1   :  { %v4115_v63 = vpop.f32.mrf.mxu2  ;;  %v4029_v20 = vpop.f32.mrf.mxu1 }
 0x8b2   :  { %4452 = vst [vmem:[#allocation10 + $0x358] sm:$0xff] %v4324_v60  ;;  %v4116_v51 = vadd.f32 %v4115_v63, %v4027_v23 }
 0x8b5   :  { %v4204_v8 = vpop.f32.mrf.mxu3  ;;  %v3940_v39 = vpop.f32.mrf.mxu0 }
 0x8b6   :  { %v4205_v33 = vadd.f32 %v4204_v8, %v4116_v51  ;;  %v3941_v2 = vadd.f32 %v3940_v39, %v5526_v5 }
 0x8b8   :  { %v4328_v10 = vmax.f32 %v4205_v33, 0.0  ;;  %v4030_v3 = vadd.f32 %v4029_v20, %v3941_v2 }
 0x8b9   :  { %v4118_v44 = vpop.f32.mrf.mxu2  ;;  %v4031_v41 = vpop.f32.mrf.mxu1 }
 0x8ba   :  { %4456 = vst [vmem:[#allocation10 + $0x378] sm:$0xff] %v4328_v10  ;;  %v4119_v56 = vadd.f32 %v4118_v44, %v4030_v3 }
 0x8bd   :  { %v4207_v54 = vpop.f32.mrf.mxu3  ;;  %v3942_v1 = vpop.f32.mrf.mxu0 }
 0x8be   :  { %v4208_v9 = vadd.f32 %v4207_v54, %v4119_v56  ;;  %v3943_v22 = vadd.f32 %v3942_v1, %v5526_v5 }
 0x8c0   :  { %v4332_v61 = vmax.f32 %v4208_v9, 0.0  ;;  %v4032_v0 = vadd.f32 %v4031_v41, %v3943_v22 }
 0x8c1   :  { %v4120_v47 = vpop.f32.mrf.mxu2  ;;  %v4034_v15 = vpop.f32.mrf.mxu1 }
 0x8c2   :  { %4460 = vst [vmem:[#allocation10 + $0x398] sm:$0xff] %v4332_v61  ;;  %v4121_v32 = vadd.f32 %v4120_v47, %v4032_v0 }
 0x8c5   :  { %v4209_v13 = vpop.f32.mrf.mxu3  ;;  %v3945_v57 = vpop.f32.mrf.mxu0 }
 0x8c6   :  { %v4210_v27 = vadd.f32 %v4209_v13, %v4121_v32  ;;  %v3946_v38 = vadd.f32 %v3945_v57, %v5526_v5 }
 0x8c8   :  { %v4336_v55 = vmax.f32 %v4210_v27, 0.0  ;;  %v4035_v45 = vadd.f32 %v4034_v15, %v3946_v38 }
 0x8c9   :  { %v4123_v12 = vpop.f32.mrf.mxu2  ;;  %v4036_v46 = vpop.f32.mrf.mxu1 }
 0x8ca   :  { %4464 = vst [vmem:[#allocation10 + $0x3b8] sm:$0xff] %v4336_v55  ;;  %v4124_v28 = vadd.f32 %v4123_v12, %v4035_v45 }
 0x8cd   :  { %v4212_v35 = vpop.f32.mrf.mxu3  ;;  %v3947_v62 = vpop.f32.mrf.mxu0 }
 0x8ce   :  { %v4213_v59 = vadd.f32 %v4212_v35, %v4124_v28  ;;  %v3948_v58 = vadd.f32 %v3947_v62, %v5526_v5 }
 0x8d0   :  { %v4340_v53 = vmax.f32 %v4213_v59, 0.0  ;;  %v4037_v4 = vadd.f32 %v4036_v46, %v3948_v58 }
 0x8d1   :  { %v4125_v18 = vpop.f32.mrf.mxu2 }
 0x8d2   :  { %4468 = vst [vmem:[#allocation10 + $0x3d8] sm:$0xff] %v4340_v53  ;;  %v4126_v31 = vadd.f32 %v4125_v18, %v4037_v4 }
 0x8d5   :  { %v4214_v25 = vpop.f32.mrf.mxu3 }
 0x8d6   :  { %v4215_v19 = vadd.f32 %v4214_v25, %v4126_v31 }
 0x8d8   :  { %v4344_v49 = vmax.f32 %v4215_v19, 0.0 }
 0x8da   :  { %4472 = vst [vmem:[#allocation10 + $0x3f8] sm:$0xff] %v4344_v49 }
 0x8db   :  { %4485 = dma.vmem_to_hbm [thread:$0]  %s4478_s8, 16384, %s4480_s11, [#allocation4], %s4632_s23, %s4632_s23, %s4633_s24  }
 0x8dc   :  { %4629 = dma.done.wait [#allocation4], 16384  }
 0x8dd   :  { %4630 = vsyncadd [#allocation4], 4294950912 }
 0x8de   :  { %4490 = vsyncpa [#allocation3], 1 }
 0x8df   :  { %4491 = vsyncpa [#allocation6], 1 }
 0x8e0   :  { %4492 = vsyncpa [#allocation9], 1 }
 0x8e1   :  { %4493 = vsyncpa [#allocation4], 1 }

</bundles_post_ra>
